<compile_context>
chip_gen: v5e
topology: v5e:2x2
jax: 0.10.0
libtpu: 0.0.40
codegen_flags: <defaults>
</compile_context>

<pallas_src>
import functools

import jax
import jax.numpy as jnp
import numpy as np
from jax.experimental import pallas as pl
from jax.experimental.pallas import tpu as pltpu

EPS = 1.1920929e-07  # torch.finfo(torch.float32).eps (nn.RMSNorm(eps=None))


def _rms(v):
    """RMSNorm without affine weight (matches nn.RMSNorm(elementwise_affine=False))."""
    return v * jax.lax.rsqrt(jnp.mean(v * v, axis=-1, keepdims=True) + EPS)


def _pick_batch_tile(B, S, target_tokens=256):
    """Batch-tile (divisor of B) per grid step.

    Bigger token tiles (Bt*S) fill the MXU rows (128 on v5e, 256 on v6e/v7x) and
    amortise per-layer weight DMA over more tokens.  Among tile sizes that reach the
    token target, prefer one leaving an even number of batch tiles so the v7x
    megacore (2 TCs) gets balanced work.  If nothing reaches the target, take the
    whole batch in one tile (weights streamed exactly once).
    """
    divisors = [d for d in range(1, B + 1) if B % d == 0]
    reaching = [d for d in divisors if d * S >= target_tokens]
    if not reaching:
        return B
    even = [d for d in reaching if (B // d) % 2 == 0]
    return min(even) if even else min(reaching)


def _vmem_limit_bytes(D, mult, out_dim, tokens, num_heads, seq):
    """Scoped-VMEM request derived from actual buffer sizes (generation-aware:
    leaves headroom on v7x's 64 MiB physical VMEM instead of a blanket 48 MiB)."""
    bf, f4 = 2, 4
    w_bytes = (D * 3 * D + D * D + D * 2 * mult * D + mult * D * D + D * out_dim) * bf
    b_bytes = (3 * D + 2 * mult * D + 6 * D + out_dim) * f4
    io_bytes = tokens * (2 * D + out_dim) * f4
    inter = tokens * (3 * D + 2 * mult * D + 4 * D) * f4 + num_heads * tokens * seq * f4
    est = 2 * (w_bytes + b_bytes) + 2 * io_bytes + 2 * inter + (8 << 20)
    return max(24 << 20, min(est, 48 << 20))


# --------------------------------------------------------------------------- #
#  Fused transformer kernel.  grid = (batch_tile, layer)
#  Output 0 : resident activation accumulator (aliased with the flattened input)
#  Output 1 : final head output, written only at the last layer.
#  NOTE: both output block indices depend only on the batch-tile axis, so they stay
#  VMEM-resident across the (inner) layer axis and are written back exactly once per
#  batch tile.  The grid order (batch outer, layers inner) and the x<->acc aliasing
#  both rely on this -- do not reorder the grid without revisiting them.
# --------------------------------------------------------------------------- #
def _transformer_kernel(H, S, MULT,
                        x_ref,
                        wqkv_ref, bqkv_ref, wan_ref, wao_ref, bao_ref, gsa_ref,
                        w1_ref, b1_ref, w2_ref, b2_ref, gff_ref,
                        wfn_ref, wout_ref, bout_ref,
                        acc_ref, y_ref):
    TT, D = x_ref.shape              # TT = Bt * S tokens in this tile
    Bt = TT // S
    HD = D // H
    layer = pl.program_id(1)
    num_layers = pl.num_programs(1)
    bf16 = jnp.bfloat16

    # Seed the resident accumulator from the input at the first layer.
    @pl.when(layer == 0)
    def _():
        acc_ref[...] = x_ref[...]

    cur = acc_ref[...]                                   # (TT, D) f32

    # ------------- self-attention residual: x + gate * Attn(RMS(x)) -------------
    h = _rms(cur)
    qkv = jnp.dot(h.astype(bf16), wqkv_ref[...],
                  preferred_element_type=jnp.float32) + bqkv_ref[...]   # (TT, 3D) f32

    def split_heads(off):
        # Lane slices + stack (proven Mosaic lowering; lane-splitting reshapes are
        # not), then a trivial leading/sublane regroup (S % 8 == 0) that folds the
        # batch into the head batch axis.
        t = jnp.stack([qkv[:, off + i * HD: off + (i + 1) * HD] for i in range(H)],
                      axis=0)                            # (H, TT, HD)
        return t.reshape(H * Bt, S, HD)                  # (H*Bt, S, HD)

    q = split_heads(0)
    k = split_heads(D)
    v = split_heads(2 * D)

    # QK-RMSNorm over the head dim; fold 1/sqrt(HD) into q; bf16 operands for the MXU.
    qn = (_rms(q) * (HD ** -0.5)).astype(bf16)
    kn = _rms(k).astype(bf16)

    # Batched attention: single batch dim = (head, batch-element).
    s = jnp.einsum('bqd,bkd->bqk', qn, kn,
                   preferred_element_type=jnp.float32)   # (H*Bt, S, S)
    # No max-subtraction: QK-RMSNorm + folded 1/sqrt(HD) bound |s| <= sqrt(HD) (~4
    # here), so exp() is safe.  Restore the row-max if the QK-norm is ever disabled.
    p = jnp.exp(s)
    p = p * pl.reciprocal(jnp.sum(p, axis=-1, keepdims=True), approx=True)
    o = jnp.einsum('bqk,bkd->bqd', p.astype(bf16), v.astype(bf16),
                   preferred_element_type=jnp.float32)   # (H*Bt, S, HD)
    o = o.reshape(H, TT, HD)                             # trivial regroup back
    a = jnp.concatenate([o[i] for i in range(H)], axis=-1)   # (TT, D)

    # Attention.final_norm (affine RMSNorm) + Attention.attn_out
    a = _rms(a) * wan_ref[...]
    a = jnp.dot(a.astype(bf16), wao_ref[...],
                preferred_element_type=jnp.float32) + bao_ref[...]
    cur = cur + a * gsa_ref[...]                          # gated residual

    # ------------- SwiGLU feed-forward residual: x + gate * FFN(RMS(x)) ---------
    h = _rms(cur)
    h12 = jnp.dot(h.astype(bf16), w1_ref[...],
                  preferred_element_type=jnp.float32) + b1_ref[...]     # (TT, 2*MULT*D)
    x1 = h12[:, :MULT * D]
    x2 = h12[:, MULT * D:]
    g = (x1 * jax.nn.sigmoid(x1)) * x2                    # SiLU(x1) * x2 (f32 VPU/EUP)
    f = jnp.dot(g.astype(bf16), w2_ref[...],
                preferred_element_type=jnp.float32) + b2_ref[...]
    cur = cur + f * gff_ref[...]                          # gated residual

    acc_ref[...] = cur

    # ------------- fused final RMSNorm + output Linear (last layer only) --------
    @pl.when(layer == num_layers - 1)
    def _():
        hh = _rms(cur) * wfn_ref[...]
        y_ref[...] = jnp.dot(hh.astype(bf16), wout_ref[...],
                             preferred_element_type=jnp.float32) + bout_ref[...]


# --------------------------------------------------------------------------- #
#  Wrapper
# --------------------------------------------------------------------------- #
def transformer_forward(x, p, *, num_heads, mult):
    B, S, D = x.shape
    assert D % num_heads == 0
    assert S % 8 == 0, "sequence length must be a multiple of the 8-sublane tile"
    L = p['wqkv_t'].shape[0]
    OUT = p['wout_t'].shape[-1]

    Bt = _pick_batch_tile(B, S)
    n_btiles = B // Bt
    TT = Bt * S                                    # tokens per grid step

    # Lane-dense (tokens, D) slab; each tile holds Bt whole sequences.
    x_flat = x.reshape(B * S, D)

    kernel = functools.partial(_transformer_kernel, num_heads, S, mult)

    grid_spec = pltpu.PrefetchScalarGridSpec(
        num_scalar_prefetch=0,
        grid=(n_btiles, L),   # batch tiles ("parallel", megacore) x layers ("arbitrary")
        in_specs=[
            pl.BlockSpec((TT, D), lambda b, l: (b, 0)),                       # x (flattened)
            pl.BlockSpec((None, D, 3 * D), lambda b, l: (l, 0, 0)),           # wqkv_t (bf16)
            pl.BlockSpec((None, 1, 3 * D), lambda b, l: (l, 0, 0)),           # bqkv
            pl.BlockSpec((None, 1, D), lambda b, l: (l, 0, 0)),               # attn final_norm w
            pl.BlockSpec((None, D, D), lambda b, l: (l, 0, 0)),               # wao_t (bf16)
            pl.BlockSpec((None, 1, D), lambda b, l: (l, 0, 0)),               # bao
            pl.BlockSpec((None, 1, D), lambda b, l: (l, 0, 0)),               # gate_sa
            pl.BlockSpec((None, D, 2 * mult * D), lambda b, l: (l, 0, 0)),    # w1_t (bf16)
            pl.BlockSpec((None, 1, 2 * mult * D), lambda b, l: (l, 0, 0)),    # b1
            pl.BlockSpec((None, mult * D, D), lambda b, l: (l, 0, 0)),        # w2_t (bf16)
            pl.BlockSpec((None, 1, D), lambda b, l: (l, 0, 0)),               # b2
            pl.BlockSpec((None, 1, D), lambda b, l: (l, 0, 0)),               # gate_ff
            pl.BlockSpec((1, D), lambda b, l: (0, 0)),                        # final_norm w
            pl.BlockSpec((D, OUT), lambda b, l: (0, 0)),                      # wout_t (bf16)
            pl.BlockSpec((1, OUT), lambda b, l: (0, 0)),                      # bout
        ],
        out_specs=[
            pl.BlockSpec((TT, D), lambda b, l: (b, 0)),     # resident activations
            pl.BlockSpec((TT, OUT), lambda b, l: (b, 0)),   # final output
        ],
    )

    vmem_limit = _vmem_limit_bytes(D, mult, OUT, TT, num_heads, S)

    _, y = pl.pallas_call(
        kernel,
        out_shape=(jax.ShapeDtypeStruct((B * S, D), jnp.float32),
                   jax.ShapeDtypeStruct((B * S, OUT), jnp.float32)),
        grid_spec=grid_spec,
        # x buffer doubles as the activation accumulator; safe only while the batch
        # axis is outer and the layer axis is inner (see kernel note).
        input_output_aliases={0: 0},
        compiler_params=pltpu.CompilerParams(
            dimension_semantics=("parallel", "arbitrary"),
            vmem_limit_bytes=vmem_limit),
    )(x_flat, p['wqkv_t'], p['bqkv'], p['wan'], p['wao_t'], p['bao'], p['gsa'],
      p['w1_t'], p['b1'], p['w2_t'], p['b2'], p['gff'],
      p['w_fn'], p['wout_t'], p['bout'])
    return y.reshape(B, S, OUT)


# --------------------------------------------------------------------------- #
#  Deterministic synthetic parameters (shapes from Transformer.__init__)
#  Matmul weights in bf16 (mixed precision), norms/biases/gates in f32.
# --------------------------------------------------------------------------- #
def init_params(key, L, D, mult, out_dim):
    ks = jax.random.split(key, 14)
    f32, bf16 = jnp.float32, jnp.bfloat16
    return {
        'wqkv_t': (jax.random.normal(ks[0], (L, D, 3 * D), f32) * 0.05).astype(bf16),
        'bqkv':   jax.random.normal(ks[1], (L, 1, 3 * D), f32) * 0.01,
        'wan':    1.0 + 0.01 * jax.random.normal(ks[2], (L, 1, D), f32),
        'wao_t':  (jax.random.normal(ks[3], (L, D, D), f32) * 0.05).astype(bf16),
        'bao':    jax.random.normal(ks[4], (L, 1, D), f32) * 0.01,
        # NOTE: PyTorch Residual zero-inits the gates (block bypass at init); nonzero
        # deterministic values are used so the attention/FFN hot path is exercised.
        'gsa':    jax.random.normal(ks[5], (L, 1, D), f32) * 0.5,
        'w1_t':   (jax.random.normal(ks[6], (L, D, 2 * mult * D), f32) * 0.05).astype(bf16),
        'b1':     jax.random.normal(ks[7], (L, 1, 2 * mult * D), f32) * 0.01,
        'w2_t':   (jax.random.normal(ks[8], (L, mult * D, D), f32) * 0.05).astype(bf16),
        'b2':     jax.random.normal(ks[9], (L, 1, D), f32) * 0.01,
        'gff':    jax.random.normal(ks[10], (L, 1, D), f32) * 0.5,
        'w_fn':   1.0 + 0.01 * jax.random.normal(ks[11], (1, D), f32),
        'wout_t': (jax.random.normal(ks[12], (D, out_dim), f32) * 0.05).astype(bf16),
        'bout':   jax.random.normal(ks[13], (1, out_dim), f32) * 0.01,
    }


# --------------------------------------------------------------------------- #
#  Pure-JAX reference (mirrors the PyTorch forward math in f32 / HIGHEST,
#  using the same bf16-stored weights upcast to f32).
# --------------------------------------------------------------------------- #
def reference_forward(x, p, H, mult):
    B, S, D = x.shape
    L = p['wqkv_t'].shape[0]
    HD = D // H
    hi = jax.lax.Precision.HIGHEST
    f32 = jnp.float32
    cur = x
    for l in range(L):
        h = _rms(cur)
        qkv = jnp.einsum('bsd,de->bse', h, p['wqkv_t'][l].astype(f32),
                         precision=hi) + p['bqkv'][l]
        q, k, v = qkv[..., :D], qkv[..., D:2 * D], qkv[..., 2 * D:]
        q = _rms(q.reshape(B, S, H, HD))
        k = _rms(k.reshape(B, S, H, HD))
        v = v.reshape(B, S, H, HD)
        s = jnp.einsum('bqhd,bkhd->bhqk', q, k, precision=hi) / jnp.sqrt(HD)
        attn = jax.nn.softmax(s, axis=-1)
        a = jnp.einsum('bhqk,bkhd->bqhd', attn, v, precision=hi).reshape(B, S, D)
        a = _rms(a) * p['wan'][l]
        a = jnp.einsum('bsd,de->bse', a, p['wao_t'][l].astype(f32),
                       precision=hi) + p['bao'][l]
        cur = cur + a * p['gsa'][l]
        h = _rms(cur)
        h12 = jnp.einsum('bsd,de->bse', h, p['w1_t'][l].astype(f32),
                         precision=hi) + p['b1'][l]
        x1, x2 = h12[..., :mult * D], h12[..., mult * D:]
        g = jax.nn.silu(x1) * x2
        f = jnp.einsum('bsm,md->bsd', g, p['w2_t'][l].astype(f32),
                       precision=hi) + p['b2'][l]
        cur = cur + f * p['gff'][l]
    h = _rms(cur) * p['w_fn'][0]
    return jnp.einsum('bsd,do->bso', h, p['wout_t'].astype(f32),
                      precision=hi) + p['bout'][0]


if __name__ == "__main__":
    B, S, D = 8, 8, 128         # batch, sequence, model dim (module default dim=128)
    H, MULT, L = 8, 2, 2        # Attention default num_heads=8; SwiGLU mult=2; 2 layers
    OUT = D                     # outp_dim defaults to dim

    key = jax.random.PRNGKey(0)
    kx, kp = jax.random.split(key)
    x = jax.random.normal(kx, (B, S, D), jnp.float32)
    params = init_params(kp, L, D, MULT, OUT)

    fwd = jax.jit(functools.partial(transformer_forward, num_heads=H, mult=MULT))
    out = jax.block_until_ready(fwd(x, params))

    ref = reference_forward(x, params, H, MULT)
    assert out.shape == (B, S, OUT)
    # Tolerance derived for bf16 mixed precision: bf16 LHS rounding (~2^-9 rel) through
    # ~9 matmul stages (now incl. bf16 attention operands) plus approx-recip softmax.
    np.testing.assert_allclose(np.asarray(out), np.asarray(ref), rtol=3e-2, atol=2e-2)

    # TODO(synk): packed/flash attention paths (pack/unpack, culens/maxlen), registers,
    # abs/rotary positional encodings, masks/attn_bias/ctxt modulation, dropout and the
    # decoder (cross-attention) blocks are not exercised by the default forward
    # configuration and are not implemented here.
    print("KERNEL_OK")
</pallas_src>

<mosaic_0001>
module attributes {stable_mosaic.version = 11 : i64} {
  func.func @_transformer_kernel(%arg0: i32, %arg1: i32, %arg2: memref<64x128xf32, #tpu.memory_space<vmem>>, %arg3: memref<1x128x384xbf16, #tpu.memory_space<vmem>>, %arg4: memref<1x1x384xf32, #tpu.memory_space<vmem>>, %arg5: memref<1x1x128xf32, #tpu.memory_space<vmem>>, %arg6: memref<1x128x128xbf16, #tpu.memory_space<vmem>>, %arg7: memref<1x1x128xf32, #tpu.memory_space<vmem>>, %arg8: memref<1x1x128xf32, #tpu.memory_space<vmem>>, %arg9: memref<1x128x512xbf16, #tpu.memory_space<vmem>>, %arg10: memref<1x1x512xf32, #tpu.memory_space<vmem>>, %arg11: memref<1x256x128xbf16, #tpu.memory_space<vmem>>, %arg12: memref<1x1x128xf32, #tpu.memory_space<vmem>>, %arg13: memref<1x1x128xf32, #tpu.memory_space<vmem>>, %arg14: memref<1x128xf32, #tpu.memory_space<vmem>>, %arg15: memref<128x128xbf16, #tpu.memory_space<vmem>>, %arg16: memref<1x128xf32, #tpu.memory_space<vmem>>, %arg17: memref<64x128xf32, #tpu.memory_space<vmem>>, %arg18: memref<64x128xf32, #tpu.memory_space<vmem>>) attributes {dimension_semantics = [#tpu.dimension_semantics<parallel>, #tpu.dimension_semantics<arbitrary>], iteration_bounds = array<i64: 1, 2>, scalar_prefetch = 0 : i64, scratch_operands = 0 : i64, tpu.core_type = #tpu.core_type<tc>, window_params = [{transform_indices = @transform_0, window_bounds = array<i64: 64, 128>}, {transform_indices = @transform_1, window_bounds = array<i64: 1, 128, 384>}, {transform_indices = @transform_2, window_bounds = array<i64: 1, 1, 384>}, {transform_indices = @transform_3, window_bounds = array<i64: 1, 1, 128>}, {transform_indices = @transform_4, window_bounds = array<i64: 1, 128, 128>}, {transform_indices = @transform_5, window_bounds = array<i64: 1, 1, 128>}, {transform_indices = @transform_6, window_bounds = array<i64: 1, 1, 128>}, {transform_indices = @transform_7, window_bounds = array<i64: 1, 128, 512>}, {transform_indices = @transform_8, window_bounds = array<i64: 1, 1, 512>}, {transform_indices = @transform_9, window_bounds = array<i64: 1, 256, 128>}, {transform_indices = @transform_10, window_bounds = array<i64: 1, 1, 128>}, {transform_indices = @transform_11, window_bounds = array<i64: 1, 1, 128>}, {pipeline_mode = #tpu.pipeline_mode<synchronous>, transform_indices = @transform_12, window_bounds = array<i64: 1, 128>}, {pipeline_mode = #tpu.pipeline_mode<synchronous>, transform_indices = @transform_13, window_bounds = array<i64: 128, 128>}, {pipeline_mode = #tpu.pipeline_mode<synchronous>, transform_indices = @transform_14, window_bounds = array<i64: 1, 128>}, {transform_indices = @transform_15, window_bounds = array<i64: 64, 128>}, {transform_indices = @transform_16, window_bounds = array<i64: 64, 128>}]} {
    %c0_i32 = arith.constant 0 : i32
    %0 = arith.cmpi eq, %arg1, %c0_i32 : i32
    %1 = arith.extui %0 : i1 to i32
    %c0_i32_0 = arith.constant 0 : i32
    %2 = arith.cmpi ne, %1, %c0_i32_0 : i32
    scf.if %2 {
      %c0_61 = arith.constant 0 : index
      %c0_62 = arith.constant 0 : index
      %199 = vector.load %arg2[%c0_61, %c0_62] : memref<64x128xf32, #tpu.memory_space<vmem>>, vector<64x128xf32>
      %c0_63 = arith.constant 0 : index
      %c0_64 = arith.constant 0 : index
      %200 = vector.load %arg17[%c0_63, %c0_64] : memref<64x128xf32, #tpu.memory_space<vmem>>, vector<64x128xf32>
      tpu.vector_store %arg17[%c0_63, %c0_64], %199 {strides = array<i32>} : memref<64x128xf32, #tpu.memory_space<vmem>>, vector<64x128xf32>,
    } else {
    }
    %c0 = arith.constant 0 : index
    %c0_1 = arith.constant 0 : index
    %3 = vector.load %arg17[%c0, %c0_1] : memref<64x128xf32, #tpu.memory_space<vmem>>, vector<64x128xf32>
    %4 = arith.mulf %3, %3 : vector<64x128xf32>
    %cst = arith.constant dense<0.000000e+00> : vector<64xf32>
    %5 = vector.multi_reduction <add>, %4, %cst [1] : vector<64x128xf32> to vector<64xf32>
    %6 = vector.shape_cast %5 : vector<64xf32> to vector<64x1xf32>
    %cst_2 = arith.constant 1.280000e+02 : f32
    %7 = vector.broadcast %cst_2 : f32 to vector<64x1xf32>
    %8 = arith.divf %6, %7 : vector<64x1xf32>
    %cst_3 = arith.constant 1.1920929E-7 : f32
    %9 = vector.broadcast %cst_3 : f32 to vector<64x1xf32>
    %10 = arith.addf %8, %9 : vector<64x1xf32>
    %11 = math.rsqrt %10 : vector<64x1xf32>
    %12 = vector.broadcast %11 : vector<64x1xf32> to vector<64x128xf32>
    %13 = arith.mulf %3, %12 : vector<64x128xf32>
    %14 = arith.truncf %13 : vector<64x128xf32> to vector<64x128xbf16>
    %c0_4 = arith.constant 0 : index
    %c0_5 = arith.constant 0 : index
    %c0_6 = arith.constant 0 : index
    %15 = vector.load %arg3[%c0_4, %c0_5, %c0_6] : memref<1x128x384xbf16, #tpu.memory_space<vmem>>, vector<1x128x384xbf16>
    %16 = vector.shape_cast %15 : vector<1x128x384xbf16> to vector<128x384xbf16>
    %cst_7 = arith.constant dense<0.000000e+00> : vector<64x384xf32>
    %17 = tpu.matmul %14, %16, %cst_7 {dimension_numbers = #tpu.dot_dimension_numbers<[1], [0], [0], [1], [0, 0, 1, 1], [], []>} : vector<64x128xbf16>, vector<128x384xbf16>, vector<64x384xf32> -> vector<64x384xf32>
    %c0_8 = arith.constant 0 : index
    %c0_9 = arith.constant 0 : index
    %c0_10 = arith.constant 0 : index
    %18 = vector.load %arg4[%c0_8, %c0_9, %c0_10] : memref<1x1x384xf32, #tpu.memory_space<vmem>>, vector<1x1x384xf32>
    %19 = vector.shape_cast %18 : vector<1x1x384xf32> to vector<1x384xf32>
    %20 = vector.broadcast %19 : vector<1x384xf32> to vector<64x384xf32>
    %21 = arith.addf %17, %20 : vector<64x384xf32>
    %22 = vector.extract_strided_slice %21 {offsets = [0, 0], sizes = [64, 16], strides = [1, 1]} : vector<64x384xf32> to vector<64x16xf32>
    %23 = vector.extract_strided_slice %21 {offsets = [0, 16], sizes = [64, 16], strides = [1, 1]} : vector<64x384xf32> to vector<64x16xf32>
    %24 = vector.extract_strided_slice %21 {offsets = [0, 32], sizes = [64, 16], strides = [1, 1]} : vector<64x384xf32> to vector<64x16xf32>
    %25 = vector.extract_strided_slice %21 {offsets = [0, 48], sizes = [64, 16], strides = [1, 1]} : vector<64x384xf32> to vector<64x16xf32>
    %26 = vector.extract_strided_slice %21 {offsets = [0, 64], sizes = [64, 16], strides = [1, 1]} : vector<64x384xf32> to vector<64x16xf32>
    %27 = vector.extract_strided_slice %21 {offsets = [0, 80], sizes = [64, 16], strides = [1, 1]} : vector<64x384xf32> to vector<64x16xf32>
    %28 = vector.extract_strided_slice %21 {offsets = [0, 96], sizes = [64, 16], strides = [1, 1]} : vector<64x384xf32> to vector<64x16xf32>
    %29 = vector.extract_strided_slice %21 {offsets = [0, 112], sizes = [64, 16], strides = [1, 1]} : vector<64x384xf32> to vector<64x16xf32>
    %30 = vector.shape_cast %22 : vector<64x16xf32> to vector<1x64x16xf32>
    %31 = vector.shape_cast %23 : vector<64x16xf32> to vector<1x64x16xf32>
    %32 = vector.shape_cast %24 : vector<64x16xf32> to vector<1x64x16xf32>
    %33 = vector.shape_cast %25 : vector<64x16xf32> to vector<1x64x16xf32>
    %34 = vector.shape_cast %26 : vector<64x16xf32> to vector<1x64x16xf32>
    %35 = vector.shape_cast %27 : vector<64x16xf32> to vector<1x64x16xf32>
    %36 = vector.shape_cast %28 : vector<64x16xf32> to vector<1x64x16xf32>
    %37 = vector.shape_cast %29 : vector<64x16xf32> to vector<1x64x16xf32>
    %38 = tpu.concatenate %30, %31, %32, %33, %34, %35, %36, %37 in 0 : vector<1x64x16xf32>, vector<1x64x16xf32>, vector<1x64x16xf32>, vector<1x64x16xf32>, vector<1x64x16xf32>, vector<1x64x16xf32>, vector<1x64x16xf32>, vector<1x64x16xf32> -> vector<8x64x16xf32>
    %39 = vector.shape_cast %38 : vector<8x64x16xf32> to vector<64x8x16xf32>
    %40 = vector.extract_strided_slice %21 {offsets = [0, 128], sizes = [64, 16], strides = [1, 1]} : vector<64x384xf32> to vector<64x16xf32>
    %41 = vector.extract_strided_slice %21 {offsets = [0, 144], sizes = [64, 16], strides = [1, 1]} : vector<64x384xf32> to vector<64x16xf32>
    %42 = vector.extract_strided_slice %21 {offsets = [0, 160], sizes = [64, 16], strides = [1, 1]} : vector<64x384xf32> to vector<64x16xf32>
    %43 = vector.extract_strided_slice %21 {offsets = [0, 176], sizes = [64, 16], strides = [1, 1]} : vector<64x384xf32> to vector<64x16xf32>
    %44 = vector.extract_strided_slice %21 {offsets = [0, 192], sizes = [64, 16], strides = [1, 1]} : vector<64x384xf32> to vector<64x16xf32>
    %45 = vector.extract_strided_slice %21 {offsets = [0, 208], sizes = [64, 16], strides = [1, 1]} : vector<64x384xf32> to vector<64x16xf32>
    %46 = vector.extract_strided_slice %21 {offsets = [0, 224], sizes = [64, 16], strides = [1, 1]} : vector<64x384xf32> to vector<64x16xf32>
    %47 = vector.extract_strided_slice %21 {offsets = [0, 240], sizes = [64, 16], strides = [1, 1]} : vector<64x384xf32> to vector<64x16xf32>
    %48 = vector.shape_cast %40 : vector<64x16xf32> to vector<1x64x16xf32>
    %49 = vector.shape_cast %41 : vector<64x16xf32> to vector<1x64x16xf32>
    %50 = vector.shape_cast %42 : vector<64x16xf32> to vector<1x64x16xf32>
    %51 = vector.shape_cast %43 : vector<64x16xf32> to vector<1x64x16xf32>
    %52 = vector.shape_cast %44 : vector<64x16xf32> to vector<1x64x16xf32>
    %53 = vector.shape_cast %45 : vector<64x16xf32> to vector<1x64x16xf32>
    %54 = vector.shape_cast %46 : vector<64x16xf32> to vector<1x64x16xf32>
    %55 = vector.shape_cast %47 : vector<64x16xf32> to vector<1x64x16xf32>
    %56 = tpu.concatenate %48, %49, %50, %51, %52, %53, %54, %55 in 0 : vector<1x64x16xf32>, vector<1x64x16xf32>, vector<1x64x16xf32>, vector<1x64x16xf32>, vector<1x64x16xf32>, vector<1x64x16xf32>, vector<1x64x16xf32>, vector<1x64x16xf32> -> vector<8x64x16xf32>
    %57 = vector.shape_cast %56 : vector<8x64x16xf32> to vector<64x8x16xf32>
    %58 = vector.extract_strided_slice %21 {offsets = [0, 256], sizes = [64, 16], strides = [1, 1]} : vector<64x384xf32> to vector<64x16xf32>
    %59 = vector.extract_strided_slice %21 {offsets = [0, 272], sizes = [64, 16], strides = [1, 1]} : vector<64x384xf32> to vector<64x16xf32>
    %60 = vector.extract_strided_slice %21 {offsets = [0, 288], sizes = [64, 16], strides = [1, 1]} : vector<64x384xf32> to vector<64x16xf32>
    %61 = vector.extract_strided_slice %21 {offsets = [0, 304], sizes = [64, 16], strides = [1, 1]} : vector<64x384xf32> to vector<64x16xf32>
    %62 = vector.extract_strided_slice %21 {offsets = [0, 320], sizes = [64, 16], strides = [1, 1]} : vector<64x384xf32> to vector<64x16xf32>
    %63 = vector.extract_strided_slice %21 {offsets = [0, 336], sizes = [64, 16], strides = [1, 1]} : vector<64x384xf32> to vector<64x16xf32>
    %64 = vector.extract_strided_slice %21 {offsets = [0, 352], sizes = [64, 16], strides = [1, 1]} : vector<64x384xf32> to vector<64x16xf32>
    %65 = vector.extract_strided_slice %21 {offsets = [0, 368], sizes = [64, 16], strides = [1, 1]} : vector<64x384xf32> to vector<64x16xf32>
    %66 = vector.shape_cast %58 : vector<64x16xf32> to vector<1x64x16xf32>
    %67 = vector.shape_cast %59 : vector<64x16xf32> to vector<1x64x16xf32>
    %68 = vector.shape_cast %60 : vector<64x16xf32> to vector<1x64x16xf32>
    %69 = vector.shape_cast %61 : vector<64x16xf32> to vector<1x64x16xf32>
    %70 = vector.shape_cast %62 : vector<64x16xf32> to vector<1x64x16xf32>
    %71 = vector.shape_cast %63 : vector<64x16xf32> to vector<1x64x16xf32>
    %72 = vector.shape_cast %64 : vector<64x16xf32> to vector<1x64x16xf32>
    %73 = vector.shape_cast %65 : vector<64x16xf32> to vector<1x64x16xf32>
    %74 = tpu.concatenate %66, %67, %68, %69, %70, %71, %72, %73 in 0 : vector<1x64x16xf32>, vector<1x64x16xf32>, vector<1x64x16xf32>, vector<1x64x16xf32>, vector<1x64x16xf32>, vector<1x64x16xf32>, vector<1x64x16xf32>, vector<1x64x16xf32> -> vector<8x64x16xf32>
    %75 = vector.shape_cast %74 : vector<8x64x16xf32> to vector<64x8x16xf32>
    %76 = arith.mulf %39, %39 : vector<64x8x16xf32>
    %cst_11 = arith.constant dense<0.000000e+00> : vector<64x8xf32>
    %77 = vector.multi_reduction <add>, %76, %cst_11 [2] : vector<64x8x16xf32> to vector<64x8xf32>
    %78 = vector.shape_cast %77 : vector<64x8xf32> to vector<64x8x1xf32>
    %cst_12 = arith.constant 1.600000e+01 : f32
    %79 = vector.broadcast %cst_12 : f32 to vector<64x8x1xf32>
    %80 = arith.divf %78, %79 : vector<64x8x1xf32>
    %cst_13 = arith.constant 1.1920929E-7 : f32
    %81 = vector.broadcast %cst_13 : f32 to vector<64x8x1xf32>
    %82 = arith.addf %80, %81 : vector<64x8x1xf32>
    %83 = math.rsqrt %82 : vector<64x8x1xf32>
    %84 = vector.broadcast %83 : vector<64x8x1xf32> to vector<64x8x16xf32>
    %85 = arith.mulf %39, %84 : vector<64x8x16xf32>
    %cst_14 = arith.constant 2.500000e-01 : f32
    %86 = vector.broadcast %cst_14 : f32 to vector<64x8x16xf32>
    %87 = arith.mulf %85, %86 : vector<64x8x16xf32>
    %88 = arith.truncf %87 : vector<64x8x16xf32> to vector<64x8x16xbf16>
    %89 = arith.mulf %57, %57 : vector<64x8x16xf32>
    %cst_15 = arith.constant dense<0.000000e+00> : vector<64x8xf32>
    %90 = vector.multi_reduction <add>, %89, %cst_15 [2] : vector<64x8x16xf32> to vector<64x8xf32>
    %91 = vector.shape_cast %90 : vector<64x8xf32> to vector<64x8x1xf32>
    %cst_16 = arith.constant 1.600000e+01 : f32
    %92 = vector.broadcast %cst_16 : f32 to vector<64x8x1xf32>
    %93 = arith.divf %91, %92 : vector<64x8x1xf32>
    %cst_17 = arith.constant 1.1920929E-7 : f32
    %94 = vector.broadcast %cst_17 : f32 to vector<64x8x1xf32>
    %95 = arith.addf %93, %94 : vector<64x8x1xf32>
    %96 = math.rsqrt %95 : vector<64x8x1xf32>
    %97 = vector.broadcast %96 : vector<64x8x1xf32> to vector<64x8x16xf32>
    %98 = arith.mulf %57, %97 : vector<64x8x16xf32>
    %99 = arith.truncf %98 : vector<64x8x16xf32> to vector<64x8x16xbf16>
    "tpu.trace_start"() <{level = 10 : i32, message = "bqd,bkd->bqk"}> : () -> ()
    %cst_18 = arith.constant dense<0.000000e+00> : vector<64x8x8xf32>
    %100 = tpu.matmul %88, %99, %cst_18 {dimension_numbers = #tpu.dot_dimension_numbers<[2], [2], [1], [1], [0, 0, 0, 1, 1, 1], [0], [0]>} : vector<64x8x16xbf16>, vector<64x8x16xbf16>, vector<64x8x8xf32> -> vector<64x8x8xf32>
    "tpu.trace_stop"() : () -> ()
    %101 = math.exp %100 : vector<64x8x8xf32>
    %cst_19 = arith.constant dense<0.000000e+00> : vector<64x8xf32>
    %102 = vector.multi_reduction <add>, %101, %cst_19 [2] : vector<64x8x8xf32> to vector<64x8xf32>
    %103 = vector.shape_cast %102 : vector<64x8xf32> to vector<64x8x1xf32>
    %104 = tpu.reciprocal %103 {approx = true} : vector<64x8x1xf32> -> vector<64x8x1xf32>
    %105 = vector.broadcast %104 : vector<64x8x1xf32> to vector<64x8x8xf32>
    %106 = arith.mulf %101, %105 : vector<64x8x8xf32>
    %107 = arith.truncf %106 : vector<64x8x8xf32> to vector<64x8x8xbf16>
    %108 = arith.truncf %75 : vector<64x8x16xf32> to vector<64x8x16xbf16>
    "tpu.trace_start"() <{level = 10 : i32, message = "bqk,bkd->bqd"}> : () -> ()
    %cst_20 = arith.constant dense<0.000000e+00> : vector<64x8x16xf32>
    %109 = tpu.matmul %107, %108, %cst_20 {dimension_numbers = #tpu.dot_dimension_numbers<[2], [1], [1], [2], [0, 0, 0, 1, 1, 2], [0], [0]>} : vector<64x8x8xbf16>, vector<64x8x16xbf16>, vector<64x8x16xf32> -> vector<64x8x16xf32>
    "tpu.trace_stop"() : () -> ()
    %110 = vector.shape_cast %109 : vector<64x8x16xf32> to vector<8x64x16xf32>
    %111 = vector.extract_strided_slice %110 {offsets = [0, 0, 0], sizes = [1, 64, 16], strides = [1, 1, 1]} : vector<8x64x16xf32> to vector<1x64x16xf32>
    %112 = vector.shape_cast %111 : vector<1x64x16xf32> to vector<64x16xf32>
    %113 = vector.extract_strided_slice %110 {offsets = [1, 0, 0], sizes = [1, 64, 16], strides = [1, 1, 1]} : vector<8x64x16xf32> to vector<1x64x16xf32>
    %114 = vector.shape_cast %113 : vector<1x64x16xf32> to vector<64x16xf32>
    %115 = vector.extract_strided_slice %110 {offsets = [2, 0, 0], sizes = [1, 64, 16], strides = [1, 1, 1]} : vector<8x64x16xf32> to vector<1x64x16xf32>
    %116 = vector.shape_cast %115 : vector<1x64x16xf32> to vector<64x16xf32>
    %117 = vector.extract_strided_slice %110 {offsets = [3, 0, 0], sizes = [1, 64, 16], strides = [1, 1, 1]} : vector<8x64x16xf32> to vector<1x64x16xf32>
    %118 = vector.shape_cast %117 : vector<1x64x16xf32> to vector<64x16xf32>
    %119 = vector.extract_strided_slice %110 {offsets = [4, 0, 0], sizes = [1, 64, 16], strides = [1, 1, 1]} : vector<8x64x16xf32> to vector<1x64x16xf32>
    %120 = vector.shape_cast %119 : vector<1x64x16xf32> to vector<64x16xf32>
    %121 = vector.extract_strided_slice %110 {offsets = [5, 0, 0], sizes = [1, 64, 16], strides = [1, 1, 1]} : vector<8x64x16xf32> to vector<1x64x16xf32>
    %122 = vector.shape_cast %121 : vector<1x64x16xf32> to vector<64x16xf32>
    %123 = vector.extract_strided_slice %110 {offsets = [6, 0, 0], sizes = [1, 64, 16], strides = [1, 1, 1]} : vector<8x64x16xf32> to vector<1x64x16xf32>
    %124 = vector.shape_cast %123 : vector<1x64x16xf32> to vector<64x16xf32>
    %125 = vector.extract_strided_slice %110 {offsets = [7, 0, 0], sizes = [1, 64, 16], strides = [1, 1, 1]} : vector<8x64x16xf32> to vector<1x64x16xf32>
    %126 = vector.shape_cast %125 : vector<1x64x16xf32> to vector<64x16xf32>
    %127 = tpu.concatenate %112, %114, %116, %118, %120, %122, %124, %126 in 1 : vector<64x16xf32>, vector<64x16xf32>, vector<64x16xf32>, vector<64x16xf32>, vector<64x16xf32>, vector<64x16xf32>, vector<64x16xf32>, vector<64x16xf32> -> vector<64x128xf32>
    %128 = arith.mulf %127, %127 : vector<64x128xf32>
    %cst_21 = arith.constant dense<0.000000e+00> : vector<64xf32>
    %129 = vector.multi_reduction <add>, %128, %cst_21 [1] : vector<64x128xf32> to vector<64xf32>
    %130 = vector.shape_cast %129 : vector<64xf32> to vector<64x1xf32>
    %cst_22 = arith.constant 1.280000e+02 : f32
    %131 = vector.broadcast %cst_22 : f32 to vector<64x1xf32>
    %132 = arith.divf %130, %131 : vector<64x1xf32>
    %cst_23 = arith.constant 1.1920929E-7 : f32
    %133 = vector.broadcast %cst_23 : f32 to vector<64x1xf32>
    %134 = arith.addf %132, %133 : vector<64x1xf32>
    %135 = math.rsqrt %134 : vector<64x1xf32>
    %136 = vector.broadcast %135 : vector<64x1xf32> to vector<64x128xf32>
    %137 = arith.mulf %127, %136 : vector<64x128xf32>
    %c0_24 = arith.constant 0 : index
    %c0_25 = arith.constant 0 : index
    %c0_26 = arith.constant 0 : index
    %138 = vector.load %arg5[%c0_24, %c0_25, %c0_26] : memref<1x1x128xf32, #tpu.memory_space<vmem>>, vector<1x1x128xf32>
    %139 = vector.shape_cast %138 : vector<1x1x128xf32> to vector<1x128xf32>
    %140 = vector.broadcast %139 : vector<1x128xf32> to vector<64x128xf32>
    %141 = arith.mulf %137, %140 : vector<64x128xf32>
    %142 = arith.truncf %141 : vector<64x128xf32> to vector<64x128xbf16>
    %c0_27 = arith.constant 0 : index
    %c0_28 = arith.constant 0 : index
    %c0_29 = arith.constant 0 : index
    %143 = vector.load %arg6[%c0_27, %c0_28, %c0_29] : memref<1x128x128xbf16, #tpu.memory_space<vmem>>, vector<1x128x128xbf16>
    %144 = vector.shape_cast %143 : vector<1x128x128xbf16> to vector<128x128xbf16>
    %cst_30 = arith.constant dense<0.000000e+00> : vector<64x128xf32>
    %145 = tpu.matmul %142, %144, %cst_30 {dimension_numbers = #tpu.dot_dimension_numbers<[1], [0], [0], [1], [0, 0, 1, 1], [], []>} : vector<64x128xbf16>, vector<128x128xbf16>, vector<64x128xf32> -> vector<64x128xf32>
    %c0_31 = arith.constant 0 : index
    %c0_32 = arith.constant 0 : index
    %c0_33 = arith.constant 0 : index
    %146 = vector.load %arg7[%c0_31, %c0_32, %c0_33] : memref<1x1x128xf32, #tpu.memory_space<vmem>>, vector<1x1x128xf32>
    %147 = vector.shape_cast %146 : vector<1x1x128xf32> to vector<1x128xf32>
    %148 = vector.broadcast %147 : vector<1x128xf32> to vector<64x128xf32>
    %149 = arith.addf %145, %148 : vector<64x128xf32>
    %c0_34 = arith.constant 0 : index
    %c0_35 = arith.constant 0 : index
    %c0_36 = arith.constant 0 : index
    %150 = vector.load %arg8[%c0_34, %c0_35, %c0_36] : memref<1x1x128xf32, #tpu.memory_space<vmem>>, vector<1x1x128xf32>
    %151 = vector.shape_cast %150 : vector<1x1x128xf32> to vector<1x128xf32>
    %152 = vector.broadcast %151 : vector<1x128xf32> to vector<64x128xf32>
    %153 = arith.mulf %149, %152 : vector<64x128xf32>
    %154 = arith.addf %3, %153 : vector<64x128xf32>
    %155 = arith.mulf %154, %154 : vector<64x128xf32>
    %cst_37 = arith.constant dense<0.000000e+00> : vector<64xf32>
    %156 = vector.multi_reduction <add>, %155, %cst_37 [1] : vector<64x128xf32> to vector<64xf32>
    %157 = vector.shape_cast %156 : vector<64xf32> to vector<64x1xf32>
    %cst_38 = arith.constant 1.280000e+02 : f32
    %158 = vector.broadcast %cst_38 : f32 to vector<64x1xf32>
    %159 = arith.divf %157, %158 : vector<64x1xf32>
    %cst_39 = arith.constant 1.1920929E-7 : f32
    %160 = vector.broadcast %cst_39 : f32 to vector<64x1xf32>
    %161 = arith.addf %159, %160 : vector<64x1xf32>
    %162 = math.rsqrt %161 : vector<64x1xf32>
    %163 = vector.broadcast %162 : vector<64x1xf32> to vector<64x128xf32>
    %164 = arith.mulf %154, %163 : vector<64x128xf32>
    %165 = arith.truncf %164 : vector<64x128xf32> to vector<64x128xbf16>
    %c0_40 = arith.constant 0 : index
    %c0_41 = arith.constant 0 : index
    %c0_42 = arith.constant 0 : index
    %166 = vector.load %arg9[%c0_40, %c0_41, %c0_42] : memref<1x128x512xbf16, #tpu.memory_space<vmem>>, vector<1x128x512xbf16>
    %167 = vector.shape_cast %166 : vector<1x128x512xbf16> to vector<128x512xbf16>
    %cst_43 = arith.constant dense<0.000000e+00> : vector<64x512xf32>
    %168 = tpu.matmul %165, %167, %cst_43 {dimension_numbers = #tpu.dot_dimension_numbers<[1], [0], [0], [1], [0, 0, 1, 1], [], []>} : vector<64x128xbf16>, vector<128x512xbf16>, vector<64x512xf32> -> vector<64x512xf32>
    %c0_44 = arith.constant 0 : index
    %c0_45 = arith.constant 0 : index
    %c0_46 = arith.constant 0 : index
    %169 = vector.load %arg10[%c0_44, %c0_45, %c0_46] : memref<1x1x512xf32, #tpu.memory_space<vmem>>, vector<1x1x512xf32>
    %170 = vector.shape_cast %169 : vector<1x1x512xf32> to vector<1x512xf32>
    %171 = vector.broadcast %170 : vector<1x512xf32> to vector<64x512xf32>
    %172 = arith.addf %168, %171 : vector<64x512xf32>
    %173 = vector.extract_strided_slice %172 {offsets = [0, 0], sizes = [64, 256], strides = [1, 1]} : vector<64x512xf32> to vector<64x256xf32>
    %174 = vector.extract_strided_slice %172 {offsets = [0, 256], sizes = [64, 256], strides = [1, 1]} : vector<64x512xf32> to vector<64x256xf32>
    %175 = arith.negf %173 : vector<64x256xf32>
    %176 = math.exp %175 : vector<64x256xf32>
    %cst_47 = arith.constant 1.000000e+00 : f32
    %177 = vector.broadcast %cst_47 : f32 to vector<64x256xf32>
    %178 = arith.addf %177, %176 : vector<64x256xf32>
    %179 = arith.divf %177, %178 : vector<64x256xf32>
    %180 = arith.mulf %173, %179 : vector<64x256xf32>
    %181 = arith.mulf %180, %174 : vector<64x256xf32>
    %182 = arith.truncf %181 : vector<64x256xf32> to vector<64x256xbf16>
    %c0_48 = arith.constant 0 : index
    %c0_49 = arith.constant 0 : index
    %c0_50 = arith.constant 0 : index
    %183 = vector.load %arg11[%c0_48, %c0_49, %c0_50] : memref<1x256x128xbf16, #tpu.memory_space<vmem>>, vector<1x256x128xbf16>
    %184 = vector.shape_cast %183 : vector<1x256x128xbf16> to vector<256x128xbf16>
    %cst_51 = arith.constant dense<0.000000e+00> : vector<64x128xf32>
    %185 = tpu.matmul %182, %184, %cst_51 {dimension_numbers = #tpu.dot_dimension_numbers<[1], [0], [0], [1], [0, 0, 1, 1], [], []>} : vector<64x256xbf16>, vector<256x128xbf16>, vector<64x128xf32> -> vector<64x128xf32>
    %c0_52 = arith.constant 0 : index
    %c0_53 = arith.constant 0 : index
    %c0_54 = arith.constant 0 : index
    %186 = vector.load %arg12[%c0_52, %c0_53, %c0_54] : memref<1x1x128xf32, #tpu.memory_space<vmem>>, vector<1x1x128xf32>
    %187 = vector.shape_cast %186 : vector<1x1x128xf32> to vector<1x128xf32>
    %188 = vector.broadcast %187 : vector<1x128xf32> to vector<64x128xf32>
    %189 = arith.addf %185, %188 : vector<64x128xf32>
    %c0_55 = arith.constant 0 : index
    %c0_56 = arith.constant 0 : index
    %c0_57 = arith.constant 0 : index
    %190 = vector.load %arg13[%c0_55, %c0_56, %c0_57] : memref<1x1x128xf32, #tpu.memory_space<vmem>>, vector<1x1x128xf32>
    %191 = vector.shape_cast %190 : vector<1x1x128xf32> to vector<1x128xf32>
    %192 = vector.broadcast %191 : vector<1x128xf32> to vector<64x128xf32>
    %193 = arith.mulf %189, %192 : vector<64x128xf32>
    %194 = arith.addf %154, %193 : vector<64x128xf32>
    %c0_58 = arith.constant 0 : index
    %c0_59 = arith.constant 0 : index
    %195 = vector.load %arg17[%c0_58, %c0_59] : memref<64x128xf32, #tpu.memory_space<vmem>>, vector<64x128xf32>
    tpu.vector_store %arg17[%c0_58, %c0_59], %194 {strides = array<i32>} : memref<64x128xf32, #tpu.memory_space<vmem>>, vector<64x128xf32>,
    %c1_i32 = arith.constant 1 : i32
    %196 = arith.cmpi eq, %arg1, %c1_i32 : i32
    %197 = arith.extui %196 : i1 to i32
    %c0_i32_60 = arith.constant 0 : i32
    %198 = arith.cmpi ne, %197, %c0_i32_60 : i32
    scf.if %198 {
      %199 = arith.mulf %194, %194 : vector<64x128xf32>
      %cst_61 = arith.constant dense<0.000000e+00> : vector<64xf32>
      %200 = vector.multi_reduction <add>, %199, %cst_61 [1] : vector<64x128xf32> to vector<64xf32>
      %201 = vector.shape_cast %200 : vector<64xf32> to vector<64x1xf32>
      %cst_62 = arith.constant 1.280000e+02 : f32
      %202 = vector.broadcast %cst_62 : f32 to vector<64x1xf32>
      %203 = arith.divf %201, %202 : vector<64x1xf32>
      %cst_63 = arith.constant 1.1920929E-7 : f32
      %204 = vector.broadcast %cst_63 : f32 to vector<64x1xf32>
      %205 = arith.addf %203, %204 : vector<64x1xf32>
      %206 = math.rsqrt %205 : vector<64x1xf32>
      %207 = vector.broadcast %206 : vector<64x1xf32> to vector<64x128xf32>
      %208 = arith.mulf %194, %207 : vector<64x128xf32>
      %c0_64 = arith.constant 0 : index
      %c0_65 = arith.constant 0 : index
      %209 = vector.load %arg14[%c0_64, %c0_65] : memref<1x128xf32, #tpu.memory_space<vmem>>, vector<1x128xf32>
      %210 = vector.broadcast %209 : vector<1x128xf32> to vector<64x128xf32>
      %211 = arith.mulf %208, %210 : vector<64x128xf32>
      %212 = arith.truncf %211 : vector<64x128xf32> to vector<64x128xbf16>
      %c0_66 = arith.constant 0 : index
      %c0_67 = arith.constant 0 : index
      %213 = vector.load %arg15[%c0_66, %c0_67] : memref<128x128xbf16, #tpu.memory_space<vmem>>, vector<128x128xbf16>
      %cst_68 = arith.constant dense<0.000000e+00> : vector<64x128xf32>
      %214 = tpu.matmul %212, %213, %cst_68 {dimension_numbers = #tpu.dot_dimension_numbers<[1], [0], [0], [1], [0, 0, 1, 1], [], []>} : vector<64x128xbf16>, vector<128x128xbf16>, vector<64x128xf32> -> vector<64x128xf32>
      %c0_69 = arith.constant 0 : index
      %c0_70 = arith.constant 0 : index
      %215 = vector.load %arg16[%c0_69, %c0_70] : memref<1x128xf32, #tpu.memory_space<vmem>>, vector<1x128xf32>
      %216 = vector.broadcast %215 : vector<1x128xf32> to vector<64x128xf32>
      %217 = arith.addf %214, %216 : vector<64x128xf32>
      %c0_71 = arith.constant 0 : index
      %c0_72 = arith.constant 0 : index
      %218 = vector.load %arg18[%c0_71, %c0_72] : memref<64x128xf32, #tpu.memory_space<vmem>>, vector<64x128xf32>
      tpu.vector_store %arg18[%c0_71, %c0_72], %217 {strides = array<i32>} : memref<64x128xf32, #tpu.memory_space<vmem>>, vector<64x128xf32>,
    } else {
    }
    return
  }
  func.func @transform_0(%arg0: i32, %arg1: i32) -> (i32, i32) {
    %c0_i32 = arith.constant 0 : i32
    %c0_i32_0 = arith.constant 0 : i32
    return %arg0, %c0_i32 : i32, i32
  }
  func.func @transform_1(%arg0: i32, %arg1: i32) -> (i32, i32, i32) {
    %c0_i32 = arith.constant 0 : i32
    %c0_i32_0 = arith.constant 0 : i32
    %c0_i32_1 = arith.constant 0 : i32
    return %arg1, %c0_i32, %c0_i32_0 : i32, i32, i32
  }
  func.func @transform_2(%arg0: i32, %arg1: i32) -> (i32, i32, i32) {
    %c0_i32 = arith.constant 0 : i32
    %c0_i32_0 = arith.constant 0 : i32
    %c0_i32_1 = arith.constant 0 : i32
    return %arg1, %c0_i32, %c0_i32_0 : i32, i32, i32
  }
  func.func @transform_3(%arg0: i32, %arg1: i32) -> (i32, i32, i32) {
    %c0_i32 = arith.constant 0 : i32
    %c0_i32_0 = arith.constant 0 : i32
    %c0_i32_1 = arith.constant 0 : i32
    return %arg1, %c0_i32, %c0_i32_0 : i32, i32, i32
  }
  func.func @transform_4(%arg0: i32, %arg1: i32) -> (i32, i32, i32) {
    %c0_i32 = arith.constant 0 : i32
    %c0_i32_0 = arith.constant 0 : i32
    %c0_i32_1 = arith.constant 0 : i32
    return %arg1, %c0_i32, %c0_i32_0 : i32, i32, i32
  }
  func.func @transform_5(%arg0: i32, %arg1: i32) -> (i32, i32, i32) {
    %c0_i32 = arith.constant 0 : i32
    %c0_i32_0 = arith.constant 0 : i32
    %c0_i32_1 = arith.constant 0 : i32
    return %arg1, %c0_i32, %c0_i32_0 : i32, i32, i32
  }
  func.func @transform_6(%arg0: i32, %arg1: i32) -> (i32, i32, i32) {
    %c0_i32 = arith.constant 0 : i32
    %c0_i32_0 = arith.constant 0 : i32
    %c0_i32_1 = arith.constant 0 : i32
    return %arg1, %c0_i32, %c0_i32_0 : i32, i32, i32
  }
  func.func @transform_7(%arg0: i32, %arg1: i32) -> (i32, i32, i32) {
    %c0_i32 = arith.constant 0 : i32
    %c0_i32_0 = arith.constant 0 : i32
    %c0_i32_1 = arith.constant 0 : i32
    return %arg1, %c0_i32, %c0_i32_0 : i32, i32, i32
  }
  func.func @transform_8(%arg0: i32, %arg1: i32) -> (i32, i32, i32) {
    %c0_i32 = arith.constant 0 : i32
    %c0_i32_0 = arith.constant 0 : i32
    %c0_i32_1 = arith.constant 0 : i32
    return %arg1, %c0_i32, %c0_i32_0 : i32, i32, i32
  }
  func.func @transform_9(%arg0: i32, %arg1: i32) -> (i32, i32, i32) {
    %c0_i32 = arith.constant 0 : i32
    %c0_i32_0 = arith.constant 0 : i32
    %c0_i32_1 = arith.constant 0 : i32
    return %arg1, %c0_i32, %c0_i32_0 : i32, i32, i32
  }
  func.func @transform_10(%arg0: i32, %arg1: i32) -> (i32, i32, i32) {
    %c0_i32 = arith.constant 0 : i32
    %c0_i32_0 = arith.constant 0 : i32
    %c0_i32_1 = arith.constant 0 : i32
    return %arg1, %c0_i32, %c0_i32_0 : i32, i32, i32
  }
  func.func @transform_11(%arg0: i32, %arg1: i32) -> (i32, i32, i32) {
    %c0_i32 = arith.constant 0 : i32
    %c0_i32_0 = arith.constant 0 : i32
    %c0_i32_1 = arith.constant 0 : i32
    return %arg1, %c0_i32, %c0_i32_0 : i32, i32, i32
  }
  func.func @transform_12(%arg0: i32, %arg1: i32) -> (i32, i32) {
    %c0_i32 = arith.constant 0 : i32
    %c0_i32_0 = arith.constant 0 : i32
    %c0_i32_1 = arith.constant 0 : i32
    return %c0_i32, %c0_i32_0 : i32, i32
  }
  func.func @transform_13(%arg0: i32, %arg1: i32) -> (i32, i32) {
    %c0_i32 = arith.constant 0 : i32
    %c0_i32_0 = arith.constant 0 : i32
    %c0_i32_1 = arith.constant 0 : i32
    return %c0_i32, %c0_i32_0 : i32, i32
  }
  func.func @transform_14(%arg0: i32, %arg1: i32) -> (i32, i32) {
    %c0_i32 = arith.constant 0 : i32
    %c0_i32_0 = arith.constant 0 : i32
    %c0_i32_1 = arith.constant 0 : i32
    return %c0_i32, %c0_i32_0 : i32, i32
  }
  func.func @transform_15(%arg0: i32, %arg1: i32) -> (i32, i32) {
    %c0_i32 = arith.constant 0 : i32
    %c0_i32_0 = arith.constant 0 : i32
    return %arg0, %c0_i32 : i32, i32
  }
  func.func @transform_16(%arg0: i32, %arg1: i32) -> (i32, i32) {
    %c0_i32 = arith.constant 0 : i32
    %c0_i32_0 = arith.constant 0 : i32
    return %arg0, %c0_i32 : i32, i32
  }
}

</mosaic_0001>

<bundles_post_ra>
// kernel: transformer_forward.1
= control target key start
LH: loop header
LB: loop body
LE: loop exit
PB: predicated region body
PF: predicated region fallthrough
CT: control target
= control target key end

     0   :  { %s15379_s0 = inlined_call_operand.vmem [shape: f32[64,128], index: 0, kind: input, shape index: {}, may-alias: {0,15}]   ;;  %s15380_s1 = inlined_call_operand.hbm [shape: bf16[2,128,384], index: 1, kind: input, shape index: {}]   ;;  %s15381_s2 = inlined_call_operand.hbm [shape: f32[2,1,384], index: 2, kind: input, shape index: {}]   ;;  %s15382_s3 = inlined_call_operand.vmem [shape: f32[2,1,128], index: 3, kind: input, shape index: {}]   ;;  %s15383_s4 = inlined_call_operand.hbm [shape: bf16[2,128,128], index: 4, kind: input, shape index: {}]   ;;  %s15384_s5 = inlined_call_operand.hbm [shape: f32[2,1,128], index: 5, kind: input, shape index: {}]   ;;  %s15385_s6 = inlined_call_operand.vmem [shape: f32[2,1,128], index: 6, kind: input, shape index: {}]   ;;  %s15386_s7 = inlined_call_operand.hbm [shape: bf16[2,128,512], index: 7, kind: input, shape index: {}]   ;;  %s15387_s8 = inlined_call_operand.hbm [shape: f32[2,1,512], index: 8, kind: input, shape index: {}]   ;;  %s15388_s9 = inlined_call_operand.hbm [shape: bf16[2,256,128], index: 9, kind: input, shape index: {}]   ;;  %s15389_s10 = inlined_call_operand.hbm [shape: f32[2,1,128], index: 10, kind: input, shape index: {}]   ;;  %s15390_s11 = inlined_call_operand.vmem [shape: f32[2,1,128], index: 11, kind: input, shape index: {}]   ;;  %s15391_s12 = inlined_call_operand.vmem [shape: f32[1,128], index: 12, kind: input, shape index: {}]   ;;  %s15392_s13 = inlined_call_operand.vmem [shape: bf16[128,128], index: 13, kind: input, shape index: {}]   ;;  %s15393_s14 = inlined_call_operand.hbm [shape: f32[1,128], index: 14, kind: input, shape index: {}]   ;;  %s15394_s15 = inlined_call_operand.vmem [shape: f32[64,128], index: 15, kind: output, shape index: {0}, may-alias: {0,15}]   ;;  %s15395_s16 = inlined_call_operand.hbm [shape: f32[64,128], index: 16, kind: output, shape index: {1}]  }
   0x1   :  { %15454 = sst [smem:[#allocation80_spill]] %s15379_s0 }
   0x2   :  { %15455 = sst [smem:[#allocation81_spill]] %s15380_s1 }
   0x3   :  { %15456 = sst [smem:[#allocation82_spill]] %s15381_s2 }
   0x4   :  { %15457 = sst [smem:[#allocation83_spill]] %s15383_s4 }
   0x5   :  { %15458 = sst [smem:[#allocation84_spill]] %s15384_s5 }
   0x6   :  { %15459 = sst [smem:[#allocation85_spill]] %s15385_s6 }
   0x7   :  { %15460 = sst [smem:[#allocation86_spill]] %s15387_s8 }
   0x8   :  { %15461 = sst [smem:[#allocation87_spill]] %s15390_s11 }
   0x9   :  { %15462 = sst [smem:[#allocation88_spill]] %s15391_s12 }
   0xa   :  { %15463 = sst [smem:[#allocation89_spill]] %s15392_s13 }
   0xb   :  { %15464 = sst [smem:[#allocation90_spill]] %s15393_s14 }
   0xc   :  { %15465 = sst [smem:[#allocation91_spill]] %s15394_s15 }
   0xd   :  { %15466 = sst [smem:[#allocation92_spill]] %s15395_s16 }
   0xe   :  { %22 = vsyncpa [#allocation3], 0 }
   0xf   :  { %24 = vsyncpa [#allocation3 + $0x1], 0 }
  0x10   :  { %25 = vsyncpa [#allocation6], 0 }
  0x11   :  { %27 = vsyncpa [#allocation6 + $0x1], 0 }
  0x12   :  { %28 = vsyncpa [#allocation9], 0 }
  0x13   :  { %30 = vsyncpa [#allocation9 + $0x1], 0 }
  0x14   :  { %31 = vsyncpa [#allocation12], 0 }
  0x15   :  { %33 = vsyncpa [#allocation12 + $0x1], 0 }
  0x16   :  { %34 = vsyncpa [#allocation15], 0 }
  0x17   :  { %36 = vsyncpa [#allocation15 + $0x1], 0 }
  0x18   :  { %37 = vsyncpa [#allocation4], 0  ;;  %s11413_s21 = smov 0   ;;  %s11415_s22 = smov 0  }
  0x19   :  { %s11417_s23 = smov 0   ;;  %s11419_s24 = smov 0  }
  0x1a   :  { %s11421_s25 = smov 0   ;;  %s11423_s26 = smov 0  }
  0x1b LB: > { %15467 = sst [smem:[#allocation25_spill]] %s11295_s23  ;;  %s11442_s27 = sadd.s32 4294967295, %s11307_s26   ;;  %s11307_s26 = sphi %s11423_s26, %s43_s26   ;;  %s11303_s25 = sphi %s11421_s25, %s15712_s25   ;;  %s11299_s24 = sphi %s11419_s24, %s15711_s24   ;;  %s11295_s23 = sphi %s11417_s23, %s15707_s23   ;;  %s11291_s22 = sphi %s11415_s22, %s15710_s22   ;;  %s11287_s21 = sphi %s11413_s21, %s15709_s21  }
  0x1c   : > { %15468 = sst [smem:[#allocation26_spill]] %s11307_s26  ;;  %s52_s28 = sadd.s32 1, %s11303_s25 }
  0x1d   : > { %p53_p0 = scmp.ge.s32.totalorder %s52_s28, 2  ;;  %s88_s29 = sadd.s32 1, %s11295_s23 }
  0x1e   : > { %p95_p1 = scmp.ne.s32.totalorder %s11295_s23, %s11291_s22  ;;  %p96_p2 = scmp.eq.s32.totalorder %s11307_s26, 0 }
  0x1f   : > { %s15714_s28 = smov (%p53_p0, %s52_s28), 0  ;;  %p101_p4 = scmp.ne.s32.totalorder %s11291_s22, %s11287_s21 }
  0x20   : > { %15469 = sst [smem:[#allocation27_spill]] %s15714_s28  ;;  %p11451_p3 = por %p96_p2, %p95_p1 }
  0x21   : > { %s85_s0 = ssub.s32 %s11303_s25, %s15714_s28  ;;  %p102_p5 = scmp.eq.s32.totalorder %s11442_s27, 0 }
  0x22   : > { %p86_p6 = scmp.eq.s32.totalorder %s85_s0, 0  ;;  %p9356_p7 = scmp.ge.s32.totalorder %s11307_s26, 1 }
  0x23   : > { %p11462_p8 = por %p102_p5, %p101_p4  ;;  %p487_p9 = scmp.lt.s32.totalorder %s11307_s26, 3 }
  0x24   : > { %s11468_s18 = scalar_select %p86_p6, %s11295_s23, %s88_s29  }
  0x25   : > { %p11470_p10 = pnand %p9356_p7, %p487_p9  ;;  %s15474_s14 = sld [smem:[#allocation90_spill]] }
  0x26   : > { %15472 = sst [smem:[#allocation28_spill]] %s11468_s18  ;;  %s11309_s28 = smov [#allocation16]  }
  0x27   : > { %p10035_p11 = pneg %p11470_p10  ;;  %s516_s16 = sshll.u32 %s11309_s28, 4  ;;  %s517_s16 = int_to_ptr.vmem [resolvable:$true] %s516_s16 }
  0x28   : > { %p10065_p13 = scmp.lt.s32.totalorder %s11307_s26, 2  ;;  %s11483_s29 = sand.u32 1, %s11295_s23  }
  0x29   : > { %p10036_p12 = pnand %p10035_p11, %p102_p5  ;;  %s11486_s18 = sand.u32 1, %s11307_s26  }
  0x2a   : > { %p11490_p0 = pnand %p10065_p13, %p11451_p3  ;;  %s10007_s28 = smul.u32 3, %s11483_s29 }
  0x2b   : > { %s514_s0 = sshll.u32 %s15474_s14, 4  ;;  %s10008_s21 = smul.u32 3, %s11303_s25  ;;  %s515_s0 = int_to_ptr.hbm [resolvable:$true] %s514_s0 }
  0x2c   : > { %10038 = dma.hbm_to_vmem [thread:$0]  (!%p10036_p12), %s515_s0, 16, %s517_s16, [#allocation15]  }
  0x2d   : > { %s15476_s2 = sld [smem:[#allocation82_spill]]  ;;  %s553_s26 = scalar_lea.vmem [#allocation5], %s10007_s28 }
  0x2e   : > { %s561_s13 = sshll.u32 %s553_s26, 4  ;;  %s15477_s5 = sld [smem:[#allocation84_spill]]  ;;  %s562_s13 = int_to_ptr.vmem [resolvable:$true] %s561_s13 }
  0x2f   : > { %s15403_s11 = scalar_lea.sflag [#allocation6], %s11486_s18  ;;  %s599_s14 = scalar_lea.vmem [#allocation8], %s11483_s29 }
  0x30   : > { %s606_s28 = sshll.u32 %s599_s14, 4  ;;  %s9367_s26 = sshll.u32 %s11483_s29, 2  ;;  %s607_s28 = int_to_ptr.vmem [resolvable:$true] %s606_s28 }
  0x31   : > { %s15478_s8 = sld [smem:[#allocation86_spill]]  ;;  %s15405_s14 = scalar_lea.sflag [#allocation12], %s11486_s18 }
  0x32   : > { %s15479_s1 = sld [smem:[#allocation81_spill]] }
  0x33   : > { %s557_s23 = scalar_lea.hbm %s15476_s2, %s10008_s21  ;;  %s9368_s21 = sshll.u32 %s11303_s25, 2 }
  0x34   : > { %s559_s16 = sshll.u32 %s557_s23, 4  ;;  %s602_s15 = scalar_lea.hbm %s15477_s5, %s11303_s25  ;;  %s560_s16 = int_to_ptr.hbm [resolvable:$true] %s559_s16 }
  0x35   : > { %10045 = dma.hbm_to_vmem [thread:$0]  (!%p11490_p0), %s560_s16, 48, %s562_s13, %s15403_s11  }
  0x36   : > { %s604_s12 = sshll.u32 %s602_s15, 4  ;;  %s15404_s23 = scalar_lea.sflag [#allocation9], %s11486_s18  ;;  %s605_s12 = int_to_ptr.hbm [resolvable:$true] %s604_s12 }
  0x37   : > { %10051 = dma.hbm_to_vmem [thread:$0]  (!%p11490_p0), %s605_s12, 16, %s607_s28, %s15404_s23  }
  0x38   : > { %s649_s13 = scalar_lea.hbm %s15478_s8, %s9368_s21  ;;  %s645_s15 = scalar_lea.vmem [#allocation11], %s9367_s26 }
  0x39   : > { %s653_s16 = sshll.u32 %s645_s15, 4  ;;  %s651_s11 = sshll.u32 %s649_s13, 4  ;;  %s654_s16 = int_to_ptr.vmem [resolvable:$true] %s653_s16  ;;  %s652_s11 = int_to_ptr.hbm [resolvable:$true] %s651_s11 }
  0x3a   : > { %10057 = dma.hbm_to_vmem [thread:$0]  (!%p11490_p0), %s652_s11, 64, %s654_s16, %s15405_s14  }
  0x3b   : > { %s10005_s2 = smul.u32 192, %s11483_s29  ;;  %s9361_s28 = sshll.u32 %s11483_s29, 6 }
  0x3c   : > { %s10006_s12 = smul.u32 192, %s11303_s25  ;;  %s528_s13 = scalar_lea.sflag [#allocation3], %s11483_s29 }
  0x3d   : > { %s531_s21 = scalar_lea.vmem [#allocation2], %s10005_s2  ;;  %s11310_s15 = smov 192  }
  0x3e   : > { %s536_s30 = scalar_lea.hbm %s15479_s1, %s10006_s12  ;;  %s539_s26 = sshll.u32 %s531_s21, 4  ;;  %s540_s26 = int_to_ptr.vmem [resolvable:$true] %s539_s26 }
  0x3f   : > { %s537_s0 = sshll.u32 %s536_s30, 4  ;;  %s11311_s8 = smov 12   ;;  %s538_s0 = int_to_ptr.hbm [resolvable:$true] %s537_s0 }
  0x40   : > { %10042 = dma.hbm_to_vmem [thread:$0]  (!%p11490_p0), %s538_s0, 3072, %s540_s26, %s528_s13, %s11310_s15, %s11310_s15, %s11311_s8  }
  0x41   : > { %s9882_s11 = sshll.u32 %s11303_s25, 6  ;;  %s578_s16 = scalar_lea.vmem [#allocation7], %s9361_s28 }
  0x42   : > { %s586_s14 = sshll.u32 %s578_s16, 4  ;;  %s15480_s4 = sld [smem:[#allocation83_spill]]  ;;  %s587_s14 = int_to_ptr.vmem [resolvable:$true] %s586_s14 }
  0x43   : > { %s11312_s12 = smov 64   ;;  %s11313_s30 = smov 4  }
  0x44   : > { %s15481_s21 = scalar_lea.sflag [#allocation6], %s11486_s18  ;;  %s9364_s8 = sshll.u32 %s11483_s29, 8 }
  0x45   : > { %s9883_s26 = sshll.u32 %s11303_s25, 8  ;;  %s623_s15 = scalar_lea.vmem [#allocation10], %s9364_s8 }
  0x46   : > { %s628_s13 = scalar_lea.hbm %s15386_s7, %s9883_s26  ;;  %s11314_s16 = smov 256  }
  0x47   : > { %s629_s6 = sshll.u32 %s628_s13, 4  ;;  %s11315_s5 = smov 16   ;;  %s630_s6 = int_to_ptr.hbm [resolvable:$true] %s629_s6 }
  0x48   : > { %s583_s2 = scalar_lea.hbm %s15480_s4, %s9882_s11  ;;  %s631_s11 = sshll.u32 %s623_s15, 4  ;;  %s632_s11 = int_to_ptr.vmem [resolvable:$true] %s631_s11 }
  0x49   : > { %s584_s23 = sshll.u32 %s583_s2, 4  ;;  %s15482_s2 = scalar_lea.sflag [#allocation9], %s11486_s18  ;;  %s585_s23 = int_to_ptr.hbm [resolvable:$true] %s584_s23 }
  0x4a   : > { %10048 = dma.hbm_to_vmem [thread:$0]  (!%p11490_p0), %s585_s23, 1024, %s587_s14, %s15481_s21, %s11312_s12, %s11312_s12, %s11313_s30  }
  0x4b   : > { %10054 = dma.hbm_to_vmem [thread:$0]  (!%p11490_p0), %s630_s6, 4096, %s632_s11, %s15482_s2, %s11314_s16, %s11314_s16, %s11315_s5  }
  0x4c   : > { %s9369_s14 = sshll.u32 %s11483_s29, 7  ;;  %s9884_s23 = sshll.u32 %s11303_s25, 7 }
  0x4d   : > { %s669_s28 = scalar_lea.hbm %s15388_s9, %s9884_s23  ;;  %s664_s8 = scalar_lea.vmem [#allocation13], %s9369_s14 }
  0x4e   : > { %s670_s0 = sshll.u32 %s669_s28, 4  ;;  %s672_s13 = sshll.u32 %s664_s8, 4  ;;  %s671_s0 = int_to_ptr.hbm [resolvable:$true] %s670_s0  ;;  %s673_s13 = int_to_ptr.vmem [resolvable:$true] %s672_s13 }
  0x4f   : > { %s15483_s15 = scalar_lea.sflag [#allocation12], %s11486_s18  ;;  %s688_s6 = scalar_lea.hbm %s15389_s10, %s11303_s25 }
  0x50   : > { %10060 = dma.hbm_to_vmem [thread:$0]  (!%p11490_p0), %s671_s0, 2048, %s673_s13, %s15483_s15, %s11312_s12, %s11312_s12, %s11313_s30  }
  0x51   : > { %s685_s11 = scalar_lea.vmem [#allocation14], %s11483_s29  ;;  %s690_s5 = sshll.u32 %s688_s6, 4  ;;  %s691_s5 = int_to_ptr.hbm [resolvable:$true] %s690_s5 }
  0x52   : > { %s692_s16 = sshll.u32 %s685_s11, 4  ;;  %s683_s2 = scalar_lea.sflag [#allocation15], %s11486_s18  ;;  %s693_s16 = int_to_ptr.vmem [resolvable:$true] %s692_s16 }
  0x53   : > { %10063 = dma.hbm_to_vmem [thread:$0]  (!%p11490_p0), %s691_s5, 16, %s693_s16, %s683_s2  }
  0x54   : > { %707 = sbr.rel (%p11470_p10) target bundleno = 4295 (0x10c7), region = 80 }
  0x59   : > { %s11570_s14 = sand.u32 1, %s11291_s22  }
  0x5a   : > { %s10009_s12 = smul.u32 192, %s11570_s14  ;;  %s710_s1 = scalar_lea.sflag [#allocation3], %s11570_s14 }
  0x5c   : > { %s11574_s4 = scalar_lea.vmem [#allocation2], %s10009_s12 }
  0x5d   : > { %11258 = dma.done.wait (%p11462_p8), %s710_s1, 3072  }
  0x5e   : > { %11260 = vsyncadd (%p11462_p8), %s710_s1, 4294964224  ;;  %s719_s18 = sand.u32 1, %s11442_s27   ;;  %s10010_s19 = smul.u32 3, %s11570_s14 }
  0x5f   : > { %s720_s29 = scalar_lea.sflag [#allocation6], %s719_s18 }
  0x60   : > { %s11582_s20 = scalar_lea.vmem [#allocation5], %s10010_s19 }
  0x61   : > { %11262 = dma.done.wait (%p11462_p8), %s720_s29, 1072  }
  0x62   : > { %11264 = vsyncadd (%p11462_p8), %s720_s29, 4294966224  ;;  %s9373_s30 = sshll.u32 %s11570_s14, 6  ;;  %s740_s21 = scalar_lea.sflag [#allocation9], %s719_s18 }
  0x63   : > { %s11589_s23 = scalar_lea.vmem [#allocation7], %s9373_s30 }
  0x64   : > { %11266 = dma.done.wait (%p11462_p8), %s740_s21, 4112  }
  0x65   : > { %11268 = vsyncadd (%p11462_p8), %s740_s21, 4294963184  ;;  %s9374_s28 = sshll.u32 %s11570_s14, 8  ;;  %s9375_s0 = sshll.u32 %s11570_s14, 2 }
  0x66   : > { %s11598_s8 = scalar_lea.vmem [#allocation10], %s9374_s28  ;;  %s759_s13 = scalar_lea.sflag [#allocation12], %s719_s18 }
  0x67   : > { %s11600_s15 = scalar_lea.vmem [#allocation11], %s9375_s0 }
  0x68   : > { %11270 = dma.done.wait (%p11462_p8), %s759_s13, 2112  }
  0x69   : > { %11272 = vsyncadd (%p11462_p8), %s759_s13, 4294965184  ;;  %s9376_s6 = sshll.u32 %s11570_s14, 7  ;;  %s779_s16 = scalar_lea.sflag [#allocation15], %s719_s18 }
  0x6a   : > { %s11607_s11 = scalar_lea.vmem [#allocation13], %s9376_s6 }
  0x6b   : > { %11274 = dma.done.wait (%p11462_p8), %s779_s16, 16  }
  0x6c   : > { %11276 = vsyncadd (%p11462_p8), %s779_s16, 4294967280 }
  0x6d   : > { %11278 = dma.done.wait (%p102_p5), [#allocation15], 16  }
  0x6e   : > { %11280 = vsyncadd (%p102_p5), [#allocation15], 4294967280  ;;  %p889_p1 = scmp.lt.s32.totalorder %s11299_s24, 1  ;;  %s15484_s29 = sld [smem:[#allocation85_spill]] }
  0x6f   : > { %p9378_p2 = scmp.ne.s32.totalorder %s11299_s24, 0 }
  0x70   : > { %s11620_s2 = scalar_select %p889_p1, %s11299_s24, 1 }
  0x71   : > { %909 = sbr.rel (%p9378_p2) target bundleno = 165 (0xa5), region = 120  ;;  %s15486_s5 = sld [smem:[#allocation80_spill]] (!%p9378_p2) }
  0x74   : > { %s894_s30 = scalar_lea.vmem %s15484_s29, %s11620_s2  ;;  %s15487_s29 = sld [smem:[#allocation91_spill]] (!%p9378_p2) }
  0x77   : > { %v910_v0 = vld [vmem:[%s15486_s5] sm:$0xff]  ;;  %v911_v1 = vld [vmem:[%s15486_s5 + $0x8] sm:$0xff]  ;;  %v912_v2 = vld [vmem:[%s15486_s5 + $0x10] sm:$0xff] }
  0x7a   : > { %918 = vst [vmem:[%s15487_s29] sm:$0xff] %v910_v0 }
  0x81   : > { %v913_v3 = vld [vmem:[%s15486_s5 + $0x18] sm:$0xff] }
  0x82   : > { %919 = vst [vmem:[%s15487_s29 + $0x8] sm:$0xff] %v911_v1 }
  0x89   : > { %v914_v4 = vld [vmem:[%s15486_s5 + $0x20] sm:$0xff] }
  0x8a   : > { %920 = vst [vmem:[%s15487_s29 + $0x10] sm:$0xff] %v912_v2 }
  0x91   : > { %v915_v5 = vld [vmem:[%s15486_s5 + $0x28] sm:$0xff] }
  0x92   : > { %921 = vst [vmem:[%s15487_s29 + $0x18] sm:$0xff] %v913_v3 }
  0x99   : > { %v916_v6 = vld [vmem:[%s15486_s5 + $0x30] sm:$0xff] }
  0x9a   : > { %922 = vst [vmem:[%s15487_s29 + $0x20] sm:$0xff] %v914_v4 }
  0xa1   : > { %v917_v7 = vld [vmem:[%s15486_s5 + $0x38] sm:$0xff] }
  0xa2   : > { %923 = vst [vmem:[%s15487_s29 + $0x28] sm:$0xff] %v915_v5 }
  0xa3   : > { %924 = vst [vmem:[%s15487_s29 + $0x30] sm:$0xff] %v916_v6 }
  0xa4   : > { %925 = vst [vmem:[%s15487_s29 + $0x38] sm:$0xff] %v917_v7 }
  0xa5 PF: > { %s15488_s13 = sld [smem:[#allocation91_spill]]  ;;  %v9465_v20 = vld [vmem:[%s11574_s4 + $0xa8] sm:$0xf]  ;;  %v9907_v21 = vld [vmem:[%s11574_s4 + $0xb0] sm:$0xf0]  ;;  %v11316_v27 = vmov 128.0   ;;  %s15673_s17 = scalar_lea.vmem %s15382_s3, %s11620_s2 }
  0xa6   : > { %v9906_v22 = vld [vmem:[%s11574_s4 + $0xac] sm:$0xf]  ;;  %v9466_v23 = vor.u32 %v9907_v21, %v9465_v20  ;;  %v9467_v24 = vld [vmem:[%s11574_s4 + $0xb4] sm:$0xf0]  ;;  %v9473_v25 = vld [vmem:[%s11574_s4 + $0xb0] sm:$0xf]  ;;  %10281 = vrcp.f32 %v11316_v27 }
  0xa7   : > { %v9908_v26 = vld [vmem:[%s11574_s4 + $0xb8] sm:$0xf0]  ;;  %v9470_v28 = vor.u32 %v9906_v22, %v9467_v24  ;;  %v9453_v30 = vld [vmem:[%s11574_s4 + $0x90] sm:$0xf]  ;;  %v9903_v32 = vld [vmem:[%s11574_s4 + $0x94] sm:$0xf] }
  0xa8   : > { %v9474_v29 = vor.u32 %v9908_v26, %v9473_v25  ;;  %1241 = vmatpush.bf16.msra.mxu0 %v9466_v23  ;;  %v9904_v31 = vld [vmem:[%s11574_s4 + $0x98] sm:$0xf0]  ;;  %v9455_v34 = vld [vmem:[%s11574_s4 + $0x9c] sm:$0xf0]  ;;  %v9461_v35 = vld [vmem:[%s11574_s4 + $0x98] sm:$0xf] }
  0xa9   : > { %1270 = vmatpush.bf16.msra.mxu1 %v9470_v28  ;;  %v9454_v33 = vor.u32 %v9904_v31, %v9453_v30  ;;  %v9905_v36 = vld [vmem:[%s11574_s4 + $0xa0] sm:$0xf0]  ;;  %v9458_v37 = vor.u32 %v9903_v32, %v9455_v34  ;;  %v9441_v40 = vld [vmem:[%s11574_s4 + $0x78] sm:$0xf]  ;;  %v9900_v42 = vld [vmem:[%s11574_s4 + $0x7c] sm:$0xf] }
  0xaa   : > { %1299 = vmatpush.bf16.msra.mxu2 %v9474_v29  ;;  %v9462_v38 = vor.u32 %v9905_v36, %v9461_v35  ;;  %v9901_v41 = vld [vmem:[%s11574_s4 + $0x80] sm:$0xf0]  ;;  %v9443_v44 = vld [vmem:[%s11574_s4 + $0x84] sm:$0xf0]  ;;  %v9449_v45 = vld [vmem:[%s11574_s4 + $0x80] sm:$0xf] }
  0xab   : > { %v11686_v8 = vld [vmem:[%s15488_s13] sm:$0xff]  ;;  %v11691_v9 = vld [vmem:[%s15488_s13 + $0x10] sm:$0xff]  ;;  %v11707_v14 = vld [vmem:[%s15488_s13 + $0x8] sm:$0xff]  ;;  %v9442_v43 = vor.u32 %v9901_v41, %v9441_v40  ;;  %v9446_v47 = vor.u32 %v9900_v42, %v9443_v44  ;;  %s11317_s6 = smov 112   ;;  %s11318_s16 = smov 96  }
  0xac   : > { %v934_v10 = vmul.f32 %v11686_v8, %v11686_v8  ;;  %v936_v11 = vmul.f32 %v11691_v9, %v11691_v9  ;;  %v11700_v12 = vld [vmem:[%s15488_s13 + $0x20] sm:$0xff]  ;;  %v11712_v15 = vld [vmem:[%s15488_s13 + $0x18] sm:$0xff]  ;;  %v11717_v16 = vld [vmem:[%s15488_s13 + $0x28] sm:$0xff]  ;;  %v935_v17 = vmul.f32 %v11707_v14, %v11707_v14  ;;  %1242 = vmatpush.bf16.msra.mxu0 %v9454_v33  ;;  %v11737_v39 = vpop.eup %10281  ;;  %s11321_s29 = smov 64   ;;  %s11322_s26 = smov 48  }
  0xad   : > { %v938_v13 = vmul.f32 %v11700_v12, %v11700_v12  ;;  %v937_v18 = vmul.f32 %v11712_v15, %v11712_v15  ;;  %v939_v19 = vmul.f32 %v11717_v16, %v11717_v16  ;;  %1271 = vmatpush.bf16.msra.mxu1 %v9458_v37  ;;  %v9902_v46 = vld [vmem:[%s11574_s4 + $0x88] sm:$0xf0]  ;;  %v959_v49 = vmul.f32 128.0, %v11737_v39  ;;  %v9429_v50 = vld [vmem:[%s11574_s4 + $0x60] sm:$0xf]  ;;  %s11323_s12 = smov 32  }
  0xae   : > { %942 = vadd.xlane.f32.xlu0 %v934_v10  ;;  %946 = vadd.xlane.f32.xlu1 %v936_v11  ;;  %v9450_v48 = vor.u32 %v9902_v46, %v9449_v45  ;;  %v9898_v51 = vld [vmem:[%s11574_s4 + $0x68] sm:$0xf0]  ;;  %v9897_v52 = vld [vmem:[%s11574_s4 + $0x64] sm:$0xf]  ;;  %v9431_v54 = vld [vmem:[%s11574_s4 + $0x6c] sm:$0xf0]  ;;  %vm963_vm0 = vweird.f32 %v11737_v39 }
  0xaf   : > { %950 = vadd.xlane.f32.xlu2 %v938_v13  ;;  %1300 = vmatpush.bf16.msra.mxu2 %v9462_v38  ;;  %v9430_v53 = vor.u32 %v9898_v51, %v9429_v50  ;;  %v9437_v55 = vld [vmem:[%s11574_s4 + $0x68] sm:$0xf]  ;;  %v9899_v56 = vld [vmem:[%s11574_s4 + $0x70] sm:$0xf0]  ;;  %v9434_v57 = vor.u32 %v9897_v52, %v9431_v54  ;;  %v960_v59 = vsub.f32 1.0, %v959_v49  ;;  %s11324_s18 = smov 16  }
  0xb0   : > { %1243 = vmatpush.bf16.msra.mxu0 %v9442_v43  ;;  %v9438_v58 = vor.u32 %v9899_v56, %v9437_v55  ;;  %v9417_v60 = vld [vmem:[%s11574_s4 + $0x48] sm:$0xf]  ;;  %v9895_v61 = vld [vmem:[%s11574_s4 + $0x50] sm:$0xf0]  ;;  %v9894_v62 = vld [vmem:[%s11574_s4 + $0x4c] sm:$0xf] }
  0xb1   : > { %1272 = vmatpush.bf16.msra.mxu1 %v9446_v47  ;;  %v9418_v63 = vor.u32 %v9895_v61, %v9417_v60  ;;  %v9419_v0 = vld [vmem:[%s11574_s4 + $0x54] sm:$0xf0]  ;;  %v9425_v1 = vld [vmem:[%s11574_s4 + $0x50] sm:$0xf]  ;;  %v9896_v2 = vld [vmem:[%s11574_s4 + $0x58] sm:$0xf0]  ;;  %v961_v10 = vmul.f32 %v11737_v39, %v960_v59 }
  0xb2   : > { %v9422_v3 = vor.u32 %v9894_v62, %v9419_v0  ;;  %v9426_v4 = vor.u32 %v9896_v2, %v9425_v1  ;;  %v9405_v5 = vld [vmem:[%s11574_s4 + $0x30] sm:$0xf]  ;;  %v9892_v6 = vld [vmem:[%s11574_s4 + $0x38] sm:$0xf0]  ;;  %v9891_v7 = vld [vmem:[%s11574_s4 + $0x34] sm:$0xf] }
  0xb3   : > { %1301 = vmatpush.bf16.msra.mxu2 %v9450_v48  ;;  %v9406_v11 = vor.u32 %v9892_v6, %v9405_v5  ;;  %v9407_v13 = vld [vmem:[%s11574_s4 + $0x3c] sm:$0xf0]  ;;  %v9393_v21 = vld [vmem:[%s11574_s4 + $0x18] sm:$0xf]  ;;  %v9889_v22 = vld [vmem:[%s11574_s4 + $0x20] sm:$0xf0]  ;;  %v962_v24 = vadd.f32 %v11737_v39, %v961_v10 }
  0xb4   : > { %1244 = vmatpush.bf16.msra.mxu0 %v9430_v53  ;;  %v9888_v23 = vld [vmem:[%s11574_s4 + $0x1c] sm:$0xf]  ;;  %v9394_v25 = vor.u32 %v9889_v22, %v9393_v21  ;;  %v9395_v26 = vld [vmem:[%s11574_s4 + $0x24] sm:$0xf0]  ;;  %v9401_v27 = vld [vmem:[%s11574_s4 + $0x20] sm:$0xf] }
  0xb5   : > { %1273 = vmatpush.bf16.msra.mxu1 %v9434_v57  ;;  %v9890_v28 = vld [vmem:[%s11574_s4 + $0x28] sm:$0xf0]  ;;  %v9398_v29 = vor.u32 %v9888_v23, %v9395_v26  ;;  %v9381_v31 = vld [vmem:[%s11574_s4] sm:$0xf]  ;;  %v9885_v33 = vld [vmem:[%s11574_s4 + $0x4] sm:$0xf]  ;;  %v11780_v41 = vsel %vm963_vm0, %v11737_v39, %v962_v24 }
  0xb6   : > { %944 = vadd.xlane.f32.xlu0 %v935_v17  ;;  %948 = vadd.xlane.f32.xlu1 %v937_v18  ;;  %v9413_v17 = vld [vmem:[%s11574_s4 + $0x38] sm:$0xf]  ;;  %v9893_v18 = vld [vmem:[%s11574_s4 + $0x40] sm:$0xf0]  ;;  %v9402_v30 = vor.u32 %v9890_v28, %v9401_v27  ;;  %v9886_v32 = vld [vmem:[%s11574_s4 + $0x8] sm:$0xf0] }
  0xb7   : > { %952 = vadd.xlane.f32.xlu2 %v939_v19  ;;  %1302 = vmatpush.bf16.msra.mxu2 %v9438_v58  ;;  %v9410_v19 = vor.u32 %v9891_v7, %v9407_v13  ;;  %v9414_v20 = vor.u32 %v9893_v18, %v9413_v17  ;;  %v9382_v34 = vor.u32 %v9886_v32, %v9381_v31  ;;  %v9383_v35 = vld [vmem:[%s11574_s4 + $0xc] sm:$0xf0]  ;;  %v9389_v36 = vld [vmem:[%s11574_s4 + $0x8] sm:$0xf]  ;;  %v9887_v37 = vld [vmem:[%s11574_s4 + $0x10] sm:$0xf0] }
  0xb8   : > { %1245 = vmatpush.bf16.msra.mxu0 %v9418_v63  ;;  %v9386_v38 = vor.u32 %v9885_v33, %v9383_v35  ;;  %v9390_v40 = vor.u32 %v9887_v37, %v9389_v36  ;;  %15489 = vst [vmem:[#allocation29_spill] sm:$0xff] %v11780_v41  ;;  %v11796_v63 = vld [vmem:[%s15488_s13 + $0x38] sm:$0xff]  ;;  %v11801_v0 = vld [vmem:[%s15488_s13 + $0x30] sm:$0xff]  ;;  %s15674_s19 = scalar_lea.vmem [#allocation8], %s11570_s14  ;;  %s15691_s0 = sld [smem:[#allocation87_spill]] }
  0xb9   : > { %1274 = vmatpush.bf16.msra.mxu1 %v9422_v3  ;;  %v941_v2 = vmul.f32 %v11796_v63, %v11796_v63  ;;  %v940_v3 = vmul.f32 %v11801_v0, %v11801_v0  ;;  %p9843_p3 = scmp.ne.s32.totalorder %s11299_s24, 1 }
  0xbb   : > { %1303 = vmatpush.bf16.msra.mxu2 %v9426_v4 }
  0xbc   : > { %1246 = vmatpush.bf16.msra.mxu0 %v9406_v11 }
  0xbd   : > { %1275 = vmatpush.bf16.msra.mxu1 %v9410_v19 }
  0xbe   : > { %956 = vadd.xlane.f32.xlu1 %v941_v2  ;;  %954 = vadd.xlane.f32.xlu0 %v940_v3 }
  0xbf   : > { %1304 = vmatpush.bf16.msra.mxu2 %v9414_v20 }
  0xc0   : > { %1247 = vmatpush.bf16.msra.mxu0 %v9394_v25 }
  0xc1   : > { %1276 = vmatpush.bf16.msra.mxu1 %v9398_v29 }
  0xc3   : > { %1305 = vmatpush.bf16.msra.mxu2 %v9402_v30 }
  0xc4   : > { %1248 = vmatpush.bf16.msra.mxu0 %v9382_v34 }
  0xc5   : > { %1277 = vmatpush.bf16.msra.mxu1 %v9386_v38 }
  0xc7   : > { %1306 = vmatpush.bf16.msra.mxu2 %v9390_v40 }
 0x121   : > { %v943_v42 = vpop.xlane.xlu0 %942  ;;  %v947_v45 = vpop.xlane.xlu1 %946 }
 0x122   : > { %v965_v43 = vmul.f32 %v11780_v41, %v943_v42  ;;  %v967_v46 = vmul.f32 %v11780_v41, %v947_v45  ;;  %v951_v60 = vpop.xlane.xlu2 %950 }
 0x123   : > { %v969_v1 = vmul.f32 %v11780_v41, %v951_v60 }
 0x124   : > { %v973_v44 = vadd.f32 1.1920929e-07, %v965_v43  ;;  %v11784_v47 = vadd.f32 1.1920929e-07, %v967_v46 }
 0x125   : > { %v977_v7 = vadd.f32 1.1920929e-07, %v969_v1 }
 0x126   : > { %10283 = vrsqrt.f32 %v973_v44  ;;  %vm987_vm2 = vweird.f32 %v973_v44  ;;  %vm1007_vm7 = vweird.f32 %v11784_v47 }
 0x127   : > { %10285 = vrsqrt.f32 %v11784_v47  ;;  %vm1027_vm13 = vweird.f32 %v977_v7 }
 0x129   : > { %v945_v48 = vpop.xlane.xlu0 %944  ;;  %v949_v52 = vpop.xlane.xlu1 %948 }
 0x12a   : > { %v966_v49 = vmul.f32 %v11780_v41, %v945_v48  ;;  %v968_v53 = vmul.f32 %v11780_v41, %v949_v52  ;;  %v953_v20 = vpop.xlane.xlu2 %952 }
 0x12b   : > { %v970_v24 = vmul.f32 %v11780_v41, %v953_v20 }
 0x12c   : > { %v10284_v39 = vpop.eup %10283  ;;  %v974_v50 = vadd.f32 1.1920929e-07, %v966_v49  ;;  %v976_v55 = vadd.f32 1.1920929e-07, %v968_v53  ;;  %v1105_v53 = vld [vmem:[%s11582_s20] sm:$0x7]  ;;  %s11320_s20 = smov 80  }
 0x12d   : > { %v982_v51 = vmul.f32 %v10284_v39, %v973_v44  ;;  %v11789_v56 = vpop.eup %10285  ;;  %vm988_vm1 = vweird.f32 %v10284_v39  ;;  %v978_v26 = vadd.f32 1.1920929e-07, %v970_v24 }
 0x12e   : > { %10287 = vrsqrt.f32 %v974_v50  ;;  %v1002_v59 = vmul.f32 %v11789_v56, %v11784_v47  ;;  %vm989_vm4 = vmor %vm987_vm2, %vm988_vm1  ;;  %vm997_vm5 = vweird.f32 %v974_v50  ;;  %vm1008_vm8 = vweird.f32 %v11789_v56 }
 0x12f   : > { %v983_v54 = vmul.f32 %v10284_v39, %v982_v51  ;;  %10289 = vrsqrt.f32 %v976_v55  ;;  %vm1017_vm9 = vweird.f32 %v976_v55  ;;  %vm1009_vm11 = vmor %vm1007_vm7, %vm1008_vm8  ;;  %vm1037_vm15 = vweird.f32 %v978_v26 }
 0x130   : > { %v1003_v6 = vmul.f32 %v11789_v56, %v1002_v59  ;;  %10291 = vrsqrt.f32 %v977_v7 }
 0x131   : > { %v984_v57 = vmul.f32 0.5, %v983_v54  ;;  %10293 = vrsqrt.f32 %v978_v26  ;;  %v11821_v54 = vperm.slane %v1105_v53, 0 }
 0x132   : > { %v1004_v19 = vmul.f32 0.5, %v1003_v6 }
 0x133   : > { %v985_v61 = vsub.f32 1.5, %v984_v57 }
 0x134   : > { %v10288_v58 = vpop.eup %10287  ;;  %v1005_v29 = vsub.f32 1.5, %v1004_v19 }
 0x135   : > { %v992_v62 = vmul.f32 %v10288_v58, %v974_v50  ;;  %v10290_v5 = vpop.eup %10289  ;;  %v986_v11 = vmul.f32 %v10284_v39, %v985_v61  ;;  %vm998_vm3 = vweird.f32 %v10288_v58 }
 0x136   : > { %v1012_v13 = vmul.f32 %v10290_v5, %v976_v55  ;;  %vm999_vm6 = vmor %vm997_vm5, %vm998_vm3  ;;  %v10292_v31 = vpop.eup %10291  ;;  %vm1018_vm10 = vweird.f32 %v10290_v5  ;;  %v1006_v33 = vmul.f32 %v11789_v56, %v1005_v29  ;;  %v11823_v55 = vperm.slane %v1105_v53, 1 }
 0x137   : > { %v993_v4 = vmul.f32 %v10288_v58, %v992_v62  ;;  %v990_v21 = vsel %vm989_vm4, %v10284_v39, %v986_v11  ;;  %v1022_v34 = vmul.f32 %v10292_v31, %v977_v7  ;;  %vm1019_vm12 = vmor %vm1017_vm9, %vm1018_vm10  ;;  %vm1028_vm14 = vweird.f32 %v10292_v31 }
 0x138   : > { %v1013_v18 = vmul.f32 %v10290_v5, %v1012_v13  ;;  %v1061_v27 = vmul.f32 %v990_v21, %v11686_v8  ;;  %v1010_v36 = vsel %vm1009_vm11, %v11789_v56, %v1006_v33  ;;  %vm1029_vm1 = vmor %vm1027_vm13, %vm1028_vm14  ;;  %vm1920_vm3 = vcmask 130048  }
 0x139   : > { %v994_v10 = vmul.f32 0.5, %v993_v4  ;;  %v1023_v38 = vmul.f32 %v10292_v31, %v1022_v34  ;;  %v1063_v42 = vmul.f32 %v1010_v36, %v11691_v9  ;;  %v957_v4 = vpop.xlane.xlu1 %956 }
 0x13a   : > { %v1014_v23 = vmul.f32 0.5, %v1013_v18  ;;  %v972_v6 = vmul.f32 %v11780_v41, %v957_v4 }
 0x13b   : > { %v995_v17 = vsub.f32 1.5, %v994_v10  ;;  %v1024_v44 = vmul.f32 0.5, %v1023_v38 }
 0x13c   : > { %v1015_v30 = vsub.f32 1.5, %v1014_v23  ;;  %v980_v19 = vadd.f32 1.1920929e-07, %v972_v6  ;;  %v11319_v6 = vmov 16.0  }
 0x13d   : > { %v996_v22 = vmul.f32 %v10288_v58, %v995_v17  ;;  %v1025_v47 = vsub.f32 1.5, %v1024_v44 }
 0x13e   : > { %v1016_v8 = vmul.f32 %v10290_v5, %v1015_v30  ;;  %10295 = vrsqrt.f32 %v980_v19  ;;  %vm1057_vm4 = vweird.f32 %v980_v19 }
 0x13f   : > { %v1000_v25 = vsel %vm999_vm6, %v10288_v58, %v996_v22  ;;  %v1026_v49 = vmul.f32 %v10292_v31, %v1025_v47 }
 0x140   : > { %v1062_v28 = vmul.f32 %v1000_v25, %v11707_v14  ;;  %v10294_v14 = vpop.eup %10293  ;;  %v1020_v37 = vsel %vm1019_vm12, %v10290_v5, %v1016_v8  ;;  %v955_v5 = vpop.xlane.xlu0 %954 }
 0x141   : > { %v1032_v35 = vmul.f32 %v10294_v14, %v978_v26  ;;  %v1064_v43 = vmul.f32 %v1020_v37, %v11712_v15  ;;  %vm1038_vm0 = vweird.f32 %v10294_v14  ;;  %v1030_v9 = vsel %vm1029_vm1, %v10292_v31, %v1026_v49 }
 0x142   : > { %v1069_v32 = vpack.c.bf16 %v1062_v28, %v1061_v27  ;;  %vm1039_vm2 = vmor %vm1037_vm15, %vm1038_vm0  ;;  %v1065_v15 = vmul.f32 %v1030_v9, %v11700_v12  ;;  %v971_v7 = vmul.f32 %v11780_v41, %v955_v5 }
 0x143   : > { %v1033_v40 = vmul.f32 %v10294_v14, %v1032_v35  ;;  %v1070_v46 = vpack.c.bf16 %v1064_v43, %v1063_v42 }
 0x144   : > { %1249 = vmatmul.bf16.vlgmr.msra.gmra.mxu0 %v1069_v32  ;;  %1278 = vmatmul.bf16.vlgmr.msra.gmra.mxu1 %v1069_v32  ;;  %v979_v20 = vadd.f32 1.1920929e-07, %v971_v7  ;;  %v10296_v27 = vpop.eup %10295 }
 0x145   : > { %1307 = vmatmul.bf16.vlgmr.msra.gmra.mxu2 %v1069_v32  ;;  %v1034_v45 = vmul.f32 0.5, %v1033_v40  ;;  %v1052_v29 = vmul.f32 %v10296_v27, %v980_v19  ;;  %vm1058_vm5 = vweird.f32 %v10296_v27 }
 0x146   : > { %10297 = vrsqrt.f32 %v979_v20  ;;  %vm1047_vm6 = vweird.f32 %v979_v20  ;;  %vm1059_vm8 = vmor %vm1057_vm4, %vm1058_vm5 }
 0x147   : > { %v1035_v48 = vsub.f32 1.5, %v1034_v45  ;;  %v1053_v32 = vmul.f32 %v10296_v27, %v1052_v29  ;;  %10299 = vrcp.f32 %v11319_v6 }
 0x149   : > { %v1036_v39 = vmul.f32 %v10294_v14, %v1035_v48  ;;  %v1054_v8 = vmul.f32 0.5, %v1053_v32 }
 0x14b   : > { %v1040_v50 = vsel %vm1039_vm2, %v10294_v14, %v1036_v39  ;;  %v1055_v14 = vsub.f32 1.5, %v1054_v8 }
 0x14c   : > { %v1066_v51 = vmul.f32 %v1040_v50, %v11717_v16  ;;  %v11839_v16 = vperm.slane %v1105_v53, 2  ;;  %v10298_v28 = vpop.eup %10297 }
 0x14d   : > { %v1042_v30 = vmul.f32 %v10298_v28, %v979_v20  ;;  %vm1048_vm7 = vweird.f32 %v10298_v28  ;;  %v1056_v38 = vmul.f32 %v10296_v27, %v1055_v14 }
 0x14e   : > { %v1071_v52 = vpack.c.bf16 %v1066_v51, %v1065_v15  ;;  %vm1049_vm9 = vmor %vm1047_vm6, %vm1048_vm7 }
 0x14f   : > { %v1043_v33 = vmul.f32 %v10298_v28, %v1042_v30  ;;  %v1060_v43 = vsel %vm1059_vm8, %v10296_v27, %v1056_v38 }
 0x150   : > { %v1068_v45 = vmul.f32 %v1060_v43, %v11796_v63 }
 0x151   : > { %v1044_v34 = vmul.f32 0.5, %v1043_v33 }
 0x153   : > { %v1045_v35 = vsub.f32 1.5, %v1044_v34 }
 0x154   : > { %1283 = vmatmul.bf16.gmra.mxu1 %v1070_v46  ;;  %1254 = vmatmul.bf16.gmra.mxu0 %v1070_v46 }
 0x155   : > { %1312 = vmatmul.bf16.gmra.mxu2 %v1070_v46  ;;  %v1046_v37 = vmul.f32 %v10298_v28, %v1045_v35 }
 0x157   : > { %v1050_v42 = vsel %vm1049_vm9, %v10298_v28, %v1046_v37 }
 0x158   : > { %v1067_v44 = vmul.f32 %v1050_v42, %v11801_v0 }
 0x15a   : > { %v1072_v47 = vpack.c.bf16 %v1068_v45, %v1067_v44 }
 0x164   : > { %1259 = vmatmul.bf16.gmra.mxu0 %v1071_v52  ;;  %1288 = vmatmul.bf16.gmra.mxu1 %v1071_v52 }
 0x165   : > { %1317 = vmatmul.bf16.gmra.mxu2 %v1071_v52 }
 0x174   : > { %1264 = vmatmul.bf16.gmra.mxu0 %v1072_v47  ;;  %1293 = vmatmul.bf16.gmra.mxu1 %v1072_v47 }
 0x175   : > { %1322 = vmatmul.bf16.gmra.mxu2 %v1072_v47 }
 0x1c1   : > { %v1250_v56 = vpop.f32.mrf.mxu0  ;;  %v1279_v57 = vpop.f32.mrf.mxu1 }
 0x1c2   : > { %v11826_v58 = vadd.f32 %v1250_v56, %v11821_v54  ;;  %v11829_v59 = vadd.f32 %v1279_v57, %v11823_v55 }
 0x1c4   : > { %1512 = vrot.lane.b32.xlu1 %v11829_v59, %s11317_s6  ;;  %1360 = vrot.lane.b32.xlu2 %v11826_v58, %s11318_s16  ;;  %v1856_v11 = vmul.f32 %v11826_v58, %v11826_v58  ;;  %v3080_v21 = vmul.f32 %v11829_v59, %v11829_v59 }
 0x1c5   : > { %1336 = vrot.lane.b32.xlu0 %v11826_v58, %s11317_s6 }
 0x1c6   : > { %v1921_v22 = vsel %vm1920_vm3, %v1856_v11, 0.0  ;;  %v3144_v25 = vsel %vm1920_vm3, %v3080_v21, 0.0 }
 0x1c8   : > { %v1308_v12 = vpop.f32.mrf.mxu2 }
 0x1c9   : > { %v11842_v61 = vadd.f32 %v1308_v12, %v11839_v16  ;;  %v1281_v3 = vpop.f32.mrf.mxu1  ;;  %v1252_v36 = vpop.f32.mrf.mxu0 }
 0x1ca   : > { %v11876_v40 = vadd.f32 %v1252_v36, %v11821_v54  ;;  %v11881_v46 = vadd.f32 %v1281_v3, %v11823_v55 }
 0x1cb   : > { %15490 = vst [vmem:[#allocation30_spill] sm:$0xff] %v11842_v61 }
 0x1cc   : > { %1536 = vrot.lane.b32.xlu1 %v11829_v59, %s11318_s16  ;;  %v1857_v57 = vmul.f32 %v11876_v40, %v11876_v40 }
 0x1ce   : > { %v1924_v12 = vsel %vm1920_vm3, %v1857_v57, 0.0 }
 0x1d0   : > { %v1310_v60 = vpop.f32.mrf.mxu2 }
 0x1d1   : > { %v11845_v62 = vadd.f32 %v1310_v60, %v11839_v16  ;;  %v1284_v18 = vpop.f32.mrf.mxu1  ;;  %v1255_v48 = vpop.f32.mrf.mxu0  ;;  %v3081_v60 = vmul.f32 %v11881_v46, %v11881_v46 }
 0x1d2   : > { %v11865_v23 = vadd.f32 %v1284_v18, %v11823_v55  ;;  %v11933_v19 = vadd.f32 %v1255_v48, %v11821_v54 }
 0x1d3   : > { %15491 = vst [vmem:[#allocation31_spill] sm:$0xff] %v11845_v62  ;;  %v11849_v1 = vpack.i.bf16 %v11845_v62, %v11842_v61 }
 0x1d4   : > { %v3082_v26 = vmul.f32 %v11865_v23, %v11865_v23 }
 0x1d5   : > { %15492 = vst [vmem:[#allocation32_spill] sm:$0xff] %v11849_v1 }
 0x1d6   : > { %v3150_v31 = vsel %vm1920_vm3, %v3082_v26, 0.0 }
 0x1d8   : > { %v1313_v2 = vpop.f32.mrf.mxu2 }
 0x1d9   : > { %v11856_v13 = vadd.f32 %v1313_v2, %v11839_v16  ;;  %v1286_v39 = vpop.f32.mrf.mxu1  ;;  %v1257_v63 = vpop.f32.mrf.mxu0  ;;  %v3147_v2 = vsel %vm1920_vm3, %v3081_v60, 0.0 }
 0x1da   : > { %v11888_v0 = vadd.f32 %v1286_v39, %v11823_v55  ;;  %v11901_v51 = vadd.f32 %v1257_v63, %v11821_v54 }
 0x1db   : > { %15493 = vst [vmem:[#allocation33_spill] sm:$0xff] %v11856_v13 }
 0x1dc   : > { %v3083_v38 = vmul.f32 %v11888_v0, %v11888_v0  ;;  %v1859_v39 = vmul.f32 %v11901_v51, %v11901_v51 }
 0x1de   : > { %v3153_v47 = vsel %vm1920_vm3, %v3083_v38, 0.0 }
 0x1e0   : > { %v1315_v10 = vpop.f32.mrf.mxu2 }
 0x1e1   : > { %v11859_v17 = vadd.f32 %v1315_v10, %v11839_v16  ;;  %v1260_v53 = vpop.f32.mrf.mxu0  ;;  %v1289_v3 = vpop.f32.mrf.mxu1 }
 0x1e2   : > { %v11912_v56 = vadd.f32 %v1260_v53, %v11821_v54  ;;  %v11923_v4 = vadd.f32 %v1289_v3, %v11823_v55  ;;  %v10300_v10 = vpop.eup %10299 }
 0x1e3   : > { %15494 = vst [vmem:[#allocation34_spill] sm:$0xff] %v11859_v17  ;;  %v11869_v24 = vpack.i.bf16 %v11859_v17, %v11856_v13  ;;  %v2114_v11 = vmul.f32 16.0, %v10300_v10  ;;  %vm2118_vm10 = vweird.f32 %v10300_v10 }
 0x1e4   : > { %v3084_v5 = vmul.f32 %v11923_v4, %v11923_v4 }
 0x1e5   : > { %15495 = vst [vmem:[#allocation35_spill] sm:$0xff] %v11869_v24  ;;  %v2115_v18 = vsub.f32 1.0, %v2114_v11 }
 0x1e6   : > { %v3156_v7 = vsel %vm1920_vm3, %v3084_v5, 0.0 }
 0x1e7   : > { %v2116_v20 = vmul.f32 %v10300_v10, %v2115_v18 }
 0x1e8   : > { %v1318_v49 = vpop.f32.mrf.mxu2 }
 0x1e9   : > { %v11895_v50 = vadd.f32 %v1318_v49, %v11839_v16  ;;  %v1291_v26 = vpop.f32.mrf.mxu1  ;;  %v1262_v6 = vpop.f32.mrf.mxu0 }
 0x1ea   : > { %v11946_v28 = vadd.f32 %v1291_v26, %v11823_v55 }
 0x1eb   : > { %15496 = vst [vmem:[#allocation36_spill] sm:$0xff] %v11895_v50 }
 0x1ed   : > { %1922 = vadd.xlane.f32.xlu2 %v1921_v22 }
 0x1ef   : > { %3145 = vadd.xlane.f32.xlu0 %v3144_v25  ;;  %v2117_v25 = vadd.f32 %v10300_v10, %v2116_v20 }
 0x1f0   : > { %v1320_v9 = vpop.f32.mrf.mxu2 }
 0x1f1   : > { %v11898_v15 = vadd.f32 %v1320_v9, %v11839_v16  ;;  %v11943_v27 = vsel %vm2118_vm10, %v10300_v10, %v2117_v25  ;;  %v11964_v10 = vadd.f32 %v1262_v6, %v11821_v54 }
 0x1f3   : > { %15497 = vst [vmem:[#allocation37_spill] sm:$0xff] %v11898_v15  ;;  %v11909_v52 = vpack.i.bf16 %v11898_v15, %v11895_v50  ;;  %v1861_v20 = vmul.f32 %v11964_v10, %v11964_v10 }
 0x1f5   : > { %15498 = vst [vmem:[#allocation38_spill] sm:$0xff] %v11909_v52  ;;  %v1936_v26 = vsel %vm1920_vm3, %v1861_v20, 0.0 }
 0x1f6   : > { %3151 = vadd.xlane.f32.xlu1 %v3150_v31 }
 0x203   : > { %1362 = vrot.lane.b32.xlu0 %v11876_v40, %s11318_s16 }
 0x205   : > { %1514 = vrot.lane.b32.xlu2 %v11881_v46, %s11317_s6 }
 0x20d   : > { %1338 = vrot.lane.b32.xlu2 %v11876_v40, %s11317_s6 }
 0x20f   : > { %1518 = vrot.lane.b32.xlu1 %v11888_v0, %s11317_s6 }
 0x215   : > { %1538 = vrot.lane.b32.xlu2 %v11881_v46, %s11318_s16 }
 0x217   : > { %1342 = vrot.lane.b32.xlu1 %v11901_v51, %s11317_s6 }
 0x21e   : > { %v11937_v21 = vpop.permute.xlu2 %1360 }
 0x21f   : > { %1368 = vrot.lane.b32.xlu1 %v11912_v56, %s11318_s16 }
 0x22d   : > { %1925 = vadd.xlane.f32.xlu0 %v1924_v12  ;;  %v1930_v12 = vsel %vm1920_vm3, %v1859_v39, 0.0 }
 0x236   : > { %v11970_v25 = vpop.permute.xlu1 %1512 }
 0x237   : > { %v11939_v22 = vpop.permute.xlu0 %1336 }
 0x23e   : > { %3148 = vadd.xlane.f32.xlu2 %v3147_v2 }
 0x241   : > { %1516 = vrot.lane.b32.xlu0 %v11865_v23, %s11317_s6 }
 0x249   : > { %1542 = vrot.lane.b32.xlu0 %v11888_v0, %s11318_s16  ;;  %3157 = vadd.xlane.f32.xlu1 %v3156_v7  ;;  %v1858_v7 = vmul.f32 %v11933_v19, %v11933_v19 }
 0x24b   : > { %v1927_v18 = vsel %vm1920_vm3, %v1858_v7, 0.0 }
 0x256   : > { %1340 = vrot.lane.b32.xlu2 %v11933_v19, %s11317_s6 }
 0x25e   : > { %1540 = vrot.lane.b32.xlu2 %v11865_v23, %s11318_s16 }
 0x260   : > { %v1923_v29 = vpop.xlane.xlu2 %1922 }
 0x261   : > { %v2120_v30 = vmul.f32 %v11943_v27, %v1923_v29  ;;  %v11975_v29 = vpop.permute.xlu1 %1536 }
 0x262   : > { %v3146_v31 = vpop.xlane.xlu0 %3145  ;;  %1546 = vrot.lane.b32.xlu1 %v11946_v28, %s11318_s16 }
 0x263   : > { %v2184_v32 = vadd.f32 1.1920929e-07, %v2120_v30  ;;  %v3336_v33 = vmul.f32 %v3146_v31, %v11943_v27  ;;  %v1323_v31 = vpop.f32.mrf.mxu2 }
 0x265   : > { %10301 = vrsqrt.f32 %v2184_v32  ;;  %v3400_v8 = vadd.f32 1.1920929e-07, %v3336_v33  ;;  %vm2254_vm13 = vweird.f32 %v2184_v32 }
 0x267   : > { %10303 = vrsqrt.f32 %v3400_v8  ;;  %vm3470_vm15 = vweird.f32 %v3400_v8 }
 0x268   : > { %v11977_v30 = vpop.permute.xlu2 %1514 }
 0x269   : > { %v3152_v33 = vpop.xlane.xlu1 %3151 }
 0x26b   : > { %v10302_v34 = vpop.eup %10301 }
 0x26c   : > { %v2249_v14 = vmul.f32 %v10302_v34, %v2184_v32  ;;  %vm2255_vm11 = vweird.f32 %v10302_v34 }
 0x26d   : > { %v10304_v35 = vpop.eup %10303  ;;  %vm2256_vm14 = vmor %vm2254_vm13, %vm2255_vm11 }
 0x26e   : > { %v2250_v36 = vmul.f32 %v10302_v34, %v2249_v14  ;;  %v3465_v37 = vmul.f32 %v10304_v35, %v3400_v8  ;;  %vm3471_vm12 = vweird.f32 %v10304_v35  ;;  %v3338_v8 = vmul.f32 %v3152_v33, %v11943_v27  ;;  %v1265_v14 = vpop.f32.mrf.mxu0 }
 0x26f   : > { %vm3472_vm0 = vmor %vm3470_vm15, %vm3471_vm12 }
 0x270   : > { %v2251_v42 = vmul.f32 0.5, %v2250_v36  ;;  %v3466_v43 = vmul.f32 %v10304_v35, %v3465_v37  ;;  %v11991_v36 = vadd.f32 %v1323_v31, %v11839_v16 }
 0x272   : > { %v2252_v44 = vsub.f32 1.5, %v2251_v42  ;;  %v3467_v45 = vmul.f32 0.5, %v3466_v43  ;;  %15499 = vst [vmem:[#allocation39_spill] sm:$0xff] %v11991_v36  ;;  %v3402_v42 = vadd.f32 1.1920929e-07, %v3338_v8  ;;  %v11997_v43 = vadd.f32 %v1265_v14, %v11821_v54 }
 0x273   : > { %3154 = vadd.xlane.f32.xlu0 %v3153_v47  ;;  %v1860_v8 = vmul.f32 %v11912_v56, %v11912_v56 }
 0x274   : > { %v2253_v48 = vmul.f32 %v10302_v34, %v2252_v44  ;;  %v3468_v49 = vsub.f32 1.5, %v3467_v45  ;;  %15501 = vst [vmem:[#allocation41_spill] sm:$0xff] %v11997_v43  ;;  %10305 = vrsqrt.f32 %v3402_v42  ;;  %vm3490_vm1 = vweird.f32 %v3402_v42 }
 0x275   : > { %v11981_v32 = vpop.permute.xlu0 %1362 }
 0x276   : > { %v3469_v63 = vmul.f32 %v10304_v35, %v3468_v49  ;;  %v2257_v53 = vsel %vm2256_vm14, %v10302_v34, %v2253_v48  ;;  %v1325_v34 = vpop.f32.mrf.mxu2 }
 0x277   : > { %v2888_v2 = vmul.f32 %v2257_v53, %v11826_v58  ;;  %v11994_v37 = vadd.f32 %v1325_v34, %v11839_v16 }
 0x278   : > { %v3473_v9 = vsel %vm3472_vm0, %v10304_v35, %v3469_v63  ;;  %v11984_v35 = vpop.permute.xlu2 %1338 }
 0x279   : > { %v4104_v57 = vmul.f32 %v3473_v9, %v11829_v59  ;;  %v2952_v5 = vmul.f32 0.25, %v2888_v2  ;;  %15500 = vst [vmem:[#allocation40_spill] sm:$0xff] %v11994_v37  ;;  %v12002_v45 = vpack.i.bf16 %v11994_v37, %v11991_v36 }
 0x27a   : > { %v10306_v48 = vpop.eup %10305 }
 0x27b   : > { %1931 = vadd.xlane.f32.xlu0 %v1930_v12  ;;  %v4168_v60 = vpack.c.bf16 %v4104_v57, %v4104_v57  ;;  %v3016_v11 = vpack.c.bf16 %v2952_v5, %v2952_v5  ;;  %15502 = vst [vmem:[#allocation42_spill] sm:$0xff] %v12002_v45  ;;  %v3485_v49 = vmul.f32 %v10306_v48, %v3402_v42  ;;  %vm3491_vm2 = vweird.f32 %v10306_v48 }
 0x27c   : > { %vm3492_vm4 = vmor %vm3490_vm1, %vm3491_vm2 }
 0x27d   : > { %v4236_v3 = vsel %vm1920_vm3, %v4168_v60, 0  ;;  %v3486_v9 = vmul.f32 %v10306_v48, %v3485_v49 }
 0x27e   : > { %4245 = vmatpush.bf16.xpose.msrb.mxu0 %v4236_v3 }
 0x27f   : > { %v3487_v60 = vmul.f32 0.5, %v3486_v9 }
 0x280   : > { %v12008_v16 = vpop.permute.xlu2 %1538 }
 0x281   : > { %v3488_v3 = vsub.f32 1.5, %v3487_v60 }
 0x285   : > { %9475 = vmatmul.msk.bf16.vlgmr.msrb.gmra.mxu0 %vm1920_vm3, %v3016_v11  ;;  %v3489_v11 = vmul.f32 %v10306_v48, %v3488_v3 }
 0x287   : > { %1928 = vadd.xlane.f32.xlu2 %v1927_v18  ;;  %v3493_v33 = vsel %vm3492_vm4, %v10306_v48, %v3489_v11 }
 0x288   : > { %v4106_v42 = vmul.f32 %v3493_v33, %v11865_v23 }
 0x28a   : > { %v4170_v9 = vpack.c.bf16 %v4106_v42, %v4106_v42 }
 0x28c   : > { %1937 = vadd.xlane.f32.xlu1 %v1936_v26  ;;  %v1294_v26 = vpop.f32.mrf.mxu1  ;;  %v4274_v3 = vsel %vm1920_vm3, %v4170_v9, 0 }
 0x28f   : > { %1344 = vrot.lane.b32.xlu0 %v11912_v56, %s11317_s6 }
 0x297   : > { %1544 = vrot.lane.b32.xlu0 %v11923_v4, %s11318_s16 }
 0x29f   : > { %1522 = vrot.lane.b32.xlu0 %v11946_v28, %s11317_s6  ;;  %1520 = vrot.lane.b32.xlu2 %v11923_v4, %s11317_s6 }
 0x2a0   : > { %v1926_v38 = vpop.xlane.xlu0 %1925 }
 0x2a1   : > { %v2121_v44 = vmul.f32 %v11943_v27, %v1926_v38 }
 0x2a3   : > { %v2185_v47 = vadd.f32 1.1920929e-07, %v2121_v44  ;;  %v1933_v44 = vsel %vm1920_vm3, %v1860_v8, 0.0 }
 0x2a5   : > { %1348 = vrot.lane.b32.xlu1 %v11997_v43, %s11317_s6  ;;  %10307 = vrsqrt.f32 %v2185_v47  ;;  %vm2264_vm7 = vweird.f32 %v2185_v47 }
 0x2a7   : > { %1346 = vrot.lane.b32.xlu0 %v11964_v10, %s11317_s6 }
 0x2ab   : > { %v10308_v39 = vpop.eup %10307 }
 0x2ac   : > { %v2259_v57 = vmul.f32 %v10308_v39, %v2185_v47  ;;  %vm2265_vm5 = vweird.f32 %v10308_v39  ;;  %v1862_v47 = vmul.f32 %v11997_v43, %v11997_v43 }
 0x2ad   : > { %vm2266_vm8 = vmor %vm2264_vm7, %vm2265_vm5 }
 0x2ae   : > { %v2260_v2 = vmul.f32 %v10308_v39, %v2259_v57 }
 0x2af   : > { %1370 = vrot.lane.b32.xlu0 %v11964_v10, %s11318_s16 }
 0x2b0   : > { %v2261_v5 = vmul.f32 0.5, %v2260_v2 }
 0x2b1   : > { %v3149_v63 = vpop.xlane.xlu2 %3148 }
 0x2b2   : > { %v3337_v53 = vmul.f32 %v3149_v63, %v11943_v27  ;;  %v2262_v18 = vsub.f32 1.5, %v2261_v5  ;;  %v1939_v5 = vsel %vm1920_vm3, %v1862_v47, 0.0 }
 0x2b4   : > { %v3401_v12 = vadd.f32 1.1920929e-07, %v3337_v53  ;;  %v2263_v14 = vmul.f32 %v10308_v39, %v2262_v18  ;;  %v12018_v53 = vpop.permute.xlu1 %1518 }
 0x2b6   : > { %10309 = vrsqrt.f32 %v3401_v12  ;;  %vm3480_vm9 = vweird.f32 %v3401_v12  ;;  %v2267_v63 = vsel %vm2266_vm8, %v10308_v39, %v2263_v14  ;;  %v12043_v14 = vadd.f32 %v1294_v26, %v11823_v55 }
 0x2b7   : > { %v2889_v60 = vmul.f32 %v2267_v63, %v11876_v40 }
 0x2b8   : > { %15503 = vst [vmem:[#allocation43_spill] sm:$0xff] %v12043_v14 }
 0x2bc   : > { %v10310_v6 = vpop.eup %10309  ;;  %v12031_v18 = vpop.permute.xlu1 %1342 }
 0x2bd   : > { %v3475_v7 = vmul.f32 %v10310_v6, %v3401_v12  ;;  %vm3481_vm6 = vweird.f32 %v10310_v6  ;;  %v1296_v12 = vpop.f32.mrf.mxu1 }
 0x2be   : > { %vm3482_vm10 = vmor %vm3480_vm9, %vm3481_vm6  ;;  %v12026_v39 = vadd.f32 %v1296_v12, %v11823_v55 }
 0x2bf   : > { %v3476_v20 = vmul.f32 %v10310_v6, %v3475_v7 }
 0x2c0   : > { %v3087_v11 = vmul.f32 %v12026_v39, %v12026_v39 }
 0x2c1   : > { %v3477_v31 = vmul.f32 0.5, %v3476_v20  ;;  %v12033_v20 = vpop.permute.xlu0 %1516 }
 0x2c2   : > { %v3165_v33 = vsel %vm1920_vm3, %v3087_v11, 0.0 }
 0x2c3   : > { %v3478_v34 = vsub.f32 1.5, %v3477_v31  ;;  %v3085_v31 = vmul.f32 %v11946_v28, %v11946_v28 }
 0x2c5   : > { %v3479_v38 = vmul.f32 %v10310_v6, %v3478_v34  ;;  %v3159_v8 = vsel %vm1920_vm3, %v3085_v31, 0.0  ;;  %v12040_v34 = vpop.permute.xlu1 %1368  ;;  %v12062_v31 = vpop.f32.mrf.mxu0 }
 0x2c7   : > { %v3483_v49 = vsel %vm3482_vm10, %v10310_v6, %v3479_v38  ;;  %v2953_v6 = vmul.f32 0.25, %v2889_v60 }
 0x2c8   : > { %1934 = vadd.xlane.f32.xlu2 %v1933_v44  ;;  %v4105_v48 = vmul.f32 %v3483_v49, %v11881_v46 }
 0x2c9   : > { %v3017_v7 = vpack.c.bf16 %v2953_v6, %v2953_v6  ;;  %v12045_v38 = vpop.permute.xlu0 %1542 }
 0x2ca   : > { %v4169_v57 = vpack.c.bf16 %v4105_v48, %v4105_v48  ;;  %15504 = vst [vmem:[#allocation44_spill] sm:$0xff] %v12045_v38  ;;  %v12051_v48 = vpop.permute.xlu2 %1340 }
 0x2cc   : > { %v4255_v2 = vsel %vm1920_vm3, %v4169_v57, 0 }
 0x2cd   : > { %4264 = vmatpush.bf16.xpose.msra.mxu3 %v4255_v2  ;;  %v3158_v42 = vpop.xlane.xlu1 %3157 }
 0x2ce   : > { %v3340_v49 = vmul.f32 %v3158_v42, %v11943_v27 }
 0x2cf   : > { %1940 = vadd.xlane.f32.xlu1 %v1939_v5 }
 0x2d0   : > { %v3404_v57 = vadd.f32 1.1920929e-07, %v3340_v49 }
 0x2d2   : > { %v12057_v26 = vpop.permute.xlu2 %1540  ;;  %vm3510_vm15 = vweird.f32 %v3404_v57 }
 0x2d4   : > { %9476 = vmatmul.msk.bf16.vlgmr.msra.gmra.mxu3 %vm1920_vm3, %v3017_v7 }
 0x2d5   : > { %4283 = vmatpush.bf16.xpose.msrb.mxu3 %v4274_v3 }
 0x2d7   : > { %3166 = vadd.xlane.f32.xlu1 %v3165_v33 }
 0x2d9   : > { %3160 = vadd.xlane.f32.xlu0 %v3159_v8 }
 0x2e0   : > { %1524 = vrot.lane.b32.xlu2 %v12043_v14, %s11317_s6 }
 0x2e6   : > { %v3155_v44 = vpop.xlane.xlu0 %3154 }
 0x2e7   : > { %v3339_v63 = vmul.f32 %v3155_v44, %v11943_v27 }
 0x2e9   : > { %v3403_v9 = vadd.f32 1.1920929e-07, %v3339_v63 }
 0x2eb   : > { %10311 = vrsqrt.f32 %v3403_v9  ;;  %vm3500_vm12 = vweird.f32 %v3403_v9 }
 0x2ec   : > { %10313 = vrsqrt.f32 %v3404_v57 }
 0x2ed   : > { %1366 = vrot.lane.b32.xlu0 %v11901_v51, %s11318_s16 }
 0x2ee   : > { %v1932_v60 = vpop.xlane.xlu0 %1931 }
 0x2ef   : > { %v2123_v3 = vmul.f32 %v11943_v27, %v1932_v60 }
 0x2f0   : > { %1560 = vrot.lane.b32.xlu1 %v11829_v59, %s11320_s20 }
 0x2f1   : > { %v10312_v55 = vpop.eup %10311  ;;  %v2187_v11 = vadd.f32 1.1920929e-07, %v2123_v3 }
 0x2f2   : > { %v3495_v47 = vmul.f32 %v10312_v55, %v3403_v9  ;;  %v10314_v2 = vpop.eup %10313  ;;  %vm3501_vm11 = vweird.f32 %v10312_v55 }
 0x2f3   : > { %v3505_v6 = vmul.f32 %v10314_v2, %v3404_v57  ;;  %vm3502_vm13 = vmor %vm3500_vm12, %vm3501_vm11  ;;  %10315 = vrsqrt.f32 %v2187_v11  ;;  %vm3511_vm14 = vweird.f32 %v10314_v2  ;;  %vm2284_vm6 = vweird.f32 %v2187_v11 }
 0x2f4   : > { %v3496_v12 = vmul.f32 %v10312_v55, %v3495_v47  ;;  %vm3512_vm0 = vmor %vm3510_vm15, %vm3511_vm14 }
 0x2f5   : > { %1562 = vrot.lane.b32.xlu0 %v11881_v46, %s11320_s20  ;;  %v3506_v44 = vmul.f32 %v10314_v2, %v3505_v6 }
 0x2f6   : > { %v3497_v5 = vmul.f32 0.5, %v3496_v12 }
 0x2f7   : > { %v3507_v12 = vmul.f32 0.5, %v3506_v44 }
 0x2f8   : > { %v3498_v7 = vsub.f32 1.5, %v3497_v5 }
 0x2f9   : > { %v10316_v9 = vpop.eup %10315  ;;  %v3508_v41 = vsub.f32 1.5, %v3507_v12 }
 0x2fa   : > { %v1929_v33 = vpop.xlane.xlu2 %1928  ;;  %v3499_v8 = vmul.f32 %v10312_v55, %v3498_v7  ;;  %v3086_v7 = vmul.f32 %v12043_v14, %v12043_v14  ;;  %v2279_v6 = vmul.f32 %v10316_v9, %v2187_v11  ;;  %vm2285_vm5 = vweird.f32 %v10316_v9 }
 0x2fb   : > { %v2122_v42 = vmul.f32 %v11943_v27, %v1929_v33  ;;  %vm2286_vm7 = vmor %vm2284_vm6, %vm2285_vm5 }
 0x2fc   : > { %v3503_v49 = vsel %vm3502_vm13, %v10312_v55, %v3499_v8  ;;  %v2280_v44 = vmul.f32 %v10316_v9, %v2279_v6  ;;  %v1864_v6 = vmul.f32 %v11939_v22, %v11939_v22 }
 0x2fd   : > { %v2186_v63 = vadd.f32 1.1920929e-07, %v2122_v42  ;;  %v4107_v47 = vmul.f32 %v3503_v49, %v11888_v0  ;;  %v3162_v42 = vsel %vm1920_vm3, %v3086_v7, 0.0  ;;  %v3509_v49 = vmul.f32 %v10314_v2, %v3508_v41 }
 0x2fe   : > { %v2281_v37 = vmul.f32 0.5, %v2280_v44  ;;  %v1865_v44 = vmul.f32 %v11984_v35, %v11984_v35 }
 0x2ff   : > { %10317 = vrsqrt.f32 %v2186_v63  ;;  %v4171_v60 = vpack.c.bf16 %v4107_v47, %v4107_v47  ;;  %v3513_v12 = vsel %vm3512_vm0, %v10314_v2, %v3509_v49  ;;  %vm2274_vm2 = vweird.f32 %v2186_v63 }
 0x300   : > { %v4108_v13 = vmul.f32 %v3513_v12, %v11923_v4  ;;  %v2282_v7 = vsub.f32 1.5, %v2281_v37  ;;  %v1948_v12 = vsel %vm1920_vm3, %v1865_v44, 0.0 }
 0x301   : > { %v4293_v5 = vsel %vm1920_vm3, %v4171_v60, 0 }
 0x302   : > { %v12067_v3 = vpop.f32.mrf.mxu0  ;;  %4302 = vmatpush.bf16.xpose.msra.mxu3 %v4293_v5 }
 0x303   : > { %15505 = vst [vmem:[#allocation45_spill] sm:$0xff] %v12067_v3 }
 0x305   : > { %v10318_v33 = vpop.eup %10317 }
 0x306   : > { %v2269_v55 = vmul.f32 %v10318_v33, %v2186_v63  ;;  %vm2275_vm1 = vweird.f32 %v10318_v33  ;;  %v3089_v63 = vmul.f32 %v11977_v30, %v11977_v30 }
 0x307   : > { %vm2276_vm4 = vmor %vm2274_vm2, %vm2275_vm1 }
 0x308   : > { %v2270_v8 = vmul.f32 %v10318_v33, %v2269_v55 }
 0x309   : > { %3163 = vadd.xlane.f32.xlu2 %v3162_v42  ;;  %v4172_v42 = vpack.c.bf16 %v4108_v13, %v4108_v13  ;;  %v3088_v13 = vmul.f32 %v11970_v25, %v11970_v25 }
 0x30a   : > { %v2271_v47 = vmul.f32 0.5, %v2270_v8  ;;  %v4249_v60 = vpop.f32.mrf.mxu0  ;;  %v2283_v8 = vmul.f32 %v10316_v9, %v2282_v7  ;;  %v12101_v7 = vpop.permute.xlu2 %1520 }
 0x30b   : > { %v4312_v2 = vsel %vm1920_vm3, %v4172_v42, 0  ;;  %v12107_v42 = vpop.permute.xlu1 %1546 }
 0x30c   : > { %v2272_v5 = vsub.f32 1.5, %v2271_v47  ;;  %v12076_v47 = vpop.permute.xlu0 %1344 }
 0x30e   : > { %v2273_v36 = vmul.f32 %v10318_v33, %v2272_v5  ;;  %v3090_v5 = vmul.f32 %v12033_v20, %v12033_v20 }
 0x310   : > { %v2277_v17 = vsel %vm2276_vm4, %v10318_v33, %v2273_v36  ;;  %v2287_v36 = vsel %vm2286_vm7, %v10316_v9, %v2283_v8  ;;  %v3168_v33 = vsel %vm1920_vm3, %v3088_v13, 0.0  ;;  %v3171_v9 = vsel %vm1920_vm3, %v3089_v63, 0.0 }
 0x311   : > { %v2890_v55 = vmul.f32 %v2277_v17, %v11933_v19  ;;  %v1945_v17 = vsel %vm1920_vm3, %v1864_v6, 0.0  ;;  %v2891_v37 = vmul.f32 %v2287_v36, %v11901_v51  ;;  %v3092_v6 = vmul.f32 %v12101_v7, %v12101_v7 }
 0x313   : > { %v2954_v41 = vmul.f32 0.25, %v2890_v55  ;;  %v2955_v11 = vmul.f32 0.25, %v2891_v37  ;;  %v12099_v55 = vadd.f32 %v12062_v31, %v11821_v54  ;;  %v3180_v31 = vsel %vm1920_vm3, %v3092_v6, 0.0 }
 0x314   : > { %v12087_v49 = vpop.permute.xlu0 %1544 }
 0x315   : > { %v3018_v57 = vpack.c.bf16 %v2954_v41, %v2954_v41  ;;  %v3019_v60 = vpack.c.bf16 %v2955_v11, %v2955_v11  ;;  %v3174_v41 = vsel %vm1920_vm3, %v3090_v5, 0.0 }
 0x317   : > { %9477 = vmatmul.msk.bf16.vlgmr.msrb.gmra.mxu3 %vm1920_vm3, %v3018_v57 }
 0x318   : > { %4321 = vmatpush.bf16.xpose.msrb.mxu3 %v4312_v2  ;;  %v1938_v2 = vpop.xlane.xlu1 %1937 }
 0x319   : > { %v2125_v13 = vmul.f32 %v11943_v27, %v1938_v2 }
 0x31a   : > { %1946 = vadd.xlane.f32.xlu1 %v1945_v17 }
 0x31b   : > { %v2189_v11 = vadd.f32 1.1920929e-07, %v2125_v13  ;;  %v1863_v13 = vmul.f32 %v12099_v55, %v12099_v55 }
 0x31c   : > { %v12109_v57 = vpop.permute.xlu0 %1522 }
 0x31d   : > { %v3093_v54 = vmul.f32 %v12109_v57, %v12109_v57  ;;  %v1942_v15 = vsel %vm1920_vm3, %v1863_v13, 0.0  ;;  %vm2304_vm15 = vweird.f32 %v2189_v11 }
 0x31f   : > { %3169 = vadd.xlane.f32.xlu0 %v3168_v33  ;;  %v3183_v8 = vsel %vm1920_vm3, %v3093_v54, 0.0 }
 0x320   : > { %v12119_v36 = vpop.permute.xlu1 %1348 }
 0x321   : > { %1526 = vrot.lane.b32.xlu2 %v12026_v39, %s11317_s6 }
 0x322   : > { %3172 = vadd.xlane.f32.xlu1 %v3171_v9 }
 0x324   : > { %v12117_v17 = vpop.permute.xlu0 %1346 }
 0x327   : > { %1949 = vadd.xlane.f32.xlu0 %v1948_v12  ;;  %9478 = vmatmul.msk.bf16.vlgmr.msra.gmra.mxu3 %vm1920_vm3, %v3019_v60 }
 0x329   : > { %1350 = vrot.lane.b32.xlu2 %v12099_v55, %s11317_s6 }
 0x32a   : > { %3175 = vadd.xlane.f32.xlu1 %v3174_v41 }
 0x32c   : > { %v12127_v44 = vpop.permute.xlu0 %1370 }
 0x32f   : > { %3181 = vadd.xlane.f32.xlu0 %v3180_v31 }
 0x332   : > { %3184 = vadd.xlane.f32.xlu1 %v3183_v8 }
 0x33b   : > { %v1935_v37 = vpop.xlane.xlu2 %1934 }
 0x33c   : > { %v2124_v63 = vmul.f32 %v11943_v27, %v1935_v37 }
 0x33e   : > { %v2188_v33 = vadd.f32 1.1920929e-07, %v2124_v63 }
 0x340   : > { %10319 = vrsqrt.f32 %v2188_v33  ;;  %vm2294_vm9 = vweird.f32 %v2188_v33 }
 0x341   : > { %10321 = vrsqrt.f32 %v2189_v11 }
 0x342   : > { %v12123_v9 = vpop.xlane.xlu1 %1940 }
 0x343   : > { %1386 = vrot.lane.b32.xlu0 %v11876_v40, %s11320_s20 }
 0x346   : > { %v10320_v60 = vpop.eup %10319 }
 0x347   : > { %v2289_v5 = vmul.f32 %v10320_v60, %v2188_v33  ;;  %v10322_v12 = vpop.eup %10321  ;;  %vm2295_vm8 = vweird.f32 %v10320_v60 }
 0x348   : > { %v2299_v8 = vmul.f32 %v10322_v12, %v2189_v11  ;;  %vm2296_vm10 = vmor %vm2294_vm9, %vm2295_vm8  ;;  %vm2305_vm12 = vweird.f32 %v10322_v12 }
 0x349   : > { %v2290_v41 = vmul.f32 %v10320_v60, %v2289_v5  ;;  %vm2306_vm1 = vmor %vm2304_vm15, %vm2305_vm12 }
 0x34a   : > { %v3167_v6 = vpop.xlane.xlu1 %3166 }
 0x34b   : > { %v2291_v54 = vmul.f32 0.5, %v2290_v41  ;;  %v3343_v31 = vmul.f32 %v3167_v6, %v11943_v27  ;;  %1548 = vrot.lane.b32.xlu1 %v12043_v14, %s11318_s16  ;;  %v2300_v41 = vmul.f32 %v10322_v12, %v2299_v8 }
 0x34c   : > { %v3161_v2 = vpop.xlane.xlu0 %3160 }
 0x34d   : > { %v2292_v37 = vsub.f32 1.5, %v2291_v54  ;;  %v3407_v63 = vadd.f32 1.1920929e-07, %v3343_v31  ;;  %v3341_v45 = vmul.f32 %v3161_v2, %v11943_v27  ;;  %v2301_v54 = vmul.f32 0.5, %v2300_v41 }
 0x34f   : > { %v2293_v50 = vmul.f32 %v10320_v60, %v2292_v37  ;;  %10323 = vrsqrt.f32 %v3407_v63  ;;  %v3405_v5 = vadd.f32 1.1920929e-07, %v3341_v45  ;;  %v2302_v45 = vsub.f32 1.5, %v2301_v54 }
 0x350   : > { %vm3540_vm13 = vweird.f32 %v3407_v63 }
 0x351   : > { %v2297_v6 = vsel %vm2296_vm10, %v10320_v60, %v2293_v50  ;;  %10325 = vrsqrt.f32 %v3405_v5  ;;  %vm3520_vm2 = vweird.f32 %v3405_v5 }
 0x352   : > { %v2892_v62 = vmul.f32 %v2297_v6, %v11912_v56  ;;  %1943 = vadd.xlane.f32.xlu2 %v1942_v15  ;;  %v2303_v6 = vmul.f32 %v10322_v12, %v2302_v45 }
 0x354   : > { %v2956_v61 = vmul.f32 0.25, %v2892_v62 }
 0x355   : > { %v10324_v1 = vpop.eup %10323 }
 0x356   : > { %v3535_v24 = vmul.f32 %v10324_v1, %v3407_v63  ;;  %v3020_v31 = vpack.c.bf16 %v2956_v61, %v2956_v61  ;;  %vm3541_vm11 = vweird.f32 %v10324_v1 }
 0x357   : > { %v10326_v52 = vpop.eup %10325  ;;  %v12137_v2 = vpop.f32.mrf.mxu3  ;;  %vm3542_vm0 = vmor %vm3540_vm13, %vm3541_vm11 }
 0x358   : > { %15506 = vst [vmem:[#allocation46_spill] sm:$0xff] %v12137_v2  ;;  %v3536_v33 = vmul.f32 %v10324_v1, %v3535_v24  ;;  %v3515_v37 = vmul.f32 %v10326_v52, %v3405_v5  ;;  %9479 = vmatmul.msk.bf16.vlgmr.msrb.gmra.mxu3 %vm1920_vm3, %v3020_v31  ;;  %vm3521_vm14 = vweird.f32 %v10326_v52  ;;  %v2307_v31 = vsel %vm2306_vm1, %v10322_v12, %v2303_v6 }
 0x359   : > { %vm3522_vm4 = vmor %vm3520_vm2, %vm3521_vm14  ;;  %v2893_v63 = vmul.f32 %v2307_v31, %v11964_v10  ;;  %v2126_v12 = vmul.f32 %v11943_v27, %v12123_v9 }
 0x35a   : > { %v3537_v50 = vmul.f32 0.5, %v3536_v33  ;;  %v3516_v60 = vmul.f32 %v10326_v52, %v3515_v37 }
 0x35b   : > { %v2957_v5 = vmul.f32 0.25, %v2893_v63  ;;  %v2190_v6 = vadd.f32 1.1920929e-07, %v2126_v12  ;;  %v3091_v12 = vmul.f32 %v12018_v53, %v12018_v53 }
 0x35c   : > { %v3538_v8 = vsub.f32 1.5, %v3537_v50  ;;  %v3517_v13 = vmul.f32 0.5, %v3516_v60 }
 0x35d   : > { %10327 = vrsqrt.f32 %v2190_v6  ;;  %vm2314_vm7 = vweird.f32 %v2190_v6 }
 0x35e   : > { %v3518_v62 = vsub.f32 1.5, %v3517_v13  ;;  %v3539_v15 = vmul.f32 %v10324_v1, %v3538_v8  ;;  %v3021_v8 = vpack.c.bf16 %v2957_v5, %v2957_v5  ;;  %v1867_v13 = vmul.f32 %v12031_v18, %v12031_v18 }
 0x35f   : > { %v4268_v61 = vpop.f32.mrf.mxu3  ;;  %v12159_v31 = vpop.permute.xlu0 %1366 }
 0x360   : > { %v3543_v24 = vsel %vm3542_vm0, %v10324_v1, %v3539_v15  ;;  %v3519_v41 = vmul.f32 %v10326_v52, %v3518_v62  ;;  %v1869_v1 = vmul.f32 %v12117_v17, %v12117_v17  ;;  %v12155_v62 = vpop.permute.xlu2 %1524  ;;  %v1954_v15 = vsel %vm1920_vm3, %v1867_v13, 0.0  ;;  %15507 = vst [vmem:[#allocation47_spill] sm:$0xff] %v12159_v31 }
 0x361   : > { %v4111_v54 = vmul.f32 %v3543_v24, %v12026_v39 }
 0x362   : > { %v3523_v33 = vsel %vm3522_vm4, %v10326_v52, %v3519_v41  ;;  %v1960_v52 = vsel %vm1920_vm3, %v1869_v1, 0.0 }
 0x363   : > { %v4175_v37 = vpack.c.bf16 %v4111_v54, %v4111_v54  ;;  %v4109_v45 = vmul.f32 %v3523_v33, %v11946_v28  ;;  %v10328_v61 = vpop.eup %10327 }
 0x364   : > { %v2309_v54 = vmul.f32 %v10328_v61, %v2190_v6  ;;  %vm2315_vm5 = vweird.f32 %v10328_v61 }
 0x365   : > { %v4369_v50 = vsel %vm1920_vm3, %v4175_v37, 0  ;;  %v4173_v60 = vpack.c.bf16 %v4109_v45, %v4109_v45  ;;  %v12163_v37 = vpop.permute.xlu1 %1560  ;;  %vm2316_vm8 = vmor %vm2314_vm7, %vm2315_vm5 }
 0x366   : > { %4378 = vmatpush.bf16.xpose.msrb.mxu1 %v4369_v50  ;;  %v2310_v33 = vmul.f32 %v10328_v61, %v2309_v54  ;;  %15508 = vst [vmem:[#allocation48_spill] sm:$0xff] %v12163_v37 }
 0x367   : > { %v4331_v11 = vsel %vm1920_vm3, %v4173_v60, 0 }
 0x368   : > { %4340 = vmatpush.bf16.xpose.msra.mxu3 %v4331_v11  ;;  %v2311_v45 = vmul.f32 0.5, %v2310_v33  ;;  %v12165_v11 = vpop.permute.xlu0 %1562 }
 0x36a   : > { %1364 = vrot.lane.b32.xlu2 %v11933_v19, %s11318_s16  ;;  %v2312_v60 = vsub.f32 1.5, %v2311_v45  ;;  %v3177_v45 = vsel %vm1920_vm3, %v3091_v12, 0.0 }
 0x36d   : > { %1961 = vadd.xlane.f32.xlu0 %v1960_v52 }
 0x36f   : > { %9480 = vmatmul.msk.bf16.vlgmr.msra.gmra.mxu3 %vm1920_vm3, %v3021_v8  ;;  %v2313_v8 = vmul.f32 %v10328_v61, %v2312_v60 }
 0x371   : > { %v2317_v54 = vsel %vm2316_vm8, %v10328_v61, %v2313_v8  ;;  %v1868_v61 = vmul.f32 %v12076_v47, %v12076_v47 }
 0x375   : > { %1955 = vadd.xlane.f32.xlu1 %v1954_v15 }
 0x37c   : > { %v3164_v24 = vpop.xlane.xlu2 %3163 }
 0x37d   : > { %v3342_v41 = vmul.f32 %v3164_v24, %v11943_v27 }
 0x37f   : > { %v3406_v9 = vadd.f32 1.1920929e-07, %v3342_v41 }
 0x381   : > { %10329 = vrsqrt.f32 %v3406_v9  ;;  %1550 = vrot.lane.b32.xlu0 %v12026_v39, %s11318_s16  ;;  %vm3530_vm9 = vweird.f32 %v3406_v9 }
 0x387   : > { %v10330_v63 = vpop.eup %10329 }
 0x388   : > { %v3525_v50 = vmul.f32 %v10330_v63, %v3406_v9  ;;  %vm3531_vm6 = vweird.f32 %v10330_v63 }
 0x389   : > { %vm3532_vm10 = vmor %vm3530_vm9, %vm3531_vm6 }
 0x38a   : > { %v3526_v1 = vmul.f32 %v10330_v63, %v3525_v50 }
 0x38c   : > { %v3527_v5 = vmul.f32 0.5, %v3526_v1 }
 0x38d   : > { %v1947_v52 = vpop.xlane.xlu1 %1946 }
 0x38e   : > { %v3528_v13 = vsub.f32 1.5, %v3527_v5  ;;  %v2128_v15 = vmul.f32 %v11943_v27, %v1947_v52  ;;  %1372 = vrot.lane.b32.xlu1 %v11997_v43, %s11318_s16  ;;  %v2894_v5 = vmul.f32 %v2317_v54, %v11997_v43 }
 0x390   : > { %v2192_v24 = vadd.f32 1.1920929e-07, %v2128_v15  ;;  %v3529_v41 = vmul.f32 %v10330_v63, %v3528_v13  ;;  %v2958_v13 = vmul.f32 0.25, %v2894_v5 }
 0x392   : > { %10331 = vrsqrt.f32 %v2192_v24  ;;  %v3170_v33 = vpop.xlane.xlu0 %3169  ;;  %v3533_v50 = vsel %vm3532_vm10, %v10330_v63, %v3529_v41  ;;  %vm2334_vm13 = vweird.f32 %v2192_v24 }
 0x393   : > { %v3344_v60 = vmul.f32 %v3170_v33, %v11943_v27  ;;  %3178 = vadd.xlane.f32.xlu2 %v3177_v45  ;;  %v4110_v1 = vmul.f32 %v3533_v50, %v12043_v14  ;;  %v1957_v33 = vsel %vm1920_vm3, %v1868_v61, 0.0 }
 0x395   : > { %v3408_v52 = vadd.f32 1.1920929e-07, %v3344_v60  ;;  %v3173_v6 = vpop.xlane.xlu1 %3172  ;;  %v4174_v2 = vpack.c.bf16 %v4110_v1, %v4110_v1 }
 0x396   : > { %v3345_v9 = vmul.f32 %v3173_v6, %v11943_v27 }
 0x397   : > { %10333 = vrsqrt.f32 %v3408_v52  ;;  %v4350_v8 = vsel %vm1920_vm3, %v4174_v2, 0  ;;  %vm3550_vm15 = vweird.f32 %v3408_v52 }
 0x398   : > { %v12180_v12 = vpop.eup %10331  ;;  %v3409_v63 = vadd.f32 1.1920929e-07, %v3345_v9  ;;  %4359 = vmatpush.bf16.xpose.msra.mxu0 %v4350_v8  ;;  %v3022_v9 = vpack.c.bf16 %v2958_v13, %v2958_v13 }
 0x399   : > { %v2329_v15 = vmul.f32 %v12180_v12, %v2192_v24  ;;  %vm2335_vm11 = vweird.f32 %v12180_v12 }
 0x39a   : > { %10335 = vrsqrt.f32 %v3409_v63  ;;  %v1950_v41 = vpop.xlane.xlu0 %1949  ;;  %v12183_v54 = vpop.f32.mrf.mxu3  ;;  %vm12203_vm14 = vmor %vm2334_vm13, %vm2335_vm11  ;;  %vm3560_vm2 = vweird.f32 %v3409_v63 }
 0x39b   : > { %15509 = vst [vmem:[#allocation49_spill] sm:$0xff] %v12183_v54  ;;  %v2330_v45 = vmul.f32 %v12180_v12, %v2329_v15  ;;  %v2129_v50 = vmul.f32 %v11943_v27, %v1950_v41  ;;  %1958 = vadd.xlane.f32.xlu2 %v1957_v33 }
 0x39d   : > { %v10334_v60 = vpop.eup %10333  ;;  %v2331_v2 = vmul.f32 0.5, %v2330_v45  ;;  %v12188_v1 = vadd.f32 1.1920929e-07, %v2129_v50  ;;  %v3176_v6 = vpop.xlane.xlu1 %3175 }
 0x39e   : > { %v3545_v5 = vmul.f32 %v10334_v60, %v3408_v52  ;;  %v3346_v8 = vmul.f32 %v3176_v6, %v11943_v27  ;;  %vm3551_vm12 = vweird.f32 %v10334_v60 }
 0x39f   : > { %10337 = vrsqrt.f32 %v12188_v1  ;;  %9481 = vmatmul.msk.bf16.vlgmr.msra.gmra.mxu0 %vm1920_vm3, %v3022_v9  ;;  %v2332_v61 = vsub.f32 1.5, %v2331_v2  ;;  %vm3552_vm1 = vmor %vm3550_vm15, %vm3551_vm12  ;;  %vm2344_vm6 = vweird.f32 %v12188_v1 }
 0x3a0   : > { %v10336_v54 = vpop.eup %10335  ;;  %v3546_v3 = vmul.f32 %v10334_v60, %v3545_v5  ;;  %v12193_v15 = vadd.f32 1.1920929e-07, %v3346_v8 }
 0x3a1   : > { %v3555_v41 = vmul.f32 %v10336_v54, %v3409_v63  ;;  %v2333_v43 = vmul.f32 %v12180_v12, %v2332_v61  ;;  %vm3561_vm0 = vweird.f32 %v10336_v54 }
 0x3a2   : > { %v3547_v33 = vmul.f32 0.5, %v3546_v3  ;;  %10339 = vrsqrt.f32 %v12193_v15  ;;  %v3182_v45 = vpop.xlane.xlu0 %3181  ;;  %v4287_v50 = vpop.f32.mrf.mxu3  ;;  %v3096_v3 = vmul.f32 %v11975_v29, %v11975_v29  ;;  %vm3562_vm4 = vmor %vm3560_vm2, %vm3561_vm0  ;;  %vm3570_vm9 = vweird.f32 %v12193_v15 }
 0x3a3   : > { %v3556_v13 = vmul.f32 %v10336_v54, %v3555_v41  ;;  %v3348_v6 = vmul.f32 %v3182_v45, %v11943_v27  ;;  %v2337_v52 = vsel %vm12203_vm14, %v12180_v12, %v2333_v43 }
 0x3a4   : > { %v3548_v31 = vsub.f32 1.5, %v3547_v33  ;;  %v2896_v43 = vmul.f32 %v2337_v52, %v11939_v22 }
 0x3a5   : > { %v10338_v9 = vpop.eup %10337  ;;  %v3557_v2 = vmul.f32 0.5, %v3556_v13  ;;  %v12199_v5 = vadd.f32 1.1920929e-07, %v3348_v6  ;;  %v3185_v8 = vpop.xlane.xlu1 %3184 }
 0x3a6   : > { %v2339_v41 = vmul.f32 %v10338_v9, %v12188_v1  ;;  %v3349_v61 = vmul.f32 %v3185_v8, %v11943_v27  ;;  %v3549_v33 = vmul.f32 %v10334_v60, %v3548_v31  ;;  %vm2345_vm5 = vweird.f32 %v10338_v9 }
 0x3a7   : > { %v3558_v45 = vsub.f32 1.5, %v3557_v2  ;;  %10341 = vrsqrt.f32 %v12199_v5  ;;  %vm2346_vm7 = vmor %vm2344_vm6, %vm2345_vm5  ;;  %vm3590_vm12 = vweird.f32 %v12199_v5 }
 0x3a8   : > { %v10340_v24 = vpop.eup %10339  ;;  %v2340_v13 = vmul.f32 %v10338_v9, %v2339_v41  ;;  %v12211_v6 = vadd.f32 1.1920929e-07, %v3349_v61  ;;  %v3553_v14 = vsel %vm3552_vm1, %v10334_v60, %v3549_v33  ;;  %v3192_v41 = vsel %vm1920_vm3, %v3096_v3, 0.0 }
 0x3a9   : > { %v3565_v37 = vmul.f32 %v10340_v24, %v12193_v15  ;;  %v4112_v31 = vmul.f32 %v3553_v14, %v11970_v25  ;;  %v3559_v2 = vmul.f32 %v10336_v54, %v3558_v45  ;;  %vm3571_vm8 = vweird.f32 %v10340_v24 }
 0x3aa   : > { %v2341_v8 = vmul.f32 0.5, %v2340_v13  ;;  %10343 = vrsqrt.f32 %v12211_v6  ;;  %v12219_v38 = vpop.f32.mrf.mxu3  ;;  %vm3572_vm10 = vmor %vm3570_vm9, %vm3571_vm8  ;;  %vm3600_vm15 = vweird.f32 %v12211_v6 }
 0x3ab   : > { %15512 = vst [vmem:[#allocation50_spill] sm:$0xff] %v12219_v38  ;;  %v3566_v61 = vmul.f32 %v10340_v24, %v3565_v37  ;;  %3193 = vadd.xlane.f32.xlu0 %v3192_v41  ;;  %v4176_v60 = vpack.c.bf16 %v4112_v31, %v4112_v31  ;;  %v3563_v33 = vsel %vm3562_vm4, %v10336_v54, %v3559_v2  ;;  %v2960_v54 = vmul.f32 0.25, %v2896_v43 }
 0x3ac   : > { %v2342_v12 = vsub.f32 1.5, %v2341_v8  ;;  %v4113_v63 = vmul.f32 %v3563_v33, %v11977_v30  ;;  %v12233_v33 = vpop.permute.xlu2 %1526 }
 0x3ad   : > { %v10342_v25 = vpop.eup %10341  ;;  %v3567_v14 = vmul.f32 0.5, %v3566_v61  ;;  %v4388_v50 = vsel %vm1920_vm3, %v4176_v60, 0  ;;  %v1872_v60 = vmul.f32 %v11937_v21, %v11937_v21 }
 0x3ae   : > { %v2343_v45 = vmul.f32 %v10338_v9, %v2342_v12  ;;  %v3585_v13 = vmul.f32 %v10342_v25, %v12199_v5  ;;  %4397 = vmatpush.bf16.xpose.msrb.mxu2 %v4388_v50  ;;  %v4177_v37 = vpack.c.bf16 %v4113_v63, %v4113_v63  ;;  %vm3591_vm11 = vweird.f32 %v10342_v25 }
 0x3af   : > { %v3568_v3 = vsub.f32 1.5, %v3567_v14  ;;  %vm3592_vm13 = vmor %vm3590_vm12, %vm3591_vm11 }
 0x3b0   : > { %v10344_v22 = vpop.eup %10343  ;;  %v2347_v52 = vsel %vm2346_vm7, %v10338_v9, %v2343_v45  ;;  %v3586_v31 = vmul.f32 %v10342_v25, %v3585_v13  ;;  %v4407_v30 = vsel %vm1920_vm3, %v4177_v37, 0 }
 0x3b1   : > { %v2897_v2 = vmul.f32 %v2347_v52, %v11984_v35  ;;  %v3595_v8 = vmul.f32 %v10344_v22, %v12211_v6  ;;  %4416 = vmatpush.bf16.xpose.msrb.mxu3 %v4407_v30  ;;  %v3569_v1 = vmul.f32 %v10340_v24, %v3568_v3  ;;  %v3024_v35 = vpack.c.bf16 %v2960_v54, %v2960_v54 }
 0x3b2   : > { %v3587_v41 = vmul.f32 0.5, %v3586_v31  ;;  %v4306_v61 = vpop.f32.mrf.mxu3  ;;  %vm3601_vm14 = vweird.f32 %v10344_v22  ;;  %v1969_v3 = vsel %vm1920_vm3, %v1872_v60, 0.0  ;;  %v3095_v31 = vmul.f32 %v12233_v33, %v12233_v33 }
 0x3b3   : > { %v2961_v9 = vmul.f32 0.25, %v2897_v2  ;;  %v3596_v43 = vmul.f32 %v10344_v22, %v3595_v8  ;;  %1384 = vrot.lane.b32.xlu2 %v11826_v58, %s11320_s20  ;;  %v3573_v12 = vsel %vm3572_vm10, %v10340_v24, %v3569_v1  ;;  %vm3602_vm0 = vmor %vm3600_vm15, %vm3601_vm14 }
 0x3b4   : > { %v3588_v15 = vsub.f32 1.5, %v3587_v41  ;;  %v4114_v63 = vmul.f32 %v3573_v12, %v12033_v20  ;;  %v12248_v8 = vpop.permute.xlu2 %1350  ;;  %v1866_v12 = vmul.f32 %v12051_v48, %v12051_v48 }
 0x3b5   : > { %v3597_v14 = vmul.f32 0.5, %v3596_v43  ;;  %9483 = vmatmul.msk.bf16.vlgmr.msrb.gmra.mxu2 %vm1920_vm3, %v3024_v35  ;;  %v3025_v50 = vpack.c.bf16 %v2961_v9, %v2961_v9 }
 0x3b6   : > { %v4178_v45 = vpack.c.bf16 %v4114_v63, %v4114_v63  ;;  %v3589_v13 = vmul.f32 %v10342_v25, %v3588_v15  ;;  %v12260_v15 = vpop.permute.xlu0 %1386 }
 0x3b7   : > { %v3598_v37 = vsub.f32 1.5, %v3597_v14 }
 0x3b8   : > { %1970 = vadd.xlane.f32.xlu1 %v1969_v3  ;;  %9484 = vmatmul.msk.bf16.vlgmr.msrb.gmra.mxu3 %vm1920_vm3, %v3025_v50  ;;  %v4426_v24 = vsel %vm1920_vm3, %v4178_v45, 0  ;;  %v3593_v54 = vsel %vm3592_vm13, %v10342_v25, %v3589_v13  ;;  %v1951_v50 = vsel %vm1920_vm3, %v1866_v12, 0.0  ;;  %v3097_v3 = vmul.f32 %v12008_v16, %v12008_v16 }
 0x3b9   : > { %4435 = vmatpush.bf16.xpose.msrb.mxu0 %v4426_v24  ;;  %v4116_v20 = vmul.f32 %v3593_v54, %v12101_v7  ;;  %v3599_v5 = vmul.f32 %v10344_v22, %v3598_v37  ;;  %v3189_v7 = vsel %vm1920_vm3, %v3095_v31, 0.0 }
 0x3ba   : > { %v3195_v31 = vsel %vm1920_vm3, %v3097_v3, 0.0 }
 0x3bb   : > { %v4180_v52 = vpack.c.bf16 %v4116_v20, %v4116_v20  ;;  %v3603_v30 = vsel %vm3602_vm0, %v10344_v22, %v3599_v5 }
 0x3bc   : > { %v4117_v2 = vmul.f32 %v3603_v30, %v12109_v57 }
 0x3bd   : > { %v4464_v1 = vsel %vm1920_vm3, %v4180_v52, 0 }
 0x3be   : > { %4473 = vmatpush.bf16.xpose.msra.mxu2 %v4464_v1  ;;  %v4181_v25 = vpack.c.bf16 %v4117_v2, %v4117_v2  ;;  %v12273_v2 = vpop.permute.xlu1 %1548 }
 0x3bf   : > { %1374 = vrot.lane.b32.xlu0 %v12099_v55, %s11318_s16 }
 0x3c0   : > { %3190 = vadd.xlane.f32.xlu1 %v3189_v7  ;;  %v4483_v6 = vsel %vm1920_vm3, %v4181_v25, 0  ;;  %v3094_v25 = vmul.f32 %v12155_v62, %v12155_v62 }
 0x3c1   : > { %4492 = vmatpush.bf16.xpose.msra.mxu3 %v4483_v6 }
 0x3c5   : > { %v1944_v41 = vpop.xlane.xlu2 %1943 }
 0x3c6   : > { %v2127_v22 = vmul.f32 %v11943_v27, %v1944_v41  ;;  %v3186_v41 = vsel %vm1920_vm3, %v3094_v25, 0.0 }
 0x3c7   : > { %1570 = vrot.lane.b32.xlu0 %v11946_v28, %s11320_s20 }
 0x3c8   : > { %v2191_v57 = vadd.f32 1.1920929e-07, %v2127_v22 }
 0x3ca   : > { %10345 = vrsqrt.f32 %v2191_v57  ;;  %vm2324_vm2 = vweird.f32 %v2191_v57 }
 0x3d0   : > { %v10346_v61 = vpop.eup %10345 }
 0x3d1   : > { %v2319_v60 = vmul.f32 %v10346_v61, %v2191_v57  ;;  %vm2325_vm1 = vweird.f32 %v10346_v61 }
 0x3d2   : > { %vm2326_vm4 = vmor %vm2324_vm2, %vm2325_vm1 }
 0x3d3   : > { %v2320_v9 = vmul.f32 %v10346_v61, %v2319_v60 }
 0x3d5   : > { %v2321_v43 = vmul.f32 0.5, %v2320_v9 }
 0x3d7   : > { %v2322_v35 = vsub.f32 1.5, %v2321_v43 }
 0x3d9   : > { %v2323_v63 = vmul.f32 %v10346_v61, %v2322_v35  ;;  %1564 = vrot.lane.b32.xlu1 %v11865_v23, %s11320_s20 }
 0x3db   : > { %v12264_v14 = vpop.f32.mrf.mxu3  ;;  %v2327_v45 = vsel %vm2326_vm4, %v10346_v61, %v2323_v63 }
 0x3dc   : > { %15513 = vst [vmem:[#allocation51_spill] sm:$0xff] %v12264_v14  ;;  %1952 = vadd.xlane.f32.xlu2 %v1951_v50  ;;  %v2895_v13 = vmul.f32 %v2327_v45, %v12099_v55 }
 0x3de   : > { %v2959_v37 = vmul.f32 0.25, %v2895_v13  ;;  %v12285_v13 = vpop.permute.xlu2 %1364 }
 0x3e0   : > { %v1962_v24 = vpop.xlane.xlu0 %1961  ;;  %v3023_v54 = vpack.c.bf16 %v2959_v37, %v2959_v37  ;;  %v3100_v37 = vmul.f32 %v12087_v49, %v12087_v49 }
 0x3e1   : > { %v2133_v20 = vmul.f32 %v11943_v27, %v1962_v24 }
 0x3e2   : > { %9482 = vmatmul.msk.bf16.vlgmr.msrb.gmra.mxu1 %vm1920_vm3, %v3023_v54  ;;  %v3204_v3 = vsel %vm1920_vm3, %v3100_v37, 0.0 }
 0x3e3   : > { %v2197_v5 = vadd.f32 1.1920929e-07, %v2133_v20  ;;  %v4325_v52 = vpop.f32.mrf.mxu3 }
 0x3e4   : > { %3196 = vadd.xlane.f32.xlu2 %v3195_v31 }
 0x3e5   : > { %10347 = vrsqrt.f32 %v2197_v5  ;;  %vm2384_vm6 = vweird.f32 %v2197_v5 }
 0x3e8   : > { %v1956_v60 = vpop.xlane.xlu1 %1955 }
 0x3e9   : > { %v2131_v35 = vmul.f32 %v11943_v27, %v1956_v60 }
 0x3eb   : > { %v10348_v30 = vpop.eup %10347  ;;  %v2195_v50 = vadd.f32 1.1920929e-07, %v2131_v35 }
 0x3ec   : > { %v2379_v1 = vmul.f32 %v10348_v30, %v2197_v5  ;;  %vm2385_vm5 = vweird.f32 %v10348_v30 }
 0x3ed   : > { %vm2386_vm7 = vmor %vm2384_vm6, %vm2385_vm5  ;;  %10349 = vrsqrt.f32 %v2195_v50  ;;  %vm2364_vm10 = vweird.f32 %v2195_v50 }
 0x3ee   : > { %v2380_v7 = vmul.f32 %v10348_v30, %v2379_v1 }
 0x3f0   : > { %v2381_v6 = vmul.f32 0.5, %v2380_v7 }
 0x3f1   : > { %3187 = vadd.xlane.f32.xlu0 %v3186_v41 }
 0x3f2   : > { %v2382_v22 = vsub.f32 1.5, %v2381_v6  ;;  %v12278_v57 = vpop.f32.mrf.mxu3 }
 0x3f4   : > { %v2383_v61 = vmul.f32 %v10348_v30, %v2382_v22 }
 0x3f6   : > { %v2387_v9 = vsel %vm2386_vm7, %v10348_v30, %v2383_v61  ;;  %v12296_v61 = vpop.permute.xlu0 %1550 }
 0x3f7   : > { %v2901_v43 = vmul.f32 %v2387_v9, %v12117_v17  ;;  %v10350_v17 = vpop.eup %10349 }
 0x3f8   : > { %v2359_v20 = vmul.f32 %v10350_v17, %v2195_v50  ;;  %vm2365_vm8 = vweird.f32 %v10350_v17 }
 0x3f9   : > { %v2965_v12 = vmul.f32 0.25, %v2901_v43  ;;  %vm2366_vm11 = vmor %vm2364_vm10, %vm2365_vm8 }
 0x3fa   : > { %v4344_v63 = vpop.f32.mrf.mxu3  ;;  %v2360_v52 = vmul.f32 %v10350_v17, %v2359_v20 }
 0x3fb   : > { %v3029_v45 = vpack.c.bf16 %v2965_v12, %v2965_v12 }
 0x3fc   : > { %1568 = vrot.lane.b32.xlu2 %v11923_v4, %s11320_s20  ;;  %v2361_v1 = vmul.f32 0.5, %v2360_v52 }
 0x3fd   : > { %9488 = vmatmul.msk.bf16.vlgmr.msra.gmra.mxu3 %vm1920_vm3, %v3029_v45 }
 0x3fe   : > { %v2362_v41 = vsub.f32 1.5, %v2361_v1 }
 0x400   : > { %v2363_v9 = vmul.f32 %v10350_v17, %v2362_v41 }
 0x402   : > { %v2367_v45 = vsel %vm2366_vm11, %v10350_v17, %v2363_v9  ;;  %v1873_v17 = vmul.f32 %v11981_v32, %v11981_v32 }
 0x403   : > { %3205 = vadd.xlane.f32.xlu1 %v3204_v3 }
 0x405   : > { %1394 = vrot.lane.b32.xlu0 %v11964_v10, %s11320_s20 }
 0x406   : > { %v3179_v24 = vpop.xlane.xlu2 %3178 }
 0x407   : > { %v3347_v54 = vmul.f32 %v3179_v24, %v11943_v27 }
 0x409   : > { %v3411_v5 = vadd.f32 1.1920929e-07, %v3347_v54 }
 0x40b   : > { %10351 = vrsqrt.f32 %v3411_v5  ;;  %vm3580_vm12 = vweird.f32 %v3411_v5 }
 0x40d   : > { %1566 = vrot.lane.b32.xlu0 %v11888_v0, %s11320_s20 }
 0x40e   : > { %v1959_v31 = vpop.xlane.xlu2 %1958 }
 0x40f   : > { %v2132_v30 = vmul.f32 %v11943_v27, %v1959_v31  ;;  %v2899_v31 = vmul.f32 %v2367_v45, %v12031_v18 }
 0x411   : > { %v10352_v25 = vpop.eup %10351  ;;  %v2196_v7 = vadd.f32 1.1920929e-07, %v2132_v30 }
 0x412   : > { %v3575_v6 = vmul.f32 %v10352_v25, %v3411_v5  ;;  %vm3581_vm9 = vweird.f32 %v10352_v25 }
 0x413   : > { %10353 = vrsqrt.f32 %v2196_v7  ;;  %vm3582_vm13 = vmor %vm3580_vm12, %vm3581_vm9  ;;  %vm2374_vm15 = vweird.f32 %v2196_v7 }
 0x414   : > { %v3576_v22 = vmul.f32 %v10352_v25, %v3575_v6 }
 0x416   : > { %v3577_v60 = vmul.f32 0.5, %v3576_v22 }
 0x418   : > { %v3578_v43 = vsub.f32 1.5, %v3577_v60  ;;  %v1972_v60 = vsel %vm1920_vm3, %v1873_v17, 0.0 }
 0x419   : > { %v10354_v35 = vpop.eup %10353 }
 0x41a   : > { %v2369_v12 = vmul.f32 %v10354_v35, %v2196_v7  ;;  %v3579_v63 = vmul.f32 %v10352_v25, %v3578_v43  ;;  %vm2375_vm14 = vweird.f32 %v10354_v35 }
 0x41b   : > { %vm2376_vm0 = vmor %vm2374_vm15, %vm2375_vm14 }
 0x41c   : > { %v2370_v37 = vmul.f32 %v10354_v35, %v2369_v12  ;;  %v12298_v3 = vpop.f32.mrf.mxu0  ;;  %1390 = vrot.lane.b32.xlu1 %v11901_v51, %s11320_s20  ;;  %v3583_v24 = vsel %vm3582_vm13, %v10352_v25, %v3579_v63  ;;  %v2963_v25 = vmul.f32 0.25, %v2899_v31 }
 0x41d   : > { %15514 = vst [vmem:[#allocation52_spill] sm:$0xff] %v12298_v3  ;;  %v4115_v54 = vmul.f32 %v3583_v24, %v12018_v53  ;;  %v12308_v53 = vpop.permute.xlu1 %1372 }
 0x41e   : > { %v2371_v20 = vmul.f32 0.5, %v2370_v37  ;;  %v3194_v52 = vpop.xlane.xlu0 %3193  ;;  %v3027_v12 = vpack.c.bf16 %v2963_v25, %v2963_v25 }
 0x41f   : > { %v3352_v50 = vmul.f32 %v3194_v52, %v11943_v27  ;;  %v4179_v5 = vpack.c.bf16 %v4115_v54, %v4115_v54 }
 0x420   : > { %v2372_v30 = vsub.f32 1.5, %v2371_v20 }
 0x421   : > { %v3416_v1 = vadd.f32 1.1920929e-07, %v3352_v50  ;;  %v4445_v6 = vsel %vm1920_vm3, %v4179_v5, 0 }
 0x422   : > { %v2373_v41 = vmul.f32 %v10354_v35, %v2372_v30  ;;  %4454 = vmatpush.bf16.xpose.msra.mxu1 %v4445_v6 }
 0x423   : > { %10355 = vrsqrt.f32 %v3416_v1  ;;  %vm3630_vm2 = vweird.f32 %v3416_v1 }
 0x424   : > { %v2377_v18 = vsel %vm2376_vm0, %v10354_v35, %v2373_v41  ;;  %v4363_v22 = vpop.f32.mrf.mxu0 }
 0x425   : > { %v2900_v9 = vmul.f32 %v2377_v18, %v12076_v47  ;;  %1973 = vadd.xlane.f32.xlu2 %v1972_v60  ;;  %v1871_v47 = vmul.f32 %v12248_v8, %v12248_v8 }
 0x427   : > { %v2964_v43 = vmul.f32 0.25, %v2900_v9  ;;  %v1966_v25 = vsel %vm1920_vm3, %v1871_v47, 0.0 }
 0x429   : > { %v10356_v63 = vpop.eup %10355  ;;  %9486 = vmatmul.msk.bf16.vlgmr.msra.gmra.mxu1 %vm1920_vm3, %v3027_v12  ;;  %v3028_v45 = vpack.c.bf16 %v2964_v43, %v2964_v43 }
 0x42a   : > { %v3625_v7 = vmul.f32 %v10356_v63, %v3416_v1  ;;  %vm3631_vm1 = vweird.f32 %v10356_v63 }
 0x42b   : > { %v1971_v37 = vpop.xlane.xlu1 %1970  ;;  %9487 = vmatmul.msk.bf16.vlgmr.msra.gmra.mxu2 %vm1920_vm3, %v3028_v45  ;;  %vm3632_vm4 = vmor %vm3630_vm2, %vm3631_vm1 }
 0x42c   : > { %v3626_v24 = vmul.f32 %v10356_v63, %v3625_v7  ;;  %v2136_v54 = vmul.f32 %v11943_v27, %v1971_v37 }
 0x42e   : > { %v3627_v35 = vmul.f32 0.5, %v3626_v24  ;;  %v2200_v20 = vadd.f32 1.1920929e-07, %v2136_v54 }
 0x430   : > { %v3628_v52 = vsub.f32 1.5, %v3627_v35  ;;  %10357 = vrsqrt.f32 %v2200_v20  ;;  %vm2414_vm6 = vweird.f32 %v2200_v20  ;;  %v1877_v35 = vmul.f32 %v12127_v44, %v12127_v44 }
 0x432   : > { %v3629_v31 = vmul.f32 %v10356_v63, %v3628_v52 }
 0x433   : > { %v3191_v50 = vpop.xlane.xlu1 %3190 }
 0x434   : > { %v3351_v5 = vmul.f32 %v3191_v50, %v11943_v27  ;;  %v3633_v30 = vsel %vm3632_vm4, %v10356_v63, %v3629_v31 }
 0x435   : > { %v4120_v17 = vmul.f32 %v3633_v30, %v11975_v29  ;;  %v1984_v30 = vsel %vm1920_vm3, %v1877_v35, 0.0 }
 0x436   : > { %v10358_v6 = vpop.eup %10357  ;;  %v3415_v41 = vadd.f32 1.1920929e-07, %v3351_v5 }
 0x437   : > { %v2409_v18 = vmul.f32 %v10358_v6, %v2200_v20  ;;  %1967 = vadd.xlane.f32.xlu0 %v1966_v25  ;;  %v4184_v22 = vpack.c.bf16 %v4120_v17, %v4120_v17  ;;  %vm2415_vm5 = vweird.f32 %v10358_v6  ;;  %v12331_v20 = vpop.permute.xlu2 %1384 }
 0x438   : > { %10359 = vrsqrt.f32 %v3415_v41  ;;  %v12320_v1 = vpop.f32.mrf.mxu2  ;;  %vm2416_vm7 = vmor %vm2414_vm6, %vm2415_vm5  ;;  %vm3620_vm9 = vweird.f32 %v3415_v41 }
 0x439   : > { %15515 = vst [vmem:[#allocation53_spill] sm:$0xff] %v12320_v1  ;;  %v2410_v60 = vmul.f32 %v10358_v6, %v2409_v18  ;;  %v4540_v9 = vsel %vm1920_vm3, %v4184_v22, 0 }
 0x43a   : > { %4549 = vmatpush.bf16.xpose.msrb.mxu2 %v4540_v9 }
 0x43b   : > { %v2411_v43 = vmul.f32 0.5, %v2410_v60  ;;  %v12323_v12 = vpop.f32.mrf.mxu3 }
 0x43c   : > { %15516 = vst [vmem:[#allocation54_spill] sm:$0xff] %v12323_v12 }
 0x43d   : > { %v2412_v63 = vsub.f32 1.5, %v2411_v43  ;;  %1392 = vrot.lane.b32.xlu2 %v11912_v56, %s11320_s20  ;;  %v12339_v43 = vpop.permute.xlu0 %1374 }
 0x43e   : > { %v10360_v29 = vpop.eup %10359 }
 0x43f   : > { %v2413_v45 = vmul.f32 %v10358_v6, %v2412_v63  ;;  %v3615_v7 = vmul.f32 %v10360_v29, %v3415_v41  ;;  %vm3621_vm8 = vweird.f32 %v10360_v29 }
 0x440   : > { %v4401_v37 = vpop.f32.mrf.mxu2  ;;  %vm3622_vm10 = vmor %vm3620_vm9, %vm3621_vm8 }
 0x441   : > { %v2417_v24 = vsel %vm2416_vm7, %v10358_v6, %v2413_v45  ;;  %v3616_v54 = vmul.f32 %v10360_v29, %v3615_v7 }
 0x442   : > { %v2904_v52 = vmul.f32 %v2417_v24, %v11937_v21 }
 0x443   : > { %v3617_v47 = vmul.f32 0.5, %v3616_v54  ;;  %v4420_v31 = vpop.f32.mrf.mxu3 }
 0x444   : > { %v2968_v50 = vmul.f32 0.25, %v2904_v52 }
 0x445   : > { %v3618_v5 = vsub.f32 1.5, %v3617_v47  ;;  %v12344_v37 = vpop.permute.xlu0 %1570  ;;  %v1870_v47 = vmul.f32 %v12119_v36, %v12119_v36 }
 0x446   : > { %1985 = vadd.xlane.f32.xlu1 %v1984_v30  ;;  %v3032_v17 = vpack.c.bf16 %v2968_v50, %v2968_v50 }
 0x447   : > { %v3619_v25 = vmul.f32 %v10360_v29, %v3618_v5 }
 0x448   : > { %9491 = vmatmul.msk.bf16.vlgmr.msrb.gmra.mxu2 %vm1920_vm3, %v3032_v17 }
 0x449   : > { %v3623_v6 = vsel %vm3622_vm10, %v10360_v29, %v3619_v25 }
 0x44a   : > { %v4119_v18 = vmul.f32 %v3623_v6, %v12233_v33 }
 0x44b   : > { %1388 = vrot.lane.b32.xlu0 %v11933_v19, %s11320_s20 }
 0x44c   : > { %v4183_v21 = vpack.c.bf16 %v4119_v18, %v4119_v18  ;;  %v1963_v18 = vsel %vm1920_vm3, %v1870_v47, 0.0 }
 0x44e   : > { %v4521_v22 = vsel %vm1920_vm3, %v4183_v21, 0 }
 0x44f   : > { %v1953_v60 = vpop.xlane.xlu2 %1952  ;;  %4530 = vmatpush.bf16.xpose.msrb.mxu1 %v4521_v22 }
 0x450   : > { %v2130_v9 = vmul.f32 %v11943_v27, %v1953_v60 }
 0x452   : > { %v2194_v41 = vadd.f32 1.1920929e-07, %v2130_v9 }
 0x453   : > { %1586 = vrot.lane.b32.xlu0 %v11881_v46, %s11321_s29 }
 0x454   : > { %10361 = vrsqrt.f32 %v2194_v41  ;;  %vm2354_vm12 = vweird.f32 %v2194_v41 }
 0x457   : > { %v3197_v63 = vpop.xlane.xlu2 %3196 }
 0x458   : > { %v3353_v33 = vmul.f32 %v3197_v63, %v11943_v27 }
 0x45a   : > { %v10362_v29 = vpop.eup %10361  ;;  %v3417_v45 = vadd.f32 1.1920929e-07, %v3353_v33 }
 0x45b   : > { %v2349_v7 = vmul.f32 %v10362_v29, %v2194_v41  ;;  %vm2355_vm11 = vweird.f32 %v10362_v29  ;;  %v3101_v41 = vmul.f32 %v12107_v42, %v12107_v42 }
 0x45c   : > { %10363 = vrsqrt.f32 %v3417_v45  ;;  %vm2356_vm13 = vmor %vm2354_vm12, %vm2355_vm11  ;;  %vm3640_vm15 = vweird.f32 %v3417_v45 }
 0x45d   : > { %v2350_v24 = vmul.f32 %v10362_v29, %v2349_v7 }
 0x45f   : > { %v2351_v54 = vmul.f32 0.5, %v2350_v24  ;;  %v12346_v35 = vpop.f32.mrf.mxu1  ;;  %1408 = vrot.lane.b32.xlu1 %v11826_v58, %s11321_s29  ;;  %v3207_v24 = vsel %vm1920_vm3, %v3101_v41, 0.0 }
 0x460   : > { %15517 = vst [vmem:[#allocation55_spill] sm:$0xff] %v12346_v35  ;;  %v15526_v35 = vld [vmem:[#allocation47_spill] sm:$0xff] }
 0x461   : > { %v2352_v52 = vsub.f32 1.5, %v2351_v54  ;;  %v12359_v54 = vpop.permute.xlu1 %1564 }
 0x462   : > { %v10364_v31 = vpop.eup %10363 }
 0x463   : > { %v2353_v50 = vmul.f32 %v10362_v29, %v2352_v52  ;;  %v3635_v5 = vmul.f32 %v10364_v31, %v3417_v45  ;;  %vm3641_vm14 = vweird.f32 %v10364_v31 }
 0x464   : > { %v3188_v30 = vpop.xlane.xlu0 %3187  ;;  %vm3642_vm0 = vmor %vm3640_vm15, %vm3641_vm14 }
 0x465   : > { %v2357_v17 = vsel %vm2356_vm13, %v10362_v29, %v2353_v50  ;;  %v3636_v25 = vmul.f32 %v10364_v31, %v3635_v5  ;;  %v3350_v6 = vmul.f32 %v3188_v30, %v11943_v27 }
 0x466   : > { %v2898_v21 = vmul.f32 %v2357_v17, %v12051_v48  ;;  %1964 = vadd.xlane.f32.xlu2 %v1963_v18 }
 0x467   : > { %v3637_v22 = vmul.f32 0.5, %v3636_v25  ;;  %v3414_v60 = vadd.f32 1.1920929e-07, %v3350_v6  ;;  %v4382_v9 = vpop.f32.mrf.mxu1 }
 0x468   : > { %v2962_v63 = vmul.f32 0.25, %v2898_v21 }
 0x469   : > { %v3638_v33 = vsub.f32 1.5, %v3637_v22  ;;  %10365 = vrsqrt.f32 %v3414_v60  ;;  %vm3610_vm2 = vweird.f32 %v3414_v60 }
 0x46a   : > { %v3026_v7 = vpack.c.bf16 %v2962_v63, %v2962_v63 }
 0x46b   : > { %v3639_v29 = vmul.f32 %v10364_v31, %v3638_v33 }
 0x46c   : > { %9485 = vmatmul.msk.bf16.vlgmr.msrb.gmra.mxu0 %vm1920_vm3, %v3026_v7 }
 0x46d   : > { %v3643_v48 = vsel %vm3642_vm0, %v10364_v31, %v3639_v29  ;;  %v3098_v31 = vmul.f32 %v12057_v26, %v12057_v26 }
 0x46e   : > { %3208 = vadd.xlane.f32.xlu2 %v3207_v24  ;;  %v4121_v52 = vmul.f32 %v3643_v48, %v12008_v16  ;;  %v1874_v48 = vmul.f32 %v12285_v13, %v12285_v13 }
 0x46f   : > { %v10366_v47 = vpop.eup %10365  ;;  %v3198_v63 = vsel %vm1920_vm3, %v3098_v31, 0.0 }
 0x470   : > { %v3605_v50 = vmul.f32 %v10366_v47, %v3414_v60  ;;  %v4185_v5 = vpack.c.bf16 %v4121_v52, %v4121_v52  ;;  %vm3611_vm1 = vweird.f32 %v10366_v47 }
 0x471   : > { %vm3612_vm4 = vmor %vm3610_vm2, %vm3611_vm1 }
 0x472   : > { %v3606_v30 = vmul.f32 %v10366_v47, %v3605_v50  ;;  %v4559_v17 = vsel %vm1920_vm3, %v4185_v5, 0  ;;  %v1975_v50 = vsel %vm1920_vm3, %v1874_v48, 0.0 }
 0x473   : > { %4568 = vmatpush.bf16.xpose.msrb.mxu3 %v4559_v17 }
 0x474   : > { %v3607_v45 = vmul.f32 0.5, %v3606_v30  ;;  %v3105_v30 = vmul.f32 %v12165_v11, %v12165_v11 }
 0x476   : > { %v3608_v25 = vsub.f32 1.5, %v3607_v45  ;;  %v3206_v6 = vpop.xlane.xlu1 %3205 }
 0x477   : > { %v3356_v18 = vmul.f32 %v3206_v6, %v11943_v27  ;;  %v12379_v6 = vpop.permute.xlu2 %1568 }
 0x478   : > { %v3609_v21 = vmul.f32 %v10366_v47, %v3608_v25 }
 0x479   : > { %v3420_v16 = vadd.f32 1.1920929e-07, %v3356_v18  ;;  %v3219_v18 = vsel %vm1920_vm3, %v3105_v30, 0.0 }
 0x47a   : > { %v3613_v22 = vsel %vm3612_vm4, %v10366_v47, %v3609_v21  ;;  %v12385_v21 = vpop.permute.xlu0 %1394 }
 0x47b   : > { %10367 = vrsqrt.f32 %v3420_v16  ;;  %v4118_v9 = vmul.f32 %v3613_v22, %v12155_v62  ;;  %vm3670_vm6 = vweird.f32 %v3420_v16 }
 0x47d   : > { %3199 = vadd.xlane.f32.xlu0 %v3198_v63  ;;  %v4182_v33 = vpack.c.bf16 %v4118_v9, %v4118_v9 }
 0x47f   : > { %v4502_v41 = vsel %vm1920_vm3, %v4182_v33, 0 }
 0x480   : > { %v12369_v7 = vpop.f32.mrf.mxu3  ;;  %4511 = vmatpush.bf16.xpose.msra.mxu0 %v4502_v41 }
 0x481   : > { %15518 = vst [vmem:[#allocation56_spill] sm:$0xff] %v12369_v7  ;;  %v10368_v60 = vpop.eup %10367 }
 0x482   : > { %v3665_v29 = vmul.f32 %v10368_v60, %v3420_v16  ;;  %vm3671_vm5 = vweird.f32 %v10368_v60  ;;  %v12390_v9 = vpop.permute.xlu0 %1566 }
 0x483   : > { %vm3672_vm7 = vmor %vm3670_vm6, %vm3671_vm5 }
 0x484   : > { %v3666_v24 = vmul.f32 %v10368_v60, %v3665_v29 }
 0x486   : > { %v3667_v52 = vmul.f32 0.5, %v3666_v24  ;;  %1584 = vrot.lane.b32.xlu2 %v11829_v59, %s11321_s29 }
 0x488   : > { %v3668_v62 = vsub.f32 1.5, %v3667_v52  ;;  %v4496_v47 = vpop.f32.mrf.mxu3  ;;  %v1876_v52 = vmul.f32 %v12040_v34, %v12040_v34 }
 0x489   : > { %1976 = vadd.xlane.f32.xlu1 %v1975_v50 }
 0x48a   : > { %v3669_v5 = vmul.f32 %v10368_v60, %v3668_v62 }
 0x48c   : > { %v3673_v17 = vsel %vm3672_vm7, %v10368_v60, %v3669_v5 }
 0x48d   : > { %v4124_v45 = vmul.f32 %v3673_v17, %v12087_v49 }
 0x48f   : > { %v4188_v25 = vpack.c.bf16 %v4124_v45, %v4124_v45  ;;  %v1981_v45 = vsel %vm1920_vm3, %v1876_v52, 0.0  ;;  %v15522_v52 = vld [vmem:[#allocation48_spill] sm:$0xff] }
 0x491   : > { %1410 = vrot.lane.b32.xlu0 %v11876_v40, %s11321_s29  ;;  %3220 = vadd.xlane.f32.xlu1 %v3219_v18  ;;  %v4616_v31 = vsel %vm1920_vm3, %v4188_v25, 0 }
 0x492   : > { %4625 = vmatpush.bf16.xpose.msra.mxu2 %v4616_v31  ;;  %v15521_v31 = vld [vmem:[#allocation44_spill] sm:$0xff] }
 0x498   : > { %v1974_v16 = vpop.xlane.xlu2 %1973 }
 0x499   : > { %v2137_v22 = vmul.f32 %v11943_v27, %v1974_v16  ;;  %1574 = vrot.lane.b32.xlu0 %v12026_v39, %s11320_s20  ;;  %v3099_v16 = vmul.f32 %v15521_v31, %v15521_v31 }
 0x49b   : > { %v2201_v49 = vadd.f32 1.1920929e-07, %v2137_v22 }
 0x49d   : > { %10369 = vrsqrt.f32 %v2201_v49  ;;  %vm2424_vm9 = vweird.f32 %v2201_v49 }
 0x4a3   : > { %v10370_v63 = vpop.eup %10369 }
 0x4a4   : > { %v2419_v33 = vmul.f32 %v10370_v63, %v2201_v49  ;;  %vm2425_vm8 = vweird.f32 %v10370_v63 }
 0x4a5   : > { %vm2426_vm10 = vmor %vm2424_vm9, %vm2425_vm8 }
 0x4a6   : > { %v2420_v41 = vmul.f32 %v10370_v63, %v2419_v33  ;;  %v12392_v60 = vpop.f32.mrf.mxu1 }
 0x4a7   : > { %15519 = vst [vmem:[#allocation57_spill] sm:$0xff] %v12392_v60 }
 0x4a8   : > { %v2421_v29 = vmul.f32 0.5, %v2420_v41 }
 0x4aa   : > { %v2422_v24 = vsub.f32 1.5, %v2421_v29  ;;  %v1968_v48 = vpop.xlane.xlu0 %1967  ;;  %1592 = vrot.lane.b32.xlu1 %v11923_v4, %s11321_s29 }
 0x4ab   : > { %v2135_v62 = vmul.f32 %v11943_v27, %v1968_v48 }
 0x4ac   : > { %v2423_v47 = vmul.f32 %v10370_v63, %v2422_v24 }
 0x4ad   : > { %v2199_v50 = vadd.f32 1.1920929e-07, %v2135_v62  ;;  %v3104_v62 = vmul.f32 %v15522_v52, %v15522_v52 }
 0x4ae   : > { %v2427_v5 = vsel %vm2426_vm10, %v10370_v63, %v2423_v47  ;;  %v4458_v30 = vpop.f32.mrf.mxu1  ;;  %v12399_v17 = vpop.f32.mrf.mxu2  ;;  %v3201_v63 = vsel %vm1920_vm3, %v3099_v16, 0.0 }
 0x4af   : > { %15520 = vst [vmem:[#allocation58_spill] sm:$0xff] %v12399_v17  ;;  %v2905_v25 = vmul.f32 %v2427_v5, %v11981_v32  ;;  %10371 = vrsqrt.f32 %v2199_v50  ;;  %1982 = vadd.xlane.f32.xlu2 %v1981_v45  ;;  %vm2404_vm12 = vweird.f32 %v2199_v50  ;;  %v3216_v30 = vsel %vm1920_vm3, %v3104_v62, 0.0 }
 0x4b1   : > { %v2969_v18 = vmul.f32 0.25, %v2905_v25 }
 0x4b3   : > { %v3033_v22 = vpack.c.bf16 %v2969_v18, %v2969_v18  ;;  %v12411_v18 = vpop.permute.xlu1 %1390 }
 0x4b5   : > { %v10372_v33 = vpop.eup %10371  ;;  %9492 = vmatmul.msk.bf16.vlgmr.msrb.gmra.mxu3 %vm1920_vm3, %v3033_v22 }
 0x4b6   : > { %v2399_v49 = vmul.f32 %v10372_v33, %v2199_v50  ;;  %v4477_v41 = vpop.f32.mrf.mxu2  ;;  %vm2405_vm11 = vweird.f32 %v10372_v33  ;;  %v15524_v50 = vld [vmem:[#allocation43_spill] sm:$0xff] }
 0x4b7   : > { %3202 = vadd.xlane.f32.xlu2 %v3201_v63  ;;  %vm2406_vm13 = vmor %vm2404_vm12, %vm2405_vm11 }
 0x4b8   : > { %v2400_v29 = vmul.f32 %v10372_v33, %v2399_v49  ;;  %v12420_v49 = vpop.permute.xlu2 %1392 }
 0x4ba   : > { %v2401_v24 = vmul.f32 0.5, %v2400_v29 }
 0x4bb   : > { %v1986_v22 = vpop.xlane.xlu1 %1985 }
 0x4bc   : > { %v2402_v48 = vsub.f32 1.5, %v2401_v24 }
 0x4bd   : > { %v12427_v62 = vpop.permute.xlu0 %1388 }
 0x4be   : > { %v2403_v32 = vmul.f32 %v10372_v33, %v2402_v48 }
 0x4c0   : > { %v2407_v47 = vsel %vm2406_vm13, %v10372_v33, %v2403_v32  ;;  %v1881_v33 = vmul.f32 %v12260_v15, %v12260_v15 }
 0x4c1   : > { %v2903_v5 = vmul.f32 %v2407_v47, %v12248_v8  ;;  %v2141_v8 = vmul.f32 %v11943_v27, %v1986_v22 }
 0x4c2   : > { %v1996_v63 = vsel %vm1920_vm3, %v1881_v33, 0.0 }
 0x4c3   : > { %v2967_v45 = vmul.f32 0.25, %v2903_v5  ;;  %3217 = vadd.xlane.f32.xlu0 %v3216_v30  ;;  %v2205_v29 = vadd.f32 1.1920929e-07, %v2141_v8 }
 0x4c5   : > { %v3031_v25 = vpack.c.bf16 %v2967_v45, %v2967_v45  ;;  %10373 = vrsqrt.f32 %v2205_v29  ;;  %vm2464_vm4 = vweird.f32 %v2205_v29 }
 0x4c7   : > { %9490 = vmatmul.msk.bf16.vlgmr.msrb.gmra.mxu1 %vm1920_vm3, %v3031_v25 }
 0x4cb   : > { %v12414_v16 = vpop.f32.mrf.mxu2  ;;  %v10374_v47 = vpop.eup %10373 }
 0x4cc   : > { %15523 = vst [vmem:[#allocation44_spill] sm:$0xff] %v12414_v16  ;;  %v2459_v45 = vmul.f32 %v10374_v47, %v2205_v29  ;;  %vm2465_vm1 = vweird.f32 %v10374_v47 }
 0x4cd   : > { %vm2466_vm5 = vmor %vm2464_vm4, %vm2465_vm1 }
 0x4ce   : > { %v2460_v8 = vmul.f32 %v10374_v47, %v2459_v45 }
 0x4cf   : > { %1572 = vrot.lane.b32.xlu2 %v15524_v50, %s11320_s20 }
 0x4d0   : > { %v2461_v60 = vmul.f32 0.5, %v2460_v8 }
 0x4d3   : > { %v4553_v41 = vpop.f32.mrf.mxu2 }
 0x4d4   : > { %1997 = vadd.xlane.f32.xlu1 %v1996_v63  ;;  %v12432_v63 = vpop.permute.xlu0 %1586 }
 0x4d7   : > { %1398 = vrot.lane.b32.xlu0 %v12099_v55, %s11320_s20 }
 0x4d9   : > { %v1965_v24 = vpop.xlane.xlu2 %1964 }
 0x4da   : > { %v2134_v48 = vmul.f32 %v11943_v27, %v1965_v24 }
 0x4dc   : > { %v2198_v32 = vadd.f32 1.1920929e-07, %v2134_v48 }
 0x4de   : > { %10375 = vrsqrt.f32 %v2198_v32  ;;  %vm2394_vm15 = vweird.f32 %v2198_v32 }
 0x4df   : > { %1594 = vrot.lane.b32.xlu0 %v11946_v28, %s11321_s29 }
 0x4e1   : > { %v3209_v5 = vpop.xlane.xlu2 %3208 }
 0x4e2   : > { %v3357_v30 = vmul.f32 %v3209_v5, %v11943_v27  ;;  %v2462_v5 = vsub.f32 1.5, %v2461_v60  ;;  %v12442_v60 = vpop.permute.xlu1 %1408 }
 0x4e4   : > { %v10376_v25 = vpop.eup %10375  ;;  %v3421_v22 = vadd.f32 1.1920929e-07, %v3357_v30 }
 0x4e5   : > { %v2389_v33 = vmul.f32 %v10376_v25, %v2198_v32  ;;  %vm2395_vm14 = vweird.f32 %v10376_v25  ;;  %v2463_v32 = vmul.f32 %v10374_v47, %v2462_v5 }
 0x4e6   : > { %10377 = vrsqrt.f32 %v3421_v22  ;;  %vm2396_vm0 = vmor %vm2394_vm15, %vm2395_vm14  ;;  %vm3680_vm6 = vweird.f32 %v3421_v22 }
 0x4e7   : > { %v2390_v41 = vmul.f32 %v10376_v25, %v2389_v33 }
 0x4e9   : > { %v2391_v24 = vmul.f32 0.5, %v2390_v41  ;;  %v12434_v48 = vpop.f32.mrf.mxu0 }
 0x4ea   : > { %15525 = vst [vmem:[#allocation48_spill] sm:$0xff] %v12434_v48 }
 0x4eb   : > { %v2392_v16 = vsub.f32 1.5, %v2391_v24 }
 0x4ec   : > { %v10378_v38 = vpop.eup %10377 }
 0x4ed   : > { %v2393_v14 = vmul.f32 %v10376_v25, %v2392_v16  ;;  %v3675_v17 = vmul.f32 %v10378_v38, %v3421_v22  ;;  %1416 = vrot.lane.b32.xlu1 %v11912_v56, %s11321_s29  ;;  %v1875_v16 = vmul.f32 %v15526_v35, %v15526_v35  ;;  %vm3681_vm2 = vweird.f32 %v10378_v38 }
 0x4ee   : > { %vm3682_vm7 = vmor %vm3680_vm6, %vm3681_vm2 }
 0x4ef   : > { %v2397_v30 = vsel %vm2396_vm0, %v10376_v25, %v2393_v14  ;;  %v3676_v45 = vmul.f32 %v10378_v38, %v3675_v17  ;;  %v1978_v17 = vsel %vm1920_vm3, %v1875_v16, 0.0 }
 0x4f0   : > { %v2902_v33 = vmul.f32 %v2397_v30, %v12119_v36  ;;  %v3200_v7 = vpop.xlane.xlu0 %3199 }
 0x4f1   : > { %v3677_v41 = vmul.f32 0.5, %v3676_v45  ;;  %v3354_v48 = vmul.f32 %v3200_v7, %v11943_v27  ;;  %v4439_v8 = vpop.f32.mrf.mxu0  ;;  %v2467_v7 = vsel %vm2466_vm5, %v10374_v47, %v2463_v32 }
 0x4f2   : > { %v2966_v24 = vmul.f32 0.25, %v2902_v33 }
 0x4f3   : > { %v3678_v3 = vsub.f32 1.5, %v3677_v41  ;;  %v3418_v12 = vadd.f32 1.1920929e-07, %v3354_v48  ;;  %v2909_v48 = vmul.f32 %v2467_v7, %v12127_v44  ;;  %v3102_v44 = vmul.f32 %v12273_v2, %v12273_v2 }
 0x4f4   : > { %v3030_v14 = vpack.c.bf16 %v2966_v24, %v2966_v24 }
 0x4f5   : > { %10379 = vrsqrt.f32 %v3418_v12  ;;  %v3679_v36 = vmul.f32 %v10378_v38, %v3678_v3  ;;  %v2973_v41 = vmul.f32 0.25, %v2909_v48  ;;  %vm3650_vm9 = vweird.f32 %v3418_v12 }
 0x4f6   : > { %9489 = vmatmul.msk.bf16.vlgmr.msra.gmra.mxu0 %vm1920_vm3, %v3030_v14  ;;  %v3210_v48 = vsel %vm1920_vm3, %v3102_v44, 0.0 }
 0x4f7   : > { %v3683_v25 = vsel %vm3682_vm7, %v10378_v38, %v3679_v36  ;;  %v3037_v16 = vpack.c.bf16 %v2973_v41, %v2973_v41 }
 0x4f8   : > { %1979 = vadd.xlane.f32.xlu2 %v1978_v17  ;;  %v4125_v5 = vmul.f32 %v3683_v25, %v12107_v42 }
 0x4fa   : > { %v4189_v29 = vpack.c.bf16 %v4125_v5, %v4125_v5 }
 0x4fb   : > { %v10380_v30 = vpop.eup %10379 }
 0x4fc   : > { %v3645_v45 = vmul.f32 %v10380_v30, %v3418_v12  ;;  %v1977_v33 = vpop.xlane.xlu1 %1976  ;;  %v4635_v22 = vsel %vm1920_vm3, %v4189_v29, 0  ;;  %vm3651_vm8 = vweird.f32 %v10380_v30 }
 0x4fd   : > { %v2138_v3 = vmul.f32 %v11943_v27, %v1977_v33  ;;  %4644 = vmatpush.bf16.xpose.msra.mxu3 %v4635_v22  ;;  %vm3652_vm10 = vmor %vm3650_vm9, %vm3651_vm8 }
 0x4fe   : > { %v3646_v8 = vmul.f32 %v10380_v30, %v3645_v45 }
 0x4ff   : > { %v2202_v47 = vadd.f32 1.1920929e-07, %v2138_v3 }
 0x500   : > { %v3647_v24 = vmul.f32 0.5, %v3646_v8  ;;  %v15527_v8 = vld [vmem:[#allocation41_spill] sm:$0xff] }
 0x501   : > { %10381 = vrsqrt.f32 %v2202_v47  ;;  %vm2434_vm12 = vweird.f32 %v2202_v47 }
 0x502   : > { %v3648_v38 = vsub.f32 1.5, %v3647_v24 }
 0x504   : > { %v3221_v42 = vpop.xlane.xlu1 %3220  ;;  %9496 = vmatmul.msk.bf16.vlgmr.msra.gmra.mxu3 %vm1920_vm3, %v3037_v16  ;;  %v3649_v32 = vmul.f32 %v10380_v30, %v3648_v38  ;;  %v1878_v38 = vmul.f32 %v12308_v53, %v12308_v53 }
 0x505   : > { %v3361_v14 = vmul.f32 %v3221_v42, %v11943_v27 }
 0x506   : > { %v3653_v36 = vsel %vm3652_vm10, %v10380_v30, %v3649_v32 }
 0x507   : > { %v10382_v7 = vpop.eup %10381  ;;  %v3425_v17 = vadd.f32 1.1920929e-07, %v3361_v14  ;;  %v4122_v25 = vmul.f32 %v3653_v36, %v12057_v26  ;;  %v1987_v14 = vsel %vm1920_vm3, %v1878_v38, 0.0 }
 0x508   : > { %v2429_v5 = vmul.f32 %v10382_v7, %v2202_v47  ;;  %vm2435_vm11 = vweird.f32 %v10382_v7 }
 0x509   : > { %10383 = vrsqrt.f32 %v3425_v17  ;;  %3211 = vadd.xlane.f32.xlu0 %v3210_v48  ;;  %v4186_v12 = vpack.c.bf16 %v4122_v25, %v4122_v25  ;;  %vm2436_vm13 = vmor %vm2434_vm12, %vm2435_vm11  ;;  %vm3720_vm15 = vweird.f32 %v3425_v17  ;;  %v3109_v25 = vmul.f32 %v12344_v37, %v12344_v37 }
 0x50a   : > { %v2430_v29 = vmul.f32 %v10382_v7, %v2429_v5 }
 0x50b   : > { %v4578_v45 = vsel %vm1920_vm3, %v4186_v12, 0  ;;  %v3231_v12 = vsel %vm1920_vm3, %v3109_v25, 0.0 }
 0x50c   : > { %v2431_v33 = vmul.f32 0.5, %v2430_v29  ;;  %4587 = vmatpush.bf16.xpose.msrb.mxu0 %v4578_v45 }
 0x50e   : > { %v2432_v22 = vsub.f32 1.5, %v2431_v33  ;;  %v12474_v33 = vpop.permute.xlu0 %1410 }
 0x50f   : > { %v10384_v3 = vpop.eup %10383 }
 0x510   : > { %v2433_v41 = vmul.f32 %v10382_v7, %v2432_v22  ;;  %v3715_v30 = vmul.f32 %v10384_v3, %v3425_v17  ;;  %1396 = vrot.lane.b32.xlu2 %v15527_v8, %s11320_s20  ;;  %vm3721_vm14 = vweird.f32 %v10384_v3 }
 0x511   : > { %vm3722_vm0 = vmor %vm3720_vm15, %vm3721_vm14 }
 0x512   : > { %v2437_v26 = vsel %vm2436_vm13, %v10382_v7, %v2433_v41  ;;  %v3716_v24 = vmul.f32 %v10384_v3, %v3715_v30  ;;  %v12464_v7 = vpop.permute.xlu2 %1584 }
 0x513   : > { %v2906_v16 = vmul.f32 %v2437_v26, %v12285_v13 }
 0x514   : > { %v3717_v42 = vmul.f32 0.5, %v3716_v24 }
 0x515   : > { %v2970_v44 = vmul.f32 0.25, %v2906_v16 }
 0x516   : > { %v3718_v32 = vsub.f32 1.5, %v3717_v42  ;;  %v12479_v26 = vpop.permute.xlu0 %1574 }
 0x517   : > { %1988 = vadd.xlane.f32.xlu1 %v1987_v14  ;;  %v3034_v47 = vpack.c.bf16 %v2970_v44, %v2970_v44  ;;  %v1880_v44 = vmul.f32 %v12331_v20, %v12331_v20 }
 0x518   : > { %v3719_v36 = vmul.f32 %v10384_v3, %v3718_v32 }
 0x519   : > { %9493 = vmatmul.msk.bf16.vlgmr.msrb.gmra.mxu0 %vm1920_vm3, %v3034_v47 }
 0x51a   : > { %v3723_v5 = vsel %vm3722_vm0, %v10384_v3, %v3719_v36 }
 0x51b   : > { %v4129_v13 = vmul.f32 %v3723_v5, %v12165_v11 }
 0x51d   : > { %1418 = vrot.lane.b32.xlu0 %v11964_v10, %s11321_s29  ;;  %v4193_v48 = vpack.c.bf16 %v4129_v13, %v4129_v13 }
 0x51f   : > { %3232 = vadd.xlane.f32.xlu1 %v3231_v12  ;;  %v4711_v17 = vsel %vm1920_vm3, %v4193_v48, 0  ;;  %v1993_v12 = vsel %vm1920_vm3, %v1880_v44, 0.0 }
 0x520   : > { %4720 = vmatpush.bf16.xpose.msrb.mxu3 %v4711_v17 }
 0x522   : > { %v1983_v29 = vpop.xlane.xlu2 %1982 }
 0x523   : > { %v2140_v45 = vmul.f32 %v11943_v27, %v1983_v29 }
 0x525   : > { %v2204_v22 = vadd.f32 1.1920929e-07, %v2140_v45  ;;  %1590 = vrot.lane.b32.xlu0 %v11888_v0, %s11321_s29 }
 0x527   : > { %10385 = vrsqrt.f32 %v2204_v22  ;;  %vm2454_vm2 = vweird.f32 %v2204_v22 }
 0x52a   : > { %v3203_v11 = vpop.xlane.xlu2 %3202 }
 0x52b   : > { %v3355_v3 = vmul.f32 %v3203_v11, %v11943_v27 }
 0x52d   : > { %v10386_v41 = vpop.eup %10385  ;;  %v3419_v30 = vadd.f32 1.1920929e-07, %v3355_v3  ;;  %v3103_v3 = vmul.f32 %v12296_v61, %v12296_v61 }
 0x52e   : > { %v2449_v24 = vmul.f32 %v10386_v41, %v2204_v22  ;;  %vm2455_vm1 = vweird.f32 %v10386_v41 }
 0x52f   : > { %10387 = vrsqrt.f32 %v3419_v30  ;;  %vm2456_vm4 = vmor %vm2454_vm2, %vm2455_vm1  ;;  %vm3660_vm6 = vweird.f32 %v3419_v30 }
 0x530   : > { %v2450_v38 = vmul.f32 %v10386_v41, %v2449_v24 }
 0x532   : > { %v2451_v16 = vmul.f32 0.5, %v2450_v38  ;;  %v12492_v38 = vpop.permute.xlu1 %1592 }
 0x534   : > { %v2452_v42 = vsub.f32 1.5, %v2451_v16 }
 0x535   : > { %v10388_v32 = vpop.eup %10387 }
 0x536   : > { %v2453_v14 = vmul.f32 %v10386_v41, %v2452_v42  ;;  %v3655_v47 = vmul.f32 %v10388_v32, %v3419_v30  ;;  %v3218_v36 = vpop.xlane.xlu0 %3217  ;;  %vm3661_vm5 = vweird.f32 %v10388_v32 }
 0x537   : > { %v3360_v25 = vmul.f32 %v3218_v36, %v11943_v27  ;;  %vm3662_vm7 = vmor %vm3660_vm6, %vm3661_vm5 }
 0x538   : > { %v2457_v5 = vsel %vm2456_vm4, %v10386_v41, %v2453_v14  ;;  %v3656_v13 = vmul.f32 %v10388_v32, %v3655_v47  ;;  %v12484_v48 = vpop.f32.mrf.mxu3  ;;  %1608 = vrot.lane.b32.xlu1 %v11829_v59, %s11322_s26 }
 0x539   : > { %15528 = vst [vmem:[#allocation43_spill] sm:$0xff] %v12484_v48  ;;  %v2908_v17 = vmul.f32 %v2457_v5, %v12040_v34  ;;  %v3424_v29 = vadd.f32 1.1920929e-07, %v3360_v25  ;;  %1994 = vadd.xlane.f32.xlu2 %v1993_v12  ;;  %v3213_v34 = vsel %vm1920_vm3, %v3103_v3, 0.0 }
 0x53a   : > { %v3657_v45 = vmul.f32 0.5, %v3656_v13 }
 0x53b   : > { %v2972_v22 = vmul.f32 0.25, %v2908_v17  ;;  %10389 = vrsqrt.f32 %v3424_v29  ;;  %vm3710_vm9 = vweird.f32 %v3424_v29 }
 0x53c   : > { %v3658_v11 = vsub.f32 1.5, %v3657_v45 }
 0x53d   : > { %v3036_v41 = vpack.c.bf16 %v2972_v22, %v2972_v22  ;;  %v3108_v22 = vmul.f32 %v12379_v6, %v12379_v6 }
 0x53e   : > { %v3659_v24 = vmul.f32 %v10388_v32, %v3658_v11 }
 0x53f   : > { %9495 = vmatmul.msk.bf16.vlgmr.msra.gmra.mxu2 %vm1920_vm3, %v3036_v41 }
 0x540   : > { %v4572_v16 = vpop.f32.mrf.mxu3  ;;  %v3663_v42 = vsel %vm3662_vm7, %v10388_v32, %v3659_v24  ;;  %v3228_v24 = vsel %vm1920_vm3, %v3108_v22, 0.0 }
 0x541   : > { %v10390_v44 = vpop.eup %10389  ;;  %3214 = vadd.xlane.f32.xlu2 %v3213_v34  ;;  %v4123_v14 = vmul.f32 %v3663_v42, %v15521_v31 }
 0x542   : > { %v3705_v47 = vmul.f32 %v10390_v44, %v3424_v29  ;;  %vm3711_vm8 = vweird.f32 %v10390_v44 }
 0x543   : > { %v4187_v36 = vpack.c.bf16 %v4123_v14, %v4123_v14  ;;  %vm3712_vm10 = vmor %vm3710_vm9, %vm3711_vm8 }
 0x544   : > { %v3706_v25 = vmul.f32 %v10390_v44, %v3705_v47  ;;  %v12497_v5 = vpop.f32.mrf.mxu1 }
 0x545   : > { %15529 = vst [vmem:[#allocation47_spill] sm:$0xff] %v12497_v5  ;;  %v4597_v30 = vsel %vm1920_vm3, %v4187_v36, 0 }
 0x546   : > { %v3707_v13 = vmul.f32 0.5, %v3706_v25  ;;  %4606 = vmatpush.bf16.xpose.msra.mxu1 %v4597_v30 }
 0x547   : > { %v1998_v12 = vpop.xlane.xlu1 %1997 }
 0x548   : > { %v3708_v17 = vsub.f32 1.5, %v3707_v13  ;;  %v2145_v45 = vmul.f32 %v11943_v27, %v1998_v12 }
 0x54a   : > { %v2209_v32 = vadd.f32 1.1920929e-07, %v2145_v45  ;;  %v3709_v31 = vmul.f32 %v10390_v44, %v3708_v17  ;;  %v12512_v45 = vpop.permute.xlu2 %1572 }
 0x54c   : > { %10391 = vrsqrt.f32 %v2209_v32  ;;  %v4534_v11 = vpop.f32.mrf.mxu1  ;;  %v3713_v3 = vsel %vm3712_vm10, %v10390_v44, %v3709_v31  ;;  %vm2504_vm12 = vweird.f32 %v2209_v32  ;;  %v3106_v44 = vmul.f32 %v12359_v54, %v12359_v54 }
 0x54d   : > { %v4128_v41 = vmul.f32 %v3713_v3, %v15522_v52 }
 0x54e   : > { %v3222_v12 = vsel %vm1920_vm3, %v3106_v44, 0.0 }
 0x54f   : > { %3229 = vadd.xlane.f32.xlu0 %v3228_v24  ;;  %v4192_v16 = vpack.c.bf16 %v4128_v41, %v4128_v41 }
 0x551   : > { %v4692_v34 = vsel %vm1920_vm3, %v4192_v16, 0 }
 0x552   : > { %v10392_v42 = vpop.eup %10391  ;;  %4701 = vmatpush.bf16.xpose.msrb.mxu2 %v4692_v34 }
 0x553   : > { %v2499_v29 = vmul.f32 %v10392_v42, %v2209_v32  ;;  %vm2505_vm11 = vweird.f32 %v10392_v42  ;;  %v12517_v32 = vpop.permute.xlu0 %1398 }
 0x554   : > { %vm2506_vm13 = vmor %vm2504_vm12, %vm2505_vm11 }
 0x555   : > { %v2500_v14 = vmul.f32 %v10392_v42, %v2499_v29 }
 0x557   : > { %v2501_v47 = vmul.f32 0.5, %v2500_v14 }
 0x559   : > { %v2502_v36 = vsub.f32 1.5, %v2501_v47  ;;  %1588 = vrot.lane.b32.xlu2 %v11865_v23, %s11321_s29 }
 0x55b   : > { %v2503_v25 = vmul.f32 %v10392_v42, %v2502_v36  ;;  %v12524_v3 = vpop.permute.xlu0 %1594  ;;  %v1879_v36 = vmul.f32 %v12339_v43, %v12339_v43 }
 0x55d   : > { %v2507_v52 = vsel %vm2506_vm13, %v10392_v42, %v2503_v25 }
 0x55e   : > { %v2913_v30 = vmul.f32 %v2507_v52, %v12260_v15 }
 0x560   : > { %v2977_v13 = vmul.f32 0.25, %v2913_v30  ;;  %v1990_v30 = vsel %vm1920_vm3, %v1879_v36, 0.0 }
 0x562   : > { %3223 = vadd.xlane.f32.xlu1 %v3222_v12  ;;  %v3041_v17 = vpack.c.bf16 %v2977_v13, %v2977_v13  ;;  %v12532_v13 = vpop.permute.xlu1 %1416 }
 0x563   : > { %1414 = vrot.lane.b32.xlu0 %v11901_v51, %s11321_s29 }
 0x564   : > { %9500 = vmatmul.msk.bf16.vlgmr.msrb.gmra.mxu3 %vm1920_vm3, %v3041_v17 }
 0x56b   : > { %1610 = vrot.lane.b32.xlu0 %v11881_v46, %s11322_s26  ;;  %v1980_v22 = vpop.xlane.xlu2 %1979 }
 0x56c   : > { %v2139_v15 = vmul.f32 %v11943_v27, %v1980_v22 }
 0x56e   : > { %v2203_v31 = vadd.f32 1.1920929e-07, %v2139_v15 }
 0x570   : > { %10393 = vrsqrt.f32 %v2203_v31  ;;  %vm2444_vm15 = vweird.f32 %v2203_v31 }
 0x573   : > { %v12522_v11 = vpop.f32.mrf.mxu0 }
 0x574   : > { %15530 = vst [vmem:[#allocation41_spill] sm:$0xff] %v12522_v11 }
 0x576   : > { %v10394_v41 = vpop.eup %10393 }
 0x577   : > { %v2439_v24 = vmul.f32 %v10394_v41, %v2203_v31  ;;  %vm2445_vm14 = vweird.f32 %v10394_v41 }
 0x578   : > { %vm2446_vm0 = vmor %vm2444_vm15, %vm2445_vm14 }
 0x579   : > { %v2440_v16 = vmul.f32 %v10394_v41, %v2439_v24 }
 0x57b   : > { %v2441_v34 = vmul.f32 0.5, %v2440_v16  ;;  %1596 = vrot.lane.b32.xlu1 %v15524_v50, %s11321_s29  ;;  %v4515_v42 = vpop.f32.mrf.mxu0 }
 0x57c   : > { %v3212_v29 = vpop.xlane.xlu0 %3211 }
 0x57d   : > { %v2442_v14 = vsub.f32 1.5, %v2441_v34  ;;  %v3358_v47 = vmul.f32 %v3212_v29, %v11943_v27 }
 0x57f   : > { %v2443_v25 = vmul.f32 %v10394_v41, %v2442_v14  ;;  %v3422_v52 = vadd.f32 1.1920929e-07, %v3358_v47 }
 0x581   : > { %v2447_v44 = vsel %vm2446_vm0, %v10394_v41, %v2443_v25  ;;  %10395 = vrsqrt.f32 %v3422_v52  ;;  %vm3690_vm2 = vweird.f32 %v3422_v52 }
 0x582   : > { %v2907_v12 = vmul.f32 %v2447_v44, %v15526_v35  ;;  %1991 = vadd.xlane.f32.xlu2 %v1990_v30  ;;  %v1885_v35 = vmul.f32 %v12385_v21, %v12385_v21 }
 0x584   : > { %v2971_v17 = vmul.f32 0.25, %v2907_v12 }
 0x586   : > { %v3035_v22 = vpack.c.bf16 %v2971_v17, %v2971_v17  ;;  %v2008_v17 = vsel %vm1920_vm3, %v1885_v35, 0.0 }
 0x587   : > { %v10396_v15 = vpop.eup %10395  ;;  %v12535_v24 = vpop.f32.mrf.mxu3 }
 0x588   : > { %15531 = vst [vmem:[#allocation59_spill] sm:$0xff] %v12535_v24  ;;  %v3685_v16 = vmul.f32 %v10396_v15, %v3422_v52  ;;  %9494 = vmatmul.msk.bf16.vlgmr.msra.gmra.mxu1 %vm1920_vm3, %v3035_v22  ;;  %vm3691_vm1 = vweird.f32 %v10396_v15 }
 0x589   : > { %vm3692_vm4 = vmor %vm3690_vm2, %vm3691_vm1 }
 0x58a   : > { %v3686_v31 = vmul.f32 %v10396_v15, %v3685_v16  ;;  %v1989_v34 = vpop.xlane.xlu1 %1988 }
 0x58b   : > { %v2142_v41 = vmul.f32 %v11943_v27, %v1989_v34 }
 0x58c   : > { %v3687_v42 = vmul.f32 0.5, %v3686_v31 }
 0x58d   : > { %v2206_v29 = vadd.f32 1.1920929e-07, %v2142_v41 }
 0x58e   : > { %v3688_v14 = vsub.f32 1.5, %v3687_v42 }
 0x58f   : > { %10397 = vrsqrt.f32 %v2206_v29  ;;  %v4648_v47 = vpop.f32.mrf.mxu3  ;;  %vm2474_vm6 = vweird.f32 %v2206_v29 }
 0x590   : > { %v3689_v36 = vmul.f32 %v10396_v15, %v3688_v14 }
 0x592   : > { %v3233_v25 = vpop.xlane.xlu1 %3232  ;;  %v3693_v44 = vsel %vm3692_vm4, %v10396_v15, %v3689_v36 }
 0x593   : > { %v3365_v30 = vmul.f32 %v3233_v25, %v11943_v27  ;;  %v4126_v12 = vmul.f32 %v3693_v44, %v12273_v2 }
 0x595   : > { %v10398_v22 = vpop.eup %10397  ;;  %v3429_v16 = vadd.f32 1.1920929e-07, %v3365_v30  ;;  %2009 = vadd.xlane.f32.xlu0 %v2008_v17  ;;  %v4190_v31 = vpack.c.bf16 %v4126_v12, %v4126_v12  ;;  %v1883_v30 = vmul.f32 %v12411_v18, %v12411_v18 }
 0x596   : > { %v2469_v34 = vmul.f32 %v10398_v22, %v2206_v29  ;;  %v12544_v41 = vpop.f32.mrf.mxu0  ;;  %vm2475_vm5 = vweird.f32 %v10398_v22 }
 0x597   : > { %15532 = vst [vmem:[#allocation60_spill] sm:$0xff] %v12544_v41  ;;  %10399 = vrsqrt.f32 %v3429_v16  ;;  %v4654_v52 = vsel %vm1920_vm3, %v4190_v31, 0  ;;  %vm2476_vm7 = vmor %vm2474_vm6, %vm2475_vm5  ;;  %vm3760_vm9 = vweird.f32 %v3429_v16 }
 0x598   : > { %v2470_v42 = vmul.f32 %v10398_v22, %v2469_v34  ;;  %4663 = vmatpush.bf16.xpose.msra.mxu0 %v4654_v52  ;;  %v12552_v34 = vpop.permute.xlu2 %1396 }
 0x59a   : > { %v2471_v14 = vmul.f32 0.5, %v2470_v42  ;;  %1412 = vrot.lane.b32.xlu2 %v11933_v19, %s11321_s29  ;;  %v2002_v42 = vsel %vm1920_vm3, %v1883_v30, 0.0 }
 0x59c   : > { %v2472_v15 = vsub.f32 1.5, %v2471_v14 }
 0x59d   : > { %v10400_v2 = vpop.eup %10399 }
 0x59e   : > { %v2473_v47 = vmul.f32 %v10398_v22, %v2472_v15  ;;  %v3755_v35 = vmul.f32 %v10400_v2, %v3429_v16  ;;  %v4591_v36 = vpop.f32.mrf.mxu0  ;;  %vm3761_vm8 = vweird.f32 %v10400_v2 }
 0x59f   : > { %vm3762_vm10 = vmor %vm3760_vm9, %vm3761_vm8 }
 0x5a0   : > { %v2477_v25 = vsel %vm2476_vm7, %v10398_v22, %v2473_v47  ;;  %v3756_v44 = vmul.f32 %v10400_v2, %v3755_v35 }
 0x5a1   : > { %v2910_v12 = vmul.f32 %v2477_v25, %v12308_v53 }
 0x5a2   : > { %v3757_v17 = vmul.f32 0.5, %v3756_v44  ;;  %v12561_v44 = vpop.permute.xlu0 %1418 }
 0x5a3   : > { %v2974_v31 = vmul.f32 0.25, %v2910_v12 }
 0x5a4   : > { %v3758_v52 = vsub.f32 1.5, %v3757_v17 }
 0x5a5   : > { %2003 = vadd.xlane.f32.xlu1 %v2002_v42  ;;  %v3038_v29 = vpack.c.bf16 %v2974_v31, %v2974_v31 }
 0x5a6   : > { %v3759_v14 = vmul.f32 %v10400_v2, %v3758_v52 }
 0x5a7   : > { %9497 = vmatmul.msk.bf16.vlgmr.msra.gmra.mxu0 %vm1920_vm3, %v3038_v29  ;;  %v1884_v29 = vmul.f32 %v12420_v49, %v12420_v49 }
 0x5a8   : > { %v3763_v22 = vsel %vm3762_vm10, %v10400_v2, %v3759_v14 }
 0x5a9   : > { %1434 = vrot.lane.b32.xlu0 %v11876_v40, %s11322_s26  ;;  %v4133_v53 = vmul.f32 %v3763_v22, %v12344_v37 }
 0x5aa   : > { %v12566_v17 = vpop.permute.xlu0 %1590 }
 0x5ab   : > { %v4197_v15 = vpack.c.bf16 %v4133_v53, %v4133_v53 }
 0x5ac   : > { %v1995_v47 = vpop.xlane.xlu2 %1994 }
 0x5ad   : > { %v2144_v35 = vmul.f32 %v11943_v27, %v1995_v47  ;;  %v4787_v36 = vsel %vm1920_vm3, %v4197_v15, 0 }
 0x5ae   : > { %4796 = vmatpush.bf16.xpose.msra.mxu3 %v4787_v36 }
 0x5af   : > { %v2208_v25 = vadd.f32 1.1920929e-07, %v2144_v35 }
 0x5b1   : > { %10401 = vrsqrt.f32 %v2208_v25  ;;  %1598 = vrot.lane.b32.xlu0 %v12026_v39, %s11321_s29  ;;  %vm2494_vm12 = vweird.f32 %v2208_v25 }
 0x5b4   : > { %v3215_v16 = vpop.xlane.xlu2 %3214 }
 0x5b5   : > { %v3359_v2 = vmul.f32 %v3215_v16, %v11943_v27  ;;  %v2005_v16 = vsel %vm1920_vm3, %v1884_v29, 0.0 }
 0x5b7   : > { %v10402_v30 = vpop.eup %10401  ;;  %v3423_v12 = vadd.f32 1.1920929e-07, %v3359_v2 }
 0x5b8   : > { %v2489_v37 = vmul.f32 %v10402_v30, %v2208_v25  ;;  %vm2495_vm11 = vweird.f32 %v10402_v30  ;;  %v3107_v25 = vmul.f32 %v12390_v9, %v12390_v9 }
 0x5b9   : > { %10403 = vrsqrt.f32 %v3423_v12  ;;  %vm2496_vm13 = vmor %vm2494_vm12, %vm2495_vm11  ;;  %vm3700_vm15 = vweird.f32 %v3423_v12 }
 0x5ba   : > { %v2490_v31 = vmul.f32 %v10402_v30, %v2489_v37 }
 0x5bc   : > { %v2491_v52 = vmul.f32 0.5, %v2490_v31 }
 0x5be   : > { %v2492_v42 = vsub.f32 1.5, %v2491_v52  ;;  %1420 = vrot.lane.b32.xlu1 %v15527_v8, %s11321_s29 }
 0x5bf   : > { %v10404_v14 = vpop.eup %10403 }
 0x5c0   : > { %v2493_v22 = vmul.f32 %v10402_v30, %v2492_v42  ;;  %v3695_v53 = vmul.f32 %v10404_v14, %v3423_v12  ;;  %vm3701_vm14 = vweird.f32 %v10404_v14 }
 0x5c1   : > { %vm3702_vm0 = vmor %vm3700_vm15, %vm3701_vm14 }
 0x5c2   : > { %v2497_v15 = vsel %vm2496_vm13, %v10402_v30, %v2493_v22  ;;  %v3696_v47 = vmul.f32 %v10404_v14, %v3695_v53  ;;  %v3230_v35 = vpop.xlane.xlu0 %3229  ;;  %v12572_v36 = vpop.f32.mrf.mxu2 }
 0x5c3   : > { %15533 = vst [vmem:[#allocation61_spill] sm:$0xff] %v12572_v36  ;;  %v2912_v2 = vmul.f32 %v2497_v15, %v12331_v20  ;;  %v3364_v37 = vmul.f32 %v3230_v35, %v11943_v27  ;;  %2006 = vadd.xlane.f32.xlu2 %v2005_v16  ;;  %v3225_v20 = vsel %vm1920_vm3, %v3107_v25, 0.0 }
 0x5c4   : > { %v3697_v31 = vmul.f32 0.5, %v3696_v47  ;;  %v12582_v47 = vpop.permute.xlu1 %1608 }
 0x5c5   : > { %v2976_v52 = vmul.f32 0.25, %v2912_v2  ;;  %v3428_v41 = vadd.f32 1.1920929e-07, %v3364_v37 }
 0x5c6   : > { %v3698_v24 = vsub.f32 1.5, %v3697_v31 }
 0x5c7   : > { %10405 = vrsqrt.f32 %v3428_v41  ;;  %v3040_v30 = vpack.c.bf16 %v2976_v52, %v2976_v52  ;;  %v3112_v52 = vmul.f32 %v12464_v7, %v12464_v7  ;;  %vm3750_vm2 = vweird.f32 %v3428_v41 }
 0x5c8   : > { %v3699_v42 = vmul.f32 %v10404_v14, %v3698_v24 }
 0x5c9   : > { %9499 = vmatmul.msk.bf16.vlgmr.msrb.gmra.mxu2 %vm1920_vm3, %v3040_v30 }
 0x5ca   : > { %v4629_v29 = vpop.f32.mrf.mxu2  ;;  %v3703_v22 = vsel %vm3702_vm0, %v10404_v14, %v3699_v42 }
 0x5cb   : > { %3226 = vadd.xlane.f32.xlu2 %v3225_v20  ;;  %v4127_v53 = vmul.f32 %v3703_v22, %v12296_v61  ;;  %v3240_v29 = vsel %vm1920_vm3, %v3112_v52, 0.0 }
 0x5cd   : > { %v10406_v15 = vpop.eup %10405  ;;  %v4191_v35 = vpack.c.bf16 %v4127_v53, %v4127_v53 }
 0x5ce   : > { %v3745_v16 = vmul.f32 %v10406_v15, %v3428_v41  ;;  %vm3751_vm1 = vweird.f32 %v10406_v15  ;;  %v1888_v41 = vmul.f32 %v12442_v60, %v12442_v60 }
 0x5cf   : > { %v4673_v2 = vsel %vm1920_vm3, %v4191_v35, 0  ;;  %vm3752_vm4 = vmor %vm3750_vm2, %vm3751_vm1 }
 0x5d0   : > { %v3746_v37 = vmul.f32 %v10406_v15, %v3745_v16  ;;  %4682 = vmatpush.bf16.xpose.msrb.mxu1 %v4673_v2 }
 0x5d2   : > { %v3747_v24 = vmul.f32 0.5, %v3746_v37  ;;  %v2017_v37 = vsel %vm1920_vm3, %v1888_v41, 0.0 }
 0x5d4   : > { %v3748_v12 = vsub.f32 1.5, %v3747_v24 }
 0x5d5   : > { %v3224_v31 = vpop.xlane.xlu1 %3223 }
 0x5d6   : > { %v3362_v14 = vmul.f32 %v3224_v31, %v11943_v27  ;;  %v3749_v61 = vmul.f32 %v10406_v15, %v3748_v12  ;;  %v3111_v12 = vmul.f32 %v12479_v26, %v12479_v26 }
 0x5d8   : > { %v3426_v25 = vadd.f32 1.1920929e-07, %v3362_v14  ;;  %v3753_v30 = vsel %vm3752_vm4, %v10406_v15, %v3749_v61  ;;  %v12601_v14 = vpop.permute.xlu2 %1588 }
 0x5d9   : > { %v4132_v42 = vmul.f32 %v3753_v30, %v12379_v6 }
 0x5da   : > { %10407 = vrsqrt.f32 %v3426_v25  ;;  %vm3730_vm6 = vweird.f32 %v3426_v25 }
 0x5db   : > { %3241 = vadd.xlane.f32.xlu0 %v3240_v29  ;;  %v4196_v20 = vpack.c.bf16 %v4132_v42, %v4132_v42  ;;  %v3237_v42 = vsel %vm1920_vm3, %v3111_v12, 0.0 }
 0x5dd   : > { %v4768_v22 = vsel %vm1920_vm3, %v4196_v20, 0  ;;  %v12607_v20 = vpop.permute.xlu0 %1414 }
 0x5de   : > { %4777 = vmatpush.bf16.xpose.msra.mxu2 %v4768_v22 }
 0x5e0   : > { %v10408_v53 = vpop.eup %10407 }
 0x5e1   : > { %v3725_v35 = vmul.f32 %v10408_v53, %v3426_v25  ;;  %vm3731_vm5 = vweird.f32 %v10408_v53 }
 0x5e2   : > { %vm3732_vm7 = vmor %vm3730_vm6, %vm3731_vm5 }
 0x5e3   : > { %v3726_v16 = vmul.f32 %v10408_v53, %v3725_v35  ;;  %1432 = vrot.lane.b32.xlu2 %v11826_v58, %s11322_s26 }
 0x5e5   : > { %v3727_v15 = vmul.f32 0.5, %v3726_v16  ;;  %v12612_v35 = vpop.permute.xlu0 %1610 }
 0x5e7   : > { %v3728_v2 = vsub.f32 1.5, %v3727_v15  ;;  %v12595_v6 = vpop.f32.mrf.mxu3 }
 0x5e8   : > { %15534 = vst [vmem:[#allocation62_spill] sm:$0xff] %v12595_v6  ;;  %2018 = vadd.xlane.f32.xlu1 %v2017_v37 }
 0x5e9   : > { %v3729_v24 = vmul.f32 %v10408_v53, %v3728_v2 }
 0x5eb   : > { %v3733_v31 = vsel %vm3732_vm7, %v10408_v53, %v3729_v24  ;;  %v1882_v24 = vmul.f32 %v12427_v62, %v12427_v62 }
 0x5ec   : > { %v4130_v52 = vmul.f32 %v3733_v31, %v12359_v54 }
 0x5ee   : > { %v4194_v61 = vpack.c.bf16 %v4130_v52, %v4130_v52 }
 0x5ef   : > { %1422 = vrot.lane.b32.xlu0 %v12099_v55, %s11321_s29  ;;  %v4724_v30 = vpop.f32.mrf.mxu3 }
 0x5f0   : > { %3238 = vadd.xlane.f32.xlu1 %v3237_v42  ;;  %v4730_v25 = vsel %vm1920_vm3, %v4194_v61, 0  ;;  %v1999_v42 = vsel %vm1920_vm3, %v1882_v24, 0.0 }
 0x5f1   : > { %4739 = vmatpush.bf16.xpose.msrb.mxu0 %v4730_v25 }
 0x5f5   : > { %v1992_v29 = vpop.xlane.xlu2 %1991 }
 0x5f6   : > { %v2143_v22 = vmul.f32 %v11943_v27, %v1992_v29 }
 0x5f7   : > { %1618 = vrot.lane.b32.xlu0 %v11946_v28, %s11322_s26 }
 0x5f8   : > { %v2207_v54 = vadd.f32 1.1920929e-07, %v2143_v22 }
 0x5fa   : > { %10409 = vrsqrt.f32 %v2207_v54  ;;  %vm2484_vm9 = vweird.f32 %v2207_v54 }
 0x600   : > { %v10410_v53 = vpop.eup %10409 }
 0x601   : > { %v2479_v16 = vmul.f32 %v10410_v53, %v2207_v54  ;;  %vm2485_vm8 = vweird.f32 %v10410_v53 }
 0x602   : > { %vm2486_vm10 = vmor %vm2484_vm9, %vm2485_vm8 }
 0x603   : > { %v2480_v41 = vmul.f32 %v10410_v53, %v2479_v16  ;;  %v3113_v16 = vmul.f32 %v12432_v63, %v12432_v63 }
 0x605   : > { %v2481_v15 = vmul.f32 0.5, %v2480_v41  ;;  %v12614_v2 = vpop.f32.mrf.mxu1 }
 0x606   : > { %15535 = vst [vmem:[#allocation63_spill] sm:$0xff] %v12614_v2 }
 0x607   : > { %v2482_v37 = vsub.f32 1.5, %v2481_v15  ;;  %v3243_v15 = vsel %vm1920_vm3, %v3113_v16, 0.0 }
 0x608   : > { %v2010_v12 = vpop.xlane.xlu0 %2009 }
 0x609   : > { %v2483_v31 = vmul.f32 %v10410_v53, %v2482_v37  ;;  %v2149_v52 = vmul.f32 %v11943_v27, %v2010_v12  ;;  %1612 = vrot.lane.b32.xlu1 %v11865_v23, %s11322_s26 }
 0x60b   : > { %v2487_v61 = vsel %vm2486_vm10, %v10410_v53, %v2483_v31  ;;  %v2213_v30 = vadd.f32 1.1920929e-07, %v2149_v52 }
 0x60c   : > { %v2911_v25 = vmul.f32 %v2487_v61, %v12339_v43  ;;  %2000 = vadd.xlane.f32.xlu2 %v1999_v42  ;;  %v3110_v43 = vmul.f32 %v12512_v45, %v12512_v45 }
 0x60d   : > { %10411 = vrsqrt.f32 %v2213_v30  ;;  %v4610_v29 = vpop.f32.mrf.mxu1  ;;  %vm2544_vm12 = vweird.f32 %v2213_v30 }
 0x60e   : > { %v2975_v22 = vmul.f32 0.25, %v2911_v25  ;;  %v3234_v42 = vsel %vm1920_vm3, %v3110_v43, 0.0 }
 0x610   : > { %v3039_v54 = vpack.c.bf16 %v2975_v22, %v2975_v22  ;;  %v12631_v22 = vpop.permute.xlu1 %1596 }
 0x612   : > { %9498 = vmatmul.msk.bf16.vlgmr.msrb.gmra.mxu1 %vm1920_vm3, %v3039_v54 }
 0x613   : > { %v10412_v41 = vpop.eup %10411 }
 0x614   : > { %v2539_v37 = vmul.f32 %v10412_v41, %v2213_v30  ;;  %3244 = vadd.xlane.f32.xlu2 %v3243_v15  ;;  %vm2545_vm11 = vweird.f32 %v10412_v41  ;;  %v12638_v15 = vpop.permute.xlu2 %1412 }
 0x615   : > { %vm2546_vm13 = vmor %vm2544_vm12, %vm2545_vm11 }
 0x616   : > { %v2540_v53 = vmul.f32 %v10412_v41, %v2539_v37 }
 0x618   : > { %v2541_v12 = vmul.f32 0.5, %v2540_v53  ;;  %v2004_v54 = vpop.xlane.xlu1 %2003 }
 0x61a   : > { %v2542_v24 = vsub.f32 1.5, %v2541_v12 }
 0x61c   : > { %v2543_v31 = vmul.f32 %v10412_v41, %v2542_v24 }
 0x61e   : > { %v2547_v52 = vsel %vm2546_vm13, %v10412_v41, %v2543_v31  ;;  %v2147_v41 = vmul.f32 %v11943_v27, %v2004_v54  ;;  %v12647_v31 = vpop.permute.xlu0 %1434 }
 0x61f   : > { %v2917_v61 = vmul.f32 %v2547_v52, %v12385_v21  ;;  %v3116_v21 = vmul.f32 %v12492_v38, %v12492_v38 }
 0x620   : > { %v2211_v53 = vadd.f32 1.1920929e-07, %v2147_v41 }
 0x621   : > { %v2981_v25 = vmul.f32 0.25, %v2917_v61  ;;  %3235 = vadd.xlane.f32.xlu0 %v3234_v42  ;;  %v3252_v37 = vsel %vm1920_vm3, %v3116_v21, 0.0 }
 0x622   : > { %10413 = vrsqrt.f32 %v2211_v53  ;;  %vm2524_vm4 = vweird.f32 %v2211_v53 }
 0x623   : > { %v3045_v29 = vpack.c.bf16 %v2981_v25, %v2981_v25 }
 0x624   : > { %v12633_v16 = vpop.f32.mrf.mxu0 }
 0x625   : > { %15536 = vst [vmem:[#allocation64_spill] sm:$0xff] %v12633_v16  ;;  %9504 = vmatmul.msk.bf16.vlgmr.msra.gmra.mxu3 %vm1920_vm3, %v3045_v29 }
 0x628   : > { %v10414_v52 = vpop.eup %10413 }
 0x629   : > { %v2519_v25 = vmul.f32 %v10414_v52, %v2211_v53  ;;  %vm2525_vm1 = vweird.f32 %v10414_v52 }
 0x62a   : > { %vm2526_vm5 = vmor %vm2524_vm4, %vm2525_vm1 }
 0x62b   : > { %v2520_v21 = vmul.f32 %v10414_v52, %v2519_v25 }
 0x62c   : > { %1616 = vrot.lane.b32.xlu2 %v11923_v4, %s11322_s26  ;;  %v4667_v30 = vpop.f32.mrf.mxu0 }
 0x633   : > { %3253 = vadd.xlane.f32.xlu1 %v3252_v37  ;;  %v12652_v37 = vpop.permute.xlu0 %1598 }
 0x635   : > { %1442 = vrot.lane.b32.xlu0 %v11964_v10, %s11322_s26 }
 0x636   : > { %v2007_v12 = vpop.xlane.xlu2 %2006 }
 0x637   : > { %v2148_v24 = vmul.f32 %v11943_v27, %v2007_v12 }
 0x639   : > { %v2212_v43 = vadd.f32 1.1920929e-07, %v2148_v24  ;;  %v2521_v24 = vmul.f32 0.5, %v2520_v21 }
 0x63b   : > { %10415 = vrsqrt.f32 %v2212_v43  ;;  %vm2534_vm15 = vweird.f32 %v2212_v43  ;;  %v2522_v5 = vsub.f32 1.5, %v2521_v24 }
 0x63d   : > { %1614 = vrot.lane.b32.xlu0 %v11888_v0, %s11322_s26 }
 0x63e   : > { %v3227_v61 = vpop.xlane.xlu2 %3226 }
 0x63f   : > { %v3363_v42 = vmul.f32 %v3227_v61, %v11943_v27 }
 0x641   : > { %v10416_v29 = vpop.eup %10415  ;;  %v3427_v54 = vadd.f32 1.1920929e-07, %v3363_v42 }
 0x642   : > { %v2529_v30 = vmul.f32 %v10416_v29, %v2212_v43  ;;  %vm2535_vm14 = vweird.f32 %v10416_v29 }
 0x643   : > { %10417 = vrsqrt.f32 %v3427_v54  ;;  %vm2536_vm0 = vmor %vm2534_vm15, %vm2535_vm14  ;;  %vm3740_vm6 = vweird.f32 %v3427_v54 }
 0x644   : > { %v2530_v41 = vmul.f32 %v10416_v29, %v2529_v30 }
 0x646   : > { %v2531_v12 = vmul.f32 0.5, %v2530_v41 }
 0x648   : > { %v2532_v16 = vsub.f32 1.5, %v2531_v12 }
 0x649   : > { %v10418_v6 = vpop.eup %10417 }
 0x64a   : > { %v2533_v2 = vmul.f32 %v10416_v29, %v2532_v16  ;;  %v3735_v36 = vmul.f32 %v10418_v6, %v3427_v54  ;;  %v2523_v16 = vmul.f32 %v10414_v52, %v2522_v5  ;;  %vm3741_vm2 = vweird.f32 %v10418_v6 }
 0x64b   : > { %vm3742_vm7 = vmor %vm3740_vm6, %vm3741_vm2 }
 0x64c   : > { %v2537_v61 = vsel %vm2536_vm0, %v10416_v29, %v2533_v2  ;;  %v3736_v48 = vmul.f32 %v10418_v6, %v3735_v36  ;;  %1438 = vrot.lane.b32.xlu1 %v11901_v51, %s11322_s26  ;;  %v12656_v42 = vpop.f32.mrf.mxu2  ;;  %v1889_v2 = vmul.f32 %v12474_v33, %v12474_v33 }
 0x64d   : > { %15537 = vst [vmem:[#allocation65_spill] sm:$0xff] %v12656_v42  ;;  %v2916_v25 = vmul.f32 %v2537_v61, %v12420_v49  ;;  %v12662_v42 = vpop.permute.xlu1 %1420  ;;  %v2527_v49 = vsel %vm2526_vm5, %v10414_v52, %v2523_v16 }
 0x64e   : > { %v3737_v30 = vmul.f32 0.5, %v3736_v48  ;;  %v3242_v41 = vpop.xlane.xlu0 %3241  ;;  %v2020_v5 = vsel %vm1920_vm3, %v1889_v2, 0.0  ;;  %v2915_v53 = vmul.f32 %v2527_v49, %v12411_v18 }
 0x64f   : > { %v2980_v21 = vmul.f32 0.25, %v2916_v25  ;;  %v3368_v12 = vmul.f32 %v3242_v41, %v11943_v27 }
 0x650   : > { %v3738_v43 = vsub.f32 1.5, %v3737_v30 }
 0x651   : > { %v3432_v36 = vadd.f32 1.1920929e-07, %v3368_v12  ;;  %v3044_v29 = vpack.c.bf16 %v2980_v21, %v2980_v21  ;;  %v2979_v12 = vmul.f32 0.25, %v2915_v53 }
 0x652   : > { %v3739_v24 = vmul.f32 %v10418_v6, %v3738_v43 }
 0x653   : > { %10419 = vrsqrt.f32 %v3432_v36  ;;  %9503 = vmatmul.msk.bf16.vlgmr.msra.gmra.mxu2 %vm1920_vm3, %v3044_v29  ;;  %v3043_v2 = vpack.c.bf16 %v2979_v12, %v2979_v12  ;;  %vm3790_vm9 = vweird.f32 %v3432_v36 }
 0x654   : > { %v4705_v48 = vpop.f32.mrf.mxu2  ;;  %v3743_v61 = vsel %vm3742_vm7, %v10418_v6, %v3739_v24 }
 0x655   : > { %2021 = vadd.xlane.f32.xlu2 %v2020_v5  ;;  %v4131_v25 = vmul.f32 %v3743_v61, %v12390_v9  ;;  %v1887_v9 = vmul.f32 %v12517_v32, %v12517_v32 }
 0x657   : > { %v4195_v30 = vpack.c.bf16 %v4131_v25, %v4131_v25  ;;  %v2014_v25 = vsel %vm1920_vm3, %v1887_v9, 0.0 }
 0x659   : > { %v10420_v41 = vpop.eup %10419  ;;  %v4749_v54 = vsel %vm1920_vm3, %v4195_v30, 0 }
 0x65a   : > { %v3785_v21 = vmul.f32 %v10420_v41, %v3432_v36  ;;  %4758 = vmatpush.bf16.xpose.msra.mxu1 %v4749_v54  ;;  %vm3791_vm8 = vweird.f32 %v10420_v41 }
 0x65b   : > { %v2019_v43 = vpop.xlane.xlu1 %2018  ;;  %vm3792_vm10 = vmor %vm3790_vm9, %vm3791_vm8 }
 0x65c   : > { %v3786_v11 = vmul.f32 %v10420_v41, %v3785_v21  ;;  %v2152_v52 = vmul.f32 %v11943_v27, %v2019_v43 }
 0x65e   : > { %v3787_v16 = vmul.f32 0.5, %v3786_v11  ;;  %v2216_v29 = vadd.f32 1.1920929e-07, %v2152_v52 }
 0x660   : > { %v3788_v6 = vsub.f32 1.5, %v3787_v16  ;;  %10421 = vrsqrt.f32 %v2216_v29  ;;  %vm2574_vm12 = vweird.f32 %v2216_v29 }
 0x661   : > { %9502 = vmatmul.msk.bf16.vlgmr.msra.gmra.mxu1 %vm1920_vm3, %v3043_v2  ;;  %v1893_v2 = vmul.f32 %v12561_v44, %v12561_v44 }
 0x662   : > { %v3789_v18 = vmul.f32 %v10420_v41, %v3788_v6 }
 0x663   : > { %v3239_v24 = vpop.xlane.xlu1 %3238 }
 0x664   : > { %v3367_v49 = vmul.f32 %v3239_v24, %v11943_v27  ;;  %v3793_v48 = vsel %vm3792_vm10, %v10420_v41, %v3789_v18 }
 0x665   : > { %v4136_v5 = vmul.f32 %v3793_v48, %v12464_v7 }
 0x666   : > { %v10422_v11 = vpop.eup %10421  ;;  %v3431_v61 = vadd.f32 1.1920929e-07, %v3367_v49  ;;  %v2032_v49 = vsel %vm1920_vm3, %v1893_v2, 0.0 }
 0x667   : > { %v2569_v53 = vmul.f32 %v10422_v11, %v2216_v29  ;;  %2015 = vadd.xlane.f32.xlu0 %v2014_v25  ;;  %v4200_v30 = vpack.c.bf16 %v4136_v5, %v4136_v5  ;;  %vm2575_vm11 = vweird.f32 %v10422_v11  ;;  %v12683_v5 = vpop.permute.xlu2 %1432 }
 0x668   : > { %10423 = vrsqrt.f32 %v3431_v61  ;;  %vm2576_vm13 = vmor %vm2574_vm12, %vm2575_vm11  ;;  %vm3780_vm15 = vweird.f32 %v3431_v61 }
 0x669   : > { %v2570_v54 = vmul.f32 %v10422_v11, %v2569_v53  ;;  %v4844_v21 = vsel %vm1920_vm3, %v4200_v30, 0 }
 0x66a   : > { %4853 = vmatpush.bf16.xpose.msrb.mxu2 %v4844_v21  ;;  %v12691_v21 = vpop.permute.xlu0 %1422 }
 0x66b   : > { %v2571_v36 = vmul.f32 0.5, %v2570_v54 }
 0x66d   : > { %v2572_v12 = vsub.f32 1.5, %v2571_v36  ;;  %1440 = vrot.lane.b32.xlu2 %v11912_v56, %s11322_s26 }
 0x66e   : > { %v10424_v41 = vpop.eup %10423 }
 0x66f   : > { %v2573_v7 = vmul.f32 %v10422_v11, %v2572_v12  ;;  %v3775_v43 = vmul.f32 %v10424_v41, %v3431_v61  ;;  %vm3781_vm14 = vweird.f32 %v10424_v41 }
 0x670   : > { %vm3782_vm0 = vmor %vm3780_vm15, %vm3781_vm14 }
 0x671   : > { %v2577_v52 = vsel %vm2576_vm13, %v10422_v11, %v2573_v7  ;;  %v3776_v16 = vmul.f32 %v10424_v41, %v3775_v43 }
 0x672   : > { %v2920_v6 = vmul.f32 %v2577_v52, %v12442_v60  ;;  %v12696_v43 = vpop.permute.xlu0 %1618 }
 0x673   : > { %v3777_v9 = vmul.f32 0.5, %v3776_v16 }
 0x674   : > { %v2984_v18 = vmul.f32 0.25, %v2920_v6 }
 0x675   : > { %v3778_v24 = vsub.f32 1.5, %v3777_v9  ;;  %v1886_v9 = vmul.f32 %v12552_v34, %v12552_v34 }
 0x676   : > { %2033 = vadd.xlane.f32.xlu1 %v2032_v49  ;;  %v3048_v48 = vpack.c.bf16 %v2984_v18, %v2984_v18 }
 0x677   : > { %v3779_v29 = vmul.f32 %v10424_v41, %v3778_v24 }
 0x678   : > { %9507 = vmatmul.msk.bf16.vlgmr.msrb.gmra.mxu2 %vm1920_vm3, %v3048_v48 }
 0x679   : > { %v3783_v11 = vsel %vm3782_vm0, %v10424_v41, %v3779_v29 }
 0x67a   : > { %v4135_v25 = vmul.f32 %v3783_v11, %v12479_v26 }
 0x67b   : > { %1436 = vrot.lane.b32.xlu0 %v11933_v19, %s11322_s26 }
 0x67c   : > { %v4199_v60 = vpack.c.bf16 %v4135_v25, %v4135_v25 }
 0x67e   : > { %v4825_v53 = vsel %vm1920_vm3, %v4199_v60, 0  ;;  %v2011_v60 = vsel %vm1920_vm3, %v1886_v9, 0.0 }
 0x67f   : > { %v2001_v30 = vpop.xlane.xlu2 %2000  ;;  %4834 = vmatpush.bf16.xpose.msrb.mxu1 %v4825_v53 }
 0x680   : > { %v2146_v54 = vmul.f32 %v11943_v27, %v2001_v30 }
 0x682   : > { %v2210_v61 = vadd.f32 1.1920929e-07, %v2146_v54 }
 0x683   : > { %1634 = vrot.lane.b32.xlu0 %v11881_v46, %s11323_s12 }
 0x684   : > { %10425 = vrsqrt.f32 %v2210_v61  ;;  %vm2514_vm2 = vweird.f32 %v2210_v61 }
 0x687   : > { %v3245_v36 = vpop.xlane.xlu2 %3244 }
 0x688   : > { %v3369_v26 = vmul.f32 %v3245_v36, %v11943_v27 }
 0x68a   : > { %v10426_v12 = vpop.eup %10425  ;;  %v3433_v41 = vadd.f32 1.1920929e-07, %v3369_v26 }
 0x68b   : > { %v2509_v7 = vmul.f32 %v10426_v12, %v2210_v61  ;;  %vm2515_vm1 = vweird.f32 %v10426_v12 }
 0x68c   : > { %10427 = vrsqrt.f32 %v3433_v41  ;;  %vm2516_vm4 = vmor %vm2514_vm2, %vm2515_vm1  ;;  %vm3800_vm6 = vweird.f32 %v3433_v41 }
 0x68d   : > { %v2510_v52 = vmul.f32 %v10426_v12, %v2509_v7  ;;  %v3117_v7 = vmul.f32 %v12524_v3, %v12524_v3 }
 0x68f   : > { %v2511_v16 = vmul.f32 0.5, %v2510_v52  ;;  %v12698_v2 = vpop.f32.mrf.mxu1  ;;  %1456 = vrot.lane.b32.xlu1 %v11826_v58, %s11323_s12 }
 0x690   : > { %15538 = vst [vmem:[#allocation66_spill] sm:$0xff] %v12698_v2 }
 0x691   : > { %v2512_v6 = vsub.f32 1.5, %v2511_v16  ;;  %v3255_v16 = vsel %vm1920_vm3, %v3117_v7, 0.0 }
 0x692   : > { %v10428_v18 = vpop.eup %10427 }
 0x693   : > { %v2513_v24 = vmul.f32 %v10426_v12, %v2512_v6  ;;  %v3795_v49 = vmul.f32 %v10428_v18, %v3433_v41  ;;  %vm3801_vm5 = vweird.f32 %v10428_v18  ;;  %v12711_v6 = vpop.permute.xlu1 %1612 }
 0x694   : > { %v3236_v48 = vpop.xlane.xlu0 %3235  ;;  %vm3802_vm7 = vmor %vm3800_vm6, %vm3801_vm5 }
 0x695   : > { %v2517_v29 = vsel %vm2516_vm4, %v10426_v12, %v2513_v24  ;;  %v3796_v11 = vmul.f32 %v10428_v18, %v3795_v49  ;;  %v3366_v25 = vmul.f32 %v3236_v48, %v11943_v27 }
 0x696   : > { %v2914_v53 = vmul.f32 %v2517_v29, %v12427_v62  ;;  %2012 = vadd.xlane.f32.xlu2 %v2011_v60 }
 0x697   : > { %v3797_v30 = vmul.f32 0.5, %v3796_v11  ;;  %v3430_v54 = vadd.f32 1.1920929e-07, %v3366_v25  ;;  %v4686_v36 = vpop.f32.mrf.mxu1 }
 0x698   : > { %v2978_v26 = vmul.f32 0.25, %v2914_v53 }
 0x699   : > { %v3798_v61 = vsub.f32 1.5, %v3797_v30  ;;  %10429 = vrsqrt.f32 %v3430_v54  ;;  %vm3770_vm9 = vweird.f32 %v3430_v54 }
 0x69a   : > { %v3042_v52 = vpack.c.bf16 %v2978_v26, %v2978_v26 }
 0x69b   : > { %v3799_v12 = vmul.f32 %v10428_v18, %v3798_v61 }
 0x69c   : > { %9501 = vmatmul.msk.bf16.vlgmr.msrb.gmra.mxu0 %vm1920_vm3, %v3042_v52 }
 0x69d   : > { %v3803_v62 = vsel %vm3802_vm7, %v10428_v18, %v3799_v12  ;;  %v3114_v18 = vmul.f32 %v12601_v14, %v12601_v14 }
 0x69e   : > { %3256 = vadd.xlane.f32.xlu2 %v3255_v16  ;;  %v4137_v9 = vmul.f32 %v3803_v62, %v12432_v63 }
 0x69f   : > { %v10430_v24 = vpop.eup %10429  ;;  %v3246_v61 = vsel %vm1920_vm3, %v3114_v18, 0.0 }
 0x6a0   : > { %v3765_v49 = vmul.f32 %v10430_v24, %v3430_v54  ;;  %v4201_v48 = vpack.c.bf16 %v4137_v9, %v4137_v9  ;;  %vm3771_vm8 = vweird.f32 %v10430_v24  ;;  %v1890_v54 = vmul.f32 %v12638_v15, %v12638_v15 }
 0x6a1   : > { %vm3772_vm10 = vmor %vm3770_vm9, %vm3771_vm8 }
 0x6a2   : > { %v3766_v29 = vmul.f32 %v10430_v24, %v3765_v49  ;;  %v4863_v11 = vsel %vm1920_vm3, %v4201_v48, 0 }
 0x6a3   : > { %4872 = vmatpush.bf16.xpose.msrb.mxu3 %v4863_v11  ;;  %v3121_v11 = vmul.f32 %v12612_v35, %v12612_v35 }
 0x6a4   : > { %v3767_v41 = vmul.f32 0.5, %v3766_v29 }
 0x6a5   : > { %v3267_v18 = vsel %vm1920_vm3, %v3121_v11, 0.0 }
 0x6a6   : > { %v3768_v25 = vsub.f32 1.5, %v3767_v41  ;;  %v3254_v60 = vpop.xlane.xlu1 %3253 }
 0x6a7   : > { %v3372_v53 = vmul.f32 %v3254_v60, %v11943_v27 }
 0x6a8   : > { %v12718_v30 = vpop.f32.mrf.mxu3  ;;  %v3769_v63 = vmul.f32 %v10430_v24, %v3768_v25 }
 0x6a9   : > { %15539 = vst [vmem:[#allocation67_spill] sm:$0xff] %v12718_v30  ;;  %v3436_v36 = vadd.f32 1.1920929e-07, %v3372_v53  ;;  %v12731_v53 = vpop.permute.xlu2 %1616 }
 0x6aa   : > { %v3773_v26 = vsel %vm3772_vm10, %v10430_v24, %v3769_v63 }
 0x6ab   : > { %10431 = vrsqrt.f32 %v3436_v36  ;;  %v4134_v7 = vmul.f32 %v3773_v26, %v12512_v45  ;;  %v2023_v45 = vsel %vm1920_vm3, %v1890_v54, 0.0  ;;  %vm3830_vm12 = vweird.f32 %v3436_v36 }
 0x6ac   : > { %v1892_v54 = vmul.f32 %v12532_v13, %v12532_v13 }
 0x6ad   : > { %3247 = vadd.xlane.f32.xlu0 %v3246_v61  ;;  %v4198_v52 = vpack.c.bf16 %v4134_v7, %v4134_v7 }
 0x6af   : > { %v4806_v12 = vsel %vm1920_vm3, %v4198_v52, 0 }
 0x6b0   : > { %v4800_v16 = vpop.f32.mrf.mxu3  ;;  %4815 = vmatpush.bf16.xpose.msra.mxu0 %v4806_v12 }
 0x6b1   : > { %v10432_v62 = vpop.eup %10431 }
 0x6b2   : > { %v3825_v9 = vmul.f32 %v10432_v62, %v3436_v36  ;;  %vm3831_vm11 = vweird.f32 %v10432_v62  ;;  %v12737_v36 = vpop.permute.xlu0 %1442 }
 0x6b3   : > { %vm3832_vm13 = vmor %vm3830_vm12, %vm3831_vm11 }
 0x6b4   : > { %v3826_v49 = vmul.f32 %v10432_v62, %v3825_v9 }
 0x6b6   : > { %v3827_v48 = vmul.f32 0.5, %v3826_v49  ;;  %1632 = vrot.lane.b32.xlu2 %v11829_v59, %s11323_s12 }
 0x6b8   : > { %v3828_v24 = vsub.f32 1.5, %v3827_v48 }
 0x6b9   : > { %2024 = vadd.xlane.f32.xlu1 %v2023_v45 }
 0x6ba   : > { %v3829_v29 = vmul.f32 %v10432_v62, %v3828_v24  ;;  %v12742_v61 = vpop.permute.xlu0 %1614 }
 0x6bc   : > { %v3833_v41 = vsel %vm3832_vm13, %v10432_v62, %v3829_v29 }
 0x6bd   : > { %v4140_v25 = vmul.f32 %v3833_v41, %v12492_v38 }
 0x6bf   : > { %v4204_v60 = vpack.c.bf16 %v4140_v25, %v4140_v25 }
 0x6c1   : > { %1458 = vrot.lane.b32.xlu0 %v11876_v40, %s11323_s12  ;;  %3268 = vadd.xlane.f32.xlu1 %v3267_v18  ;;  %v4920_v63 = vsel %vm1920_vm3, %v4204_v60, 0  ;;  %v2029_v60 = vsel %vm1920_vm3, %v1892_v54, 0.0 }
 0x6c2   : > { %4929 = vmatpush.bf16.xpose.msra.mxu2 %v4920_v63 }
 0x6c8   : > { %v2022_v26 = vpop.xlane.xlu2 %2021 }
 0x6c9   : > { %v2153_v7 = vmul.f32 %v11943_v27, %v2022_v26  ;;  %1622 = vrot.lane.b32.xlu0 %v12026_v39, %s11322_s26  ;;  %v3115_v26 = vmul.f32 %v12566_v17, %v12566_v17 }
 0x6cb   : > { %v2217_v38 = vadd.f32 1.1920929e-07, %v2153_v7 }
 0x6cd   : > { %10433 = vrsqrt.f32 %v2217_v38  ;;  %vm2584_vm15 = vweird.f32 %v2217_v38 }
 0x6d3   : > { %v10434_v52 = vpop.eup %10433 }
 0x6d4   : > { %v2579_v12 = vmul.f32 %v10434_v52, %v2217_v38  ;;  %vm2585_vm14 = vweird.f32 %v10434_v52 }
 0x6d5   : > { %vm2586_vm0 = vmor %vm2584_vm15, %vm2585_vm14 }
 0x6d6   : > { %v2580_v16 = vmul.f32 %v10434_v52, %v2579_v12  ;;  %v12744_v62 = vpop.f32.mrf.mxu2 }
 0x6d7   : > { %15540 = vst [vmem:[#allocation68_spill] sm:$0xff] %v12744_v62 }
 0x6d8   : > { %v2581_v9 = vmul.f32 0.5, %v2580_v16 }
 0x6da   : > { %v2582_v49 = vsub.f32 1.5, %v2581_v9  ;;  %v2016_v48 = vpop.xlane.xlu0 %2015  ;;  %1640 = vrot.lane.b32.xlu1 %v11923_v4, %s11323_s12 }
 0x6db   : > { %v2151_v24 = vmul.f32 %v11943_v27, %v2016_v48 }
 0x6dc   : > { %v2583_v45 = vmul.f32 %v10434_v52, %v2582_v49 }
 0x6dd   : > { %v2215_v29 = vadd.f32 1.1920929e-07, %v2151_v24 }
 0x6de   : > { %v2587_v11 = vsel %vm2586_vm0, %v10434_v52, %v2583_v45  ;;  %v12751_v41 = vpop.f32.mrf.mxu1  ;;  %v4781_v25 = vpop.f32.mrf.mxu2  ;;  %v3249_v52 = vsel %vm1920_vm3, %v3115_v26, 0.0  ;;  %v1897_v26 = vmul.f32 %v12647_v31, %v12647_v31 }
 0x6df   : > { %15541 = vst [vmem:[#allocation69_spill] sm:$0xff] %v12751_v41  ;;  %v2921_v18 = vmul.f32 %v2587_v11, %v12474_v33  ;;  %10435 = vrsqrt.f32 %v2215_v29  ;;  %2030 = vadd.xlane.f32.xlu2 %v2029_v60  ;;  %v3120_v33 = vmul.f32 %v12582_v47, %v12582_v47  ;;  %vm2564_vm2 = vweird.f32 %v2215_v29 }
 0x6e1   : > { %v2985_v63 = vmul.f32 0.25, %v2921_v18  ;;  %v3264_v11 = vsel %vm1920_vm3, %v3120_v33, 0.0  ;;  %v12763_v18 = vpop.permute.xlu1 %1438 }
 0x6e3   : > { %v3049_v7 = vpack.c.bf16 %v2985_v63, %v2985_v63 }
 0x6e5   : > { %v10436_v12 = vpop.eup %10435  ;;  %9508 = vmatmul.msk.bf16.vlgmr.msrb.gmra.mxu3 %vm1920_vm3, %v3049_v7 }
 0x6e6   : > { %v2559_v38 = vmul.f32 %v10436_v12, %v2215_v29  ;;  %v4762_v16 = vpop.f32.mrf.mxu1  ;;  %vm2565_vm1 = vweird.f32 %v10436_v12  ;;  %v12772_v29 = vpop.permute.xlu2 %1440 }
 0x6e7   : > { %3250 = vadd.xlane.f32.xlu2 %v3249_v52  ;;  %vm2566_vm4 = vmor %vm2564_vm2, %vm2565_vm1 }
 0x6e8   : > { %v2560_v9 = vmul.f32 %v10436_v12, %v2559_v38  ;;  %v2044_v38 = vsel %vm1920_vm3, %v1897_v26, 0.0 }
 0x6e9   : > { %v2034_v7 = vpop.xlane.xlu1 %2033 }
 0x6ea   : > { %v2561_v49 = vmul.f32 0.5, %v2560_v9 }
 0x6ec   : > { %v2562_v54 = vsub.f32 1.5, %v2561_v49 }
 0x6ee   : > { %v2563_v48 = vmul.f32 %v10436_v12, %v2562_v54  ;;  %v12779_v54 = vpop.permute.xlu0 %1436 }
 0x6f0   : > { %v2567_v24 = vsel %vm2566_vm4, %v10436_v12, %v2563_v48 }
 0x6f1   : > { %v2919_v45 = vmul.f32 %v2567_v24, %v12517_v32  ;;  %v2157_v32 = vmul.f32 %v11943_v27, %v2034_v7 }
 0x6f3   : > { %v2983_v25 = vmul.f32 0.25, %v2919_v45  ;;  %3265 = vadd.xlane.f32.xlu0 %v3264_v11  ;;  %v2221_v16 = vadd.f32 1.1920929e-07, %v2157_v32 }
 0x6f5   : > { %v3047_v60 = vpack.c.bf16 %v2983_v25, %v2983_v25  ;;  %10437 = vrsqrt.f32 %v2221_v16  ;;  %vm2624_vm10 = vweird.f32 %v2221_v16 }
 0x6f6   : > { %v12784_v32 = vpop.permute.xlu0 %1634 }
 0x6f7   : > { %9506 = vmatmul.msk.bf16.vlgmr.msrb.gmra.mxu1 %vm1920_vm3, %v3047_v60 }
 0x6fb   : > { %v12766_v63 = vpop.f32.mrf.mxu2  ;;  %v10438_v33 = vpop.eup %10437 }
 0x6fc   : > { %15542 = vst [vmem:[#allocation70_spill] sm:$0xff] %v12766_v63  ;;  %v2619_v45 = vmul.f32 %v10438_v33, %v2221_v16  ;;  %vm2625_vm8 = vweird.f32 %v10438_v33 }
 0x6fd   : > { %vm2626_vm11 = vmor %vm2624_vm10, %vm2625_vm8 }
 0x6fe   : > { %v2620_v26 = vmul.f32 %v10438_v33, %v2619_v45 }
 0x6ff   : > { %1620 = vrot.lane.b32.xlu2 %v15524_v50, %s11322_s26 }
 0x703   : > { %v4857_v12 = vpop.f32.mrf.mxu2 }
 0x704   : > { %2045 = vadd.xlane.f32.xlu1 %v2044_v38 }
 0x707   : > { %1446 = vrot.lane.b32.xlu0 %v12099_v55, %s11322_s26 }
 0x709   : > { %v2013_v52 = vpop.xlane.xlu2 %2012 }
 0x70a   : > { %v2150_v9 = vmul.f32 %v11943_v27, %v2013_v52  ;;  %v2621_v52 = vmul.f32 0.5, %v2620_v26 }
 0x70c   : > { %v2214_v49 = vadd.f32 1.1920929e-07, %v2150_v9 }
 0x70e   : > { %10439 = vrsqrt.f32 %v2214_v49  ;;  %vm2554_vm6 = vweird.f32 %v2214_v49 }
 0x70f   : > { %1642 = vrot.lane.b32.xlu0 %v11946_v28, %s11323_s12 }
 0x711   : > { %v3257_v48 = vpop.xlane.xlu2 %3256 }
 0x712   : > { %v3373_v24 = vmul.f32 %v3257_v48, %v11943_v27  ;;  %v2622_v48 = vsub.f32 1.5, %v2621_v52  ;;  %v12794_v52 = vpop.permute.xlu1 %1456 }
 0x714   : > { %v10440_v11 = vpop.eup %10439  ;;  %v3437_v25 = vadd.f32 1.1920929e-07, %v3373_v24 }
 0x715   : > { %v2549_v60 = vmul.f32 %v10440_v11, %v2214_v49  ;;  %vm2555_vm5 = vweird.f32 %v10440_v11 }
 0x716   : > { %10441 = vrsqrt.f32 %v3437_v25  ;;  %vm2556_vm7 = vmor %vm2554_vm6, %vm2555_vm5  ;;  %vm3840_vm12 = vweird.f32 %v3437_v25 }
 0x717   : > { %v2550_v7 = vmul.f32 %v10440_v11, %v2549_v60 }
 0x719   : > { %v2551_v12 = vmul.f32 0.5, %v2550_v7  ;;  %v12786_v38 = vpop.f32.mrf.mxu0 }
 0x71a   : > { %15543 = vst [vmem:[#allocation71_spill] sm:$0xff] %v12786_v38 }
 0x71b   : > { %v2552_v9 = vsub.f32 1.5, %v2551_v12  ;;  %v1891_v12 = vmul.f32 %v12607_v20, %v12607_v20 }
 0x71c   : > { %v10442_v63 = vpop.eup %10441 }
 0x71d   : > { %v2553_v41 = vmul.f32 %v10440_v11, %v2552_v9  ;;  %v3835_v62 = vmul.f32 %v10442_v63, %v3437_v25  ;;  %1464 = vrot.lane.b32.xlu1 %v11912_v56, %s11323_s12  ;;  %v2623_v9 = vmul.f32 %v10438_v33, %v2622_v48  ;;  %vm3841_vm9 = vweird.f32 %v10442_v63 }
 0x71e   : > { %vm3842_vm13 = vmor %vm3840_vm12, %vm3841_vm9 }
 0x71f   : > { %v2557_v24 = vsel %vm2556_vm7, %v10440_v11, %v2553_v41  ;;  %v3836_v45 = vmul.f32 %v10442_v63, %v3835_v62  ;;  %v2026_v41 = vsel %vm1920_vm3, %v1891_v12, 0.0 }
 0x720   : > { %v2918_v60 = vmul.f32 %v2557_v24, %v12552_v34  ;;  %v3248_v30 = vpop.xlane.xlu0 %3247 }
 0x721   : > { %v3837_v7 = vmul.f32 0.5, %v3836_v45  ;;  %v3370_v38 = vmul.f32 %v3248_v30, %v11943_v27  ;;  %v4743_v26 = vpop.f32.mrf.mxu0  ;;  %v2627_v30 = vsel %vm2626_vm11, %v10438_v33, %v2623_v9 }
 0x722   : > { %v2982_v49 = vmul.f32 0.25, %v2918_v60 }
 0x723   : > { %v3838_v2 = vsub.f32 1.5, %v3837_v7  ;;  %v3434_v1 = vadd.f32 1.1920929e-07, %v3370_v38  ;;  %v2925_v38 = vmul.f32 %v2627_v30, %v12561_v44 }
 0x724   : > { %v3046_v62 = vpack.c.bf16 %v2982_v49, %v2982_v49 }
 0x725   : > { %10443 = vrsqrt.f32 %v3434_v1  ;;  %v3839_v34 = vmul.f32 %v10442_v63, %v3838_v2  ;;  %v2989_v7 = vmul.f32 0.25, %v2925_v38  ;;  %vm3810_vm15 = vweird.f32 %v3434_v1 }
 0x726   : > { %9505 = vmatmul.msk.bf16.vlgmr.msra.gmra.mxu0 %vm1920_vm3, %v3046_v62 }
 0x727   : > { %v3843_v11 = vsel %vm3842_vm13, %v10442_v63, %v3839_v34  ;;  %v3053_v63 = vpack.c.bf16 %v2989_v7, %v2989_v7 }
 0x728   : > { %2027 = vadd.xlane.f32.xlu2 %v2026_v41  ;;  %v4141_v48 = vmul.f32 %v3843_v11, %v12524_v3  ;;  %v3118_v3 = vmul.f32 %v12631_v22, %v12631_v22 }
 0x72a   : > { %v4205_v16 = vpack.c.bf16 %v4141_v48, %v4141_v48  ;;  %v3258_v38 = vsel %vm1920_vm3, %v3118_v3, 0.0 }
 0x72b   : > { %v10444_v24 = vpop.eup %10443 }
 0x72c   : > { %v3805_v45 = vmul.f32 %v10444_v24, %v3434_v1  ;;  %v2025_v60 = vpop.xlane.xlu1 %2024  ;;  %v4939_v25 = vsel %vm1920_vm3, %v4205_v16, 0  ;;  %vm3811_vm14 = vweird.f32 %v10444_v24 }
 0x72d   : > { %v2154_v2 = vmul.f32 %v11943_v27, %v2025_v60  ;;  %4948 = vmatpush.bf16.xpose.msra.mxu3 %v4939_v25  ;;  %vm3812_vm0 = vmor %vm3810_vm15, %vm3811_vm14 }
 0x72e   : > { %v3806_v26 = vmul.f32 %v10444_v24, %v3805_v45 }
 0x72f   : > { %v2218_v33 = vadd.f32 1.1920929e-07, %v2154_v2 }
 0x730   : > { %v3807_v49 = vmul.f32 0.5, %v3806_v26 }
 0x731   : > { %10445 = vrsqrt.f32 %v2218_v33  ;;  %vm2594_vm2 = vweird.f32 %v2218_v33 }
 0x732   : > { %v3808_v12 = vsub.f32 1.5, %v3807_v49 }
 0x734   : > { %v3269_v44 = vpop.xlane.xlu1 %3268  ;;  %9512 = vmatmul.msk.bf16.vlgmr.msra.gmra.mxu3 %vm1920_vm3, %v3053_v63  ;;  %v3809_v9 = vmul.f32 %v10444_v24, %v3808_v12 }
 0x735   : > { %v3377_v62 = vmul.f32 %v3269_v44, %v11943_v27 }
 0x736   : > { %v3813_v34 = vsel %vm3812_vm0, %v10444_v24, %v3809_v9 }
 0x737   : > { %v10446_v30 = vpop.eup %10445  ;;  %v3441_v41 = vadd.f32 1.1920929e-07, %v3377_v62  ;;  %v4138_v11 = vmul.f32 %v3813_v34, %v12601_v14  ;;  %v1894_v14 = vmul.f32 %v12662_v42, %v12662_v42  ;;  %v3125_v34 = vmul.f32 %v12696_v43, %v12696_v43 }
 0x738   : > { %v2589_v48 = vmul.f32 %v10446_v30, %v2218_v33  ;;  %vm2595_vm1 = vweird.f32 %v10446_v30 }
 0x739   : > { %10447 = vrsqrt.f32 %v3441_v41  ;;  %3259 = vadd.xlane.f32.xlu0 %v3258_v38  ;;  %v4202_v16 = vpack.c.bf16 %v4138_v11, %v4138_v11  ;;  %vm2596_vm4 = vmor %vm2594_vm2, %vm2595_vm1  ;;  %v2035_v9 = vsel %vm1920_vm3, %v1894_v14, 0.0  ;;  %vm3880_vm6 = vweird.f32 %v3441_v41 }
 0x73a   : > { %v2590_v45 = vmul.f32 %v10446_v30, %v2589_v48  ;;  %v3279_v38 = vsel %vm1920_vm3, %v3125_v34, 0.0 }
 0x73b   : > { %v4882_v1 = vsel %vm1920_vm3, %v4202_v16, 0 }
 0x73c   : > { %v2591_v60 = vmul.f32 0.5, %v2590_v45  ;;  %4891 = vmatpush.bf16.xpose.msrb.mxu0 %v4882_v1  ;;  %v12826_v1 = vpop.permute.xlu0 %1458 }
 0x73e   : > { %v2592_v25 = vsub.f32 1.5, %v2591_v60 }
 0x73f   : > { %v10448_v2 = vpop.eup %10447 }
 0x740   : > { %v2593_v7 = vmul.f32 %v10446_v30, %v2592_v25  ;;  %v3875_v24 = vmul.f32 %v10448_v2, %v3441_v41  ;;  %1444 = vrot.lane.b32.xlu2 %v15527_v8, %s11322_s26  ;;  %vm3881_vm5 = vweird.f32 %v10448_v2 }
 0x741   : > { %vm3882_vm7 = vmor %vm3880_vm6, %vm3881_vm5 }
 0x742   : > { %v2597_v26 = vsel %vm2596_vm4, %v10446_v30, %v2593_v7  ;;  %v3876_v49 = vmul.f32 %v10448_v2, %v3875_v24  ;;  %v12818_v30 = vpop.permute.xlu2 %1632 }
 0x743   : > { %v2922_v63 = vmul.f32 %v2597_v26, %v12638_v15 }
 0x744   : > { %v3877_v12 = vmul.f32 0.5, %v3876_v49  ;;  %v12831_v24 = vpop.permute.xlu0 %1622 }
 0x745   : > { %v2986_v3 = vmul.f32 0.25, %v2922_v63  ;;  %v1896_v63 = vmul.f32 %v12683_v5, %v12683_v5 }
 0x746   : > { %v3878_v44 = vsub.f32 1.5, %v3877_v12 }
 0x747   : > { %v3050_v62 = vpack.c.bf16 %v2986_v3, %v2986_v3  ;;  %2036 = vadd.xlane.f32.xlu1 %v2035_v9 }
 0x748   : > { %v3879_v33 = vmul.f32 %v10448_v2, %v3878_v44 }
 0x749   : > { %9509 = vmatmul.msk.bf16.vlgmr.msrb.gmra.mxu0 %vm1920_vm3, %v3050_v62 }
 0x74a   : > { %v3883_v11 = vsel %vm3882_vm7, %v10448_v2, %v3879_v33 }
 0x74b   : > { %v4145_v15 = vmul.f32 %v3883_v11, %v12612_v35 }
 0x74d   : > { %1466 = vrot.lane.b32.xlu0 %v11964_v10, %s11323_s12  ;;  %v4209_v48 = vpack.c.bf16 %v4145_v15, %v4145_v15 }
 0x74f   : > { %3280 = vadd.xlane.f32.xlu1 %v3279_v38  ;;  %v5015_v41 = vsel %vm1920_vm3, %v4209_v48, 0  ;;  %v2041_v48 = vsel %vm1920_vm3, %v1896_v63, 0.0 }
 0x750   : > { %5024 = vmatpush.bf16.xpose.msrb.mxu3 %v5015_v41 }
 0x752   : > { %v2031_v16 = vpop.xlane.xlu2 %2030 }
 0x753   : > { %v2156_v45 = vmul.f32 %v11943_v27, %v2031_v16 }
 0x755   : > { %v2220_v60 = vadd.f32 1.1920929e-07, %v2156_v45  ;;  %1638 = vrot.lane.b32.xlu0 %v11888_v0, %s11323_s12 }
 0x757   : > { %10449 = vrsqrt.f32 %v2220_v60  ;;  %vm2614_vm9 = vweird.f32 %v2220_v60 }
 0x75a   : > { %v3251_v35 = vpop.xlane.xlu2 %3250 }
 0x75b   : > { %v3371_v25 = vmul.f32 %v3251_v35, %v11943_v27 }
 0x75d   : > { %v10450_v2 = vpop.eup %10449  ;;  %v3435_v7 = vadd.f32 1.1920929e-07, %v3371_v25 }
 0x75e   : > { %v2609_v14 = vmul.f32 %v10450_v2, %v2220_v60  ;;  %vm2615_vm8 = vweird.f32 %v10450_v2  ;;  %v3119_v60 = vmul.f32 %v12652_v37, %v12652_v37 }
 0x75f   : > { %10451 = vrsqrt.f32 %v3435_v7  ;;  %vm2616_vm10 = vmor %vm2614_vm9, %vm2615_vm8  ;;  %vm3820_vm12 = vweird.f32 %v3435_v7 }
 0x760   : > { %v2610_v26 = vmul.f32 %v10450_v2, %v2609_v14  ;;  %v12844_v14 = vpop.permute.xlu1 %1640 }
 0x762   : > { %v2611_v49 = vmul.f32 0.5, %v2610_v26 }
 0x764   : > { %v2612_v12 = vsub.f32 1.5, %v2611_v49 }
 0x765   : > { %v10452_v3 = vpop.eup %10451 }
 0x766   : > { %v2613_v44 = vmul.f32 %v10450_v2, %v2612_v12  ;;  %v3815_v9 = vmul.f32 %v10452_v3, %v3435_v7  ;;  %v3266_v62 = vpop.xlane.xlu0 %3265  ;;  %vm3821_vm11 = vweird.f32 %v10452_v3 }
 0x767   : > { %v3376_v33 = vmul.f32 %v3266_v62, %v11943_v27  ;;  %vm3822_vm13 = vmor %vm3820_vm12, %vm3821_vm11 }
 0x768   : > { %v2617_v34 = vsel %vm2616_vm10, %v10450_v2, %v2613_v44  ;;  %v3816_v11 = vmul.f32 %v10452_v3, %v3815_v9  ;;  %v12836_v15 = vpop.f32.mrf.mxu3  ;;  %1656 = vrot.lane.b32.xlu1 %v11829_v59, %s11324_s18 }
 0x769   : > { %v2924_v38 = vmul.f32 %v2617_v34, %v12532_v13  ;;  %v3440_v41 = vadd.f32 1.1920929e-07, %v3376_v33  ;;  %2042 = vadd.xlane.f32.xlu2 %v2041_v48  ;;  %v3261_v13 = vsel %vm1920_vm3, %v3119_v60, 0.0 }
 0x76a   : > { %v3817_v16 = vmul.f32 0.5, %v3816_v11 }
 0x76b   : > { %v2988_v45 = vmul.f32 0.25, %v2924_v38  ;;  %10453 = vrsqrt.f32 %v3440_v41  ;;  %vm3870_vm15 = vweird.f32 %v3440_v41 }
 0x76c   : > { %v3818_v35 = vsub.f32 1.5, %v3817_v16 }
 0x76d   : > { %v3052_v25 = vpack.c.bf16 %v2988_v45, %v2988_v45 }
 0x76e   : > { %v3819_v2 = vmul.f32 %v10452_v3, %v3818_v35 }
 0x76f   : > { %9511 = vmatmul.msk.bf16.vlgmr.msra.gmra.mxu2 %vm1920_vm3, %v3052_v25 }
 0x770   : > { %v4876_v59 = vpop.f32.mrf.mxu3  ;;  %v3823_v26 = vsel %vm3822_vm13, %v10452_v3, %v3819_v2  ;;  %v3124_v3 = vmul.f32 %v12731_v53, %v12731_v53 }
 0x771   : > { %v10454_v49 = vpop.eup %10453  ;;  %3262 = vadd.xlane.f32.xlu2 %v3261_v13  ;;  %v4139_v63 = vmul.f32 %v3823_v26, %v12566_v17 }
 0x772   : > { %v3865_v12 = vmul.f32 %v10454_v49, %v3440_v41  ;;  %vm3871_vm14 = vweird.f32 %v10454_v49  ;;  %v3276_v35 = vsel %vm1920_vm3, %v3124_v3, 0.0 }
 0x773   : > { %v4203_v44 = vpack.c.bf16 %v4139_v63, %v4139_v63  ;;  %vm3872_vm0 = vmor %vm3870_vm15, %vm3871_vm14 }
 0x774   : > { %v3866_v9 = vmul.f32 %v10454_v49, %v3865_v12  ;;  %v12849_v62 = vpop.f32.mrf.mxu1 }
 0x775   : > { %v4901_v7 = vsel %vm1920_vm3, %v4203_v44, 0 }
 0x776   : > { %v3867_v33 = vmul.f32 0.5, %v3866_v9  ;;  %4910 = vmatpush.bf16.xpose.msra.mxu1 %v4901_v7 }
 0x777   : > { %v2046_v34 = vpop.xlane.xlu1 %2045 }
 0x778   : > { %v3868_v11 = vsub.f32 1.5, %v3867_v33  ;;  %v2161_v48 = vmul.f32 %v11943_v27, %v2046_v34  ;;  %v12864_v34 = vpop.permute.xlu2 %1620 }
 0x77a   : > { %v2225_v38 = vadd.f32 1.1920929e-07, %v2161_v48  ;;  %v3869_v17 = vmul.f32 %v10454_v49, %v3868_v11  ;;  %v12869_v11 = vpop.permute.xlu0 %1446 }
 0x77c   : > { %10455 = vrsqrt.f32 %v2225_v38  ;;  %v4838_v16 = vpop.f32.mrf.mxu1  ;;  %v3873_v45 = vsel %vm3872_vm0, %v10454_v49, %v3869_v17  ;;  %vm2664_vm2 = vweird.f32 %v2225_v38 }
 0x77d   : > { %v4144_v60 = vmul.f32 %v3873_v45, %v12582_v47  ;;  %v3122_v47 = vmul.f32 %v12711_v6, %v12711_v6 }
 0x77f   : > { %3277 = vadd.xlane.f32.xlu0 %v3276_v35  ;;  %v4208_v25 = vpack.c.bf16 %v4144_v60, %v4144_v60  ;;  %v3270_v7 = vsel %vm1920_vm3, %v3122_v47, 0.0 }
 0x781   : > { %v4996_v2 = vsel %vm1920_vm3, %v4208_v25, 0 }
 0x782   : > { %v10456_v59 = vpop.eup %10455  ;;  %5005 = vmatpush.bf16.xpose.msrb.mxu2 %v4996_v2  ;;  %v12876_v17 = vpop.permute.xlu0 %1642 }
 0x783   : > { %v2659_v13 = vmul.f32 %v10456_v59, %v2225_v38  ;;  %vm2665_vm1 = vweird.f32 %v10456_v59 }
 0x784   : > { %vm2666_vm4 = vmor %vm2664_vm2, %vm2665_vm1 }
 0x785   : > { %v2660_v26 = vmul.f32 %v10456_v59, %v2659_v13 }
 0x787   : > { %v2661_v63 = vmul.f32 0.5, %v2660_v26 }
 0x789   : > { %v2662_v41 = vsub.f32 1.5, %v2661_v63  ;;  %1636 = vrot.lane.b32.xlu2 %v11865_v23, %s11323_s12 }
 0x78b   : > { %v2663_v12 = vmul.f32 %v10456_v59, %v2662_v41 }
 0x78d   : > { %v2667_v49 = vsel %vm2666_vm4, %v10456_v59, %v2663_v12 }
 0x78e   : > { %v2929_v44 = vmul.f32 %v2667_v49, %v12647_v31 }
 0x78f   : > { %v12884_v47 = vpop.permute.xlu1 %1464 }
 0x790   : > { %v2993_v9 = vmul.f32 0.25, %v2929_v44 }
 0x792   : > { %v3057_v33 = vpack.c.bf16 %v2993_v9, %v2993_v9  ;;  %3271 = vadd.xlane.f32.xlu1 %v3270_v7 }
 0x793   : > { %1462 = vrot.lane.b32.xlu0 %v11901_v51, %s11323_s12 }
 0x794   : > { %9516 = vmatmul.msk.bf16.vlgmr.msrb.gmra.mxu3 %vm1920_vm3, %v3057_v33 }
 0x79b   : > { %1658 = vrot.lane.b32.xlu0 %v11881_v46, %s11324_s18  ;;  %v2028_v48 = vpop.xlane.xlu2 %2027  ;;  %v1895_v46 = vmul.f32 %v12691_v21, %v12691_v21 }
 0x79c   : > { %v2155_v31 = vmul.f32 %v11943_v27, %v2028_v48 }
 0x79d   : > { %v2038_v12 = vsel %vm1920_vm3, %v1895_v46, 0.0 }
 0x79e   : > { %v2219_v3 = vadd.f32 1.1920929e-07, %v2155_v31 }
 0x7a0   : > { %10457 = vrsqrt.f32 %v2219_v3  ;;  %vm2604_vm6 = vweird.f32 %v2219_v3 }
 0x7a3   : > { %v12874_v38 = vpop.f32.mrf.mxu0 }
 0x7a6   : > { %v10458_v16 = vpop.eup %10457 }
 0x7a7   : > { %v2599_v45 = vmul.f32 %v10458_v16, %v2219_v3  ;;  %vm2605_vm5 = vweird.f32 %v10458_v16 }
 0x7a8   : > { %vm2606_vm7 = vmor %vm2604_vm6, %vm2605_vm5 }
 0x7a9   : > { %v2600_v60 = vmul.f32 %v10458_v16, %v2599_v45 }
 0x7ab   : > { %v2601_v35 = vmul.f32 0.5, %v2600_v60  ;;  %1644 = vrot.lane.b32.xlu1 %v15524_v50, %s11323_s12  ;;  %v4819_v25 = vpop.f32.mrf.mxu0 }
 0x7ac   : > { %v3260_v2 = vpop.xlane.xlu0 %3259 }
 0x7ad   : > { %v2602_v59 = vsub.f32 1.5, %v2601_v35  ;;  %v3374_v13 = vmul.f32 %v3260_v2, %v11943_v27 }
 0x7af   : > { %v2603_v26 = vmul.f32 %v10458_v16, %v2602_v59  ;;  %v3438_v63 = vadd.f32 1.1920929e-07, %v3374_v13 }
 0x7b1   : > { %v2607_v41 = vsel %vm2606_vm7, %v10458_v16, %v2603_v26  ;;  %10459 = vrsqrt.f32 %v3438_v63  ;;  %vm3850_vm9 = vweird.f32 %v3438_v63 }
 0x7b2   : > { %v2923_v49 = vmul.f32 %v2607_v41, %v12607_v20  ;;  %2039 = vadd.xlane.f32.xlu2 %v2038_v12  ;;  %v1901_v20 = vmul.f32 %v12737_v36, %v12737_v36 }
 0x7b4   : > { %v2987_v44 = vmul.f32 0.25, %v2923_v49  ;;  %v2056_v41 = vsel %vm1920_vm3, %v1901_v20, 0.0 }
 0x7b6   : > { %v3051_v9 = vpack.c.bf16 %v2987_v44, %v2987_v44 }
 0x7b7   : > { %v10460_v7 = vpop.eup %10459  ;;  %v12887_v33 = vpop.f32.mrf.mxu3 }
 0x7b8   : > { %v3845_v48 = vmul.f32 %v10460_v7, %v3438_v63  ;;  %9510 = vmatmul.msk.bf16.vlgmr.msra.gmra.mxu1 %vm1920_vm3, %v3051_v9  ;;  %vm3851_vm8 = vweird.f32 %v10460_v7 }
 0x7b9   : > { %vm3852_vm10 = vmor %vm3850_vm9, %vm3851_vm8 }
 0x7ba   : > { %v3846_v31 = vmul.f32 %v10460_v7, %v3845_v48  ;;  %v2037_v3 = vpop.xlane.xlu1 %2036 }
 0x7bb   : > { %v2158_v16 = vmul.f32 %v11943_v27, %v2037_v3 }
 0x7bc   : > { %v3847_v45 = vmul.f32 0.5, %v3846_v31 }
 0x7bd   : > { %v2222_v60 = vadd.f32 1.1920929e-07, %v2158_v16 }
 0x7be   : > { %v3848_v35 = vsub.f32 1.5, %v3847_v45 }
 0x7bf   : > { %10461 = vrsqrt.f32 %v2222_v60  ;;  %v4952_v25 = vpop.f32.mrf.mxu3  ;;  %vm2634_vm12 = vweird.f32 %v2222_v60 }
 0x7c0   : > { %v3849_v2 = vmul.f32 %v10460_v7, %v3848_v35  ;;  %v1899_v25 = vmul.f32 %v12763_v18, %v12763_v18 }
 0x7c2   : > { %v3281_v46 = vpop.xlane.xlu1 %3280  ;;  %v3853_v59 = vsel %vm3852_vm10, %v10460_v7, %v3849_v2 }
 0x7c3   : > { %v3381_v13 = vmul.f32 %v3281_v46, %v11943_v27  ;;  %v4142_v26 = vmul.f32 %v3853_v59, %v12631_v22 }
 0x7c5   : > { %v10462_v12 = vpop.eup %10461  ;;  %v3445_v49 = vadd.f32 1.1920929e-07, %v3381_v13  ;;  %2057 = vadd.xlane.f32.xlu0 %v2056_v41  ;;  %v4206_v44 = vpack.c.bf16 %v4142_v26, %v4142_v26  ;;  %v12904_v26 = vpop.permute.xlu2 %1444 }
 0x7c6   : > { %v2629_v9 = vmul.f32 %v10462_v12, %v2222_v60  ;;  %v12896_v48 = vpop.f32.mrf.mxu0  ;;  %vm2635_vm11 = vweird.f32 %v10462_v12 }
 0x7c7   : > { %10463 = vrsqrt.f32 %v3445_v49  ;;  %v4958_v63 = vsel %vm1920_vm3, %v4206_v44, 0  ;;  %vm2636_vm13 = vmor %vm2634_vm12, %vm2635_vm11  ;;  %v2050_v44 = vsel %vm1920_vm3, %v1899_v25, 0.0  ;;  %vm3920_vm15 = vweird.f32 %v3445_v49 }
 0x7c8   : > { %v2630_v31 = vmul.f32 %v10462_v12, %v2629_v9  ;;  %4967 = vmatpush.bf16.xpose.msra.mxu0 %v4958_v63 }
 0x7ca   : > { %v2631_v3 = vmul.f32 0.5, %v2630_v31  ;;  %1460 = vrot.lane.b32.xlu2 %v11933_v19, %s11323_s12 }
 0x7cc   : > { %v2632_v7 = vsub.f32 1.5, %v2631_v3 }
 0x7cd   : > { %v10464_v22 = vpop.eup %10463 }
 0x7ce   : > { %v2633_v16 = vmul.f32 %v10462_v12, %v2632_v7  ;;  %v3915_v45 = vmul.f32 %v10464_v22, %v3445_v49  ;;  %v4895_v35 = vpop.f32.mrf.mxu0  ;;  %vm3921_vm14 = vweird.f32 %v10464_v22 }
 0x7cf   : > { %vm3922_vm0 = vmor %vm3920_vm15, %vm3921_vm14 }
 0x7d0   : > { %v2637_v20 = vsel %vm2636_vm13, %v10462_v12, %v2633_v16  ;;  %v3916_v2 = vmul.f32 %v10464_v22, %v3915_v45  ;;  %v12913_v45 = vpop.permute.xlu0 %1466 }
 0x7d1   : > { %v2926_v46 = vmul.f32 %v2637_v20, %v12662_v42 }
 0x7d2   : > { %v3917_v59 = vmul.f32 0.5, %v3916_v2 }
 0x7d3   : > { %v2990_v13 = vmul.f32 0.25, %v2926_v46  ;;  %v1900_v46 = vmul.f32 %v12772_v29, %v12772_v29 }
 0x7d4   : > { %v3918_v41 = vsub.f32 1.5, %v3917_v59 }
 0x7d5   : > { %v3054_v9 = vpack.c.bf16 %v2990_v13, %v2990_v13  ;;  %2051 = vadd.xlane.f32.xlu1 %v2050_v44 }
 0x7d6   : > { %v3919_v60 = vmul.f32 %v10464_v22, %v3918_v41 }
 0x7d7   : > { %9513 = vmatmul.msk.bf16.vlgmr.msra.gmra.mxu0 %vm1920_vm3, %v3054_v9 }
 0x7d8   : > { %v3923_v63 = vsel %vm3922_vm0, %v10464_v22, %v3919_v60  ;;  %v12918_v25 = vpop.permute.xlu0 %1638 }
 0x7d9   : > { %1482 = vrot.lane.b32.xlu0 %v11876_v40, %s11324_s18  ;;  %v4149_v42 = vmul.f32 %v3923_v63, %v12696_v43 }
 0x7db   : > { %v4213_v12 = vpack.c.bf16 %v4149_v42, %v4149_v42 }
 0x7dc   : > { %v2043_v31 = vpop.xlane.xlu2 %2042 }
 0x7dd   : > { %v2160_v3 = vmul.f32 %v11943_v27, %v2043_v31  ;;  %v5091_v7 = vsel %vm1920_vm3, %v4213_v12, 0  ;;  %v2053_v12 = vsel %vm1920_vm3, %v1900_v46, 0.0 }
 0x7de   : > { %5100 = vmatpush.bf16.xpose.msra.mxu3 %v5091_v7 }
 0x7df   : > { %v2224_v16 = vadd.f32 1.1920929e-07, %v2160_v3 }
 0x7e1   : > { %10465 = vrsqrt.f32 %v2224_v16  ;;  %1646 = vrot.lane.b32.xlu0 %v12026_v39, %s11323_s12  ;;  %vm2654_vm2 = vweird.f32 %v2224_v16 }
 0x7e4   : > { %v3263_v49 = vpop.xlane.xlu2 %3262 }
 0x7e5   : > { %v3375_v22 = vmul.f32 %v3263_v49, %v11943_v27 }
 0x7e7   : > { %v10466_v40 = vpop.eup %10465  ;;  %v3439_v35 = vadd.f32 1.1920929e-07, %v3375_v22 }
 0x7e8   : > { %v2649_v43 = vmul.f32 %v10466_v40, %v2224_v16  ;;  %vm2655_vm1 = vweird.f32 %v10466_v40  ;;  %v3123_v16 = vmul.f32 %v12742_v61, %v12742_v61 }
 0x7e9   : > { %10467 = vrsqrt.f32 %v3439_v35  ;;  %vm2656_vm4 = vmor %vm2654_vm2, %vm2655_vm1  ;;  %vm3860_vm6 = vweird.f32 %v3439_v35 }
 0x7ea   : > { %v2650_v20 = vmul.f32 %v10466_v40, %v2649_v43 }
 0x7ec   : > { %v2651_v2 = vmul.f32 0.5, %v2650_v20 }
 0x7ee   : > { %v2652_v59 = vsub.f32 1.5, %v2651_v2  ;;  %1468 = vrot.lane.b32.xlu1 %v15527_v8, %s11323_s12 }
 0x7ef   : > { %v10468_v13 = vpop.eup %10467 }
 0x7f0   : > { %v2653_v41 = vmul.f32 %v10466_v40, %v2652_v59  ;;  %v3855_v44 = vmul.f32 %v10468_v13, %v3439_v35  ;;  %vm3861_vm5 = vweird.f32 %v10468_v13 }
 0x7f1   : > { %vm3862_vm7 = vmor %vm3860_vm6, %vm3861_vm5 }
 0x7f2   : > { %v2657_v9 = vsel %vm2656_vm4, %v10466_v40, %v2653_v41  ;;  %v3856_v60 = vmul.f32 %v10468_v13, %v3855_v44  ;;  %v3278_v63 = vpop.xlane.xlu0 %3277  ;;  %v12924_v42 = vpop.f32.mrf.mxu2 }
 0x7f3   : > { %v2928_v31 = vmul.f32 %v2657_v9, %v12683_v5  ;;  %v3380_v3 = vmul.f32 %v3278_v63, %v11943_v27  ;;  %2054 = vadd.xlane.f32.xlu2 %v2053_v12  ;;  %v3273_v5 = vsel %vm1920_vm3, %v3123_v16, 0.0  ;;  %v12934_v44 = vpop.permute.xlu1 %1656 }
 0x7f4   : > { %v3857_v7 = vmul.f32 0.5, %v3856_v60 }
 0x7f5   : > { %v2992_v49 = vmul.f32 0.25, %v2928_v31  ;;  %v3444_v22 = vadd.f32 1.1920929e-07, %v3380_v3 }
 0x7f6   : > { %v3858_v43 = vsub.f32 1.5, %v3857_v7  ;;  %v3128_v7 = vmul.f32 %v12818_v30, %v12818_v30 }
 0x7f7   : > { %v3056_v40 = vpack.c.bf16 %v2992_v49, %v2992_v49  ;;  %10469 = vrsqrt.f32 %v3444_v22  ;;  %vm3910_vm9 = vweird.f32 %v3444_v22 }
 0x7f8   : > { %v3859_v20 = vmul.f32 %v10468_v13, %v3858_v43 }
 0x7f9   : > { %9515 = vmatmul.msk.bf16.vlgmr.msrb.gmra.mxu2 %vm1920_vm3, %v3056_v40  ;;  %v3288_v40 = vsel %vm1920_vm3, %v3128_v7, 0.0 }
 0x7fa   : > { %v4933_v2 = vpop.f32.mrf.mxu2  ;;  %v3863_v46 = vsel %vm3862_vm7, %v10468_v13, %v3859_v20 }
 0x7fb   : > { %3274 = vadd.xlane.f32.xlu2 %v3273_v5  ;;  %v4143_v59 = vmul.f32 %v3863_v46, %v12652_v37 }
 0x7fd   : > { %v10470_v41 = vpop.eup %10469  ;;  %v4207_v9 = vpack.c.bf16 %v4143_v59, %v4143_v59 }
 0x7fe   : > { %v3905_v60 = vmul.f32 %v10470_v41, %v3444_v22  ;;  %vm3911_vm8 = vweird.f32 %v10470_v41  ;;  %v1904_v22 = vmul.f32 %v12794_v52, %v12794_v52 }
 0x7ff   : > { %v4977_v63 = vsel %vm1920_vm3, %v4207_v9, 0  ;;  %vm3912_vm10 = vmor %vm3910_vm9, %vm3911_vm8 }
 0x800   : > { %v3906_v12 = vmul.f32 %v10470_v41, %v3905_v60  ;;  %4986 = vmatpush.bf16.xpose.msrb.mxu1 %v4977_v63  ;;  %v2065_v60 = vsel %vm1920_vm3, %v1904_v22, 0.0 }
 0x802   : > { %v3907_v35 = vmul.f32 0.5, %v3906_v12  ;;  %v3127_v12 = vmul.f32 %v12831_v24, %v12831_v24 }
 0x804   : > { %v3908_v31 = vsub.f32 1.5, %v3907_v35 }
 0x805   : > { %v3272_v3 = vpop.xlane.xlu1 %3271 }
 0x806   : > { %v3378_v13 = vmul.f32 %v3272_v3, %v11943_v27  ;;  %v3909_v37 = vmul.f32 %v10470_v41, %v3908_v31  ;;  %v12953_v3 = vpop.permute.xlu2 %1636 }
 0x808   : > { %v3442_v49 = vadd.f32 1.1920929e-07, %v3378_v13  ;;  %v3913_v16 = vsel %vm3912_vm10, %v10470_v41, %v3909_v37  ;;  %v3285_v13 = vsel %vm1920_vm3, %v3127_v12, 0.0 }
 0x809   : > { %v4148_v43 = vmul.f32 %v3913_v16, %v12731_v53  ;;  %v12959_v16 = vpop.permute.xlu0 %1462 }
 0x80a   : > { %10471 = vrsqrt.f32 %v3442_v49  ;;  %vm3890_vm12 = vweird.f32 %v3442_v49 }
 0x80b   : > { %3289 = vadd.xlane.f32.xlu0 %v3288_v40  ;;  %v4212_v20 = vpack.c.bf16 %v4148_v43, %v4148_v43 }
 0x80d   : > { %v5072_v2 = vsel %vm1920_vm3, %v4212_v20, 0 }
 0x80e   : > { %5081 = vmatpush.bf16.xpose.msra.mxu2 %v5072_v2 }
 0x810   : > { %v10472_v5 = vpop.eup %10471 }
 0x811   : > { %v3885_v46 = vmul.f32 %v10472_v5, %v3442_v49  ;;  %vm3891_vm11 = vweird.f32 %v10472_v5  ;;  %v12964_v20 = vpop.permute.xlu0 %1658 }
 0x812   : > { %vm3892_vm13 = vmor %vm3890_vm12, %vm3891_vm11 }
 0x813   : > { %v3886_v59 = vmul.f32 %v10472_v5, %v3885_v46  ;;  %1480 = vrot.lane.b32.xlu2 %v11826_v58, %s11324_s18 }
 0x815   : > { %v3887_v41 = vmul.f32 0.5, %v3886_v59  ;;  %v1898_v59 = vmul.f32 %v12779_v54, %v12779_v54 }
 0x817   : > { %v3888_v9 = vsub.f32 1.5, %v3887_v41  ;;  %v12947_v53 = vpop.f32.mrf.mxu3 }
 0x818   : > { %15544 = vst [vmem:[#allocation72_spill] sm:$0xff] %v12947_v53  ;;  %2066 = vadd.xlane.f32.xlu1 %v2065_v60 }
 0x819   : > { %v3889_v63 = vmul.f32 %v10472_v5, %v3888_v9 }
 0x81b   : > { %v3893_v35 = vsel %vm3892_vm13, %v10472_v5, %v3889_v63 }
 0x81c   : > { %v4146_v31 = vmul.f32 %v3893_v35, %v12711_v6  ;;  %v2047_v35 = vsel %vm1920_vm3, %v1898_v59, 0.0 }
 0x81e   : > { %v4210_v58 = vpack.c.bf16 %v4146_v31, %v4146_v31 }
 0x81f   : > { %1470 = vrot.lane.b32.xlu0 %v12099_v55, %s11323_s12  ;;  %v5028_v7 = vpop.f32.mrf.mxu3 }
 0x820   : > { %3286 = vadd.xlane.f32.xlu1 %v3285_v13  ;;  %v5034_v37 = vsel %vm1920_vm3, %v4210_v58, 0  ;;  %v3129_v13 = vmul.f32 %v12784_v32, %v12784_v32 }
 0x821   : > { %5043 = vmatpush.bf16.xpose.msrb.mxu0 %v5034_v37 }
 0x825   : > { %v2040_v49 = vpop.xlane.xlu2 %2039 }
 0x826   : > { %v2159_v43 = vmul.f32 %v11943_v27, %v2040_v49 }
 0x827   : > { %1666 = vrot.lane.b32.xlu0 %v11946_v28, %s11324_s18 }
 0x828   : > { %v2223_v6 = vadd.f32 1.1920929e-07, %v2159_v43 }
 0x82a   : > { %10473 = vrsqrt.f32 %v2223_v6  ;;  %vm2644_vm15 = vweird.f32 %v2223_v6 }
 0x830   : > { %v10474_v40 = vpop.eup %10473 }
 0x831   : > { %v2639_v2 = vmul.f32 %v10474_v40, %v2223_v6  ;;  %vm2645_vm14 = vweird.f32 %v10474_v40 }
 0x832   : > { %vm2646_vm0 = vmor %vm2644_vm15, %vm2645_vm14 }
 0x833   : > { %v2640_v5 = vmul.f32 %v10474_v40, %v2639_v2 }
 0x835   : > { %v2641_v46 = vmul.f32 0.5, %v2640_v5  ;;  %v12966_v22 = vpop.f32.mrf.mxu1 }
 0x837   : > { %v2642_v41 = vsub.f32 1.5, %v2641_v46 }
 0x838   : > { %v2058_v9 = vpop.xlane.xlu0 %2057 }
 0x839   : > { %v2643_v60 = vmul.f32 %v10474_v40, %v2642_v41  ;;  %v2165_v28 = vmul.f32 %v11943_v27, %v2058_v9  ;;  %1660 = vrot.lane.b32.xlu1 %v11865_v23, %s11324_s18  ;;  %v3291_v23 = vsel %vm1920_vm3, %v3129_v13, 0.0 }
 0x83b   : > { %v2647_v63 = vsel %vm2646_vm0, %v10474_v40, %v2643_v60  ;;  %v2229_v12 = vadd.f32 1.1920929e-07, %v2165_v28  ;;  %v12983_v28 = vpop.permute.xlu1 %1644 }
 0x83c   : > { %v2927_v31 = vmul.f32 %v2647_v63, %v12691_v21  ;;  %2048 = vadd.xlane.f32.xlu2 %v2047_v35  ;;  %v3126_v21 = vmul.f32 %v12864_v34, %v12864_v34 }
 0x83d   : > { %10475 = vrsqrt.f32 %v2229_v12  ;;  %v4914_v58 = vpop.f32.mrf.mxu1  ;;  %vm2704_vm2 = vweird.f32 %v2229_v12 }
 0x83e   : > { %v2991_v7 = vmul.f32 0.25, %v2927_v31  ;;  %v3282_v41 = vsel %vm1920_vm3, %v3126_v21, 0.0  ;;  %v3132_v31 = vmul.f32 %v12844_v14, %v12844_v14 }
 0x840   : > { %v3055_v37 = vpack.c.bf16 %v2991_v7, %v2991_v7  ;;  %v3300_v7 = vsel %vm1920_vm3, %v3132_v31, 0.0 }
 0x842   : > { %9514 = vmatmul.msk.bf16.vlgmr.msrb.gmra.mxu1 %vm1920_vm3, %v3055_v37 }
 0x843   : > { %v10476_v49 = vpop.eup %10475 }
 0x844   : > { %v2699_v43 = vmul.f32 %v10476_v49, %v2229_v12  ;;  %3292 = vadd.xlane.f32.xlu2 %v3291_v23  ;;  %vm2705_vm1 = vweird.f32 %v10476_v49 }
 0x845   : > { %vm2706_vm4 = vmor %vm2704_vm2, %vm2705_vm1 }
 0x846   : > { %v2700_v6 = vmul.f32 %v10476_v49, %v2699_v43 }
 0x848   : > { %v2701_v40 = vmul.f32 0.5, %v2700_v6  ;;  %v2052_v35 = vpop.xlane.xlu1 %2051 }
 0x849   : > { %v2163_v58 = vmul.f32 %v11943_v27, %v2052_v35 }
 0x84a   : > { %v2702_v2 = vsub.f32 1.5, %v2701_v40 }
 0x84b   : > { %v2227_v13 = vadd.f32 1.1920929e-07, %v2163_v58  ;;  %v12999_v23 = vpop.permute.xlu0 %1482 }
 0x84c   : > { %v2703_v5 = vmul.f32 %v10476_v49, %v2702_v2 }
 0x84d   : > { %10477 = vrsqrt.f32 %v2227_v13  ;;  %vm2684_vm10 = vweird.f32 %v2227_v13 }
 0x84e   : > { %v2707_v46 = vsel %vm2706_vm4, %v10476_v49, %v2703_v5 }
 0x84f   : > { %v2933_v59 = vmul.f32 %v2707_v46, %v12737_v36  ;;  %v12992_v36 = vpop.permute.xlu2 %1460 }
 0x851   : > { %v2997_v9 = vmul.f32 0.25, %v2933_v59  ;;  %3283 = vadd.xlane.f32.xlu0 %v3282_v41 }
 0x853   : > { %v3061_v60 = vpack.c.bf16 %v2997_v9, %v2997_v9  ;;  %v10478_v43 = vpop.eup %10477  ;;  %v13004_v41 = vpop.permute.xlu0 %1646 }
 0x854   : > { %v12985_v63 = vpop.f32.mrf.mxu0  ;;  %v2679_v2 = vmul.f32 %v10478_v43, %v2227_v13  ;;  %vm2685_vm8 = vweird.f32 %v10478_v43 }
 0x855   : > { %15545 = vst [vmem:[#allocation73_spill] sm:$0xff] %v12985_v63  ;;  %9520 = vmatmul.msk.bf16.vlgmr.msra.gmra.mxu3 %vm1920_vm3, %v3061_v60  ;;  %vm2686_vm11 = vmor %vm2684_vm10, %vm2685_vm8 }
 0x85c   : > { %1664 = vrot.lane.b32.xlu2 %v11923_v4, %s11324_s18  ;;  %v4971_v12 = vpop.f32.mrf.mxu0 }
 0x863   : > { %3301 = vadd.xlane.f32.xlu1 %v3300_v7 }
 0x865   : > { %1490 = vrot.lane.b32.xlu0 %v11964_v10, %s11324_s18  ;;  %v2680_v10 = vmul.f32 %v10478_v43, %v2679_v2 }
 0x866   : > { %v2055_v37 = vpop.xlane.xlu2 %2054 }
 0x867   : > { %v2164_v49 = vmul.f32 %v11943_v27, %v2055_v37  ;;  %v2681_v60 = vmul.f32 0.5, %v2680_v10 }
 0x869   : > { %v2228_v4 = vadd.f32 1.1920929e-07, %v2164_v49  ;;  %v2682_v58 = vsub.f32 1.5, %v2681_v60 }
 0x86b   : > { %10479 = vrsqrt.f32 %v2228_v4  ;;  %vm2694_vm6 = vweird.f32 %v2228_v4 }
 0x86d   : > { %1662 = vrot.lane.b32.xlu0 %v11888_v0, %s11324_s18 }
 0x86e   : > { %v3275_v6 = vpop.xlane.xlu2 %3274 }
 0x86f   : > { %v3379_v40 = vmul.f32 %v3275_v6, %v11943_v27 }
 0x871   : > { %v10480_v21 = vpop.eup %10479  ;;  %v3443_v5 = vadd.f32 1.1920929e-07, %v3379_v40 }
 0x872   : > { %v2689_v46 = vmul.f32 %v10480_v21, %v2228_v4  ;;  %vm2695_vm5 = vweird.f32 %v10480_v21  ;;  %v1905_v4 = vmul.f32 %v12826_v1, %v12826_v1 }
 0x873   : > { %10481 = vrsqrt.f32 %v3443_v5  ;;  %vm2696_vm7 = vmor %vm2694_vm6, %vm2695_vm5  ;;  %vm3900_vm12 = vweird.f32 %v3443_v5 }
 0x874   : > { %v2690_v59 = vmul.f32 %v10480_v21, %v2689_v46 }
 0x876   : > { %v2691_v9 = vmul.f32 0.5, %v2690_v59  ;;  %v2683_v59 = vmul.f32 %v10478_v43, %v2682_v58 }
 0x878   : > { %v2692_v35 = vsub.f32 1.5, %v2691_v9 }
 0x879   : > { %v10482_v12 = vpop.eup %10481 }
 0x87a   : > { %v2693_v31 = vmul.f32 %v10480_v21, %v2692_v35  ;;  %v3895_v0 = vmul.f32 %v10482_v12, %v3443_v5  ;;  %vm3901_vm9 = vweird.f32 %v10482_v12  ;;  %v13014_v35 = vpop.permute.xlu1 %1468 }
 0x87b   : > { %vm3902_vm13 = vmor %vm3900_vm12, %vm3901_vm9 }
 0x87c   : > { %v2697_v7 = vsel %vm2696_vm7, %v10480_v21, %v2693_v31  ;;  %v3896_v37 = vmul.f32 %v10482_v12, %v3895_v0  ;;  %1486 = vrot.lane.b32.xlu1 %v11901_v51, %s11324_s18  ;;  %v13008_v49 = vpop.f32.mrf.mxu2  ;;  %v2068_v0 = vsel %vm1920_vm3, %v1905_v4, 0.0 }
 0x87d   : > { %v2932_v6 = vmul.f32 %v2697_v7, %v12772_v29  ;;  %v2687_v29 = vsel %vm2686_vm11, %v10478_v43, %v2683_v59 }
 0x87e   : > { %v3897_v40 = vmul.f32 0.5, %v3896_v37  ;;  %v3290_v2 = vpop.xlane.xlu0 %3289  ;;  %v2931_v5 = vmul.f32 %v2687_v29, %v12763_v18 }
 0x87f   : > { %v2996_v46 = vmul.f32 0.25, %v2932_v6  ;;  %v3384_v10 = vmul.f32 %v3290_v2, %v11943_v27 }
 0x880   : > { %v3898_v9 = vsub.f32 1.5, %v3897_v40  ;;  %v2995_v2 = vmul.f32 0.25, %v2931_v5 }
 0x881   : > { %v3060_v21 = vpack.c.bf16 %v2996_v46, %v2996_v46  ;;  %v3448_v60 = vadd.f32 1.1920929e-07, %v3384_v10 }
 0x882   : > { %v3899_v51 = vmul.f32 %v10482_v12, %v3898_v9  ;;  %v3059_v4 = vpack.c.bf16 %v2995_v2, %v2995_v2 }
 0x883   : > { %10483 = vrsqrt.f32 %v3448_v60  ;;  %9519 = vmatmul.msk.bf16.vlgmr.msra.gmra.mxu2 %vm1920_vm3, %v3060_v21  ;;  %vm3950_vm15 = vweird.f32 %v3448_v60 }
 0x884   : > { %1670 = vrot.lane.b32.xlu1 %v12026_v39, %s11324_s18  ;;  %v5009_v31 = vpop.f32.mrf.mxu2  ;;  %v3903_v58 = vsel %vm3902_vm13, %v10482_v12, %v3899_v51 }
 0x885   : > { %2069 = vadd.xlane.f32.xlu2 %v2068_v0  ;;  %v4147_v13 = vmul.f32 %v3903_v58, %v12742_v61  ;;  %v1903_v61 = vmul.f32 %v12869_v11, %v12869_v11 }
 0x887   : > { %v4211_v7 = vpack.c.bf16 %v4147_v13, %v4147_v13  ;;  %v2062_v58 = vsel %vm1920_vm3, %v1903_v61, 0.0 }
 0x889   : > { %v10484_v37 = vpop.eup %10483  ;;  %v5053_v6 = vsel %vm1920_vm3, %v4211_v7, 0 }
 0x88a   : > { %v3945_v40 = vmul.f32 %v10484_v37, %v3448_v60  ;;  %5062 = vmatpush.bf16.xpose.msra.mxu1 %v5053_v6  ;;  %vm3951_vm14 = vweird.f32 %v10484_v37 }
 0x88b   : > { %v2067_v43 = vpop.xlane.xlu1 %2066  ;;  %vm3952_vm0 = vmor %vm3950_vm15, %vm3951_vm14 }
 0x88c   : > { %v3946_v46 = vmul.f32 %v10484_v37, %v3945_v40  ;;  %v2168_v39 = vmul.f32 %v11943_v27, %v2067_v43 }
 0x88e   : > { %v3947_v10 = vmul.f32 0.5, %v3946_v46  ;;  %v2232_v59 = vadd.f32 1.1920929e-07, %v2168_v39 }
 0x890   : > { %v3948_v12 = vsub.f32 1.5, %v3947_v10  ;;  %10485 = vrsqrt.f32 %v2232_v59  ;;  %vm2734_vm2 = vweird.f32 %v2232_v59 }
 0x891   : > { %9518 = vmatmul.msk.bf16.vlgmr.msra.gmra.mxu1 %vm1920_vm3, %v3059_v4 }
 0x892   : > { %v3949_v18 = vmul.f32 %v10484_v37, %v3948_v12 }
 0x893   : > { %v3287_v9 = vpop.xlane.xlu1 %3286 }
 0x894   : > { %v3383_v21 = vmul.f32 %v3287_v9, %v11943_v27  ;;  %v3953_v51 = vsel %vm3952_vm0, %v10484_v37, %v3949_v18  ;;  %v13034_v18 = vpop.permute.xlu2 %1480 }
 0x895   : > { %v4152_v29 = vmul.f32 %v3953_v51, %v12818_v30 }
 0x896   : > { %v10486_v31 = vpop.eup %10485  ;;  %v3447_v0 = vadd.f32 1.1920929e-07, %v3383_v21 }
 0x897   : > { %v2729_v13 = vmul.f32 %v10486_v31, %v2232_v59  ;;  %2063 = vadd.xlane.f32.xlu0 %v2062_v58  ;;  %v4216_v5 = vpack.c.bf16 %v4152_v29, %v4152_v29  ;;  %vm2735_vm1 = vweird.f32 %v10486_v31  ;;  %v13045_v58 = vpop.permute.xlu0 %1470 }
 0x898   : > { %10487 = vrsqrt.f32 %v3447_v0  ;;  %vm2736_vm4 = vmor %vm2734_vm2, %vm2735_vm1  ;;  %vm3940_vm6 = vweird.f32 %v3447_v0 }
 0x899   : > { %v2730_v7 = vmul.f32 %v10486_v31, %v2729_v13  ;;  %v5148_v6 = vsel %vm1920_vm3, %v4216_v5, 0 }
 0x89a   : > { %5157 = vmatpush.bf16.xpose.msrb.mxu2 %v5148_v6 }
 0x89b   : > { %v2731_v60 = vmul.f32 0.5, %v2730_v7 }
 0x89d   : > { %v2732_v40 = vsub.f32 1.5, %v2731_v60  ;;  %1488 = vrot.lane.b32.xlu2 %v11912_v56, %s11324_s18  ;;  %v1906_v56 = vmul.f32 %v12992_v36, %v12992_v36 }
 0x89e   : > { %v10488_v37 = vpop.eup %10487 }
 0x89f   : > { %v2733_v30 = vmul.f32 %v10486_v31, %v2732_v40  ;;  %v3935_v2 = vmul.f32 %v10488_v37, %v3447_v0  ;;  %vm3941_vm5 = vweird.f32 %v10488_v37  ;;  %v2071_v51 = vsel %vm1920_vm3, %v1906_v56, 0.0  ;;  %v13048_v60 = vpop.permute.xlu0 %1666 }
 0x8a0   : > { %vm3942_vm7 = vmor %vm3940_vm6, %vm3941_vm5 }
 0x8a1   : > { %v2737_v43 = vsel %vm2736_vm4, %v10486_v31, %v2733_v30  ;;  %v3936_v46 = vmul.f32 %v10488_v37, %v3935_v2  ;;  %v1902_v2 = vmul.f32 %v12904_v26, %v12904_v26 }
 0x8a2   : > { %v2936_v39 = vmul.f32 %v2737_v43, %v12794_v52 }
 0x8a3   : > { %v3937_v10 = vmul.f32 0.5, %v3936_v46  ;;  %v2059_v56 = vsel %vm1920_vm3, %v1902_v2, 0.0 }
 0x8a4   : > { %v3000_v4 = vmul.f32 0.25, %v2936_v39 }
 0x8a5   : > { %v3938_v12 = vsub.f32 1.5, %v3937_v10 }
 0x8a6   : > { %v3064_v61 = vpack.c.bf16 %v3000_v4, %v3000_v4 }
 0x8a7   : > { %v3939_v9 = vmul.f32 %v10488_v37, %v3938_v12 }
 0x8a8   : > { %9523 = vmatmul.msk.bf16.vlgmr.msrb.gmra.mxu2 %vm1920_vm3, %v3064_v61 }
 0x8a9   : > { %v3943_v59 = vsel %vm3942_vm7, %v10488_v37, %v3939_v9 }
 0x8aa   : > { %v4151_v21 = vmul.f32 %v3943_v59, %v12831_v24 }
 0x8ab   : > { %1484 = vrot.lane.b32.xlu0 %v11933_v19, %s11324_s18 }
 0x8ac   : > { %v4215_v52 = vpack.c.bf16 %v4151_v21, %v4151_v21 }
 0x8ae   : > { %2072 = vadd.xlane.f32.xlu1 %v2071_v51  ;;  %v5129_v29 = vsel %vm1920_vm3, %v4215_v52, 0 }
 0x8af   : > { %v2049_v31 = vpop.xlane.xlu2 %2048  ;;  %5138 = vmatpush.bf16.xpose.msrb.mxu1 %v5129_v29 }
 0x8b0   : > { %v2162_v0 = vmul.f32 %v11943_v27, %v2049_v31  ;;  %v3133_v31 = vmul.f32 %v12876_v17, %v12876_v17 }
 0x8b2   : > { %v2226_v13 = vadd.f32 1.1920929e-07, %v2162_v0 }
 0x8b4   : > { %10489 = vrsqrt.f32 %v2226_v13  ;;  %vm2674_vm9 = vweird.f32 %v2226_v13 }
 0x8b7   : > { %v3293_v5 = vpop.xlane.xlu2 %3292 }
 0x8b8   : > { %v3385_v24 = vmul.f32 %v3293_v5, %v11943_v27 }
 0x8ba   : > { %v10490_v7 = vpop.eup %10489  ;;  %v3449_v6 = vadd.f32 1.1920929e-07, %v3385_v24 }
 0x8bb   : > { %v2669_v19 = vmul.f32 %v10490_v7, %v2226_v13  ;;  %vm2675_vm8 = vweird.f32 %v10490_v7 }
 0x8bc   : > { %10491 = vrsqrt.f32 %v3449_v6  ;;  %vm2676_vm10 = vmor %vm2674_vm9, %vm2675_vm8  ;;  %vm3960_vm12 = vweird.f32 %v3449_v6 }
 0x8bd   : > { %v2670_v40 = vmul.f32 %v10490_v7, %v2669_v19 }
 0x8bf   : > { %v2671_v37 = vmul.f32 0.5, %v2670_v40  ;;  %v13050_v30 = vpop.f32.mrf.mxu1  ;;  %v3131_v40 = vmul.f32 %v12918_v25, %v12918_v25 }
 0x8c0   : > { %15546 = vst [vmem:[#allocation74_spill] sm:$0xff] %v13050_v30 }
 0x8c1   : > { %v2672_v43 = vsub.f32 1.5, %v2671_v37 }
 0x8c2   : > { %v10492_v46 = vpop.eup %10491 }
 0x8c3   : > { %v2673_v39 = vmul.f32 %v10490_v7, %v2672_v43  ;;  %v3955_v10 = vmul.f32 %v10492_v46, %v3449_v6  ;;  %vm3961_vm11 = vweird.f32 %v10492_v46  ;;  %v1908_v6 = vmul.f32 %v12884_v47, %v12884_v47 }
 0x8c4   : > { %v3284_v4 = vpop.xlane.xlu0 %3283  ;;  %vm3962_vm13 = vmor %vm3960_vm12, %vm3961_vm11  ;;  %vm5576_vm11 = vcmask 64512  }
 0x8c5   : > { %v2677_v12 = vsel %vm2676_vm10, %v10490_v7, %v2673_v39  ;;  %v3956_v61 = vmul.f32 %v10492_v46, %v3955_v10  ;;  %v3382_v9 = vmul.f32 %v3284_v4, %v11943_v27  ;;  %v13063_v7 = vpop.permute.xlu1 %1660  ;;  %v2077_v4 = vsel %vm1920_vm3, %v1908_v6, 0.0 }
 0x8c6   : > { %v2930_v59 = vmul.f32 %v2677_v12, %v12779_v54  ;;  %2060 = vadd.xlane.f32.xlu2 %v2059_v56  ;;  %v3303_v54 = vsel %vm1920_vm3, %v3133_v31, 0.0 }
 0x8c7   : > { %v3957_v21 = vmul.f32 0.5, %v3956_v61  ;;  %v3446_v52 = vadd.f32 1.1920929e-07, %v3382_v9  ;;  %v4990_v51 = vpop.f32.mrf.mxu1  ;;  %1492 = vrot.lane.b32.xlu1 %v15527_v8, %s11324_s18  ;;  %v3136_v9 = vmul.f32 %v12934_v44, %v12934_v44 }
 0x8c8   : > { %v2994_v29 = vmul.f32 0.25, %v2930_v59 }
 0x8c9   : > { %v3958_v0 = vsub.f32 1.5, %v3957_v21  ;;  %10493 = vrsqrt.f32 %v3446_v52  ;;  %vm3930_vm15 = vweird.f32 %v3446_v52  ;;  %v1909_v21 = vmul.f32 %v12913_v45, %v12913_v45 }
 0x8ca   : > { %v3058_v13 = vpack.c.bf16 %v2994_v29, %v2994_v29 }
 0x8cb   : > { %v3959_v5 = vmul.f32 %v10492_v46, %v3958_v0  ;;  %v3312_v0 = vsel %vm1920_vm3, %v3136_v9, 0.0 }
 0x8cc   : > { %9517 = vmatmul.msk.bf16.vlgmr.msrb.gmra.mxu0 %vm1920_vm3, %v3058_v13  ;;  %v2080_v13 = vsel %vm1920_vm3, %v1909_v21, 0.0 }
 0x8cd   : > { %v3963_v24 = vsel %vm3962_vm13, %v10492_v46, %v3959_v5  ;;  %v3297_v46 = vsel %vm1920_vm3, %v3131_v40, 0.0 }
 0x8ce   : > { %3304 = vadd.xlane.f32.xlu2 %v3303_v54  ;;  %v4153_v8 = vmul.f32 %v3963_v24, %v12784_v32  ;;  %v3137_v54 = vmul.f32 %v12964_v20, %v12964_v20 }
 0x8cf   : > { %v10494_v19 = vpop.eup %10493 }
 0x8d0   : > { %v3925_v37 = vmul.f32 %v10494_v19, %v3446_v52  ;;  %v4217_v2 = vpack.c.bf16 %v4153_v8, %v4153_v8  ;;  %vm3931_vm14 = vweird.f32 %v10494_v19 }
 0x8d1   : > { %vm3932_vm0 = vmor %vm3930_vm15, %vm3931_vm14 }
 0x8d2   : > { %v3926_v43 = vmul.f32 %v10494_v19, %v3925_v37  ;;  %v5167_v39 = vsel %vm1920_vm3, %v4217_v2, 0  ;;  %v3315_v37 = vsel %vm1920_vm3, %v3137_v54, 0.0 }
 0x8d3   : > { %5176 = vmatpush.bf16.xpose.msrb.mxu3 %v5167_v39 }
 0x8d4   : > { %v3927_v10 = vmul.f32 0.5, %v3926_v43 }
 0x8d5   : > { %3298 = vadd.xlane.f32.xlu0 %v3297_v46 }
 0x8d6   : > { %v3928_v32 = vsub.f32 1.5, %v3927_v10  ;;  %v3302_v12 = vpop.xlane.xlu1 %3301  ;;  %2078 = vadd.xlane.f32.xlu2 %v2077_v4  ;;  %v3135_v10 = vmul.f32 %v13004_v41, %v13004_v41 }
 0x8d7   : > { %v3388_v61 = vmul.f32 %v3302_v12, %v11943_v27  ;;  %v13093_v12 = vpop.permute.xlu2 %1664  ;;  %v13099_v21 = vpop.permute.xlu0 %1490 }
 0x8d8   : > { %v13076_v56 = vpop.f32.mrf.mxu3  ;;  %v3929_v59 = vmul.f32 %v10494_v19, %v3928_v32 }
 0x8d9   : > { %15547 = vst [vmem:[#allocation75_spill] sm:$0xff] %v13076_v56  ;;  %v3452_v51 = vadd.f32 1.1920929e-07, %v3388_v61  ;;  %v3309_v61 = vsel %vm1920_vm3, %v3135_v10, 0.0 }
 0x8da   : > { %v3933_v29 = vsel %vm3932_vm0, %v10494_v19, %v3929_v59  ;;  %v3130_v19 = vmul.f32 %v12953_v3, %v12953_v3  ;;  %v3138_v59 = vmul.f32 %v13063_v7, %v13063_v7 }
 0x8db   : > { %10495 = vrsqrt.f32 %v3452_v51  ;;  %v4150_v31 = vmul.f32 %v3933_v29, %v12864_v34  ;;  %vm3990_vm2 = vweird.f32 %v3452_v51 }
 0x8dc   : > { %v3294_v2 = vsel %vm1920_vm3, %v3130_v19, 0.0  ;;  %v3318_v29 = vsel %vm1920_vm3, %v3138_v59, 0.0 }
 0x8dd   : > { %3313 = vadd.xlane.f32.xlu0 %v3312_v0  ;;  %v4214_v5 = vpack.c.bf16 %v4150_v31, %v4150_v31 }
 0x8de   : > { %2081 = vadd.xlane.f32.xlu2 %v2080_v13 }
 0x8df   : > { %v5110_v52 = vsel %vm1920_vm3, %v4214_v5, 0 }
 0x8e0   : > { %v5104_v24 = vpop.f32.mrf.mxu3  ;;  %5119 = vmatpush.bf16.xpose.msra.mxu0 %v5110_v52  ;;  %v13112_v52 = vpop.permute.xlu0 %1662 }
 0x8e1   : > { %v10496_v8 = vpop.eup %10495 }
 0x8e2   : > { %v3985_v40 = vmul.f32 %v10496_v8, %v3452_v51  ;;  %vm3991_vm1 = vweird.f32 %v10496_v8 }
 0x8e3   : > { %vm3992_vm4 = vmor %vm3990_vm2, %vm3991_vm1 }
 0x8e4   : > { %v3986_v34 = vmul.f32 %v10496_v8, %v3985_v40 }
 0x8e5   : > { %3316 = vadd.xlane.f32.xlu0 %v3315_v37 }
 0x8e6   : > { %v3987_v6 = vmul.f32 0.5, %v3986_v34  ;;  %3295 = vadd.xlane.f32.xlu2 %v3294_v2 }
 0x8e8   : > { %v3988_v43 = vsub.f32 1.5, %v3987_v6 }
 0x8ea   : > { %v3989_v39 = vmul.f32 %v10496_v8, %v3988_v43 }
 0x8ec   : > { %v3993_v46 = vsel %vm3992_vm4, %v10496_v8, %v3989_v39 }
 0x8ed   : > { %v4156_v4 = vmul.f32 %v3993_v46, %v12844_v14 }
 0x8ee   : > { %v13102_v31 = vpop.permute.xlu1 %1486 }
 0x8ef   : > { %v4220_v32 = vpack.c.bf16 %v4156_v4, %v4156_v4  ;;  %v1915_v13 = vmul.f32 %v13102_v31, %v13102_v31 }
 0x8f1   : > { %3310 = vadd.xlane.f32.xlu1 %v3309_v61  ;;  %v5224_v9 = vsel %vm1920_vm3, %v4220_v32, 0  ;;  %v2098_v5 = vsel %vm1920_vm3, %v1915_v13, 0.0 }
 0x8f2   : > { %5233 = vmatpush.bf16.xpose.msra.mxu2 %v5224_v9 }
 0x8f8   : > { %v2070_v51 = vpop.xlane.xlu2 %2069 }
 0x8f9   : > { %v2169_v14 = vmul.f32 %v11943_v27, %v2070_v51  ;;  %1494 = vrot.lane.b32.xlu0 %v12099_v55, %s11324_s18  ;;  %3319 = vadd.xlane.f32.xlu1 %v3318_v29 }
 0x8fb   : > { %v2233_v0 = vadd.f32 1.1920929e-07, %v2169_v14  ;;  %v3134_v14 = vmul.f32 %v12983_v28, %v12983_v28 }
 0x8fd   : > { %10497 = vrsqrt.f32 %v2233_v0  ;;  %vm2744_vm6 = vweird.f32 %v2233_v0 }
 0x8fe   : > { %1668 = vrot.lane.b32.xlu2 %v15524_v50, %s11324_s18 }
 0x901   : > { %2099 = vadd.xlane.f32.xlu1 %v2098_v5  ;;  %v1907_v5 = vmul.f32 %v12959_v16, %v12959_v16 }
 0x903   : > { %v10498_v54 = vpop.eup %10497 }
 0x904   : > { %v2739_v24 = vmul.f32 %v10498_v54, %v2233_v0  ;;  %vm2745_vm5 = vweird.f32 %v10498_v54 }
 0x905   : > { %vm2746_vm7 = vmor %vm2744_vm6, %vm2745_vm5 }
 0x906   : > { %v2740_v8 = vmul.f32 %v10498_v54, %v2739_v24  ;;  %v13114_v19 = vpop.f32.mrf.mxu2 }
 0x907   : > { %15548 = vst [vmem:[#allocation76_spill] sm:$0xff] %v13114_v19 }
 0x908   : > { %v2741_v55 = vmul.f32 0.5, %v2740_v8 }
 0x90a   : > { %v2742_v40 = vsub.f32 1.5, %v2741_v55  ;;  %v2064_v34 = vpop.xlane.xlu0 %2063  ;;  %v1917_v55 = vmul.f32 %v13099_v21, %v13099_v21 }
 0x90b   : > { %v2167_v37 = vmul.f32 %v11943_v27, %v2064_v34  ;;  %v13131_v34 = vpop.permute.xlu1 %1670 }
 0x90c   : > { %v2743_v2 = vmul.f32 %v10498_v54, %v2742_v40  ;;  %v2074_v40 = vsel %vm1920_vm3, %v1907_v5, 0.0  ;;  %v1910_v5 = vmul.f32 %v13014_v35, %v13014_v35 }
 0x90d   : > { %v2231_v50 = vadd.f32 1.1920929e-07, %v2167_v37  ;;  %v2104_v37 = vsel %vm1920_vm3, %v1917_v55, 0.0 }
 0x90e   : > { %v2747_v6 = vsel %vm2746_vm7, %v10498_v54, %v2743_v2  ;;  %v13117_v43 = vpop.f32.mrf.mxu1  ;;  %v5085_v39 = vpop.f32.mrf.mxu2  ;;  %v3306_v54 = vsel %vm1920_vm3, %v3134_v14, 0.0  ;;  %v15552_v14 = vld [vmem:[#allocation46_spill] sm:$0xff] }
 0x90f   : > { %15549 = vst [vmem:[#allocation77_spill] sm:$0xff] %v13117_v43  ;;  %v2937_v10 = vmul.f32 %v2747_v6, %v12826_v1  ;;  %10499 = vrsqrt.f32 %v2231_v50  ;;  %vm2724_vm9 = vweird.f32 %v2231_v50 }
 0x911   : > { %v3001_v46 = vmul.f32 0.25, %v2937_v10  ;;  %v13143_v10 = vpop.permute.xlu2 %1488 }
 0x913   : > { %v3065_v4 = vpack.c.bf16 %v3001_v46, %v3001_v46 }
 0x915   : > { %v10500_v32 = vpop.eup %10499  ;;  %9524 = vmatmul.msk.bf16.vlgmr.msrb.gmra.mxu3 %vm1920_vm3, %v3065_v4  ;;  %v1913_v4 = vmul.f32 %v12999_v23, %v12999_v23 }
 0x916   : > { %v2719_v61 = vmul.f32 %v10500_v32, %v2231_v50  ;;  %v5066_v9 = vpop.f32.mrf.mxu1  ;;  %vm2725_vm8 = vweird.f32 %v10500_v32 }
 0x917   : > { %vm2726_vm10 = vmor %vm2724_vm9, %vm2725_vm8  ;;  %v15551_v9 = vld [vmem:[#allocation45_spill] sm:$0xff] }
 0x918   : > { %v2720_v59 = vmul.f32 %v10500_v32, %v2719_v61 }
 0x91a   : > { %v2721_v51 = vmul.f32 0.5, %v2720_v59  ;;  %v5448_v59 = vmul.f32 1.442695, %v15551_v9  ;;  %v1911_v9 = vmul.f32 %v13045_v58, %v13045_v58 }
 0x91c   : > { %v2722_v29 = vsub.f32 1.5, %v2721_v51  ;;  %v3143_v51 = vmul.f32 %v13131_v34, %v13131_v34  ;;  %10501 = vpow2.f32 %v5448_v59 }
 0x91d   : > { %v13136_v2 = vpop.permute.xlu0 %1484 }
 0x91e   : > { %v2723_v0 = vmul.f32 %v10500_v32, %v2722_v29  ;;  %v1914_v6 = vmul.f32 %v13136_v2, %v13136_v2  ;;  %v2092_v29 = vsel %vm1920_vm3, %v1913_v4, 0.0 }
 0x920   : > { %v2727_v13 = vsel %vm2726_vm10, %v10500_v32, %v2723_v0  ;;  %v2095_v32 = vsel %vm1920_vm3, %v1914_v6, 0.0  ;;  %v5450_v0 = vmul.f32 1.442695, %v15552_v14 }
 0x921   : > { %v2935_v1 = vmul.f32 %v2727_v13, %v12869_v11  ;;  %v1912_v11 = vmul.f32 %v13034_v18, %v13034_v18  ;;  %v2073_v46 = vpop.xlane.xlu1 %2072 }
 0x922   : > { %10503 = vpow2.f32 %v5450_v0  ;;  %v13164_v6 = vpop.eup %10501 }
 0x923   : > { %v2999_v24 = vmul.f32 0.25, %v2935_v1  ;;  %3307 = vadd.xlane.f32.xlu0 %v3306_v54  ;;  %v2089_v39 = vsel %vm1920_vm3, %v1912_v11, 0.0  ;;  %v5458_v11 = vmul.f32 1.442695, %v12278_v57  ;;  %v5577_v57 = vsel %vm5576_vm11, %v13164_v6, 0.0 }
 0x925   : > { %v3063_v8 = vpack.c.bf16 %v2999_v24, %v2999_v24 }
 0x927   : > { %9522 = vmatmul.msk.bf16.vlgmr.msrb.gmra.mxu1 %vm1920_vm3, %v3063_v8  ;;  %2075 = vadd.xlane.f32.xlu2 %v2074_v40  ;;  %v3333_v8 = vsel %vm1920_vm3, %v3143_v51, 0.0 }
 0x92b   : > { %2105 = vadd.xlane.f32.xlu0 %v2104_v37  ;;  %v13138_v50 = vpop.f32.mrf.mxu2  ;;  %v2083_v37 = vsel %vm1920_vm3, %v1910_v5, 0.0  ;;  %v15556_v5 = vld [vmem:[#allocation54_spill] sm:$0xff] }
 0x92c   : > { %15550 = vst [vmem:[#allocation78_spill] sm:$0xff] %v13138_v50 }
 0x92f   : > { %2090 = vadd.xlane.f32.xlu2 %v2089_v39  ;;  %v15554_v39 = vld [vmem:[#allocation49_spill] sm:$0xff] }
 0x930   : > { %v5452_v4 = vmul.f32 1.442695, %v15554_v39 }
 0x933   : > { %2096 = vadd.xlane.f32.xlu0 %v2095_v32  ;;  %v5161_v61 = vpop.f32.mrf.mxu2  ;;  %v13167_v32 = vpop.eup %10503 }
 0x937   : > { %2093 = vadd.xlane.f32.xlu2 %v2092_v29  ;;  %v15555_v29 = vld [vmem:[#allocation53_spill] sm:$0xff] }
 0x938   : > { %v5464_v14 = vmul.f32 1.442695, %v15555_v29 }
 0x939   : > { %v2061_v13 = vpop.xlane.xlu2 %2060  ;;  %v13153_v1 = vpop.permute.xlu1 %1492 }
 0x93a   : > { %15553 = vst [vmem:[#allocation45_spill] sm:$0xff] %v13153_v1  ;;  %v2166_v54 = vmul.f32 %v11943_v27, %v2061_v13  ;;  %v1918_v24 = vmul.f32 %v13153_v1, %v13153_v1  ;;  %v5580_v13 = vsel %vm5576_vm11, %v13167_v32, 0.0 }
 0x93b   : > { %3334 = vadd.xlane.f32.xlu0 %v3333_v8  ;;  %v2086_v8 = vsel %vm1920_vm3, %v1911_v9, 0.0 }
 0x93c   : > { %v2230_v55 = vadd.f32 1.1920929e-07, %v2166_v54  ;;  %v2107_v40 = vsel %vm1920_vm3, %v1918_v24, 0.0  ;;  %v5466_v54 = vmul.f32 1.442695, %v15556_v5 }
 0x93d   : > { %2108 = vadd.xlane.f32.xlu1 %v2107_v40 }
 0x93e   : > { %10505 = vrsqrt.f32 %v2230_v55  ;;  %vm2714_vm13 = vweird.f32 %v2230_v55 }
 0x93f   : > { %2084 = vadd.xlane.f32.xlu2 %v2083_v37  ;;  %10507 = vpow2.f32 %v5458_v11  ;;  %v15558_v11 = vld [vmem:[#allocation52_spill] sm:$0xff] }
 0x940   : > { %10509 = vpow2.f32 %v5452_v4  ;;  %v5460_v37 = vmul.f32 1.442695, %v15558_v11  ;;  %v15559_v4 = vld [vmem:[#allocation55_spill] sm:$0xff]  ;;  %v3140_v11 = vmul.f32 %v13093_v12, %v13093_v12 }
 0x941   : > { %v3305_v61 = vpop.xlane.xlu2 %3304 }
 0x942   : > { %v3389_v59 = vmul.f32 %v3305_v61, %v11943_v27  ;;  %v5462_v61 = vmul.f32 1.442695, %v15559_v4 }
 0x943   : > { %5578 = vadd.xlane.f32.xlu0 %v5577_v57 }
 0x944   : > { %v10506_v51 = vpop.eup %10505  ;;  %v13175_v0 = vadd.f32 1.1920929e-07, %v3389_v59  ;;  %v2170_v59 = vmul.f32 %v11943_v27, %v2073_v46 }
 0x945   : > { %v2709_v24 = vmul.f32 %v10506_v51, %v2230_v55  ;;  %5581 = vadd.xlane.f32.xlu1 %v5580_v13  ;;  %v13182_v40 = vpop.eup %10507  ;;  %vm2715_vm12 = vweird.f32 %v10506_v51 }
 0x946   : > { %10511 = vrsqrt.f32 %v13175_v0  ;;  %15557 = vst [vmem:[#allocation46_spill] sm:$0xff] %v13182_v40  ;;  %v13187_v29 = vpop.eup %10509  ;;  %vm2716_vm14 = vmor %vm2714_vm13, %vm2715_vm12  ;;  %vm4000_vm0 = vweird.f32 %v13175_v0 }
 0x947   : > { %v2710_v39 = vmul.f32 %v10506_v51, %v2709_v24  ;;  %2087 = vadd.xlane.f32.xlu2 %v2086_v8  ;;  %10513 = vpow2.f32 %v5464_v14  ;;  %15560 = vst [vmem:[#allocation49_spill] sm:$0xff] %v13187_v29  ;;  %v5592_v14 = vsel %vm5576_vm11, %v13182_v40, 0.0 }
 0x948   : > { %v3299_v57 = vpop.xlane.xlu0 %3298  ;;  %10515 = vpow2.f32 %v5466_v54 }
 0x949   : > { %v2711_v13 = vmul.f32 0.5, %v2710_v39  ;;  %v3387_v5 = vmul.f32 %v3299_v57, %v11943_v27  ;;  %v2079_v50 = vpop.xlane.xlu2 %2078  ;;  %v13190_v9 = vpop.f32.mrf.mxu0  ;;  %10517 = vpow2.f32 %v5460_v37  ;;  %v13201_v39 = vadd.f32 1.1920929e-07, %v2170_v59 }
 0x94a   : > { %15561 = vst [vmem:[#allocation53_spill] sm:$0xff] %v13190_v9  ;;  %v2172_v24 = vmul.f32 %v11943_v27, %v2079_v50  ;;  %10519 = vpow2.f32 %v5462_v61  ;;  %v5583_v57 = vsel %vm5576_vm11, %v13187_v29, 0.0  ;;  %v3324_v61 = vsel %vm1920_vm3, %v3140_v11, 0.0 }
 0x94b   : > { %v2712_v46 = vsub.f32 1.5, %v2711_v13  ;;  %v13197_v8 = vadd.f32 1.1920929e-07, %v3387_v5  ;;  %5593 = vadd.xlane.f32.xlu0 %v5592_v14 }
 0x94c   : > { %v13199_v54 = vpop.eup %10511  ;;  %v13203_v4 = vadd.f32 1.1920929e-07, %v2172_v24 }
 0x94d   : > { %v2713_v50 = vmul.f32 %v10506_v51, %v2712_v46  ;;  %v3995_v37 = vmul.f32 %v13199_v54, %v13175_v0  ;;  %10521 = vrsqrt.f32 %v13197_v8  ;;  %5584 = vadd.xlane.f32.xlu1 %v5583_v57  ;;  %v13210_v13 = vpop.eup %10513  ;;  %v3141_v57 = vmul.f32 %v13048_v60, %v13048_v60 }
 0x94e   : > { %15562 = vst [vmem:[#allocation54_spill] sm:$0xff] %v13210_v13  ;;  %10523 = vrsqrt.f32 %v13203_v4  ;;  %v13214_v59 = vpop.eup %10515  ;;  %vm4001_vm15 = vweird.f32 %v13199_v54  ;;  %vm3980_vm5 = vweird.f32 %v13197_v8  ;;  %vm2774_vm7 = vweird.f32 %v13203_v4 }
 0x94f   : > { %15563 = vst [vmem:[#allocation52_spill] sm:$0xff] %v13214_v59  ;;  %v2717_v5 = vsel %vm2716_vm14, %v10506_v51, %v2713_v50  ;;  %v3996_v24 = vmul.f32 %v13199_v54, %v3995_v37  ;;  %3325 = vadd.xlane.f32.xlu2 %v3324_v61  ;;  %v13218_v46 = vpop.eup %10517  ;;  %10525 = vrsqrt.f32 %v13201_v39  ;;  %v5604_v37 = vsel %vm5576_vm11, %v13214_v59, 0.0  ;;  %vm4002_vm1 = vmor %vm4000_vm0, %vm4001_vm15 }
 0x950   : > { %v2934_v55 = vmul.f32 %v2717_v5, %v12904_v26  ;;  %v3314_v14 = vpop.xlane.xlu0 %3313  ;;  %15564 = vst [vmem:[#allocation55_spill] sm:$0xff] %v13218_v46  ;;  %v13224_v56 = vpop.eup %10519  ;;  %v5601_v26 = vsel %vm5576_vm11, %v13210_v13, 0.0  ;;  %v15566_v5 = vld [vmem:[#allocation56_spill] sm:$0xff]  ;;  %vm2754_vm0 = vweird.f32 %v13201_v39 }
 0x951   : > { %v3997_v43 = vmul.f32 0.5, %v3996_v24  ;;  %v3392_v9 = vmul.f32 %v3314_v14, %v11943_v27  ;;  %v5047_v11 = vpop.f32.mrf.mxu0  ;;  %v2082_v29 = vpop.xlane.xlu2 %2081  ;;  %15565 = vst [vmem:[#allocation79_spill] sm:$0xff] %v13224_v56  ;;  %v5474_v19 = vmul.f32 1.442695, %v15566_v5  ;;  %v15567_v24 = vld [vmem:[#allocation58_spill] sm:$0xff]  ;;  %v5598_v0 = vsel %vm5576_vm11, %v13224_v56, 0.0 }
 0x952   : > { %v2998_v51 = vmul.f32 0.25, %v2934_v55  ;;  %v2173_v50 = vmul.f32 %v11943_v27, %v2082_v29  ;;  %v5472_v40 = vmul.f32 1.442695, %v15567_v24 }
 0x953   : > { %v13231_v61 = vpop.eup %10521  ;;  %v3998_v14 = vsub.f32 1.5, %v3997_v43  ;;  %v13235_v11 = vadd.f32 1.1920929e-07, %v3392_v9  ;;  %5602 = vadd.xlane.f32.xlu0 %v5601_v26  ;;  %v3327_v43 = vsel %vm1920_vm3, %v3141_v57, 0.0  ;;  %v5595_v57 = vsel %vm5576_vm11, %v13218_v46, 0.0 }
 0x954   : > { %v13237_v30 = vpop.eup %10523  ;;  %v3062_v55 = vpack.c.bf16 %v2998_v51, %v2998_v51  ;;  %v3975_v29 = vmul.f32 %v13231_v61, %v13197_v8  ;;  %v13242_v13 = vadd.f32 1.1920929e-07, %v2173_v50  ;;  %vm3981_vm2 = vweird.f32 %v13231_v61 }
 0x955   : > { %v2769_v59 = vmul.f32 %v13237_v30, %v13203_v4  ;;  %10527 = vrsqrt.f32 %v13235_v11  ;;  %5605 = vadd.xlane.f32.xlu1 %v5604_v37  ;;  %v3999_v51 = vmul.f32 %v13199_v54, %v3998_v14  ;;  %v13253_v50 = vpop.eup %10525  ;;  %v15568_v37 = vld [vmem:[#allocation48_spill] sm:$0xff]  ;;  %vm2775_vm4 = vweird.f32 %v13237_v30  ;;  %vm13285_vm6 = vmor %vm3980_vm5, %vm3981_vm2 }
 0x956   : > { %v3976_v9 = vmul.f32 %v13231_v61, %v3975_v29  ;;  %10529 = vrsqrt.f32 %v13242_v13  ;;  %9521 = vmatmul.msk.bf16.vlgmr.msra.gmra.mxu0 %vm1920_vm3, %v3062_v55  ;;  %v5468_v5 = vmul.f32 1.442695, %v15568_v37  ;;  %v2749_v46 = vmul.f32 %v13253_v50, %v13201_v39  ;;  %vm2776_vm8 = vmor %vm2774_vm7, %vm2775_vm4 }
 0x957   : > { %10531 = vpow2.f32 %v5474_v19  ;;  %v2770_v26 = vmul.f32 %v13237_v30, %v2769_v59  ;;  %3328 = vadd.xlane.f32.xlu2 %v3327_v43  ;;  %v4003_v14 = vsel %vm4002_vm1, %v13199_v54, %v3999_v51  ;;  %v1916_v19 = vmul.f32 %v13143_v10, %v13143_v10 }
 0x958   : > { %10533 = vpow2.f32 %v5472_v40  ;;  %v3977_v24 = vmul.f32 0.5, %v3976_v9  ;;  %v3317_v55 = vpop.xlane.xlu0 %3316  ;;  %v4157_v63 = vmul.f32 %v4003_v14, %v12876_v17  ;;  %vm2784_vm12 = vweird.f32 %v13242_v13 }
 0x959   : > { %v2771_v29 = vmul.f32 0.5, %v2770_v26  ;;  %v3393_v59 = vmul.f32 %v3317_v55, %v11943_v27  ;;  %v3296_v43 = vpop.xlane.xlu2 %3295  ;;  %vm4030_vm13 = vweird.f32 %v13235_v11  ;;  %vm2755_vm1 = vweird.f32 %v13253_v50 }
 0x95a   : > { %v3978_v56 = vsub.f32 1.5, %v3977_v24  ;;  %v3386_v40 = vmul.f32 %v3296_v43, %v11943_v27  ;;  %v4221_v26 = vpack.c.bf16 %v4157_v63, %v4157_v63  ;;  %v2101_v43 = vsel %vm1920_vm3, %v1916_v19, 0.0  ;;  %vm13360_vm5 = vmor %vm2754_vm0, %vm2755_vm1 }
 0x95b   : > { %v13270_v9 = vpop.eup %10527  ;;  %v2772_v54 = vsub.f32 1.5, %v2771_v29  ;;  %v13273_v51 = vadd.f32 1.1920929e-07, %v3393_v59  ;;  %5596 = vadd.xlane.f32.xlu0 %v5595_v57 }
 0x95c   : > { %v13275_v37 = vpop.eup %10529  ;;  %v4025_v17 = vmul.f32 %v13270_v9, %v13235_v11  ;;  %v13280_v24 = vadd.f32 1.1920929e-07, %v3386_v40  ;;  %v3979_v55 = vmul.f32 %v13231_v61, %v3978_v56  ;;  %v2750_v56 = vmul.f32 %v13253_v50, %v2749_v46 }
 0x95d   : > { %v13283_v14 = vpop.eup %10531  ;;  %v2773_v57 = vmul.f32 %v13237_v30, %v2772_v54  ;;  %v2779_v63 = vmul.f32 %v13275_v37, %v13242_v13  ;;  %10535 = vrsqrt.f32 %v13273_v51  ;;  %5599 = vadd.xlane.f32.xlu1 %v5598_v0  ;;  %v5243_v54 = vsel %vm1920_vm3, %v4221_v26, 0 }
 0x95e   : > { %v13294_v8 = vpop.eup %10533  ;;  %v4026_v59 = vmul.f32 %v13270_v9, %v4025_v17  ;;  %10537 = vrsqrt.f32 %v13280_v24  ;;  %v3983_v46 = vsel %vm13285_vm6, %v13231_v61, %v3979_v55  ;;  %5252 = vmatpush.bf16.xpose.msra.mxu3 %v5243_v54  ;;  %v3139_v26 = vmul.f32 %v13112_v52, %v13112_v52 }
 0x95f   : > { %v2777_v4 = vsel %vm2776_vm8, %v13237_v30, %v2773_v57  ;;  %v2780_v40 = vmul.f32 %v13275_v37, %v2779_v63  ;;  %2102 = vadd.xlane.f32.xlu2 %v2101_v43  ;;  %v4155_v17 = vmul.f32 %v3983_v46, %v12918_v25  ;;  %v5613_v19 = vsel %vm5576_vm11, %v13294_v8, 0.0 }
 0x960   : > { %v2940_v0 = vmul.f32 %v2777_v4, %v12884_v47  ;;  %v4027_v1 = vmul.f32 0.5, %v4026_v59  ;;  %v5616_v30 = vsel %vm5576_vm11, %v13283_v14, 0.0  ;;  %10539 = vpow2.f32 %v5468_v5 }
 0x961   : > { %v2781_v53 = vmul.f32 0.5, %v2780_v40  ;;  %v4219_v29 = vpack.c.bf16 %v4155_v17, %v4155_v17  ;;  %v2751_v47 = vmul.f32 0.5, %v2750_v56  ;;  %vm2785_vm9 = vweird.f32 %v13275_v37  ;;  %v13341_v11 = vpop.permute.xlu2 %1668 }
 0x962   : > { %v3004_v57 = vmul.f32 0.25, %v2940_v0  ;;  %v4028_v63 = vsub.f32 1.5, %v4027_v1  ;;  %vm4031_vm10 = vweird.f32 %v13270_v9  ;;  %vm2786_vm14 = vmor %vm2784_vm12, %vm2785_vm9  ;;  %v3321_v54 = vsel %vm1920_vm3, %v3139_v26, 0.0 }
 0x963   : > { %v13316_v61 = vpop.eup %10535  ;;  %v2782_v55 = vsub.f32 1.5, %v2781_v53  ;;  %5614 = vadd.xlane.f32.xlu0 %v5613_v19  ;;  %v5205_v4 = vsel %vm1920_vm3, %v4219_v29, 0  ;;  %v2752_v46 = vsub.f32 1.5, %v2751_v47  ;;  %vm4032_vm15 = vmor %vm4030_vm13, %vm4031_vm10  ;;  %vm4040_vm6 = vweird.f32 %v13273_v51 }
 0x964   : > { %v13319_v25 = vpop.eup %10537  ;;  %v3068_v59 = vpack.c.bf16 %v3004_v57, %v3004_v57  ;;  %v4035_v43 = vmul.f32 %v13316_v61, %v13273_v51  ;;  %v3311_v1 = vpop.xlane.xlu1 %3310  ;;  %5214 = vmatpush.bf16.xpose.msra.mxu1 %v5205_v4  ;;  %v4029_v13 = vmul.f32 %v13270_v9, %v4028_v63  ;;  %vm4041_vm2 = vweird.f32 %v13316_v61 }
 0x965   : > { %v2783_v40 = vmul.f32 %v13275_v37, %v2782_v55  ;;  %v3965_v53 = vmul.f32 %v13319_v25, %v13280_v24  ;;  %v3391_v5 = vmul.f32 %v3311_v1, %v11943_v27  ;;  %5617 = vadd.xlane.f32.xlu1 %v5616_v30  ;;  %vm3971_vm4 = vweird.f32 %v13319_v25  ;;  %vm4042_vm7 = vmor %vm4040_vm6, %vm4041_vm2 }
 0x966   : > { %v4036_v56 = vmul.f32 %v13316_v61, %v4035_v43  ;;  %9527 = vmatmul.msk.bf16.vlgmr.msra.gmra.mxu2 %vm1920_vm3, %v3068_v59  ;;  %v4033_v57 = vsel %vm4032_vm15, %v13270_v9, %v4029_v13  ;;  %v13348_v63 = vpop.eup %10539  ;;  %v3142_v59 = vmul.f32 %v13341_v11, %v13341_v11  ;;  %vm3970_vm8 = vweird.f32 %v13280_v24 }
 0x967   : > { %v2787_v0 = vsel %vm2786_vm14, %v13275_v37, %v2783_v40  ;;  %v3966_v17 = vmul.f32 %v13319_v25, %v3965_v53  ;;  %v13343_v19 = vadd.f32 1.1920929e-07, %v3391_v5  ;;  %3322 = vadd.xlane.f32.xlu2 %v3321_v54  ;;  %v4160_v37 = vmul.f32 %v4033_v57, %v12934_v44  ;;  %vm3972_vm9 = vmor %vm3970_vm8, %vm3971_vm4 }
 0x968   : > { %v2941_v30 = vmul.f32 %v2787_v0, %v12913_v45  ;;  %v4037_v26 = vmul.f32 0.5, %v4036_v56  ;;  %v2753_v45 = vmul.f32 %v13253_v50, %v2752_v46  ;;  %v5607_v1 = vsel %vm5576_vm11, %v13348_v63, 0.0 }
 0x969   : > { %v3967_v29 = vmul.f32 0.5, %v3966_v17  ;;  %10541 = vrsqrt.f32 %v13343_v19  ;;  %v4224_v9 = vpack.c.bf16 %v4160_v37, %v4160_v37  ;;  %v3330_v5 = vsel %vm1920_vm3, %v3142_v59, 0.0 }
 0x96a   : > { %v3005_v47 = vmul.f32 0.25, %v2941_v30  ;;  %v4038_v55 = vsub.f32 1.5, %v4037_v26  ;;  %v2757_v54 = vsel %vm13360_vm5, %v13253_v50, %v2753_v45  ;;  %v15573_v30 = vld [vmem:[#allocation51_spill] sm:$0xff]  ;;  %vm4020_vm12 = vweird.f32 %v13343_v19 }
 0x96b   : > { %v3968_v43 = vsub.f32 1.5, %v3967_v29  ;;  %v5300_v53 = vsel %vm1920_vm3, %v4224_v9, 0  ;;  %v13377_v13 = vpop.permute.xlu0 %1494  ;;  %v5456_v26 = vmul.f32 1.442695, %v15573_v30 }
 0x96c   : > { %v3069_v44 = vpack.c.bf16 %v3005_v47, %v3005_v47  ;;  %v4039_v40 = vmul.f32 %v13316_v61, %v4038_v55  ;;  %5309 = vmatpush.bf16.xpose.msrb.mxu2 %v5300_v53  ;;  %v1919_v50 = vmul.f32 %v13377_v13, %v13377_v13 }
 0x96d   : > { %5608 = vadd.xlane.f32.xlu1 %v5607_v1  ;;  %v3969_v39 = vmul.f32 %v13319_v25, %v3968_v43  ;;  %10543 = vpow2.f32 %v5456_v26  ;;  %v15575_v43 = vld [vmem:[#allocation50_spill] sm:$0xff] }
 0x96e   : > { %9528 = vmatmul.msk.bf16.vlgmr.msra.gmra.mxu3 %vm1920_vm3, %v3069_v44  ;;  %v4043_v51 = vsel %vm4042_vm7, %v13316_v61, %v4039_v40  ;;  %v2938_v61 = vmul.f32 %v2757_v54, %v12992_v36  ;;  %v2110_v59 = vsel %vm1920_vm3, %v1919_v50, 0.0  ;;  %v15574_v36 = vld [vmem:[#allocation38_spill] sm:$0xff]  ;;  %v5454_v9 = vmul.f32 1.442695, %v15575_v43  ;;  %v15580_v43 = vld [vmem:[#allocation32_spill] sm:$0xff] }
 0x96f   : > { %v10542_v56 = vpop.eup %10541  ;;  %3331 = vadd.xlane.f32.xlu2 %v3330_v5  ;;  %v4161_v24 = vmul.f32 %v4043_v51, %v12964_v20  ;;  %v3973_v46 = vsel %vm3972_vm9, %v13319_v25, %v3969_v39  ;;  %v3320_v5 = vpop.xlane.xlu1 %3319 }
 0x970   : > { %v4015_v0 = vmul.f32 %v10542_v56, %v13343_v19  ;;  %v4154_v17 = vmul.f32 %v3973_v46, %v12953_v3  ;;  %v3002_v25 = vmul.f32 0.25, %v2938_v61  ;;  %vm4021_vm10 = vweird.f32 %v10542_v56 }
 0x971   : > { %v4225_v57 = vpack.c.bf16 %v4161_v24, %v4161_v24  ;;  %vm4022_vm13 = vmor %vm4020_vm12, %vm4021_vm10  ;;  %10545 = vpow2.f32 %v5454_v9  ;;  %v3394_v51 = vmul.f32 %v3320_v5, %v11943_v27  ;;  %v15576_v24 = vld [vmem:[#allocation35_spill] sm:$0xff] }
 0x972   : > { %v4016_v29 = vmul.f32 %v10542_v56, %v4015_v0  ;;  %v4218_v37 = vpack.c.bf16 %v4154_v17, %v4154_v17  ;;  %v3066_v4 = vpack.c.bf16 %v3002_v25, %v3002_v25  ;;  %v15577_v0 = vld [vmem:[#allocation44_spill] sm:$0xff] }
 0x973   : > { %v5319_v47 = vsel %vm1920_vm3, %v4225_v57, 0  ;;  %v13394_v1 = vpop.eup %10543  ;;  %v5480_v17 = vmul.f32 1.442695, %v15577_v0 }
 0x974   : > { %v4017_v55 = vmul.f32 0.5, %v4016_v29  ;;  %5328 = vmatpush.bf16.xpose.msrb.mxu3 %v5319_v47  ;;  %v5186_v20 = vsel %vm1920_vm3, %v4218_v37, 0  ;;  %v5589_v39 = vsel %vm5576_vm11, %v13394_v1, 0.0  ;;  %v15578_v37 = vld [vmem:[#allocation41_spill] sm:$0xff] }
 0x975   : > { %5195 = vmatpush.bf16.xpose.msrb.mxu0 %v5186_v20  ;;  %v5476_v47 = vmul.f32 1.442695, %v15578_v37 }
 0x976   : > { %v4018_v3 = vsub.f32 1.5, %v4017_v55 }
 0x977   : > { %10142 = vrot.lane.b32.xlu0 %v15574_v36, %s11317_s6  ;;  %2111 = vadd.xlane.f32.xlu2 %v2110_v59  ;;  %v13402_v54 = vpop.eup %10545 }
 0x978   : > { %v4019_v45 = vmul.f32 %v10542_v56, %v4018_v3 }
 0x97a   : > { %v4023_v44 = vsel %vm4022_vm13, %v10542_v56, %v4019_v45  ;;  %v3458_v56 = vadd.f32 1.1920929e-07, %v3394_v51 }
 0x97b   : > { %v4159_v40 = vmul.f32 %v4023_v44, %v13004_v41  ;;  %v5586_v41 = vsel %vm5576_vm11, %v13402_v54, 0.0 }
 0x97c   : > { %9525 = vmatmul.msk.bf16.vlgmr.msrb.gmra.mxu0 %vm1920_vm3, %v3066_v4  ;;  %10547 = vrsqrt.f32 %v3458_v56  ;;  %vm4050_vm15 = vweird.f32 %v3458_v56 }
 0x97d   : > { %v4223_v53 = vpack.c.bf16 %v4159_v40, %v4159_v40  ;;  %10549 = vpow2.f32 %v5480_v17  ;;  %v15581_v40 = vld [vmem:[#allocation43_spill] sm:$0xff] }
 0x97f   : > { %5590 = vadd.xlane.f32.xlu2 %v5589_v39  ;;  %v5281_v19 = vsel %vm1920_vm3, %v4223_v53, 0  ;;  %v5482_v53 = vmul.f32 1.442695, %v15581_v40  ;;  %v15582_v39 = vld [vmem:[#allocation47_spill] sm:$0xff] }
 0x980   : > { %5290 = vmatpush.bf16.xpose.msrb.mxu1 %v5281_v19  ;;  %v5478_v5 = vmul.f32 1.442695, %v15582_v39 }
 0x982   : > { %v10548_v46 = vpop.eup %10547 }
 0x983   : > { %v4045_v30 = vmul.f32 %v10548_v46, %v3458_v56  ;;  %v13414_v3 = vpop.eup %10549  ;;  %vm4051_vm14 = vweird.f32 %v10548_v46 }
 0x984   : > { %15579 = vst [vmem:[#allocation56_spill] sm:$0xff] %v13414_v3  ;;  %v5625_v4 = vsel %vm5576_vm11, %v13414_v3, 0.0  ;;  %vm13431_vm0 = vmor %vm4050_vm15, %vm4051_vm14  ;;  %v5514_v3 = vmul.f32 1.442695, %v12836_v15 }
 0x985   : > { %v4046_v57 = vmul.f32 %v10548_v46, %v4045_v30 }
 0x986   : > { %10147 = vrot.lane.b32.xlu1 %v15576_v24, %s11317_s6 }
 0x987   : > { %5587 = vadd.xlane.f32.xlu2 %v5586_v41  ;;  %v4047_v20 = vmul.f32 0.5, %v4046_v57 }
 0x989   : > { %v4048_v45 = vsub.f32 1.5, %v4047_v20 }
 0x98b   : > { %v4049_v17 = vmul.f32 %v10548_v46, %v4048_v45 }
 0x98d   : > { %v4053_v45 = vsel %vm13431_vm0, %v10548_v46, %v4049_v17 }
 0x996   : > { %v3308_v26 = vpop.xlane.xlu0 %3307 }
 0x997   : > { %v3390_v61 = vmul.f32 %v3308_v26, %v11943_v27 }
 0x998   : > { %v13410_v29 = vpop.f32.mrf.mxu3 }
 0x999   : > { %v3454_v50 = vadd.f32 1.1920929e-07, %v3390_v61 }
 0x99a   : > { %v2076_v55 = vpop.xlane.xlu2 %2075 }
 0x99b   : > { %10551 = vrsqrt.f32 %v3454_v50  ;;  %v2171_v25 = vmul.f32 %v11943_v27, %v2076_v55  ;;  %vm4010_vm2 = vweird.f32 %v3454_v50 }
 0x99c   : > { %10553 = vpow2.f32 %v5476_v47 }
 0x99d   : > { %v2235_v59 = vadd.f32 1.1920929e-07, %v2171_v25 }
 0x99e   : > { %v13422_v51 = vpop.xlane.xlu0 %2105 }
 0x99f   : > { %10555 = vrsqrt.f32 %v2235_v59  ;;  %10137 = vrot.lane.b32.xlu2 %v15580_v43, %s11317_s6  ;;  %vm2764_vm6 = vweird.f32 %v2235_v59 }
 0x9a0   : > { %v5180_v9 = vpop.f32.mrf.mxu3  ;;  %10557 = vpow2.f32 %v5482_v53  ;;  %v15587_v53 = vld [vmem:[#allocation61_spill] sm:$0xff] }
 0x9a1   : > { %v10552_v44 = vpop.eup %10551  ;;  %5626 = vadd.xlane.f32.xlu0 %v5625_v4  ;;  %10559 = vpow2.f32 %v5478_v5  ;;  %v15586_v9 = vld [vmem:[#allocation59_spill] sm:$0xff]  ;;  %v5488_v39 = vmul.f32 1.442695, %v15587_v53 }
 0x9a2   : > { %v4005_v19 = vmul.f32 %v10552_v44, %v3454_v50  ;;  %v2091_v41 = vpop.xlane.xlu2 %2090  ;;  %v13425_v30 = vpop.eup %10553  ;;  %v5490_v4 = vmul.f32 1.442695, %v15586_v9  ;;  %vm4011_vm1 = vweird.f32 %v10552_v44 }
 0x9a3   : > { %v2176_v0 = vmul.f32 %v11943_v27, %v2091_v41  ;;  %15583 = vst [vmem:[#allocation58_spill] sm:$0xff] %v13425_v30  ;;  %v5619_v25 = vsel %vm5576_vm11, %v13425_v30, 0.0  ;;  %vm4012_vm4 = vmor %vm4010_vm2, %vm4011_vm1 }
 0x9a4   : > { %v4006_v26 = vmul.f32 %v10552_v44, %v4005_v19  ;;  %v13427_v57 = vpop.f32.mrf.mxu1 }
 0x9a5   : > { %v10556_v61 = vpop.eup %10555  ;;  %v13429_v37 = vadd.f32 1.1920929e-07, %v2176_v0  ;;  %v4162_v0 = vmul.f32 %v4053_v45, %v13063_v7 }
 0x9a6   : > { %v4007_v55 = vmul.f32 0.5, %v4006_v26  ;;  %v2759_v20 = vmul.f32 %v10556_v61, %v2235_v59  ;;  %v13443_v26 = vpop.eup %10557  ;;  %vm2765_vm5 = vweird.f32 %v10556_v61 }
 0x9a7   : > { %10561 = vrsqrt.f32 %v13429_v37  ;;  %15588 = vst [vmem:[#allocation48_spill] sm:$0xff] %v13443_v26  ;;  %v13446_v46 = vpop.eup %10559  ;;  %vm2766_vm7 = vmor %vm2764_vm6, %vm2765_vm5  ;;  %vm2814_vm9 = vweird.f32 %v13429_v37  ;;  %vm6028_vm5 = vcmask 1043456  }
 0x9a8   : > { %v4008_v56 = vsub.f32 1.5, %v4007_v55  ;;  %v2760_v40 = vmul.f32 %v10556_v61, %v2759_v20  ;;  %15589 = vst [vmem:[#allocation51_spill] sm:$0xff] %v13446_v46  ;;  %10563 = vpow2.f32 %v5490_v4  ;;  %v2097_v55 = vpop.xlane.xlu0 %2096  ;;  %v5628_v4 = vsel %vm5576_vm11, %v13443_v26, 0.0 }
 0x9a9   : > { %5620 = vadd.xlane.f32.xlu0 %v5619_v25  ;;  %10565 = vpow2.f32 %v5488_v39  ;;  %v2178_v53 = vmul.f32 %v11943_v27, %v2097_v55 }
 0x9aa   : > { %v2761_v5 = vmul.f32 0.5, %v2760_v40  ;;  %v2094_v19 = vpop.xlane.xlu2 %2093  ;;  %v4009_v41 = vmul.f32 %v10552_v44, %v4008_v56  ;;  %v4226_v40 = vpack.c.bf16 %v4162_v0, %v4162_v0 }
 0x9ab   : > { %v2177_v47 = vmul.f32 %v11943_v27, %v2094_v19  ;;  %v15590_v19 = vld [vmem:[#allocation60_spill] sm:$0xff] }
 0x9ac   : > { %v2762_v17 = vsub.f32 1.5, %v2761_v5  ;;  %v5142_v20 = vpop.f32.mrf.mxu1  ;;  %v4013_v9 = vsel %vm4012_vm4, %v10552_v44, %v4009_v41  ;;  %v5484_v59 = vmul.f32 1.442695, %v15590_v19  ;;  %v15594_v19 = vld [vmem:[#allocation57_spill] sm:$0xff] }
 0x9ad   : > { %v10562_v25 = vpop.eup %10561  ;;  %v13448_v50 = vadd.f32 1.1920929e-07, %v2177_v47  ;;  %v4158_v56 = vmul.f32 %v4013_v9, %v12983_v28  ;;  %v5622_v28 = vsel %vm5576_vm11, %v13446_v46, 0.0 }
 0x9ae   : > { %v2763_v7 = vmul.f32 %v10556_v61, %v2762_v17  ;;  %v2809_v45 = vmul.f32 %v10562_v25, %v13429_v37  ;;  %v13461_v47 = vpop.eup %10563  ;;  %v15592_v17 = vld [vmem:[#allocation63_spill] sm:$0xff]  ;;  %vm2815_vm8 = vweird.f32 %v10562_v25 }
 0x9af   : > { %10567 = vrsqrt.f32 %v13448_v50  ;;  %v4222_v44 = vpack.c.bf16 %v4158_v56, %v4158_v56  ;;  %15591 = vst [vmem:[#allocation38_spill] sm:$0xff] %v13461_v47  ;;  %v5486_v55 = vmul.f32 1.442695, %v15592_v17  ;;  %v13465_v56 = vpop.eup %10565  ;;  %vm2816_vm10 = vmor %vm2814_vm9, %vm2815_vm8  ;;  %v5640_v37 = vsel %vm5576_vm11, %v13461_v47, 0.0  ;;  %v15595_v17 = vld [vmem:[#allocation62_spill] sm:$0xff] }
 0x9b0   : > { %v2767_v5 = vsel %vm2766_vm7, %v10556_v61, %v2763_v7  ;;  %v2810_v39 = vmul.f32 %v10562_v25, %v2809_v45  ;;  %5629 = vadd.xlane.f32.xlu1 %v5628_v4  ;;  %v5338_v61 = vsel %vm1920_vm3, %v4226_v40, 0  ;;  %15593 = vst [vmem:[#allocation50_spill] sm:$0xff] %v13465_v56  ;;  %v13467_v45 = vadd.f32 1.1920929e-07, %v2178_v53 }
 0x9b1   : > { %v2939_v41 = vmul.f32 %v2767_v5, %v12959_v16  ;;  %5623 = vadd.xlane.f32.xlu0 %v5622_v28  ;;  %v5262_v0 = vsel %vm1920_vm3, %v4222_v44, 0  ;;  %10569 = vpow2.f32 %v5484_v59  ;;  %v5637_v53 = vsel %vm5576_vm11, %v13465_v56, 0.0 }
 0x9b2   : > { %v2811_v20 = vmul.f32 0.5, %v2810_v39  ;;  %5271 = vmatpush.bf16.xpose.msra.mxu0 %v5262_v0  ;;  %v2085_v9 = vpop.xlane.xlu2 %2084  ;;  %10571 = vpow2.f32 %v5486_v55  ;;  %v5498_v55 = vmul.f32 1.442695, %v15595_v17  ;;  %vm2824_vm13 = vweird.f32 %v13448_v50 }
 0x9b3   : > { %v3003_v7 = vmul.f32 0.25, %v2939_v41  ;;  %v2174_v16 = vmul.f32 %v11943_v27, %v2085_v9  ;;  %10573 = vrsqrt.f32 %v13467_v45  ;;  %v5470_v41 = vmul.f32 1.442695, %v15594_v19  ;;  %v15596_v9 = vld [vmem:[#allocation65_spill] sm:$0xff]  ;;  %v15599_v19 = vld [vmem:[#allocation64_spill] sm:$0xff] }
 0x9b4   : > { %v2812_v4 = vsub.f32 1.5, %v2811_v20  ;;  %vm2834_vm8 = vweird.f32 %v13467_v45 }
 0x9b5   : > { %v10568_v44 = vpop.eup %10567  ;;  %v3067_v5 = vpack.c.bf16 %v3003_v7, %v3003_v7  ;;  %v13473_v40 = vadd.f32 1.1920929e-07, %v2174_v16  ;;  %v2181_v7 = vmul.f32 %v11943_v27, %v13422_v51 }
 0x9b6   : > { %v2813_v28 = vmul.f32 %v10562_v25, %v2812_v4  ;;  %v2819_v39 = vmul.f32 %v10568_v44, %v13448_v50  ;;  %vm2825_vm12 = vweird.f32 %v10568_v44 }
 0x9b7   : > { %9526 = vmatmul.msk.bf16.vlgmr.msra.gmra.mxu1 %vm1920_vm3, %v3067_v5  ;;  %10575 = vrsqrt.f32 %v13473_v40  ;;  %vm2826_vm14 = vmor %vm2824_vm13, %vm2825_vm12  ;;  %vm2794_vm0 = vweird.f32 %v13473_v40 }
 0x9b8   : > { %v2817_v59 = vsel %vm2816_vm10, %v10562_v25, %v2813_v28  ;;  %v2820_v0 = vmul.f32 %v10568_v44, %v2819_v39  ;;  %5638 = vadd.xlane.f32.xlu1 %v5637_v53  ;;  %v13487_v25 = vpop.eup %10569  ;;  %10577 = vpow2.f32 %v5470_v41 }
 0x9b9   : > { %v2944_v20 = vmul.f32 %v2817_v59, %v13034_v18  ;;  %5641 = vadd.xlane.f32.xlu0 %v5640_v37  ;;  %15597 = vst [vmem:[#allocation35_spill] sm:$0xff] %v13487_v25  ;;  %v13490_v39 = vpop.eup %10571  ;;  %10579 = vpow2.f32 %v5498_v55  ;;  %v5492_v59 = vmul.f32 1.442695, %v15599_v19  ;;  %v2100_v37 = vpop.xlane.xlu1 %2099  ;;  %v5631_v55 = vsel %vm5576_vm11, %v13487_v25, 0.0 }
 0x9ba   : > { %5347 = vmatpush.bf16.xpose.msrb.mxu0 %v5338_v61  ;;  %v5496_v61 = vmul.f32 1.442695, %v15596_v9  ;;  %v2821_v4 = vmul.f32 0.5, %v2820_v0  ;;  %v2088_v16 = vpop.xlane.xlu2 %2087  ;;  %15598 = vst [vmem:[#allocation44_spill] sm:$0xff] %v13490_v39  ;;  %v13492_v18 = vpop.eup %10573  ;;  %v13497_v0 = vadd.f32 1.1920929e-07, %v2181_v7  ;;  %v5634_v50 = vsel %vm5576_vm11, %v13490_v39, 0.0 }
 0x9bb   : > { %v3008_v5 = vmul.f32 0.25, %v2944_v20  ;;  %v2175_v28 = vmul.f32 %v11943_v27, %v2088_v16  ;;  %v15600_v16 = vld [vmem:[#allocation66_spill] sm:$0xff]  ;;  %vm2835_vm7 = vweird.f32 %v13492_v18 }
 0x9bc   : > { %v2822_v53 = vsub.f32 1.5, %v2821_v4  ;;  %10581 = vpow2.f32 %v5496_v61  ;;  %v5494_v41 = vmul.f32 1.442695, %v15600_v16  ;;  %v2829_v4 = vmul.f32 %v13492_v18, %v13467_v45  ;;  %vm13604_vm9 = vmor %vm2834_vm8, %vm2835_vm7 }
 0x9bd   : > { %v3072_v17 = vpack.c.bf16 %v3008_v5, %v3008_v5  ;;  %v13495_v51 = vadd.f32 1.1920929e-07, %v2175_v28  ;;  %v10576_v9 = vpop.eup %10575 }
 0x9be   : > { %v2823_v20 = vmul.f32 %v10568_v44, %v2822_v53  ;;  %v2789_v7 = vmul.f32 %v10576_v9, %v13473_v40  ;;  %v13511_v28 = vpop.eup %10577  ;;  %vm2795_vm15 = vweird.f32 %v10576_v9  ;;  %v15608_v40 = vld [vmem:[#allocation30_spill] sm:$0xff] }
 0x9bf   : > { %10583 = vrsqrt.f32 %v13495_v51  ;;  %9531 = vmatmul.msk.bf16.vlgmr.msrb.gmra.mxu2 %vm1920_vm3, %v3072_v17  ;;  %15601 = vst [vmem:[#allocation41_spill] sm:$0xff] %v13511_v28  ;;  %v13514_v17 = vpop.eup %10579  ;;  %vm2796_vm1 = vmor %vm2794_vm0, %vm2795_vm15  ;;  %vm2804_vm4 = vweird.f32 %v13495_v51  ;;  %vm2864_vm0 = vweird.f32 %v13497_v0 }
 0x9c0   : > { %v2827_v61 = vsel %vm2826_vm14, %v10568_v44, %v2823_v20  ;;  %5632 = vadd.xlane.f32.xlu1 %v5631_v55  ;;  %10585 = vpow2.f32 %v5492_v59  ;;  %v2790_v53 = vmul.f32 %v10576_v9, %v2789_v7  ;;  %15602 = vst [vmem:[#allocation32_spill] sm:$0xff] %v13514_v17  ;;  %v3335_v20 = vpop.xlane.xlu0 %3334  ;;  %v2830_v59 = vmul.f32 %v13492_v18, %v2829_v4 }
 0x9c1   : > { %v2945_v5 = vmul.f32 %v2827_v61, %v12999_v23  ;;  %5635 = vadd.xlane.f32.xlu0 %v5634_v50  ;;  %10587 = vrsqrt.f32 %v13497_v0  ;;  %v15604_v61 = vld [vmem:[#allocation67_spill] sm:$0xff]  ;;  %v13523_v47 = vpop.xlane.xlu1 %2108 }
 0x9c2   : > { %v3326_v19 = vpop.xlane.xlu2 %3325  ;;  %10589 = vpow2.f32 %v5494_v41  ;;  %v13517_v55 = vpop.eup %10581  ;;  %v2791_v39 = vmul.f32 0.5, %v2790_v53  ;;  %v5506_v50 = vmul.f32 1.442695, %v15604_v61  ;;  %v3399_v41 = vmul.f32 %v3335_v20, %v11943_v27 }
 0x9c3   : > { %v3009_v44 = vmul.f32 0.25, %v2945_v5  ;;  %v3396_v16 = vmul.f32 %v3326_v19, %v11943_v27  ;;  %15603 = vst [vmem:[#allocation43_spill] sm:$0xff] %v13517_v55  ;;  %v5649_v4 = vsel %vm5576_vm11, %v13517_v55, 0.0  ;;  %v5652_v53 = vsel %vm5576_vm11, %v13514_v17, 0.0  ;;  %v15607_v55 = vld [vmem:[#allocation68_spill] sm:$0xff] }
 0x9c4   : > { %v2792_v5 = vsub.f32 1.5, %v2791_v39  ;;  %v2831_v20 = vmul.f32 0.5, %v2830_v59  ;;  %v5504_v46 = vmul.f32 1.442695, %v15607_v55  ;;  %v2179_v17 = vmul.f32 %v11943_v27, %v2100_v37 }
 0x9c5   : > { %v13520_v23 = vpop.eup %10583  ;;  %v3073_v25 = vpack.c.bf16 %v3009_v44, %v3009_v44  ;;  %v13525_v7 = vadd.f32 1.1920929e-07, %v3396_v16  ;;  %v5610_v44 = vsel %vm5576_vm11, %v13511_v28, 0.0  ;;  %v13549_v30 = vadd.f32 1.1920929e-07, %v3399_v41 }
 0x9c6   : > { %v2799_v19 = vmul.f32 %v13520_v23, %v13495_v51  ;;  %v13530_v56 = vpop.eup %10585  ;;  %v2793_v16 = vmul.f32 %v10576_v9, %v2792_v5  ;;  %vm2805_vm2 = vweird.f32 %v13520_v23 }
 0x9c7   : > { %15605 = vst [vmem:[#allocation47_spill] sm:$0xff] %v13530_v56  ;;  %10591 = vrsqrt.f32 %v13525_v7  ;;  %9532 = vmatmul.msk.bf16.vlgmr.msrb.gmra.mxu3 %vm1920_vm3, %v3073_v25  ;;  %v13540_v39 = vpop.eup %10587  ;;  %v5643_v37 = vsel %vm5576_vm11, %v13530_v56, 0.0  ;;  %vm2806_vm6 = vmor %vm2804_vm4, %vm2805_vm2  ;;  %vm4070_vm12 = vweird.f32 %v13525_v7 }
 0x9c8   : > { %v2800_v61 = vmul.f32 %v13520_v23, %v2799_v19  ;;  %5650 = vadd.xlane.f32.xlu1 %v5649_v4  ;;  %5611 = vadd.xlane.f32.xlu2 %v5610_v44  ;;  %v13544_v25 = vpop.eup %10589  ;;  %10593 = vpow2.f32 %v5506_v50  ;;  %v2797_v59 = vsel %vm2796_vm1, %v10576_v9, %v2793_v16  ;;  %v2859_v4 = vmul.f32 %v13540_v39, %v13497_v0 }
 0x9c9   : > { %15606 = vst [vmem:[#allocation59_spill] sm:$0xff] %v13544_v25  ;;  %5653 = vadd.xlane.f32.xlu0 %v5652_v53  ;;  %v2942_v50 = vmul.f32 %v2797_v59, %v13014_v35  ;;  %v2832_v44 = vsub.f32 1.5, %v2831_v20  ;;  %v5646_v9 = vsel %vm5576_vm11, %v13544_v25, 0.0  ;;  %10595 = vpow2.f32 %v5504_v46  ;;  %v15610_v59 = vld [vmem:[#allocation69_spill] sm:$0xff] }
 0x9ca   : > { %v2801_v5 = vmul.f32 0.5, %v2800_v61  ;;  %v3329_v26 = vpop.xlane.xlu2 %3328  ;;  %v13564_v16 = vadd.f32 1.1920929e-07, %v2179_v17  ;;  %10597 = vrsqrt.f32 %v13549_v30  ;;  %v2860_v46 = vmul.f32 %v13540_v39, %v2859_v4 }
 0x9cb   : > { %v3397_v55 = vmul.f32 %v3329_v26, %v11943_v27  ;;  %v3006_v61 = vmul.f32 0.25, %v2942_v50  ;;  %v13577_v50 = vpop.xlane.xlu1 %5581  ;;  %v2833_v51 = vmul.f32 %v13492_v18, %v2832_v44  ;;  %v13595_v44 = vpop.xlane.xlu0 %5578  ;;  %vm2865_vm14 = vweird.f32 %v13540_v39 }
 0x9cc   : > { %v2802_v53 = vsub.f32 1.5, %v2801_v5  ;;  %v5502_v5 = vmul.f32 1.442695, %v15610_v59  ;;  %v15611_v59 = vld [vmem:[#allocation71_spill] sm:$0xff]  ;;  %vm13678_vm1 = vmor %vm2864_vm0, %vm2865_vm14 }
 0x9cd   : > { %v13562_v41 = vpop.eup %10591  ;;  %v13566_v19 = vadd.f32 1.1920929e-07, %v3397_v55  ;;  %v3070_v17 = vpack.c.bf16 %v3006_v61, %v3006_v61  ;;  %v5500_v25 = vmul.f32 1.442695, %v15611_v59  ;;  %v15612_v61 = vld [vmem:[#allocation31_spill] sm:$0xff] }
 0x9ce   : > { %v2803_v35 = vmul.f32 %v13520_v23, %v2802_v53  ;;  %v4065_v26 = vmul.f32 %v13562_v41, %v13525_v7  ;;  %v13573_v20 = vpop.eup %10593  ;;  %v5962_v56 = vpack.c.bf16 %v15612_v61, %v15612_v61  ;;  %v2861_v61 = vmul.f32 0.5, %v2860_v46 }
 0x9cf   : > { %15609 = vst [vmem:[#allocation61_spill] sm:$0xff] %v13573_v20  ;;  %10599 = vrsqrt.f32 %v13566_v19  ;;  %9529 = vmatmul.msk.bf16.vlgmr.msra.gmra.mxu0 %vm1920_vm3, %v3070_v17  ;;  %v13599_v59 = vpop.eup %10595  ;;  %vm4071_vm10 = vweird.f32 %v13562_v41  ;;  %vm4080_vm2 = vweird.f32 %v13566_v19 }
 0x9d0   : > { %v2807_v55 = vsel %vm2806_vm6, %v13520_v23, %v2803_v35  ;;  %v4066_v53 = vmul.f32 %v13562_v41, %v4065_v26  ;;  %5644 = vadd.xlane.f32.xlu1 %v5643_v37  ;;  %10601 = vrsqrt.f32 %v13564_v16  ;;  %v2182_v23 = vmul.f32 %v11943_v27, %v13523_v47  ;;  %15613 = vst [vmem:[#allocation60_spill] sm:$0xff] %v13599_v59  ;;  %vm4072_vm13 = vmor %vm4070_vm12, %vm4071_vm10 }
 0x9d1   : > { %v2943_v4 = vmul.f32 %v2807_v55, %v13045_v58  ;;  %5647 = vadd.xlane.f32.xlu0 %v5646_v9  ;;  %v5664_v26 = vsel %vm5576_vm11, %v13573_v20, 0.0  ;;  %10603 = vpow2.f32 %v5502_v5  ;;  %v15614_v58 = vld [vmem:[#allocation70_spill] sm:$0xff]  ;;  %v2837_v5 = vsel %vm13604_vm9, %v13492_v18, %v2833_v51 }
 0x9d2   : > { %v4067_v37 = vmul.f32 0.5, %v4066_v53  ;;  %v2103_v35 = vpop.xlane.xlu2 %2102  ;;  %v5512_v9 = vmul.f32 1.442695, %v15614_v58  ;;  %v13611_v53 = vpop.eup %10597  ;;  %10605 = vpow2.f32 %v5500_v25  ;;  %v5661_v15 = vsel %vm5576_vm11, %v13599_v59, 0.0 }
 0x9d3   : > { %v3007_v45 = vmul.f32 0.25, %v2943_v4  ;;  %v2180_v47 = vmul.f32 %v11943_v27, %v2103_v35  ;;  %v13609_v55 = vpop.f32.mrf.mxu0  ;;  %v13622_v35 = vadd.f32 1.1920929e-07, %v2182_v23  ;;  %v4095_v25 = vmul.f32 %v13611_v53, %v13549_v30 }
 0x9d4   : > { %v4068_v20 = vsub.f32 1.5, %v4067_v37  ;;  %v2946_v37 = vmul.f32 %v2837_v5, %v13136_v2  ;;  %v2862_v7 = vsub.f32 1.5, %v2861_v61  ;;  %v13641_v2 = vpop.xlane.xlu1 %5584  ;;  %vm4101_vm8 = vweird.f32 %v13611_v53 }
 0x9d5   : > { %v13617_v58 = vpop.eup %10599  ;;  %v3071_v4 = vpack.c.bf16 %v3007_v45, %v3007_v45  ;;  %v13620_v28 = vadd.f32 1.1920929e-07, %v2180_v47  ;;  %v15618_v47 = vpack.c.bf16 %v15608_v40, %v15608_v40  ;;  %vm4100_vm10 = vweird.f32 %v13549_v30 }
 0x9d6   : > { %v4075_v46 = vmul.f32 %v13617_v58, %v13566_v19  ;;  %v4069_v18 = vmul.f32 %v13562_v41, %v4068_v20  ;;  %v13628_v51 = vpop.eup %10601  ;;  %vm4081_vm15 = vweird.f32 %v13617_v58 }
 0x9d7   : > { %10607 = vrsqrt.f32 %v13620_v28  ;;  %9530 = vmatmul.msk.bf16.vlgmr.msrb.gmra.mxu1 %vm1920_vm3, %v3071_v4  ;;  %v13639_v17 = vpop.eup %10603  ;;  %v6030_v5 = vsel %vm6028_vm5, %v15618_v47, 0  ;;  %v2839_v61 = vmul.f32 %v13628_v51, %v13564_v16  ;;  %v4096_v4 = vmul.f32 %v13611_v53, %v4095_v25  ;;  %v15620_v47 = vld [vmem:[#allocation37_spill] sm:$0xff]  ;;  %vm4082_vm4 = vmor %vm4080_vm2, %vm4081_vm15 }
 0x9d8   : > { %10609 = vpow2.f32 %v5512_v9  ;;  %v4076_v23 = vmul.f32 %v13617_v58, %v4075_v46  ;;  %5662 = vadd.xlane.f32.xlu1 %v5661_v15  ;;  %v4073_v20 = vsel %vm4072_vm13, %v13562_v41, %v4069_v18  ;;  %15617 = vst [vmem:[#allocation63_spill] sm:$0xff] %v13639_v17  ;;  %v13649_v9 = vsel %vm6028_vm5, %v5962_v56, 0  ;;  %v13660_v15 = vpop.xlane.xlu0 %5593  ;;  %vm13756_vm13 = vmor %vm4100_vm10, %vm4101_vm8 }
 0x9d9   : > { %10611 = vpow2.f32 %v5514_v3  ;;  %5665 = vadd.xlane.f32.xlu0 %v5664_v26  ;;  %v4164_v45 = vmul.f32 %v4073_v20, %v13093_v12  ;;  %v13655_v26 = vpop.eup %10605  ;;  %v3010_v12 = vmul.f32 0.25, %v2946_v37  ;;  %v2863_v56 = vmul.f32 %v13540_v39, %v2862_v7 }
 0x9da   : > { %10613 = vrsqrt.f32 %v13622_v35  ;;  %v4077_v3 = vmul.f32 0.5, %v4076_v23  ;;  %v3323_v41 = vpop.xlane.xlu2 %3322  ;;  %15619 = vst [vmem:[#allocation57_spill] sm:$0xff] %v13655_v26  ;;  %v4097_v23 = vmul.f32 0.5, %v4096_v4  ;;  %vm2854_vm7 = vweird.f32 %v13620_v28 }
 0x9db   : > { %v3395_v40 = vmul.f32 %v3323_v41, %v11943_v27  ;;  %v5123_v46 = vpop.f32.mrf.mxu0  ;;  %v4228_v18 = vpack.c.bf16 %v4164_v45, %v4164_v45  ;;  %v5658_v45 = vsel %vm5576_vm11, %v13639_v17, 0.0  ;;  %v5510_v17 = vmul.f32 1.442695, %v12849_v62  ;;  %v15623_v62 = vld [vmem:[#allocation36_spill] sm:$0xff] }
 0x9dc   : > { %v4078_v20 = vsub.f32 1.5, %v4077_v3  ;;  %v2840_v3 = vmul.f32 %v13628_v51, %v2839_v61  ;;  %v5655_v61 = vsel %vm5576_vm11, %v13655_v26, 0.0  ;;  %v5965_v26 = vpack.c.bf16 %v15623_v62, %v15623_v62 }
 0x9dd   : > { %v13665_v59 = vpop.eup %10607  ;;  %v13668_v37 = vadd.f32 1.1920929e-07, %v3395_v40  ;;  %v5376_v25 = vsel %vm1920_vm3, %v4228_v18, 0  ;;  %v3074_v18 = vpack.c.bf16 %v3010_v12, %v3010_v12  ;;  %vm2845_vm12 = vweird.f32 %v13628_v51 }
 0x9de   : > { %v13673_v7 = vpop.eup %10609  ;;  %v2849_v0 = vmul.f32 %v13665_v59, %v13620_v28  ;;  %5385 = vmatpush.bf16.xpose.msra.mxu2 %v5376_v25  ;;  %v4079_v40 = vmul.f32 %v13617_v58, %v4078_v20  ;;  %v2867_v20 = vsel %vm13678_vm1, %v13540_v39, %v2863_v56  ;;  %v2841_v41 = vmul.f32 0.5, %v2840_v3 }
 0x9df   : > { %v13686_v46 = vpop.eup %10611  ;;  %10615 = vrsqrt.f32 %v13668_v37  ;;  %9533 = vmatmul.msk.bf16.vlgmr.msrb.gmra.mxu0 %vm1920_vm3, %v3074_v18  ;;  %vm2855_vm6 = vweird.f32 %v13665_v59  ;;  %vm2844_vm15 = vweird.f32 %v13564_v16  ;;  %vm4060_vm1 = vweird.f32 %v13668_v37 }
 0x9e0   : > { %v13693_v19 = vpop.eup %10613  ;;  %v2850_v12 = vmul.f32 %v13665_v59, %v2849_v0  ;;  %5656 = vadd.xlane.f32.xlu1 %v5655_v61  ;;  %10152 = vrot.lane.b32.xlu2 %v15580_v43, %s11318_s16  ;;  %v4083_v4 = vsel %vm4082_vm4, %v13617_v58, %v4079_v40  ;;  %v5673_v0 = vsel %vm5576_vm11, %v13673_v7, 0.0  ;;  %v5676_v61 = vsel %vm5576_vm11, %v13686_v46, 0.0  ;;  %v13713_v40 = vpop.xlane.xlu1 %5605  ;;  %vm2856_vm9 = vmor %vm2854_vm7, %vm2855_vm6 }
 0x9e1   : > { %5659 = vadd.xlane.f32.xlu0 %v5658_v45  ;;  %v4165_v25 = vmul.f32 %v4083_v4, %v13048_v60  ;;  %v2949_v58 = vmul.f32 %v2867_v20, %v13099_v21  ;;  %10617 = vpow2.f32 %v5510_v17  ;;  %v2869_v3 = vmul.f32 %v13693_v19, %v13622_v35  ;;  %v13725_v20 = vpop.xlane.xlu0 %5602  ;;  %vm13778_vm0 = vmor %vm2844_vm15, %vm2845_vm12 }
 0x9e2   : > { %v2851_v39 = vmul.f32 0.5, %v2850_v12  ;;  %v3332_v56 = vpop.xlane.xlu2 %3331  ;;  %v5522_v4 = vmul.f32 1.442695, %v12887_v33  ;;  %vm2875_vm4 = vweird.f32 %v13693_v19  ;;  %vm2874_vm7 = vweird.f32 %v13622_v35 }
 0x9e3   : > { %v3398_v45 = vmul.f32 %v3332_v56, %v11943_v27  ;;  %v4229_v60 = vpack.c.bf16 %v4165_v25, %v4165_v25  ;;  %vm13832_vm8 = vmor %vm2874_vm7, %vm2875_vm4  ;;  %vm7501_vm15 = vcmask 654336  }
 0x9e4   : > { %v2852_v18 = vsub.f32 1.5, %v2851_v39  ;;  %v3013_v39 = vmul.f32 0.25, %v2949_v58  ;;  %v15624_v58 = vld [vmem:[#allocation42_spill] sm:$0xff] }
 0x9e5   : > { %v13719_v12 = vpop.eup %10615  ;;  %v13722_v62 = vadd.f32 1.1920929e-07, %v3398_v45  ;;  %v5395_v21 = vsel %vm1920_vm3, %v4229_v60, 0 }
 0x9e6   : > { %6039 = vmatpush.bf16.msrb.mxu2 %v6030_v5  ;;  %v5508_v5 = vmul.f32 1.442695, %v12874_v38  ;;  %v4098_v38 = vsub.f32 1.5, %v4097_v23  ;;  %v2842_v23 = vsub.f32 1.5, %v2841_v41  ;;  %v2853_v17 = vmul.f32 %v13665_v59, %v2852_v18  ;;  %5404 = vmatpush.bf16.xpose.msra.mxu3 %v5395_v21 }
 0x9e7   : > { %v4055_v25 = vmul.f32 %v13719_v12, %v13668_v37  ;;  %v2870_v41 = vmul.f32 %v13693_v19, %v2869_v3  ;;  %v13750_v60 = vpop.eup %10617  ;;  %v3077_v3 = vpack.c.bf16 %v3013_v39, %v3013_v39  ;;  %vm4061_vm14 = vweird.f32 %v13719_v12 }
 0x9e8   : > { %10619 = vpow2.f32 %v5508_v5  ;;  %v4099_v33 = vmul.f32 %v13611_v53, %v4098_v38  ;;  %v5520_v5 = vmul.f32 1.442695, %v12924_v42  ;;  %v2857_v28 = vsel %vm2856_vm9, %v13665_v59, %v2853_v17  ;;  %5674 = vadd.xlane.f32.xlu1 %v5673_v0  ;;  %10157 = vrot.lane.b32.xlu2 %v15624_v58, %s11317_s6  ;;  %vm13792_vm2 = vmor %vm4060_vm1, %vm4061_vm14 }
 0x9e9   : > { %10621 = vrsqrt.f32 %v13722_v62  ;;  %v4056_v56 = vmul.f32 %v13719_v12, %v4055_v25  ;;  %v2948_v45 = vmul.f32 %v2857_v28, %v13143_v10  ;;  %5677 = vadd.xlane.f32.xlu0 %v5676_v61  ;;  %v15625_v42 = vpack.c.bf16 %v15620_v47, %v15620_v47  ;;  %v13771_v25 = vpop.xlane.xlu1 %5599 }
 0x9ea   : > { %v6106_v59 = vsel %vm6028_vm5, %v5965_v26, 0  ;;  %10623 = vpow2.f32 %v5522_v4  ;;  %v2843_v0 = vmul.f32 %v13628_v51, %v2842_v23  ;;  %v2112_v61 = vpop.xlane.xlu2 %2111  ;;  %v4103_v4 = vsel %vm13756_vm13, %v13611_v53, %v4099_v33 }
 0x9eb   : > { %v6125_v38 = vsel %vm6028_vm5, %v15625_v42, 0  ;;  %v4057_v30 = vmul.f32 0.5, %v4056_v56  ;;  %v3012_v18 = vmul.f32 0.25, %v2948_v45  ;;  %v2183_v26 = vmul.f32 %v11943_v27, %v2112_v61 }
 0x9ec   : > { %10625 = vpow2.f32 %v5520_v5  ;;  %v2871_v21 = vmul.f32 0.5, %v2870_v41  ;;  %v4167_v53 = vmul.f32 %v4103_v4, %v13131_v34  ;;  %v2847_v33 = vsel %vm13778_vm0, %v13628_v51, %v2843_v0  ;;  %v13805_v51 = vpop.xlane.xlu0 %5596 }
 0x9ed   : > { %v4058_v23 = vsub.f32 1.5, %v4057_v30  ;;  %10627 = vrcp.f32 %v13577_v50  ;;  %v3076_v39 = vpack.c.bf16 %v3012_v18, %v3012_v18  ;;  %v13773_v28 = vadd.f32 1.1920929e-07, %v2183_v26  ;;  %9536 = vmatmul.msk.bf16.vlgmr.msra.gmra.mxu3 %vm1920_vm3, %v3077_v3 }
 0x9ee   : > { %6058 = vmatpush.bf16.msrb.mxu3 %v13649_v9  ;;  %v13743_v9 = vpop.f32.mrf.mxu2  ;;  %v13760_v47 = vpop.eup %10619  ;;  %v5670_v34 = vsel %vm5576_vm11, %v13750_v60, 0.0  ;;  %v2872_v56 = vsub.f32 1.5, %v2871_v21  ;;  %v4231_v3 = vpack.c.bf16 %v4167_v53, %v4167_v53  ;;  %vm4090_vm9 = vweird.f32 %v13722_v62 }
 0x9ef   : > { %v13767_v17 = vpop.eup %10621  ;;  %v4059_v50 = vmul.f32 %v13719_v12, %v4058_v23  ;;  %10629 = vrsqrt.f32 %v13773_v28  ;;  %9535 = vmatmul.msk.bf16.vlgmr.msra.gmra.mxu2 %vm1920_vm3, %v3076_v39  ;;  %v5667_v37 = vsel %vm5576_vm11, %v13760_v47, 0.0  ;;  %v5528_v5 = vmul.f32 1.442695, %v13008_v49 }
 0x9f0   : > { %v4085_v16 = vmul.f32 %v13767_v17, %v13722_v62  ;;  %v13802_v41 = vpop.eup %10623  ;;  %10631 = vrcp.f32 %v13595_v44  ;;  %6115 = vmatpush.bf16.msra.mxu2 %v6106_v59  ;;  %5668 = vadd.xlane.f32.xlu1 %v5667_v37  ;;  %v2873_v4 = vmul.f32 %v13693_v19, %v2872_v56  ;;  %vm4091_vm6 = vweird.f32 %v13767_v17 }
 0x9f1   : > { %v4063_v42 = vsel %vm13792_vm2, %v13719_v12, %v4059_v50  ;;  %5671 = vadd.xlane.f32.xlu0 %v5670_v34  ;;  %10162 = vrot.lane.b32.xlu2 %v15574_v36, %s11318_s16  ;;  %v13814_v10 = vpop.f32.mrf.mxu3  ;;  %v5518_v12 = vmul.f32 1.442695, %v12966_v22  ;;  %v5688_v22 = vsel %vm5576_vm11, %v13802_v41, 0.0  ;;  %vm4092_vm10 = vmor %vm4090_vm9, %vm4091_vm6  ;;  %vm2884_vm13 = vweird.f32 %v13773_v28 }
 0x9f2   : > { %6134 = vmatpush.bf16.msra.mxu3 %v6125_v38  ;;  %v4086_v45 = vmul.f32 %v13767_v17, %v4085_v16  ;;  %v5516_v38 = vmul.f32 1.442695, %v12896_v48  ;;  %v4163_v44 = vmul.f32 %v4063_v42, %v13112_v52  ;;  %v13817_v30 = vpop.eup %10625  ;;  %v13819_v59 = vpop.xlane.xlu2 %5590  ;;  %v2947_v48 = vmul.f32 %v2847_v33, %v13102_v31 }
 0x9f3   : > { %v10628_v18 = vpop.eup %10627  ;;  %v5433_v16 = vsel %vm1920_vm3, %v4231_v3, 0  ;;  %v13842_v33 = vpop.xlane.xlu1 %5617  ;;  %v5685_v62 = vsel %vm5576_vm11, %v13817_v30, 0.0  ;;  %v2877_v37 = vsel %vm13832_vm8, %v13693_v19, %v2873_v4  ;;  %v15635_v19 = vld [vmem:[#allocation72_spill] sm:$0xff]  ;;  %vm7492_vm0 = vcmask 523264  }
 0x9f4   : > { %v4087_v61 = vmul.f32 0.5, %v4086_v45  ;;  %v4227_v26 = vpack.c.bf16 %v4163_v44, %v4163_v44  ;;  %10633 = vpow2.f32 %v5516_v38  ;;  %v3011_v50 = vmul.f32 0.25, %v2947_v48  ;;  %v15634_v38 = vld [vmem:[#allocation34_spill] sm:$0xff] }
 0x9f5   : > { %v13826_v52 = vpop.eup %10629  ;;  %10635 = vpow2.f32 %v5518_v12  ;;  %v5834_v53 = vmul.f32 %v10628_v18, %v13167_v32  ;;  %v5530_v44 = vmul.f32 1.442695, %v15635_v19  ;;  %vm7510_vm1 = vcmask 785408  }
 0x9f6   : > { %v5237_v0 = vpop.f32.mrf.mxu2  ;;  %v4088_v21 = vsub.f32 1.5, %v4087_v61  ;;  %v5357_v23 = vsel %vm1920_vm3, %v4227_v26, 0  ;;  %v10632_v39 = vpop.eup %10631  ;;  %v2879_v27 = vmul.f32 %v13826_v52, %v13773_v28  ;;  %v3075_v48 = vpack.c.bf16 %v3011_v50, %v3011_v50  ;;  %v15637_v26 = vld [vmem:[#allocation45_spill] sm:$0xff] }
 0x9f7   : > { %5366 = vmatpush.bf16.xpose.msra.mxu1 %v5357_v23  ;;  %v5833_v56 = vmul.f32 %v10632_v39, %v13164_v6  ;;  %v5964_v0 = vpack.c.bf16 %v15634_v38, %v15634_v38  ;;  %v13863_v61 = vpop.xlane.xlu0 %5614  ;;  %v15636_v6 = vld [vmem:[#allocation33_spill] sm:$0xff]  ;;  %v2950_v4 = vmul.f32 %v2877_v37, %v15637_v26  ;;  %10637 = vpow2.f32 %v5528_v5 }
 0x9f8   : > { %v4089_v35 = vmul.f32 %v13767_v17, %v4088_v21  ;;  %v2880_v34 = vmul.f32 %v13826_v52, %v2879_v27  ;;  %5686 = vadd.xlane.f32.xlu1 %v5685_v62  ;;  %v5963_v18 = vpack.c.bf16 %v15636_v6, %v15636_v6  ;;  %v5898_v21 = vpack.c.bf16 %v5834_v53, %v5834_v53  ;;  %v15640_v62 = vld [vmem:[#allocation39_spill] sm:$0xff]  ;;  %v15641_v5 = vld [vmem:[#allocation73_spill] sm:$0xff] }
 0x9f9   : > { %5689 = vadd.xlane.f32.xlu0 %v5688_v22  ;;  %10167 = vrot.lane.b32.xlu2 %v15576_v24, %s11318_s16  ;;  %v13857_v45 = vpop.f32.mrf.mxu0  ;;  %v5256_v42 = vpop.f32.mrf.mxu3  ;;  %vm2885_vm12 = vweird.f32 %v13826_v52  ;;  %v5897_v39 = vpack.c.bf16 %v5833_v56, %v5833_v56  ;;  %10639 = vrcp.f32 %v13660_v15  ;;  %v6087_v27 = vsel %vm6028_vm5, %v5964_v0, 0  ;;  %v15642_v56 = vld [vmem:[#allocation74_spill] sm:$0xff]  ;;  %v15644_v15 = vld [vmem:[#allocation76_spill] sm:$0xff] }
 0x9fa   : > { %v4093_v32 = vsel %vm4092_vm10, %v13767_v17, %v4089_v35  ;;  %v2881_v3 = vmul.f32 0.5, %v2880_v34  ;;  %v13865_v17 = vpop.xlane.xlu2 %5587  ;;  %v13869_v12 = vpop.eup %10633  ;;  %v6068_v35 = vsel %vm6028_vm5, %v5963_v18, 0  ;;  %10641 = vpow2.f32 %v5530_v44  ;;  %vm13885_vm14 = vmor %vm2884_vm13, %vm2885_vm12 }
 0x9fb   : > { %v4166_v49 = vmul.f32 %v4093_v32, %v13341_v11  ;;  %v13873_v22 = vpop.eup %10635  ;;  %v3014_v50 = vmul.f32 0.25, %v2950_v4  ;;  %v5679_v53 = vsel %vm5576_vm11, %v13869_v12, 0.0  ;;  %v5967_v28 = vpack.c.bf16 %v15640_v62, %v15640_v62 }
 0x9fc   : > { %v2882_v23 = vsub.f32 1.5, %v2881_v3  ;;  %v5524_v37 = vmul.f32 1.442695, %v15641_v5  ;;  %10643 = vrcp.f32 %v13819_v59  ;;  %v5682_v32 = vsel %vm5576_vm11, %v13873_v22, 0.0 }
 0x9fd   : > { %v4230_v11 = vpack.c.bf16 %v4166_v49, %v4166_v49  ;;  %9540 = vmatmul.msk.bf16.vlgmr.msrb.gmra.mxu3 %vm5576_vm11, %v5898_v21  ;;  %v5526_v42 = vmul.f32 1.442695, %v15642_v56  ;;  %v13902_v49 = vpop.xlane.xlu1 %5608  ;;  %v13906_v0 = vpop.eup %10637  ;;  %v3078_v3 = vpack.c.bf16 %v3014_v50, %v3014_v50  ;;  %vm7519_vm2 = vcmask 916480  }
 0x9fe   : > { %9534 = vmatmul.msk.bf16.vlgmr.msra.gmra.mxu1 %vm1920_vm3, %v3075_v48  ;;  %10645 = vpow2.f32 %v5524_v37  ;;  %v6144_v48 = vsel %vm6028_vm5, %v5967_v28, 0  ;;  %v15645_v28 = vld [vmem:[#allocation40_spill] sm:$0xff] }
 0x9ff   : > { %5442 = vmatpush.bf16.xpose.msrb.mxu1 %v5433_v16  ;;  %v5414_v31 = vsel %vm1920_vm3, %v4230_v11, 0  ;;  %v2883_v16 = vmul.f32 %v13826_v52, %v2882_v23  ;;  %9539 = vmatmul.msk.bf16.vlgmr.msrb.gmra.mxu2 %vm5576_vm11, %v5897_v39  ;;  %v10143_v19 = vpop.permute.xlu0 %10142  ;;  %10647 = vpow2.f32 %v5526_v42  ;;  %v15643_v39 = vld [vmem:[#allocation46_spill] sm:$0xff]  ;;  %v15646_v42 = vld [vmem:[#allocation75_spill] sm:$0xff] }
 0xa00   : > { %5423 = vmatpush.bf16.xpose.msra.mxu0 %v5414_v31  ;;  %5680 = vadd.xlane.f32.xlu1 %v5679_v53  ;;  %v10145_v4 = vunpack.i.h.bf16 %v10143_v19  ;;  %10649 = vrcp.f32 %v13641_v2  ;;  %v5536_v53 = vmul.f32 1.442695, %v15644_v15  ;;  %v5968_v2 = vpack.c.bf16 %v15645_v28, %v15645_v28 }
 0xa01   : > { %v2887_v34 = vsel %vm13885_vm14, %v13826_v52, %v2883_v16  ;;  %5683 = vadd.xlane.f32.xlu0 %v5682_v32  ;;  %10172 = vrot.lane.b32.xlu2 %v15580_v43, %s11320_s20  ;;  %v5199_v38 = vpop.f32.mrf.mxu0  ;;  %v10640_v52 = vpop.eup %10639 }
 0xa02   : > { %v10138_v44 = vpop.permute.xlu2 %10137  ;;  %v2951_v59 = vmul.f32 %v2887_v34, %v13377_v13  ;;  %v13910_v26 = vpop.eup %10641  ;;  %v5838_v31 = vmul.f32 %v10640_v52, %v15643_v39  ;;  %v5697_v13 = vsel %vm5576_vm11, %v13906_v0, 0.0  ;;  %v5974_v5 = vpack.c.bf16 %v10145_v4, %v10145_v4 }
 0xa03   : > { %v10140_v6 = vunpack.i.h.bf16 %v10138_v44  ;;  %v10139_v18 = vunpack.i.l.bf16 %v10138_v44  ;;  %v10644_v23 = vpop.eup %10643  ;;  %v5700_v62 = vsel %vm5576_vm11, %v13910_v26, 0.0  ;;  %v5538_v38 = vmul.f32 1.442695, %v15646_v42 }
 0xa04   : > { %v3015_v16 = vmul.f32 0.25, %v2951_v59  ;;  %v5837_v37 = vmul.f32 %v10644_v23, %v13394_v1  ;;  %v13927_v34 = vpop.eup %10645  ;;  %10651 = vpow2.f32 %v5536_v53  ;;  %v6163_v59 = vsel %vm6028_vm5, %v5968_v2, 0  ;;  %v15650_v2 = vld [vmem:[#allocation52_spill] sm:$0xff] }
 0xa05   : > { %v5970_v21 = vpack.c.bf16 %v10140_v6, %v10140_v6  ;;  %v5969_v11 = vpack.c.bf16 %v10139_v18, %v10139_v18  ;;  %v10148_v32 = vpop.permute.xlu1 %10147  ;;  %v13929_v56 = vpop.eup %10647  ;;  %10653 = vrcp.f32 %v13713_v40  ;;  %v6277_v18 = vsel %vm6028_vm5, %v5974_v5, 0 }
 0xa06   : > { %v3079_v52 = vpack.c.bf16 %v3015_v16, %v3015_v16  ;;  %v5901_v1 = vpack.c.bf16 %v5837_v37, %v5837_v37  ;;  %v10149_v6 = vunpack.i.l.bf16 %v10148_v32  ;;  %10655 = vrcp.f32 %v13865_v17  ;;  %v15648_v17 = vld [vmem:[#allocation53_spill] sm:$0xff] }
 0xa07   : > { %6096 = vmatpush.bf16.msra.mxu1 %v6087_v27  ;;  %9537 = vmatmul.msk.bf16.vlgmr.msra.gmra.mxu0 %vm1920_vm3, %v3078_v3  ;;  %v10144_v27 = vunpack.i.l.bf16 %v10143_v19  ;;  %v6201_v50 = vsel %vm6028_vm5, %v5970_v21, 0  ;;  %v5902_v19 = vpack.c.bf16 %v5838_v31, %v5838_v31  ;;  %v10650_v3 = vpop.eup %10649  ;;  %10657 = vpow2.f32 %v5538_v38  ;;  %v15651_v38 = vld [vmem:[#allocation78_spill] sm:$0xff] }
 0xa08   : > { %6077 = vmatpush.bf16.msrb.mxu0 %v6068_v35  ;;  %v6182_v35 = vsel %vm6028_vm5, %v5969_v11, 0  ;;  %5698 = vadd.xlane.f32.xlu1 %v5697_v13  ;;  %v5691_v40 = vsel %vm5576_vm11, %v13927_v34, 0.0  ;;  %10659 = vrcp.f32 %v13725_v20  ;;  %v5694_v11 = vsel %vm5576_vm11, %v13929_v56, 0.0 }
 0xa09   : > { %6191 = vmatpush.bf16.msrb.mxu2 %v6182_v35  ;;  %5701 = vadd.xlane.f32.xlu0 %v5700_v62  ;;  %v5973_v44 = vpack.c.bf16 %v10144_v27, %v10144_v27  ;;  %v5532_v23 = vmul.f32 1.442695, %v15648_v17  ;;  %v5971_v39 = vpack.c.bf16 %v10149_v6, %v10149_v6  ;;  %v15649_v27 = vld [vmem:[#allocation77_spill] sm:$0xff]  ;;  %v10150_v53 = vunpack.i.h.bf16 %v10148_v32 }
 0xa0a   : > { %10177 = vrot.lane.b32.xlu2 %v15624_v58, %s11318_s16  ;;  %6210 = vmatpush.bf16.msrb.mxu3 %v6201_v50  ;;  %v13949_v31 = vpop.eup %10651  ;;  %v5534_v16 = vmul.f32 1.442695, %v15649_v27  ;;  %v5540_v17 = vmul.f32 1.442695, %v13609_v55 }
 0xa0b   : > { %v6258_v21 = vsel %vm6028_vm5, %v5973_v44, 0  ;;  %v10654_v13 = vpop.eup %10653  ;;  %10661 = vpow2.f32 %v5532_v23  ;;  %v6220_v62 = vsel %vm6028_vm5, %v5971_v39, 0  ;;  %v5709_v42 = vsel %vm5576_vm11, %v13949_v31, 0.0  ;;  %v15652_v44 = vld [vmem:[#allocation54_spill] sm:$0xff] }
 0xa0c   : > { %6153 = vmatpush.bf16.msra.mxu0 %v6144_v48  ;;  %v15647_v48 = vld [vmem:[#allocation49_spill] sm:$0xff]  ;;  %v10656_v50 = vpop.eup %10655  ;;  %10663 = vrcp.f32 %v13805_v51  ;;  %v5842_v5 = vmul.f32 %v10654_v13, %v15650_v2  ;;  %v5542_v39 = vmul.f32 1.442695, %v13427_v57 }
 0xa0d   : > { %9544 = vmatmul.msk.bf16.vlgmr.msra.gmra.mxu3 %vm5576_vm11, %v5902_v19  ;;  %v5835_v4 = vmul.f32 %v10650_v3, %v15647_v48  ;;  %v13954_v15 = vpop.eup %10657  ;;  %10665 = vpow2.f32 %v5534_v16  ;;  %v5836_v37 = vmul.f32 %v10656_v50, %v13402_v54  ;;  %v5544_v19 = vmul.f32 1.442695, %v15651_v38  ;;  %v15654_v50 = vld [vmem:[#allocation79_spill] sm:$0xff] }
 0xa0e   : > { %9538 = vmatmul.msk.bf16.vlgmr.msrb.gmra.mxu1 %vm1920_vm3, %v3079_v52  ;;  %6286 = vmatpush.bf16.msra.mxu3 %v6277_v18  ;;  %v10660_v28 = vpop.eup %10659  ;;  %v5712_v32 = vsel %vm5576_vm11, %v13954_v15, 0.0  ;;  %v5972_v3 = vpack.c.bf16 %v10150_v53, %v10150_v53  ;;  %v5546_v54 = vmul.f32 1.442695, %v13410_v29  ;;  %v15653_v29 = vld [vmem:[#allocation55_spill] sm:$0xff] }
 0xa0f   : > { %6172 = vmatpush.bf16.msrb.mxu1 %v6163_v59  ;;  %9543 = vmatmul.msk.bf16.vlgmr.msra.gmra.mxu2 %vm5576_vm11, %v5901_v1  ;;  %v5899_v35 = vpack.c.bf16 %v5835_v4, %v5835_v4  ;;  %v5841_v52 = vmul.f32 %v10660_v28, %v15652_v44  ;;  %v5906_v59 = vpack.c.bf16 %v5842_v5, %v5842_v5  ;;  %10667 = vpow2.f32 %v5544_v19 }
 0xa10   : > { %6267 = vmatpush.bf16.msra.mxu2 %v6258_v21  ;;  %5692 = vadd.xlane.f32.xlu1 %v5691_v40  ;;  %v5900_v1 = vpack.c.bf16 %v5836_v37, %v5836_v37  ;;  %10669 = vrcp.f32 %v13771_v25  ;;  %v6239_v21 = vsel %vm6028_vm5, %v5972_v3, 0  ;;  %v5548_v3 = vmul.f32 1.442695, %v13857_v45 }
 0xa11   : > { %5695 = vadd.xlane.f32.xlu0 %v5694_v11  ;;  %v13969_v51 = vpop.eup %10661  ;;  %v5905_v4 = vpack.c.bf16 %v5841_v52, %v5841_v52  ;;  %10671 = vrcp.f32 %v13842_v33 }
 0xa12   : > { %10182 = vrot.lane.b32.xlu2 %v15574_v36, %s11320_s20  ;;  %v10664_v6 = vpop.eup %10663  ;;  %10673 = vpow2.f32 %v5546_v54  ;;  %v5703_v11 = vsel %vm5576_vm11, %v13969_v51, 0.0 }
 0xa13   : > { %v13974_v48 = vpop.eup %10665  ;;  %v5839_v40 = vmul.f32 %v10664_v6, %v15653_v29  ;;  %10675 = vrcp.f32 %v13863_v61 }
 0xa14   : > { %v13952_v20 = vpop.xlane.xlu0 %5626  ;;  %v5706_v25 = vsel %vm5576_vm11, %v13974_v48, 0.0  ;;  %10677 = vpow2.f32 %v5540_v17 }
 0xa15   : > { %v13991_v33 = vpop.eup %10667  ;;  %v5903_v13 = vpack.c.bf16 %v5839_v40, %v5839_v40  ;;  %10679 = vrcp.f32 %v13902_v49  ;;  %v5552_v49 = vmul.f32 1.442695, %v13743_v9 }
 0xa16   : > { %v10670_v23 = vpop.eup %10669  ;;  %10681 = vpow2.f32 %v5542_v39  ;;  %v5721_v57 = vsel %vm5576_vm11, %v13991_v33, 0.0 }
 0xa17   : > { %9541 = vmatmul.msk.bf16.vlgmr.msrb.gmra.mxu0 %vm5576_vm11, %v5899_v35  ;;  %v10672_v16 = vpop.eup %10671  ;;  %v5840_v53 = vmul.f32 %v10670_v23, %v15654_v50  ;;  %10683 = vpow2.f32 %v5552_v49 }
 0xa18   : > { %6229 = vmatpush.bf16.msrb.mxu0 %v6220_v62  ;;  %5710 = vadd.xlane.f32.xlu1 %v5709_v42  ;;  %v13996_v61 = vpop.eup %10673  ;;  %v5846_v62 = vmul.f32 %v10672_v16, %v13283_v14  ;;  %v5554_v14 = vmul.f32 1.442695, %v13814_v10 }
 0xa19   : > { %5713 = vadd.xlane.f32.xlu0 %v5712_v32  ;;  %v10676_v55 = vpop.eup %10675  ;;  %v5724_v28 = vsel %vm5576_vm11, %v13996_v61, 0.0  ;;  %v5904_v37 = vpack.c.bf16 %v5840_v53, %v5840_v53 }
 0xa1a   : > { %10187 = vrot.lane.b32.xlu2 %v15576_v24, %s11320_s20  ;;  %v5845_v2 = vmul.f32 %v10676_v55, %v13294_v8  ;;  %v14010_v5 = vpop.eup %10677  ;;  %v5910_v42 = vpack.c.bf16 %v5846_v62, %v5846_v62  ;;  %10685 = vpow2.f32 %v5554_v14 }
 0xa1b   : > { %v10680_v19 = vpop.eup %10679  ;;  %v5715_v10 = vsel %vm5576_vm11, %v14010_v5, 0.0  ;;  %10687 = vpow2.f32 %v5548_v3 }
 0xa1c   : > { %v13972_v18 = vpop.xlane.xlu0 %5620  ;;  %v14017_v44 = vpop.eup %10681  ;;  %v5909_v8 = vpack.c.bf16 %v5845_v2, %v5845_v2  ;;  %v5843_v9 = vmul.f32 %v10680_v19, %v13348_v63 }
 0xa1d   : > { %9548 = vmatmul.msk.bf16.vlgmr.msrb.gmra.mxu3 %vm5576_vm11, %v5906_v59  ;;  %v5718_v52 = vsel %vm5576_vm11, %v14017_v44, 0.0  ;;  %v14032_v63 = vpop.eup %10683 }
 0xa1e   : > { %9542 = vmatmul.msk.bf16.vlgmr.msra.gmra.mxu1 %vm5576_vm11, %v5900_v1  ;;  %v5907_v54 = vpack.c.bf16 %v5843_v9, %v5843_v9  ;;  %v5733_v29 = vsel %vm5576_vm11, %v14032_v63, 0.0 }
 0xa1f   : > { %6248 = vmatpush.bf16.msra.mxu1 %v6239_v21  ;;  %9547 = vmatmul.msk.bf16.vlgmr.msrb.gmra.mxu2 %vm5576_vm11, %v5905_v4 }
 0xa20   : > { %5704 = vadd.xlane.f32.xlu1 %v5703_v11  ;;  %v14036_v4 = vpop.eup %10685 }
 0xa21   : > { %5707 = vadd.xlane.f32.xlu0 %v5706_v25  ;;  %v5736_v45 = vsel %vm5576_vm11, %v14036_v4, 0.0  ;;  %v14047_v25 = vpop.eup %10687 }
 0xa22   : > { %10192 = vrot.lane.b32.xlu2 %v15580_v43, %s11321_s29  ;;  %v5727_v16 = vsel %vm5576_vm11, %v14047_v25, 0.0 }
 0xa23   : > { %v5630_v27 = vpop.xlane.xlu1 %5629 }
 0xa24   : > { %v13994_v35 = vpop.xlane.xlu0 %5623 }
 0xa27   : > { %9545 = vmatmul.msk.bf16.vlgmr.msra.gmra.mxu0 %vm5576_vm11, %v5903_v13 }
 0xa28   : > { %5722 = vadd.xlane.f32.xlu1 %v5721_v57 }
 0xa29   : > { %5725 = vadd.xlane.f32.xlu0 %v5724_v28 }
 0xa2a   : > { %10197 = vrot.lane.b32.xlu2 %v15624_v58, %s11320_s20 }
 0xa2b   : > { %v14013_v38 = vpop.xlane.xlu1 %5638 }
 0xa2c   : > { %v14015_v32 = vpop.xlane.xlu0 %5641 }
 0xa2d   : > { %9552 = vmatmul.msk.bf16.vlgmr.msra.gmra.mxu3 %vm5576_vm11, %v5910_v42  ;;  %v15656_v42 = vld [vmem:[#allocation56_spill] sm:$0xff] }
 0xa2e   : > { %9546 = vmatmul.msk.bf16.vlgmr.msrb.gmra.mxu1 %vm5576_vm11, %v5904_v37 }
 0xa2f   : > { %9551 = vmatmul.msk.bf16.vlgmr.msra.gmra.mxu2 %vm5576_vm11, %v5909_v8 }
 0xa30   : > { %5716 = vadd.xlane.f32.xlu1 %v5715_v10  ;;  %v15657_v10 = vld [vmem:[#allocation48_spill] sm:$0xff] }
 0xa31   : > { %5719 = vadd.xlane.f32.xlu0 %v5718_v52 }
 0xa32   : > { %10202 = vrot.lane.b32.xlu2 %v15574_v36, %s11321_s29 }
 0xa33   : > { %v14030_v59 = vpop.xlane.xlu1 %5632 }
 0xa34   : > { %v14034_v1 = vpop.xlane.xlu0 %5635  ;;  %v5216_v6 = vpop.f32.mrf.mxu1 }
 0xa35   : > { %v5550_v21 = vmul.f32 1.442695, %v5216_v6 }
 0xa37   : > { %9549 = vmatmul.msk.bf16.vlgmr.msrb.gmra.mxu0 %vm5576_vm11, %v5907_v54  ;;  %10689 = vpow2.f32 %v5550_v21 }
 0xa38   : > { %5734 = vadd.xlane.f32.xlu1 %v5733_v29  ;;  %10691 = vrcp.f32 %v13952_v20 }
 0xa39   : > { %5737 = vadd.xlane.f32.xlu0 %v5736_v45 }
 0xa3a   : > { %10207 = vrot.lane.b32.xlu2 %v15576_v24, %s11321_s29 }
 0xa3b   : > { %v14045_v40 = vpop.xlane.xlu1 %5650  ;;  %v5612_v11 = vpop.xlane.xlu2 %5611 }
 0xa3c   : > { %v5218_v17 = vpop.f32.mrf.mxu1  ;;  %10693 = vrcp.f32 %v5612_v11  ;;  %v14052_v39 = vpop.xlane.xlu0 %5653 }
 0xa3d   : > { %v14050_v23 = vpop.eup %10689  ;;  %10695 = vrcp.f32 %v5630_v27  ;;  %v15655_v27 = vld [vmem:[#allocation41_spill] sm:$0xff] }
 0xa3e   : > { %v5730_v13 = vsel %vm5576_vm11, %v14050_v23, 0.0  ;;  %v10692_v55 = vpop.eup %10691  ;;  %10697 = vrcp.f32 %v13972_v18 }
 0xa3f   : > { %v5849_v14 = vmul.f32 %v10692_v55, %v15656_v42 }
 0xa40   : > { %5728 = vadd.xlane.f32.xlu1 %v5727_v16 }
 0xa41   : > { %5731 = vadd.xlane.f32.xlu0 %v5730_v13  ;;  %v5913_v21 = vpack.c.bf16 %v5849_v14, %v5849_v14 }
 0xa42   : > { %10212 = vrot.lane.b32.xlu2 %v15580_v43, %s11322_s26  ;;  %v5311_v20 = vpop.f32.mrf.mxu2  ;;  %v10694_v50 = vpop.eup %10693 }
 0xa43   : > { %v5560_v53 = vmul.f32 1.442695, %v5311_v20  ;;  %v10153_v62 = vpop.permute.xlu2 %10152  ;;  %v10696_v57 = vpop.eup %10695  ;;  %v5844_v28 = vmul.f32 %v10694_v50, %v15655_v27  ;;  %v15658_v50 = vld [vmem:[#allocation58_spill] sm:$0xff] }
 0xa44   : > { %v10155_v2 = vunpack.i.h.bf16 %v10153_v62  ;;  %v10154_v49 = vunpack.i.l.bf16 %v10153_v62  ;;  %v14062_v37 = vpop.xlane.xlu1 %5644  ;;  %v5850_v52 = vmul.f32 %v10696_v57, %v15657_v10  ;;  %v14066_v3 = vpop.xlane.xlu0 %5647 }
 0xa45   : > { %10699 = vpow2.f32 %v5560_v53  ;;  %v5908_v19 = vpack.c.bf16 %v5844_v28, %v5844_v28  ;;  %v10698_v6 = vpop.eup %10697 }
 0xa46   : > { %v5978_v8 = vpack.c.bf16 %v10155_v2, %v10155_v2  ;;  %v5977_v9 = vpack.c.bf16 %v10154_v49, %v10154_v49  ;;  %10701 = vrcp.f32 %v13994_v35  ;;  %v5914_v17 = vpack.c.bf16 %v5850_v52, %v5850_v52 }
 0xa47   : > { %9550 = vmatmul.msk.bf16.vlgmr.msra.gmra.mxu1 %vm5576_vm11, %v5908_v19  ;;  %10703 = vrcp.f32 %v14013_v38  ;;  %v5847_v53 = vmul.f32 %v10698_v6, %v15658_v50  ;;  %v15660_v50 = vld [vmem:[#allocation50_spill] sm:$0xff] }
 0xa48   : > { %v6334_v18 = vsel %vm6028_vm5, %v5977_v9, 0  ;;  %v6353_v54 = vsel %vm6028_vm5, %v5978_v8, 0  ;;  %v15659_v8 = vld [vmem:[#allocation51_spill] sm:$0xff] }
 0xa49   : > { %6343 = vmatpush.bf16.msrb.mxu2 %v6334_v18  ;;  %6362 = vmatpush.bf16.msrb.mxu3 %v6353_v54 }
 0xa4a   : > { %10217 = vrot.lane.b32.xlu2 %v15624_v58, %s11321_s29  ;;  %v5313_v29 = vpop.f32.mrf.mxu2  ;;  %v5330_v45 = vpop.f32.mrf.mxu3 }
 0xa4b   : > { %v14074_v11 = vpop.eup %10699  ;;  %v5562_v13 = vmul.f32 1.442695, %v5330_v45  ;;  %v10158_v16 = vpop.permute.xlu2 %10157 }
 0xa4c   : > { %v10160_v55 = vunpack.i.h.bf16 %v10158_v16  ;;  %v10159_v20 = vunpack.i.l.bf16 %v10158_v16  ;;  %9555 = vmatmul.msk.bf16.vlgmr.msrb.gmra.mxu2 %vm5576_vm11, %v5913_v21  ;;  %v5745_v35 = vsel %vm5576_vm11, %v14074_v11, 0.0  ;;  %9556 = vmatmul.msk.bf16.vlgmr.msrb.gmra.mxu3 %vm5576_vm11, %v5914_v17  ;;  %v5273_v27 = vpop.f32.mrf.mxu0  ;;  %v10702_v28 = vpop.eup %10701 }
 0xa4d   : > { %10705 = vpow2.f32 %v5562_v13  ;;  %5746 = vadd.xlane.f32.xlu1 %v5745_v35  ;;  %v14083_v38 = vpop.xlane.xlu1 %5662  ;;  %v5556_v2 = vmul.f32 1.442695, %v5273_v27  ;;  %v14087_v14 = vpop.xlane.xlu0 %5665  ;;  %v5848_v9 = vmul.f32 %v10702_v28, %v15659_v8 }
 0xa4e   : > { %10707 = vrcp.f32 %v14015_v32  ;;  %v5976_v62 = vpack.c.bf16 %v10160_v55, %v10160_v55  ;;  %v5975_v57 = vpack.c.bf16 %v10159_v20, %v10159_v20  ;;  %v10704_v19 = vpop.eup %10703  ;;  %v5911_v32 = vpack.c.bf16 %v5847_v53, %v5847_v53 }
 0xa4f   : > { %10709 = vpow2.f32 %v5556_v2  ;;  %v5912_v13 = vpack.c.bf16 %v5848_v9, %v5848_v9  ;;  %v5853_v53 = vmul.f32 %v10704_v19, %v15660_v50 }
 0xa50   : > { %v6296_v49 = vsel %vm6028_vm5, %v5975_v57, 0  ;;  %v6315_v42 = vsel %vm6028_vm5, %v5976_v62, 0  ;;  %10711 = vrcp.f32 %v14030_v59  ;;  %v15661_v62 = vld [vmem:[#allocation38_spill] sm:$0xff] }
 0xa51   : > { %6305 = vmatpush.bf16.msra.mxu0 %v6296_v49  ;;  %6324 = vmatpush.bf16.msrb.mxu1 %v6315_v42  ;;  %v5917_v42 = vpack.c.bf16 %v5853_v53, %v5853_v53 }
 0xa52   : > { %10222 = vrot.lane.b32.xlu2 %v15574_v36, %s11322_s26  ;;  %v5332_v10 = vpop.f32.mrf.mxu3 }
 0xa53   : > { %v14092_v52 = vpop.eup %10705  ;;  %v10163_v18 = vpop.permute.xlu2 %10162 }
 0xa54   : > { %v10708_v54 = vpop.eup %10707  ;;  %v10165_v6 = vunpack.i.h.bf16 %v10163_v18  ;;  %v10164_v21 = vunpack.i.l.bf16 %v10163_v18  ;;  %v5292_v29 = vpop.f32.mrf.mxu1  ;;  %9553 = vmatmul.msk.bf16.vlgmr.msra.gmra.mxu0 %vm5576_vm11, %v5911_v32  ;;  %v5748_v45 = vsel %vm5576_vm11, %v14092_v52, 0.0 }
 0xa55   : > { %v5558_v17 = vmul.f32 1.442695, %v5292_v29  ;;  %5749 = vadd.xlane.f32.xlu0 %v5748_v45  ;;  %v5275_v20 = vpop.f32.mrf.mxu0  ;;  %v14098_v35 = vpop.eup %10709  ;;  %v5854_v59 = vmul.f32 %v10708_v54, %v15661_v62 }
 0xa56   : > { %v5982_v16 = vpack.c.bf16 %v10165_v6, %v10165_v6  ;;  %v5981_v55 = vpack.c.bf16 %v10164_v21, %v10164_v21  ;;  %v5739_v57 = vsel %vm5576_vm11, %v14098_v35, 0.0  ;;  %v14108_v2 = vpop.xlane.xlu1 %5656  ;;  %v10712_v49 = vpop.eup %10711 }
 0xa57   : > { %10713 = vpow2.f32 %v5558_v17  ;;  %9554 = vmatmul.msk.bf16.vlgmr.msrb.gmra.mxu1 %vm5576_vm11, %v5912_v13  ;;  %5740 = vadd.xlane.f32.xlu1 %v5739_v57  ;;  %v5918_v19 = vpack.c.bf16 %v5854_v59, %v5854_v59  ;;  %v14112_v32 = vpop.xlane.xlu0 %5659 }
 0xa58   : > { %v6410_v27 = vsel %vm6028_vm5, %v5981_v55, 0  ;;  %v6429_v28 = vsel %vm6028_vm5, %v5982_v16, 0  ;;  %10715 = vrcp.f32 %v14034_v1  ;;  %v15662_v1 = vld [vmem:[#allocation35_spill] sm:$0xff] }
 0xa59   : > { %6419 = vmatpush.bf16.msra.mxu2 %v6410_v27  ;;  %6438 = vmatpush.bf16.msra.mxu3 %v6429_v28  ;;  %v5851_v6 = vmul.f32 %v10712_v49, %v15662_v1  ;;  %10717 = vrcp.f32 %v14045_v40 }
 0xa5a   : > { %10227 = vrot.lane.b32.xlu2 %v15576_v24, %s11322_s26  ;;  %10719 = vrcp.f32 %v14052_v39  ;;  %v15663_v39 = vld [vmem:[#allocation44_spill] sm:$0xff] }
 0xa5b   : > { %v10168_v8 = vpop.permute.xlu2 %10167  ;;  %v5915_v40 = vpack.c.bf16 %v5851_v6, %v5851_v6  ;;  %v15665_v6 = vld [vmem:[#allocation32_spill] sm:$0xff] }
 0xa5c   : > { %v10170_v9 = vunpack.i.h.bf16 %v10168_v8  ;;  %v10169_v10 = vunpack.i.l.bf16 %v10168_v8  ;;  %v5294_v18 = vpop.f32.mrf.mxu1  ;;  %9559 = vmatmul.msk.bf16.vlgmr.msra.gmra.mxu2 %vm5576_vm11, %v5917_v42  ;;  %9560 = vmatmul.msk.bf16.vlgmr.msra.gmra.mxu3 %vm5576_vm11, %v5918_v19 }
 0xa5d   : > { %v14114_v54 = vpop.eup %10713  ;;  %v5349_v45 = vpop.f32.mrf.mxu0  ;;  %v15664_v18 = vld [vmem:[#allocation43_spill] sm:$0xff] }
 0xa5e   : > { %v5980_v21 = vpack.c.bf16 %v10170_v9, %v10170_v9  ;;  %v5979_v29 = vpack.c.bf16 %v10169_v10, %v10169_v10  ;;  %v5742_v17 = vsel %vm5576_vm11, %v14114_v54, 0.0  ;;  %v10716_v13 = vpop.eup %10715  ;;  %v5564_v16 = vmul.f32 1.442695, %v5349_v45  ;;  %v14128_v62 = vpop.xlane.xlu1 %5674 }
 0xa5f   : > { %5743 = vadd.xlane.f32.xlu0 %v5742_v17  ;;  %v5852_v50 = vmul.f32 %v10716_v13, %v15663_v39  ;;  %v10718_v53 = vpop.eup %10717  ;;  %v14132_v49 = vpop.xlane.xlu0 %5677 }
 0xa60   : > { %v6372_v55 = vsel %vm6028_vm5, %v5979_v29, 0  ;;  %v6391_v20 = vsel %vm6028_vm5, %v5980_v21, 0  ;;  %10721 = vpow2.f32 %v5564_v16  ;;  %v10720_v57 = vpop.eup %10719  ;;  %v5857_v1 = vmul.f32 %v10718_v53, %v15664_v18 }
 0xa61   : > { %6381 = vmatpush.bf16.msrb.mxu0 %v6372_v55  ;;  %6400 = vmatpush.bf16.msra.mxu1 %v6391_v20  ;;  %10723 = vrcp.f32 %v14062_v37  ;;  %v5916_v42 = vpack.c.bf16 %v5852_v50, %v5852_v50  ;;  %v5858_v21 = vmul.f32 %v10720_v57, %v15665_v6 }
 0xa62   : > { %10232 = vrot.lane.b32.xlu2 %v15580_v43, %s11323_s12  ;;  %10725 = vrcp.f32 %v14066_v3  ;;  %v5921_v13 = vpack.c.bf16 %v5857_v1, %v5857_v1  ;;  %v15666_v3 = vld [vmem:[#allocation47_spill] sm:$0xff] }
 0xa63   : > { %v10173_v59 = vpop.permute.xlu2 %10172  ;;  %v5922_v16 = vpack.c.bf16 %v5858_v21, %v5858_v21  ;;  %10727 = vrcp.f32 %v14083_v38 }
 0xa64   : > { %v10175_v27 = vunpack.i.h.bf16 %v10173_v59  ;;  %v10174_v28 = vunpack.i.l.bf16 %v10173_v59  ;;  %9557 = vmatmul.msk.bf16.vlgmr.msrb.gmra.mxu0 %vm5576_vm11, %v5915_v40  ;;  %10729 = vrcp.f32 %v14087_v14 }
 0xa65   : > { %v5351_v9 = vpop.f32.mrf.mxu0  ;;  %10731 = vrcp.f32 %v14108_v2 }
 0xa66   : > { %v5986_v19 = vpack.c.bf16 %v10175_v27, %v10175_v27  ;;  %v5985_v8 = vpack.c.bf16 %v10174_v28, %v10174_v28  ;;  %v14134_v10 = vpop.eup %10721  ;;  %v14147_v39 = vpop.xlane.xlu1 %5668 }
 0xa67   : > { %v5751_v29 = vsel %vm5576_vm11, %v14134_v10, 0.0  ;;  %9558 = vmatmul.msk.bf16.vlgmr.msra.gmra.mxu1 %vm5576_vm11, %v5916_v42  ;;  %v10724_v17 = vpop.eup %10723  ;;  %v14153_v27 = vpop.xlane.xlu0 %5671 }
 0xa68   : > { %v6486_v45 = vsel %vm6028_vm5, %v5985_v8, 0  ;;  %v6505_v37 = vsel %vm6028_vm5, %v5986_v19, 0  ;;  %5752 = vadd.xlane.f32.xlu1 %v5751_v29  ;;  %v5855_v50 = vmul.f32 %v10724_v17, %v15666_v3  ;;  %v10726_v57 = vpop.eup %10725  ;;  %v15667_v8 = vld [vmem:[#allocation59_spill] sm:$0xff] }
 0xa69   : > { %6495 = vmatpush.bf16.msrb.mxu2 %v6486_v45  ;;  %6514 = vmatpush.bf16.msrb.mxu3 %v6505_v37  ;;  %v5856_v9 = vmul.f32 %v10726_v57, %v15667_v8  ;;  %v10728_v14 = vpop.eup %10727 }
 0xa6a   : > { %10237 = vrot.lane.b32.xlu2 %v15624_v58, %s11322_s26  ;;  %v5919_v19 = vpack.c.bf16 %v5855_v50, %v5855_v50  ;;  %v10730_v21 = vpop.eup %10729 }
 0xa6b   : > { %v10178_v55 = vpop.permute.xlu2 %10177  ;;  %v5920_v37 = vpack.c.bf16 %v5856_v9, %v5856_v9  ;;  %v10732_v57 = vpop.eup %10731 }
 0xa6c   : > { %v10180_v20 = vunpack.i.h.bf16 %v10178_v55  ;;  %v10179_v40 = vunpack.i.l.bf16 %v10178_v55  ;;  %9563 = vmatmul.msk.bf16.vlgmr.msrb.gmra.mxu2 %vm5576_vm11, %v5921_v13  ;;  %9564 = vmatmul.msk.bf16.vlgmr.msrb.gmra.mxu3 %vm5576_vm11, %v5922_v16  ;;  %v15668_v16 = vld [vmem:[#allocation60_spill] sm:$0xff] }
 0xa6d   : > { %v5861_v55 = vmul.f32 %v10728_v14, %v15668_v16 }
 0xa6e   : > { %v5984_v53 = vpack.c.bf16 %v10180_v20, %v10180_v20  ;;  %v5983_v59 = vpack.c.bf16 %v10179_v40, %v10179_v40  ;;  %v15669_v20 = vld [vmem:[#allocation61_spill] sm:$0xff]  ;;  %v14164_v3 = vpop.xlane.xlu1 %5686 }
 0xa6f   : > { %v5862_v40 = vmul.f32 %v10730_v21, %v15669_v20  ;;  %v5925_v8 = vpack.c.bf16 %v5861_v55, %v5861_v55  ;;  %v15670_v21 = vld [vmem:[#allocation57_spill] sm:$0xff] }
 0xa70   : > { %v5406_v28 = vpop.f32.mrf.mxu3  ;;  %v6448_v42 = vsel %vm6028_vm5, %v5983_v59, 0  ;;  %v6467_v38 = vsel %vm6028_vm5, %v5984_v53, 0  ;;  %v14170_v59 = vpop.xlane.xlu0 %5689 }
 0xa71   : > { %6457 = vmatpush.bf16.msra.mxu0 %v6448_v42  ;;  %6476 = vmatpush.bf16.msrb.mxu1 %v6467_v38  ;;  %v5926_v9 = vpack.c.bf16 %v5862_v40, %v5862_v40 }
 0xa72   : > { %10242 = vrot.lane.b32.xlu2 %v15574_v36, %s11323_s12  ;;  %v5387_v18 = vpop.f32.mrf.mxu2 }
 0xa73   : > { %v5568_v1 = vmul.f32 1.442695, %v5387_v18  ;;  %v10183_v6 = vpop.permute.xlu2 %10182 }
 0xa74   : > { %v10185_v29 = vunpack.i.h.bf16 %v10183_v6  ;;  %v10184_v45 = vunpack.i.l.bf16 %v10183_v6  ;;  %9561 = vmatmul.msk.bf16.vlgmr.msra.gmra.mxu0 %vm5576_vm11, %v5919_v19 }
 0xa75   : > { %10733 = vpow2.f32 %v5568_v1 }
 0xa76   : > { %v5990_v17 = vpack.c.bf16 %v10185_v29, %v10185_v29  ;;  %v5989_v13 = vpack.c.bf16 %v10184_v45, %v10184_v45  ;;  %10735 = vrcp.f32 %v14112_v32  ;;  %v5859_v29 = vmul.f32 %v10732_v57, %v15670_v21  ;;  %v14187_v40 = vpop.xlane.xlu1 %5680 }
 0xa77   : > { %9562 = vmatmul.msk.bf16.vlgmr.msrb.gmra.mxu1 %vm5576_vm11, %v5920_v37 }
 0xa78   : > { %v5408_v50 = vpop.f32.mrf.mxu3  ;;  %v6562_v53 = vsel %vm6028_vm5, %v5989_v13, 0  ;;  %v6581_v2 = vsel %vm6028_vm5, %v5990_v17, 0  ;;  %v5570_v13 = vmul.f32 1.442695, %v5406_v28  ;;  %v14194_v28 = vpop.xlane.xlu0 %5683 }
 0xa79   : > { %6571 = vmatpush.bf16.msra.mxu2 %v6562_v53  ;;  %6590 = vmatpush.bf16.msra.mxu3 %v6581_v2  ;;  %v15671_v50 = vld [vmem:[#allocation63_spill] sm:$0xff] }
 0xa7a   : > { %10247 = vrot.lane.b32.xlu2 %v15576_v24, %s11323_s12  ;;  %v5389_v38 = vpop.f32.mrf.mxu2 }
 0xa7b   : > { %v5368_v42 = vpop.f32.mrf.mxu1  ;;  %v14174_v19 = vpop.eup %10733 }
 0xa7c   : > { %v5566_v18 = vmul.f32 1.442695, %v5368_v42  ;;  %v10188_v14 = vpop.permute.xlu2 %10187  ;;  %v5757_v32 = vsel %vm5576_vm11, %v14174_v19, 0.0  ;;  %9567 = vmatmul.msk.bf16.vlgmr.msra.gmra.mxu2 %vm5576_vm11, %v5925_v8  ;;  %9568 = vmatmul.msk.bf16.vlgmr.msra.gmra.mxu3 %vm5576_vm11, %v5926_v9  ;;  %v10736_v17 = vpop.eup %10735 }
 0xa7d   : > { %v10190_v1 = vunpack.i.h.bf16 %v10188_v14  ;;  %v10189_v6 = vunpack.i.l.bf16 %v10188_v14  ;;  %5758 = vadd.xlane.f32.xlu1 %v5757_v32  ;;  %v5860_v53 = vmul.f32 %v10736_v17, %v15671_v50 }
 0xa7e   : > { %10737 = vpow2.f32 %v5566_v18 }
 0xa7f   : > { %10739 = vrcp.f32 %v14132_v49  ;;  %v5988_v45 = vpack.c.bf16 %v10190_v1, %v10190_v1  ;;  %v5987_v37 = vpack.c.bf16 %v10189_v6, %v10189_v6  ;;  %v5923_v49 = vpack.c.bf16 %v5859_v29, %v5859_v29 }
 0xa80   : > { %10741 = vrcp.f32 %v14128_v62  ;;  %v14183_v16 = vpop.f32.mrf.mxu3  ;;  %v5924_v1 = vpack.c.bf16 %v5860_v53, %v5860_v53 }
 0xa81   : > { %v6524_v55 = vsel %vm6028_vm5, %v5987_v37, 0  ;;  %v6543_v20 = vsel %vm6028_vm5, %v5988_v45, 0  ;;  %10743 = vpow2.f32 %v5570_v13 }
 0xa82   : > { %10252 = vrot.lane.b32.xlu2 %v15580_v43, %s11324_s18  ;;  %6533 = vmatpush.bf16.msrb.mxu0 %v6524_v55  ;;  %v14196_v38 = vpop.f32.mrf.mxu2 }
 0xa83   : > { %6552 = vmatpush.bf16.msra.mxu1 %v6543_v20  ;;  %v5370_v2 = vpop.f32.mrf.mxu1 }
 0xa84   : > { %v5425_v57 = vpop.f32.mrf.mxu0  ;;  %v14192_v62 = vpop.eup %10737 }
 0xa85   : > { %v5572_v42 = vmul.f32 1.442695, %v5425_v57  ;;  %v10740_v8 = vpop.eup %10739  ;;  %v10193_v9 = vpop.permute.xlu2 %10192  ;;  %9565 = vmatmul.msk.bf16.vlgmr.msrb.gmra.mxu0 %vm5576_vm11, %v5923_v49  ;;  %v5754_v43 = vsel %vm5576_vm11, %v14192_v62, 0.0 }
 0xa86   : > { %v10742_v18 = vpop.eup %10741  ;;  %v10195_v14 = vunpack.i.h.bf16 %v10193_v9  ;;  %5755 = vadd.xlane.f32.xlu0 %v5754_v43  ;;  %v10194_v6 = vunpack.i.l.bf16 %v10193_v9  ;;  %v5866_v32 = vmul.f32 %v10740_v8, %v13686_v46  ;;  %v14214_v49 = vpop.xlane.xlu1 %5698 }
 0xa87   : > { %10745 = vpow2.f32 %v5572_v42  ;;  %v5865_v29 = vmul.f32 %v10742_v18, %v13673_v7  ;;  %9566 = vmatmul.msk.bf16.vlgmr.msra.gmra.mxu1 %vm5576_vm11, %v5924_v1  ;;  %v14205_v17 = vpop.eup %10743  ;;  %v5702_v9 = vpop.xlane.xlu0 %5701 }
 0xa88   : > { %10747 = vrcp.f32 %v14147_v39  ;;  %v5994_v21 = vpack.c.bf16 %v10195_v14, %v10195_v14  ;;  %v5993_v45 = vpack.c.bf16 %v10194_v6, %v10194_v6  ;;  %v6062_v37 = vpop.f32.mrf.mxu3  ;;  %v5930_v7 = vpack.c.bf16 %v5866_v32, %v5866_v32 }
 0xa89   : > { %10749 = vrcp.f32 %v14153_v27  ;;  %v5929_v2 = vpack.c.bf16 %v5865_v29, %v5865_v29  ;;  %v5760_v57 = vsel %vm5576_vm11, %v14205_v17, 0.0 }
 0xa8a   : > { %10257 = vrot.lane.b32.xlu2 %v15624_v58, %s11323_s12  ;;  %v6657_v13 = vsel %vm6028_vm5, %v5994_v21, 0  ;;  %v6638_v46 = vsel %vm6028_vm5, %v5993_v45, 0  ;;  %v6043_v53 = vpop.f32.mrf.mxu2 }
 0xa8b   : > { %6666 = vmatpush.bf16.msrb.mxu3 %v6657_v13  ;;  %v5444_v55 = vpop.f32.mrf.mxu1  ;;  %6647 = vmatpush.bf16.msrb.mxu2 %v6638_v46 }
 0xa8c   : > { %v5427_v39 = vpop.f32.mrf.mxu0  ;;  %v5574_v50 = vmul.f32 1.442695, %v5444_v55 }
 0xa8d   : > { %v14212_v20 = vpop.eup %10745  ;;  %v10198_v27 = vpop.permute.xlu2 %10197 }
 0xa8e   : > { %v5763_v42 = vsel %vm5576_vm11, %v14212_v20, 0.0  ;;  %v10748_v8 = vpop.eup %10747  ;;  %10751 = vpow2.f32 %v5574_v50  ;;  %v10200_v43 = vunpack.i.h.bf16 %v10198_v27  ;;  %9572 = vmatmul.msk.bf16.vlgmr.msrb.gmra.mxu3 %vm5576_vm11, %v5930_v7  ;;  %5761 = vadd.xlane.f32.xlu0 %v5760_v57  ;;  %v10199_v18 = vunpack.i.l.bf16 %v10198_v27  ;;  %v5693_v50 = vpop.xlane.xlu1 %5692 }
 0xa8f   : > { %10753 = vrcp.f32 %v14170_v59  ;;  %9571 = vmatmul.msk.bf16.vlgmr.msrb.gmra.mxu2 %vm5576_vm11, %v5929_v2  ;;  %5764 = vadd.xlane.f32.xlu1 %v5763_v42  ;;  %v10750_v14 = vpop.eup %10749  ;;  %v5863_v6 = vmul.f32 %v10748_v8, %v13760_v47  ;;  %v5696_v57 = vpop.xlane.xlu0 %5695 }
 0xa90   : > { %10755 = vrcp.f32 %v14164_v3  ;;  %v5992_v1 = vpack.c.bf16 %v10200_v43, %v10200_v43  ;;  %v5991_v32 = vpack.c.bf16 %v10199_v18, %v10199_v18  ;;  %v14225_v21 = vpop.f32.mrf.mxu3  ;;  %v5864_v59 = vmul.f32 %v10750_v14, %v13750_v60 }
 0xa91   : > { %v5927_v39 = vpack.c.bf16 %v5863_v6, %v5863_v6  ;;  %10757 = vrcp.f32 %v14187_v40 }
 0xa92   : > { %10262 = vrot.lane.b32.xlu2 %v15576_v24, %s11324_s18  ;;  %v6619_v29 = vsel %vm6028_vm5, %v5992_v1, 0  ;;  %v6600_v45 = vsel %vm6028_vm5, %v5991_v32, 0  ;;  %v14236_v47 = vpop.f32.mrf.mxu2  ;;  %v5928_v2 = vpack.c.bf16 %v5864_v59, %v5864_v59  ;;  %10759 = vrcp.f32 %v14194_v28 }
 0xa93   : > { %6628 = vmatpush.bf16.msrb.mxu1 %v6619_v29  ;;  %v5446_v37 = vpop.f32.mrf.mxu1  ;;  %6609 = vmatpush.bf16.msra.mxu0 %v6600_v45  ;;  %10761 = vrcp.f32 %v5702_v9 }
 0xa94   : > { %v14232_v13 = vpop.f32.mrf.mxu0  ;;  %v14234_v3 = vpop.eup %10751  ;;  %10763 = vrcp.f32 %v14214_v49 }
 0xa95   : > { %v10754_v46 = vpop.eup %10753  ;;  %v10203_v55 = vpop.permute.xlu2 %10202  ;;  %v5766_v24 = vsel %vm5576_vm11, %v14234_v3, 0.0  ;;  %10765 = vrcp.f32 %v5693_v50 }
 0xa96   : > { %v10756_v7 = vpop.eup %10755  ;;  %v10205_v60 = vunpack.i.h.bf16 %v10203_v55  ;;  %v10204_v53 = vunpack.i.l.bf16 %v10203_v55  ;;  %5767 = vadd.xlane.f32.xlu0 %v5766_v24  ;;  %9569 = vmatmul.msk.bf16.vlgmr.msra.gmra.mxu0 %vm5576_vm11, %v5927_v39  ;;  %v5870_v27 = vmul.f32 %v10754_v46, %v13802_v41  ;;  %v5711_v28 = vpop.xlane.xlu1 %5710  ;;  %10767 = vrcp.f32 %v5696_v57 }
 0xa97   : > { %v5869_v43 = vmul.f32 %v10756_v7, %v13817_v30  ;;  %9570 = vmatmul.msk.bf16.vlgmr.msrb.gmra.mxu1 %vm5576_vm11, %v5928_v2  ;;  %v10758_v59 = vpop.eup %10757  ;;  %v5714_v7 = vpop.xlane.xlu0 %5713 }
 0xa98   : > { %v5998_v42 = vpack.c.bf16 %v10205_v60, %v10205_v60  ;;  %v5997_v8 = vpack.c.bf16 %v10204_v53, %v10204_v53  ;;  %v6138_v18 = vpop.f32.mrf.mxu3  ;;  %v5934_v6 = vpack.c.bf16 %v5870_v27, %v5870_v27  ;;  %v5867_v55 = vmul.f32 %v10758_v59, %v13869_v12 }
 0xa99   : > { %v5933_v30 = vpack.c.bf16 %v5869_v43, %v5869_v43  ;;  %10769 = vrcp.f32 %v5714_v7 }
 0xa9a   : > { %10267 = vrot.lane.b32.xlu2 %v15574_v36, %s11324_s18  ;;  %v6714_v14 = vsel %vm6028_vm5, %v5997_v8, 0  ;;  %v6733_v1 = vsel %vm6028_vm5, %v5998_v42, 0  ;;  %v6119_v32 = vpop.f32.mrf.mxu2  ;;  %v10760_v36 = vpop.eup %10759  ;;  %v5931_v8 = vpack.c.bf16 %v5867_v55, %v5867_v55  ;;  %10771 = vrcp.f32 %v5711_v28 }
 0xa9b   : > { %6723 = vmatpush.bf16.msra.mxu2 %v6714_v14  ;;  %6742 = vmatpush.bf16.msra.mxu3 %v6733_v1  ;;  %v14250_v40 = vpop.f32.mrf.mxu1  ;;  %v5868_v9 = vmul.f32 %v10760_v36, %v13873_v22  ;;  %v10762_v42 = vpop.eup %10761 }
 0xa9c   : > { %v6081_v41 = vpop.f32.mrf.mxu0  ;;  %v10764_v43 = vpop.eup %10763 }
 0xa9d   : > { %v10208_v29 = vpop.permute.xlu2 %10207  ;;  %v5932_v1 = vpack.c.bf16 %v5868_v9, %v5868_v9 }
 0xa9e   : > { %v10210_v45 = vunpack.i.h.bf16 %v10208_v29  ;;  %v10209_v37 = vunpack.i.l.bf16 %v10208_v29  ;;  %9576 = vmatmul.msk.bf16.vlgmr.msra.gmra.mxu3 %vm5576_vm11, %v5934_v6  ;;  %v5873_v6 = vmul.f32 %v10764_v43, %v13906_v0 }
 0xa9f   : > { %9575 = vmatmul.msk.bf16.vlgmr.msra.gmra.mxu2 %vm5576_vm11, %v5933_v30  ;;  %v5705_v30 = vpop.xlane.xlu1 %5704 }
 0xaa0   : > { %v5996_v46 = vpack.c.bf16 %v10210_v45, %v10210_v45  ;;  %v5995_v39 = vpack.c.bf16 %v10209_v37, %v10209_v37  ;;  %v6212_v24 = vpop.f32.mrf.mxu3  ;;  %v5708_v37 = vpop.xlane.xlu0 %5707  ;;  %v5937_v0 = vpack.c.bf16 %v5873_v6, %v5873_v6  ;;  %10773 = vrcp.f32 %v5705_v30 }
 0xaa1   : > { %10775 = vrcp.f32 %v5708_v37 }
 0xaa2   : > { %10272 = vrot.lane.b32.xlu2 %v15624_v58, %s11324_s18  ;;  %v6676_v60 = vsel %vm6028_vm5, %v5995_v39, 0  ;;  %v6695_v53 = vsel %vm6028_vm5, %v5996_v46, 0  ;;  %v6193_v27 = vpop.f32.mrf.mxu2  ;;  %v5874_v58 = vmul.f32 %v10762_v42, %v13910_v26  ;;  %v10766_v39 = vpop.eup %10765 }
 0xaa3   : > { %6685 = vmatpush.bf16.msrb.mxu0 %v6676_v60  ;;  %6704 = vmatpush.bf16.msra.mxu1 %v6695_v53  ;;  %v6100_v2 = vpop.f32.mrf.mxu1  ;;  %v5871_v9 = vmul.f32 %v10766_v39, %v13927_v34 }
 0xaa4   : > { %v14261_v49 = vpop.f32.mrf.mxu0  ;;  %v5938_v45 = vpack.c.bf16 %v5874_v58, %v5874_v58 }
 0xaa5   : > { %v10213_v12 = vpop.permute.xlu2 %10212 }
 0xaa6   : > { %v10215_v18 = vunpack.i.h.bf16 %v10213_v12  ;;  %v10214_v14 = vunpack.i.l.bf16 %v10213_v12  ;;  %9573 = vmatmul.msk.bf16.vlgmr.msrb.gmra.mxu0 %vm5576_vm11, %v5931_v8 }
 0xaa7   : > { %9574 = vmatmul.msk.bf16.vlgmr.msra.gmra.mxu1 %vm5576_vm11, %v5932_v1  ;;  %v5723_v34 = vpop.xlane.xlu1 %5722 }
 0xaa8   : > { %v6002_v41 = vpack.c.bf16 %v10215_v18, %v10215_v18  ;;  %v6001_v22 = vpack.c.bf16 %v10214_v14, %v10214_v14  ;;  %7250 = vrot.lane.b32.xlu1 %v6193_v27, %s11324_s18  ;;  %v6214_v32 = vpop.f32.mrf.mxu3  ;;  %v5935_v18 = vpack.c.bf16 %v5871_v9, %v5871_v9  ;;  %v5726_v58 = vpop.xlane.xlu0 %5725 }
 0xaa9   : > { %10777 = vrcp.f32 %v5726_v58 }
 0xaaa   : > { %7252 = vrot.lane.b32.xlu0 %v6212_v24, %s11324_s18  ;;  %v6790_v29 = vsel %vm6028_vm5, %v6001_v22, 0  ;;  %v6809_v59 = vsel %vm6028_vm5, %v6002_v41, 0  ;;  %v6195_v36 = vpop.f32.mrf.mxu2  ;;  %v10768_v24 = vpop.eup %10767  ;;  %10779 = vrcp.f32 %v5723_v34 }
 0xaab   : > { %6799 = vmatpush.bf16.msrb.mxu2 %v6790_v29  ;;  %6818 = vmatpush.bf16.msrb.mxu3 %v6809_v59  ;;  %v14271_v50 = vpop.f32.mrf.mxu1  ;;  %v5872_v8 = vmul.f32 %v10768_v24, %v13929_v56  ;;  %v10770_v28 = vpop.eup %10769 }
 0xaac   : > { %v6157_v26 = vpop.f32.mrf.mxu0  ;;  %v10772_v1 = vpop.eup %10771  ;;  %v5878_v56 = vmul.f32 %v10770_v28, %v13954_v15 }
 0xaad   : > { %v10218_v46 = vpop.permute.xlu2 %10217  ;;  %v5936_v6 = vpack.c.bf16 %v5872_v8, %v5872_v8  ;;  %v5877_v59 = vmul.f32 %v10772_v1, %v13949_v31  ;;  %v10774_v30 = vpop.eup %10773 }
 0xaae   : > { %v10220_v55 = vunpack.i.h.bf16 %v10218_v46  ;;  %v10219_v57 = vunpack.i.l.bf16 %v10218_v46  ;;  %9580 = vmatmul.msk.bf16.vlgmr.msrb.gmra.mxu3 %vm5576_vm11, %v5938_v45  ;;  %v5942_v46 = vpack.c.bf16 %v5878_v56, %v5878_v56  ;;  %v10776_v31 = vpop.eup %10775 }
 0xaaf   : > { %9579 = vmatmul.msk.bf16.vlgmr.msrb.gmra.mxu2 %vm5576_vm11, %v5937_v0  ;;  %v5717_v37 = vpop.xlane.xlu1 %5716  ;;  %v10778_v28 = vpop.eup %10777 }
 0xab0   : > { %v6000_v60 = vpack.c.bf16 %v10220_v55, %v10220_v55  ;;  %v5999_v53 = vpack.c.bf16 %v10219_v57, %v10219_v57  ;;  %v14276_v2 = vpop.f32.mrf.mxu3  ;;  %v5941_v55 = vpack.c.bf16 %v5877_v59, %v5877_v59  ;;  %v10780_v1 = vpop.eup %10779  ;;  %10781 = vrcp.f32 %v5717_v37 }
 0xab2   : > { %v6752_v27 = vsel %vm6028_vm5, %v5999_v53, 0  ;;  %v6771_v42 = vsel %vm6028_vm5, %v6000_v60, 0  ;;  %v14283_v43 = vpop.f32.mrf.mxu2  ;;  %v5720_v60 = vpop.xlane.xlu0 %5719 }
 0xab3   : > { %6761 = vmatpush.bf16.msra.mxu0 %v6752_v27  ;;  %6780 = vmatpush.bf16.msrb.mxu1 %v6771_v42  ;;  %v6176_v12 = vpop.f32.mrf.mxu1  ;;  %v5875_v27 = vmul.f32 %v10774_v30, %v13969_v51  ;;  %v5882_v51 = vmul.f32 %v10778_v28, %v13996_v61  ;;  %10783 = vrcp.f32 %v5720_v60 }
 0xab4   : > { %v14281_v7 = vpop.f32.mrf.mxu0  ;;  %v5876_v12 = vmul.f32 %v10776_v31, %v13974_v48  ;;  %v5881_v48 = vmul.f32 %v10780_v1, %v13991_v33 }
 0xab5   : > { %v10223_v14 = vpop.permute.xlu2 %10222 }
 0xab6   : > { %v10225_v41 = vunpack.i.h.bf16 %v10223_v14  ;;  %v10224_v22 = vunpack.i.l.bf16 %v10223_v14  ;;  %9577 = vmatmul.msk.bf16.vlgmr.msra.gmra.mxu0 %vm5576_vm11, %v5935_v18  ;;  %v5939_v18 = vpack.c.bf16 %v5875_v27, %v5875_v27  ;;  %v10782_v61 = vpop.eup %10781 }
 0xab7   : > { %9578 = vmatmul.msk.bf16.vlgmr.msrb.gmra.mxu1 %vm5576_vm11, %v5936_v6 }
 0xab8   : > { %v6006_v32 = vpack.c.bf16 %v10225_v41, %v10225_v41  ;;  %v6005_v29 = vpack.c.bf16 %v10224_v22, %v10224_v22  ;;  %v6290_v26 = vpop.f32.mrf.mxu3  ;;  %v5940_v22 = vpack.c.bf16 %v5876_v12, %v5876_v12 }
 0xab9   : > { %v10784_v33 = vpop.eup %10783 }
 0xaba   : > { %v6866_v45 = vsel %vm6028_vm5, %v6005_v29, 0  ;;  %v6885_v36 = vsel %vm6028_vm5, %v6006_v32, 0  ;;  %v6271_v39 = vpop.f32.mrf.mxu2  ;;  %v5735_v32 = vpop.xlane.xlu1 %5734 }
 0xabb   : > { %6875 = vmatpush.bf16.msra.mxu2 %v6866_v45  ;;  %6894 = vmatpush.bf16.msra.mxu3 %v6885_v36  ;;  %v5738_v29 = vpop.xlane.xlu0 %5737  ;;  %v5946_v45 = vpack.c.bf16 %v5882_v51, %v5882_v51  ;;  %v5945_v36 = vpack.c.bf16 %v5881_v48, %v5881_v48 }
 0xabc   : > { %v6233_v0 = vpop.f32.mrf.mxu0  ;;  %10785 = vrcp.f32 %v5738_v29 }
 0xabd   : > { %v10228_v15 = vpop.permute.xlu2 %10227  ;;  %10787 = vrcp.f32 %v5735_v32 }
 0xabe   : > { %v10230_v57 = vunpack.i.h.bf16 %v10228_v15  ;;  %v10229_v24 = vunpack.i.l.bf16 %v10228_v15  ;;  %9584 = vmatmul.msk.bf16.vlgmr.msra.gmra.mxu3 %vm5576_vm11, %v5942_v46 }
 0xabf   : > { %9583 = vmatmul.msk.bf16.vlgmr.msra.gmra.mxu2 %vm5576_vm11, %v5941_v55 }
 0xac0   : > { %v6004_v53 = vpack.c.bf16 %v10230_v57, %v10230_v57  ;;  %v6003_v9 = vpack.c.bf16 %v10229_v24, %v10229_v24  ;;  %v5879_v24 = vmul.f32 %v10782_v61, %v14010_v5 }
 0xac2   : > { %v6828_v42 = vsel %vm6028_vm5, %v6003_v9, 0  ;;  %v6847_v8 = vsel %vm6028_vm5, %v6004_v53, 0  ;;  %v5880_v9 = vmul.f32 %v10784_v33, %v14017_v44  ;;  %v5729_v27 = vpop.xlane.xlu1 %5728  ;;  %v5943_v12 = vpack.c.bf16 %v5879_v24, %v5879_v24 }
 0xac3   : > { %6837 = vmatpush.bf16.msrb.mxu0 %v6828_v42  ;;  %6856 = vmatpush.bf16.msra.mxu1 %v6847_v8  ;;  %v5732_v42 = vpop.xlane.xlu0 %5731  ;;  %v10786_v8 = vpop.eup %10785  ;;  %10789 = vrcp.f32 %v5729_v27 }
 0xac4   : > { %v14297_v41 = vpop.f32.mrf.mxu1  ;;  %10791 = vrcp.f32 %v5732_v42 }
 0xac5   : > { %v10233_v14 = vpop.permute.xlu2 %10232 }
 0xac6   : > { %v10235_v58 = vunpack.i.h.bf16 %v10233_v14  ;;  %v10234_v34 = vunpack.i.l.bf16 %v10233_v14  ;;  %9581 = vmatmul.msk.bf16.vlgmr.msrb.gmra.mxu0 %vm5576_vm11, %v5939_v18  ;;  %v10788_v18 = vpop.eup %10787 }
 0xac7   : > { %9582 = vmatmul.msk.bf16.vlgmr.msra.gmra.mxu1 %vm5576_vm11, %v5940_v22 }
 0xac8   : > { %v6010_v6 = vpack.c.bf16 %v10235_v58, %v10235_v58  ;;  %v6009_v56 = vpack.c.bf16 %v10234_v34, %v10234_v34  ;;  %v5944_v58 = vpack.c.bf16 %v5880_v9, %v5880_v9  ;;  %v5886_v34 = vmul.f32 %v10786_v8, %v14036_v4 }
 0xaca   : > { %v6942_v59 = vsel %vm6028_vm5, %v6009_v56, 0  ;;  %v6961_v26 = vsel %vm6028_vm5, %v6010_v6, 0  ;;  %v5885_v6 = vmul.f32 %v10788_v18, %v14032_v63  ;;  %v5950_v4 = vpack.c.bf16 %v5886_v34, %v5886_v34 }
 0xacb   : > { %6951 = vmatpush.bf16.msrb.mxu2 %v6942_v59  ;;  %6970 = vmatpush.bf16.msrb.mxu3 %v6961_v26  ;;  %v5747_v59 = vpop.xlane.xlu1 %5746  ;;  %v5750_v26 = vpop.xlane.xlu0 %5749 }
 0xacc   : > { %v6252_v55 = vpop.f32.mrf.mxu1  ;;  %10793 = vrcp.f32 %v5750_v26 }
 0xacd   : > { %v10238_v0 = vpop.permute.xlu2 %10237  ;;  %10795 = vrcp.f32 %v5747_v59 }
 0xace   : > { %v10240_v46 = vunpack.i.h.bf16 %v10238_v0  ;;  %v10239_v39 = vunpack.i.l.bf16 %v10238_v0  ;;  %9588 = vmatmul.msk.bf16.vlgmr.msrb.gmra.mxu3 %vm5576_vm11, %v5946_v45  ;;  %v5949_v45 = vpack.c.bf16 %v5885_v6, %v5885_v6  ;;  %v10790_v0 = vpop.eup %10789 }
 0xacf   : > { %9587 = vmatmul.msk.bf16.vlgmr.msrb.gmra.mxu2 %vm5576_vm11, %v5945_v36  ;;  %v6345_v57 = vpop.f32.mrf.mxu2  ;;  %v6364_v31 = vpop.f32.mrf.mxu3 }
 0xad0   : > { %v6008_v15 = vpack.c.bf16 %v10240_v46, %v10240_v46  ;;  %v6007_v30 = vpack.c.bf16 %v10239_v39, %v10239_v39  ;;  %7282 = vrot.lane.b32.xlu2 %v6345_v57, %s11323_s12  ;;  %v10792_v39 = vpop.eup %10791 }
 0xad1   : > { %v14309_v37 = vpop.f32.mrf.mxu0 }
 0xad2   : > { %v6904_v60 = vsel %vm6028_vm5, %v6007_v30, 0  ;;  %v6923_v53 = vsel %vm6028_vm5, %v6008_v15, 0  ;;  %v5883_v15 = vmul.f32 %v10790_v0, %v14047_v25  ;;  %v10794_v27 = vpop.eup %10793 }
 0xad3   : > { %6913 = vmatpush.bf16.msra.mxu0 %v6904_v60  ;;  %6932 = vmatpush.bf16.msrb.mxu1 %v6923_v53  ;;  %v5884_v53 = vmul.f32 %v10792_v39, %v14050_v23  ;;  %v5741_v9 = vpop.xlane.xlu1 %5740 }
 0xad4   : > { %v14314_v1 = vpop.f32.mrf.mxu1  ;;  %v5947_v42 = vpack.c.bf16 %v5883_v15, %v5883_v15  ;;  %10797 = vrcp.f32 %v5741_v9 }
 0xad5   : > { %v10243_v28 = vpop.permute.xlu2 %10242 }
 0xad6   : > { %v10245_v5 = vunpack.i.h.bf16 %v10243_v28  ;;  %v10244_v14 = vunpack.i.l.bf16 %v10243_v28  ;;  %9585 = vmatmul.msk.bf16.vlgmr.msra.gmra.mxu0 %vm5576_vm11, %v5943_v12  ;;  %v10796_v12 = vpop.eup %10795 }
 0xad7   : > { %v6347_v51 = vpop.f32.mrf.mxu2  ;;  %v6366_v56 = vpop.f32.mrf.mxu3  ;;  %9586 = vmatmul.msk.bf16.vlgmr.msrb.gmra.mxu1 %vm5576_vm11, %v5944_v58  ;;  %v5890_v58 = vmul.f32 %v10794_v27, %v14092_v52 }
 0xad8   : > { %v6014_v22 = vpack.c.bf16 %v10245_v5, %v10245_v5  ;;  %v6013_v44 = vpack.c.bf16 %v10244_v14, %v10244_v14  ;;  %7284 = vrot.lane.b32.xlu2 %v6364_v31, %s11323_s12  ;;  %v5948_v5 = vpack.c.bf16 %v5884_v53, %v5884_v53  ;;  %v5744_v14 = vpop.xlane.xlu0 %5743 }
 0xad9   : > { %v6309_v48 = vpop.f32.mrf.mxu0  ;;  %10799 = vrcp.f32 %v5744_v14 }
 0xada   : > { %v7018_v32 = vsel %vm6028_vm5, %v6013_v44, 0  ;;  %v7037_v29 = vsel %vm6028_vm5, %v6014_v22, 0  ;;  %v5889_v22 = vmul.f32 %v10796_v12, %v14074_v11  ;;  %v10798_v59 = vpop.eup %10797 }
 0xadb   : > { %7027 = vmatpush.bf16.msra.mxu2 %v7018_v32  ;;  %7046 = vmatpush.bf16.msra.mxu3 %v7037_v29  ;;  %v5954_v32 = vpack.c.bf16 %v5890_v58, %v5890_v58  ;;  %v5753_v29 = vpop.xlane.xlu1 %5752 }
 0xadc   : > { %v6328_v46 = vpop.f32.mrf.mxu1  ;;  %v5953_v52 = vpack.c.bf16 %v5889_v22, %v5889_v22 }
 0xadd   : > { %v10248_v36 = vpop.permute.xlu2 %10247 }
 0xade   : > { %v10250_v63 = vunpack.i.h.bf16 %v10248_v36  ;;  %v10249_v61 = vunpack.i.l.bf16 %v10248_v36  ;;  %9592 = vmatmul.msk.bf16.vlgmr.msra.gmra.mxu3 %vm5576_vm11, %v5950_v4 }
 0xadf   : > { %9591 = vmatmul.msk.bf16.vlgmr.msra.gmra.mxu2 %vm5576_vm11, %v5949_v45  ;;  %v14326_v30 = vpop.f32.mrf.mxu2  ;;  %v14328_v57 = vpop.f32.mrf.mxu3 }
 0xae0   : > { %v6012_v55 = vpack.c.bf16 %v10250_v63, %v10250_v63  ;;  %v6011_v33 = vpack.c.bf16 %v10249_v61, %v10249_v61  ;;  %v10800_v36 = vpop.eup %10799  ;;  %v5887_v61 = vmul.f32 %v10798_v59, %v14098_v35 }
 0xae1   : > { %v14330_v24 = vpop.f32.mrf.mxu0 }
 0xae2   : > { %v6980_v31 = vsel %vm6028_vm5, %v6011_v33, 0  ;;  %v6999_v60 = vsel %vm6028_vm5, %v6012_v55, 0  ;;  %v5951_v53 = vpack.c.bf16 %v5887_v61, %v5887_v61 }
 0xae3   : > { %6989 = vmatpush.bf16.msrb.mxu0 %v6980_v31  ;;  %7008 = vmatpush.bf16.msra.mxu1 %v6999_v60  ;;  %v5888_v31 = vmul.f32 %v10800_v36, %v14114_v54 }
 0xae4   : > { %v14335_v18 = vpop.f32.mrf.mxu1 }
 0xae5   : > { %v10253_v8 = vpop.permute.xlu2 %10252 }
 0xae6   : > { %v10255_v25 = vunpack.i.h.bf16 %v10253_v8  ;;  %v10254_v28 = vunpack.i.l.bf16 %v10253_v8  ;;  %9589 = vmatmul.msk.bf16.vlgmr.msrb.gmra.mxu0 %vm5576_vm11, %v5947_v42  ;;  %v5952_v8 = vpack.c.bf16 %v5888_v31, %v5888_v31 }
 0xae7   : > { %v6423_v44 = vpop.f32.mrf.mxu2  ;;  %v6442_v51 = vpop.f32.mrf.mxu3  ;;  %9590 = vmatmul.msk.bf16.vlgmr.msra.gmra.mxu1 %vm5576_vm11, %v5948_v5 }
 0xae8   : > { %v6018_v34 = vpack.c.bf16 %v10255_v25, %v10255_v25  ;;  %v6017_v23 = vpack.c.bf16 %v10254_v28, %v10254_v28 }
 0xae9   : > { %v6385_v6 = vpop.f32.mrf.mxu0 }
 0xaea   : > { %v7094_v56 = vsel %vm6028_vm5, %v6017_v23, 0  ;;  %v7113_v48 = vsel %vm6028_vm5, %v6018_v34, 0 }
 0xaeb   : > { %7103 = vmatpush.bf16.msrb.mxu2 %v7094_v56  ;;  %7122 = vmatpush.bf16.msrb.mxu3 %v7113_v48 }
 0xaec   : > { %v6404_v11 = vpop.f32.mrf.mxu1 }
 0xaed   : > { %v10258_v4 = vpop.permute.xlu2 %10257 }
 0xaee   : > { %v10260_v26 = vunpack.i.h.bf16 %v10258_v4  ;;  %v10259_v45 = vunpack.i.l.bf16 %v10258_v4  ;;  %9596 = vmatmul.msk.bf16.vlgmr.msrb.gmra.mxu3 %vm5576_vm11, %v5954_v32 }
 0xaef   : > { %9595 = vmatmul.msk.bf16.vlgmr.msrb.gmra.mxu2 %vm5576_vm11, %v5953_v52  ;;  %v6497_v46 = vpop.f32.mrf.mxu2  ;;  %v6516_v39 = vpop.f32.mrf.mxu3 }
 0xaf0   : > { %v6016_v0 = vpack.c.bf16 %v10260_v26, %v10260_v26  ;;  %v6015_v63 = vpack.c.bf16 %v10259_v45, %v10259_v45  ;;  %7316 = vrot.lane.b32.xlu0 %v6516_v39, %s11322_s26  ;;  %7314 = vrot.lane.b32.xlu2 %v6497_v46, %s11322_s26  ;;  %v5759_v60 = vpop.xlane.xlu1 %5758 }
 0xaf1   : > { %v14348_v55 = vpop.f32.mrf.mxu0  ;;  %10801 = vrcp.f32 %v5759_v60 }
 0xaf2   : > { %v7056_v33 = vsel %vm6028_vm5, %v6015_v63, 0  ;;  %v7075_v15 = vsel %vm6028_vm5, %v6016_v0, 0  ;;  %10803 = vrcp.f32 %v5753_v29 }
 0xaf3   : > { %7065 = vmatpush.bf16.msra.mxu0 %v7056_v33  ;;  %7084 = vmatpush.bf16.msrb.mxu1 %v7075_v15 }
 0xaf4   : > { %v14353_v42 = vpop.f32.mrf.mxu1 }
 0xaf5   : > { %v10263_v9 = vpop.permute.xlu2 %10262 }
 0xaf6   : > { %v10265_v35 = vunpack.i.h.bf16 %v10263_v9  ;;  %v10264_v27 = vunpack.i.l.bf16 %v10263_v9  ;;  %9593 = vmatmul.msk.bf16.vlgmr.msra.gmra.mxu0 %vm5576_vm11, %v5951_v53 }
 0xaf7   : > { %v6499_v28 = vpop.f32.mrf.mxu2  ;;  %v6518_v5 = vpop.f32.mrf.mxu3  ;;  %9594 = vmatmul.msk.bf16.vlgmr.msrb.gmra.mxu1 %vm5576_vm11, %v5952_v8 }
 0xaf8   : > { %v6020_v12 = vpack.c.bf16 %v10265_v35, %v10265_v35  ;;  %v6019_v25 = vpack.c.bf16 %v10264_v27, %v10264_v27  ;;  %v10802_v23 = vpop.eup %10801 }
 0xaf9   : > { %v5756_v54 = vpop.xlane.xlu0 %5755  ;;  %v6461_v14 = vpop.f32.mrf.mxu0  ;;  %v5893_v48 = vmul.f32 %v10802_v23, %v14174_v19 }
 0xafa   : > { %v7132_v58 = vsel %vm6028_vm5, %v6019_v25, 0  ;;  %v7151_v34 = vsel %vm6028_vm5, %v6020_v12, 0  ;;  %10805 = vrcp.f32 %v5756_v54  ;;  %v10804_v44 = vpop.eup %10803 }
 0xafb   : > { %7141 = vmatpush.bf16.msrb.mxu0 %v7132_v58  ;;  %7160 = vmatpush.bf16.msra.mxu1 %v7151_v34  ;;  %v5891_v4 = vmul.f32 %v10804_v44, %v14134_v10  ;;  %v5957_v19 = vpack.c.bf16 %v5893_v48, %v5893_v48 }
 0xafc   : > { %v6480_v56 = vpop.f32.mrf.mxu1 }
 0xafd   : > { %v10268_v22 = vpop.permute.xlu2 %10267  ;;  %v5955_v61 = vpack.c.bf16 %v5891_v4, %v5891_v4 }
 0xafe   : > { %v10270_v51 = vunpack.i.h.bf16 %v10268_v22  ;;  %v10269_v6 = vunpack.i.l.bf16 %v10268_v22 }
 0xaff   : > { %v14361_v59 = vpop.f32.mrf.mxu2  ;;  %v14363_v26 = vpop.f32.mrf.mxu3 }
 0xb00   : > { %v6022_v32 = vpack.c.bf16 %v10270_v51, %v10270_v51  ;;  %v6021_v29 = vpack.c.bf16 %v10269_v6, %v10269_v6  ;;  %v10806_v52 = vpop.eup %10805 }
 0xb01   : > { %v5762_v45 = vpop.xlane.xlu0 %5761  ;;  %v5892_v0 = vmul.f32 %v10806_v52, %v14192_v62 }
 0xb02   : > { %v7170_v11 = vsel %vm6028_vm5, %v6021_v29, 0  ;;  %v7189_v36 = vsel %vm6028_vm5, %v6022_v32, 0  ;;  %v14368_v63 = vpop.f32.mrf.mxu0  ;;  %10807 = vrcp.f32 %v5762_v45  ;;  %v5765_v46 = vpop.xlane.xlu1 %5764 }
 0xb03   : > { %7179 = vmatpush.bf16.msra.mxu2 %v7170_v11  ;;  %7198 = vmatpush.bf16.msra.mxu3 %v7189_v36  ;;  %v5956_v31 = vpack.c.bf16 %v5892_v0, %v5892_v0  ;;  %10809 = vrcp.f32 %v5765_v46 }
 0xb04   : > { %v14370_v15 = vpop.f32.mrf.mxu1 }
 0xb05   : > { %v10273_v10 = vpop.permute.xlu2 %10272 }
 0xb06   : > { %v10275_v39 = vunpack.i.h.bf16 %v10273_v10  ;;  %v10274_v33 = vunpack.i.l.bf16 %v10273_v10  ;;  %9599 = vmatmul.msk.bf16.vlgmr.msra.gmra.mxu2 %vm5576_vm11, %v5957_v19  ;;  %9597 = vmatmul.msk.bf16.vlgmr.msrb.gmra.mxu0 %vm5576_vm11, %v5955_v61 }
 0xb07   : > { %v6575_v53 = vpop.f32.mrf.mxu2  ;;  %v6594_v9 = vpop.f32.mrf.mxu3  ;;  %9598 = vmatmul.msk.bf16.vlgmr.msra.gmra.mxu1 %vm5576_vm11, %v5956_v31 }
 0xb08   : > { %v6024_v62 = vpack.c.bf16 %v10275_v39, %v10275_v39  ;;  %v6023_v60 = vpack.c.bf16 %v10274_v33, %v10274_v33  ;;  %v10808_v35 = vpop.eup %10807 }
 0xb09   : > { %v5768_v27 = vpop.xlane.xlu0 %5767  ;;  %v5894_v25 = vmul.f32 %v10808_v35, %v14205_v17  ;;  %v10810_v54 = vpop.eup %10809 }
 0xb0a   : > { %v7208_v8 = vsel %vm6028_vm5, %v6023_v60, 0  ;;  %v7227_v12 = vsel %vm6028_vm5, %v6024_v62, 0  ;;  %10811 = vrcp.f32 %v5768_v27  ;;  %v6537_v28 = vpop.f32.mrf.mxu0  ;;  %v5895_v34 = vmul.f32 %v10810_v54, %v14212_v20 }
 0xb0b   : > { %7217 = vmatpush.bf16.msra.mxu0 %v7208_v8  ;;  %7236 = vmatpush.bf16.msrb.mxu1 %v7227_v12  ;;  %v5958_v5 = vpack.c.bf16 %v5894_v25, %v5894_v25  ;;  %vm7483_vm5 = vcmask 392192  }
 0xb0c   : > { %v6556_v14 = vpop.f32.mrf.mxu1  ;;  %v5959_v51 = vpack.c.bf16 %v5895_v34, %v5895_v34 }
 0xb0d   : > { %9600 = vmatmul.msk.bf16.vlgmr.msra.gmra.mxu3 %vm5576_vm11, %v5958_v5 }
 0xb10   : > { %v10812_v58 = vpop.eup %10811 }
 0xb11   : > { %v6668_v23 = vpop.f32.mrf.mxu3  ;;  %v5896_v44 = vmul.f32 %v10812_v58, %v14234_v3 }
 0xb12   : > { %v6649_v22 = vpop.f32.mrf.mxu2  ;;  %7348 = vrot.lane.b32.xlu2 %v6668_v23, %s11321_s29 }
 0xb13   : > { %7346 = vrot.lane.b32.xlu1 %v6649_v22, %s11321_s29  ;;  %v14383_v17 = vpop.f32.mrf.mxu0  ;;  %v5960_v56 = vpack.c.bf16 %v5896_v44, %v5896_v44 }
 0xb14   : > { %v14385_v6 = vpop.f32.mrf.mxu1 }
 0xb16   : > { %9601 = vmatmul.msk.bf16.vlgmr.msra.gmra.mxu0 %vm5576_vm11, %v5959_v51 }
 0xb17   : > { %9602 = vmatmul.msk.bf16.vlgmr.msrb.gmra.mxu1 %vm5576_vm11, %v5960_v56  ;;  %vm7474_vm11 = vcmask 261120  }
 0xb19   : > { %v6670_v48 = vpop.f32.mrf.mxu3 }
 0xb1a   : > { %v6651_v20 = vpop.f32.mrf.mxu2 }
 0xb1b   : > { %v6613_v32 = vpop.f32.mrf.mxu0 }
 0xb1c   : > { %v6632_v29 = vpop.f32.mrf.mxu1 }
 0xb21   : > { %v14389_v52 = vpop.f32.mrf.mxu3 }
 0xb22   : > { %v14391_v4 = vpop.f32.mrf.mxu2 }
 0xb23   : > { %v6687_v3 = vpop.f32.mrf.mxu0 }
 0xb24   : > { %v14393_v45 = vpop.f32.mrf.mxu1 }
 0xb29   : > { %v6746_v11 = vpop.f32.mrf.mxu3 }
 0xb2a   : > { %v6727_v36 = vpop.f32.mrf.mxu2 }
 0xb2b   : > { %v6689_v0 = vpop.f32.mrf.mxu0 }
 0xb2c   : > { %v6708_v19 = vpop.f32.mrf.mxu1 }
 0xb31   : > { %v6820_v61 = vpop.f32.mrf.mxu3 }
 0xb32   : > { %v6801_v46 = vpop.f32.mrf.mxu2  ;;  %7380 = vrot.lane.b32.xlu1 %v6820_v61, %s11320_s20 }
 0xb33   : > { %7378 = vrot.lane.b32.xlu0 %v6801_v46, %s11320_s20  ;;  %v14397_v10 = vpop.f32.mrf.mxu0 }
 0xb34   : > { %v14399_v39 = vpop.f32.mrf.mxu1 }
 0xb39   : > { %v6822_v33 = vpop.f32.mrf.mxu3 }
 0xb3a   : > { %v6803_v31 = vpop.f32.mrf.mxu2 }
 0xb3b   : > { %v6765_v62 = vpop.f32.mrf.mxu0 }
 0xb3c   : > { %v6784_v60 = vpop.f32.mrf.mxu1 }
 0xb41   : > { %v14401_v53 = vpop.f32.mrf.mxu3 }
 0xb42   : > { %v14403_v9 = vpop.f32.mrf.mxu2 }
 0xb43   : > { %v6839_v35 = vpop.f32.mrf.mxu0 }
 0xb44   : > { %v6858_v27 = vpop.f32.mrf.mxu1 }
 0xb49   : > { %v6898_v8 = vpop.f32.mrf.mxu3 }
 0xb4a   : > { %v6879_v12 = vpop.f32.mrf.mxu2 }
 0xb4b   : > { %v6841_v25 = vpop.f32.mrf.mxu0  ;;  %v7283_v12 = vpop.permute.xlu2 %7282 }
 0xb4c   : > { %v6860_v28 = vpop.f32.mrf.mxu1 }
 0xb51   : > { %v6972_v5 = vpop.f32.mrf.mxu3 }
 0xb52   : > { %v6953_v54 = vpop.f32.mrf.mxu2  ;;  %7412 = vrot.lane.b32.xlu0 %v6972_v5, %s11318_s16 }
 0xb53   : > { %7410 = vrot.lane.b32.xlu2 %v6953_v54, %s11318_s16  ;;  %v14407_v14 = vpop.f32.mrf.mxu0 }
 0xb54   : > { %v14409_v58 = vpop.f32.mrf.mxu1 }
 0xb59   : > { %v6974_v34 = vpop.f32.mrf.mxu3 }
 0xb5a   : > { %v6955_v23 = vpop.f32.mrf.mxu2  ;;  %7254 = vrot.lane.b32.xlu0 %v14281_v7, %s11324_s18 }
 0xb5b   : > { %v6917_v22 = vpop.f32.mrf.mxu0 }
 0xb5c   : > { %v6936_v44 = vpop.f32.mrf.mxu1 }
 0xb61   : > { %v7048_v51 = vpop.f32.mrf.mxu3 }
 0xb62   : > { %v7029_v56 = vpop.f32.mrf.mxu2  ;;  %7288 = vrot.lane.b32.xlu0 %v14335_v18, %s11323_s12 }
 0xb63   : > { %v6991_v48 = vpop.f32.mrf.mxu0 }
 0xb64   : > { %v7010_v20 = vpop.f32.mrf.mxu1 }
 0xb69   : > { %v7050_v32 = vpop.f32.mrf.mxu3 }
 0xb6a   : > { %v7031_v29 = vpop.f32.mrf.mxu2  ;;  %7350 = vrot.lane.b32.xlu0 %v6687_v3, %s11321_s29 }
 0xb6b   : > { %v6993_v11 = vpop.f32.mrf.mxu0 }
 0xb6c   : > { %v7012_v36 = vpop.f32.mrf.mxu1 }
 0xb71   : > { %v7124_v0 = vpop.f32.mrf.mxu3 }
 0xb72   : > { %v7105_v19 = vpop.f32.mrf.mxu2  ;;  %7384 = vrot.lane.b32.xlu0 %v6858_v27, %s11320_s20  ;;  %7444 = vrot.lane.b32.xlu2 %v7124_v0, %s11317_s6 }
 0xb73   : > { %7442 = vrot.lane.b32.xlu1 %v7105_v19, %s11317_s6  ;;  %v14419_v7 = vpop.f32.mrf.mxu0 }
 0xb74   : > { %v14421_v61 = vpop.f32.mrf.mxu1 }
 0xb79   : > { %v7126_v18 = vpop.f32.mrf.mxu3 }
 0xb7a   : > { %v7107_v46 = vpop.f32.mrf.mxu2  ;;  %7286 = vrot.lane.b32.xlu2 %v14330_v24, %s11323_s12 }
 0xb7b   : > { %7256 = vrot.lane.b32.xlu1 %v14297_v41, %s11324_s18  ;;  %v7069_v3 = vpop.f32.mrf.mxu0 }
 0xb7c   : > { %v7088_v33 = vpop.f32.mrf.mxu1 }
 0xb82   : > { %7320 = vrot.lane.b32.xlu2 %v14370_v15, %s11322_s26 }
 0xb83   : > { %7318 = vrot.lane.b32.xlu1 %v14368_v63, %s11322_s26  ;;  %v7143_v31 = vpop.f32.mrf.mxu0 }
 0xb84   : > { %7446 = vrot.lane.b32.xlu0 %v7143_v31, %s11317_s6  ;;  %v7162_v62 = vpop.f32.mrf.mxu1 }
 0xb89   : > { %v7181_v60 = vpop.f32.mrf.mxu2 }
 0xb8a   : > { %7382 = vrot.lane.b32.xlu2 %v6839_v35, %s11320_s20 }
 0xb8b   : > { %7352 = vrot.lane.b32.xlu1 %v14393_v45, %s11321_s29  ;;  %v7145_v24 = vpop.f32.mrf.mxu0 }
 0xb8c   : > { %7260 = vrot.lane.b32.xlu0 %v14276_v2, %s11324_s18  ;;  %v7164_v41 = vpop.f32.mrf.mxu1 }
 0xb90   : > { %v7200_v15 = vpop.f32.mrf.mxu3 }
 0xb91   : > { %v7183_v27 = vpop.f32.mrf.mxu2 }
 0xb92   : > { %7416 = vrot.lane.b32.xlu2 %v7010_v20, %s11318_s16 }
 0xb93   : > { %7414 = vrot.lane.b32.xlu1 %v6991_v48, %s11318_s16  ;;  %v14439_v63 = vpop.f32.mrf.mxu0 }
 0xb94   : > { %7322 = vrot.lane.b32.xlu0 %v14361_v59, %s11322_s26  ;;  %v14443_v35 = vpop.f32.mrf.mxu1  ;;  %v7253_v59 = vpop.permute.xlu0 %7252 }
 0xb98   : > { %v7202_v8 = vpop.f32.mrf.mxu3 }
 0xb9a   : > { %7258 = vrot.lane.b32.xlu2 %v14283_v43, %s11324_s18  ;;  %v7285_v43 = vpop.permute.xlu2 %7284 }
 0xb9b   : > { %7448 = vrot.lane.b32.xlu1 %v7162_v62, %s11317_s6  ;;  %v7221_v2 = vpop.f32.mrf.mxu0 }
 0xb9c   : > { %7356 = vrot.lane.b32.xlu0 %v14389_v52, %s11321_s29  ;;  %v7240_v45 = vpop.f32.mrf.mxu1  ;;  %v7317_v52 = vpop.permute.xlu0 %7316 }
 0xba2   : > { %7292 = vrot.lane.b32.xlu2 %v14328_v57, %s11323_s12  ;;  %v7315_v57 = vpop.permute.xlu2 %7314 }
 0xba3   : > { %7290 = vrot.lane.b32.xlu1 %v14326_v30, %s11323_s12 }
 0xba4   : > { %7418 = vrot.lane.b32.xlu0 %v7029_v56, %s11318_s16 }
 0xbaa   : > { %7354 = vrot.lane.b32.xlu2 %v14391_v4, %s11321_s29  ;;  %v7349_v30 = vpop.permute.xlu2 %7348  ;;  %v7379_v4 = vpop.permute.xlu0 %7378 }
 0xbab   : > { %7324 = vrot.lane.b32.xlu1 %v14363_v26, %s11322_s26 }
 0xbac   : > { %7452 = vrot.lane.b32.xlu0 %v7200_v15, %s11317_s6 }
 0xbb2   : > { %7388 = vrot.lane.b32.xlu2 %v14401_v53, %s11320_s20  ;;  %v7411_v26 = vpop.permute.xlu2 %7410 }
 0xbb3   : > { %7386 = vrot.lane.b32.xlu1 %v14403_v9, %s11320_s20  ;;  %v7251_v9 = vpop.permute.xlu1 %7250 }
 0xbba   : > { %7450 = vrot.lane.b32.xlu2 %v7181_v60, %s11317_s6 }
 0xbbb   : > { %7420 = vrot.lane.b32.xlu1 %v7048_v51, %s11318_s16  ;;  %v7347_v5 = vpop.permute.xlu1 %7346 }
 0xbc2   : > { %7264 = vrot.lane.b32.xlu2 %v14314_v1, %s11324_s18 }
 0xbc3   : > { %7262 = vrot.lane.b32.xlu1 %v14309_v37, %s11324_s18  ;;  %v7381_v37 = vpop.permute.xlu1 %7380 }
 0xbc4   : > { %v7413_v25 = vpop.permute.xlu0 %7412 }
 0xbca   : > { %7294 = vrot.lane.b32.xlu2 %v14348_v55, %s11323_s12  ;;  %v7466_v55 = vsel %vm1920_vm3, %v14196_v38, %v7251_v9 }
 0xbcb   : > { %v7475_v34 = vsel %vm7474_vm11, %v7466_v55, %v7283_v12 }
 0xbcc   : > { %v7445_v53 = vpop.permute.xlu2 %7444  ;;  %v7255_v54 = vpop.permute.xlu0 %7254  ;;  %v7484_v23 = vsel %vm7483_vm5, %v7475_v34, %v7315_v57 }
 0xbcd   : > { %v7493_v22 = vsel %vm7492_vm0, %v7484_v23, %v7347_v5 }
 0xbce   : > { %v7502_v51 = vsel %vm7501_vm15, %v7493_v22, %v7379_v4 }
 0xbd2   : > { %7296 = vrot.lane.b32.xlu2 %v14353_v42, %s11323_s12  ;;  %v7467_v42 = vsel %vm1920_vm3, %v14183_v16, %v7253_v59  ;;  %v7511_v16 = vsel %vm7510_vm1, %v7502_v51, %v7411_v26 }
 0xbd4   : > { %v14474_v28 = vpop.permute.xlu2 %7286  ;;  %v7289_v44 = vpop.permute.xlu0 %7288 }
 0xbda   : > { %7326 = vrot.lane.b32.xlu2 %v14383_v17, %s11322_s26  ;;  %v7476_v17 = vsel %vm7474_vm11, %v7467_v42, %v7285_v43 }
 0xbdb   : > { %v7485_v38 = vsel %vm7483_vm5, %v7476_v17, %v7317_v52 }
 0xbdc   : > { %v14478_v1 = vpop.permute.xlu2 %7320  ;;  %v7494_v48 = vsel %vm7492_vm0, %v7485_v38, %v7349_v30  ;;  %v7351_v18 = vpop.permute.xlu0 %7350 }
 0xbdd   : > { %v7503_v32 = vsel %vm7501_vm15, %v7494_v48, %v7381_v37 }
 0xbde   : > { %v7512_v29 = vsel %vm7510_vm1, %v7503_v32, %v7413_v25 }
 0xbdf   : > { %v14502_v36 = vsel %vm7519_vm2, %v7512_v29, %v7445_v53 }
 0xbe0   : > { %v7529_v0 = vmul.f32 %v14502_v36, %v14502_v36 }
 0xbe2   : > { %7328 = vrot.lane.b32.xlu2 %v14385_v6, %s11322_s26 }
 0xbe4   : > { %v7383_v56 = vpop.permute.xlu2 %7382  ;;  %v7385_v31 = vpop.permute.xlu0 %7384 }
 0xbe5   : > { %v7443_v20 = vpop.permute.xlu1 %7442 }
 0xbe6   : > { %v14496_v6 = vsel %vm7519_vm2, %v7511_v16, %v7443_v20 }
 0xbe7   : > { %v7528_v11 = vmul.f32 %v14496_v6, %v14496_v6 }
 0xbe9   : > { %7536 = vadd.xlane.f32.xlu0 %v7528_v11 }
 0xbea   : > { %7358 = vrot.lane.b32.xlu2 %v14397_v10, %s11321_s29 }
 0xbec   : > { %v7417_v19 = vpop.permute.xlu2 %7416 }
 0xbed   : > { %7538 = vadd.xlane.f32.xlu1 %v7529_v0  ;;  %v7257_v46 = vpop.permute.xlu1 %7256  ;;  %v9916_v0 = vld [vmem:[%s11589_s23 + $0x38] sm:$0xff] }
 0xbee   : > { %7740 = vmatpush.bf16.msrb.mxu2 %v9916_v0 }
 0xbf2   : > { %7390 = vrot.lane.b32.xlu2 %v14407_v14, %s11320_s20 }
 0xbf4   : > { %v7259_v3 = vpop.permute.xlu2 %7258 }
 0xbf5   : > { %v7319_v33 = vpop.permute.xlu1 %7318 }
 0xbf6   : > { %v7447_v60 = vpop.permute.xlu0 %7446 }
 0xbfa   : > { %7422 = vrot.lane.b32.xlu2 %v14419_v7, %s11318_s16 }
 0xbfc   : > { %v7293_v62 = vpop.permute.xlu2 %7292 }
 0xbfd   : > { %7360 = vrot.lane.b32.xlu0 %v14399_v39, %s11321_s29  ;;  %v7353_v10 = vpop.permute.xlu1 %7352 }
 0xbfe   : > { %v7261_v41 = vpop.permute.xlu0 %7260 }
 0xbff   : > { %v7471_v52 = vsel %vm1920_vm3, %v14225_v21, %v7261_v41 }
 0xc02   : > { %7424 = vrot.lane.b32.xlu2 %v14421_v61, %s11318_s16  ;;  %v7469_v61 = vsel %vm1920_vm3, %v14250_v40, %v7257_v46 }
 0xc03   : > { %v7478_v12 = vsel %vm7474_vm11, %v7469_v61, %v7289_v44 }
 0xc04   : > { %v7355_v24 = vpop.permute.xlu2 %7354  ;;  %v7487_v30 = vsel %vm7483_vm5, %v7478_v12, %v14478_v1 }
 0xc05   : > { %7454 = vrot.lane.b32.xlu0 %v14439_v63, %s11317_s6  ;;  %v7415_v14 = vpop.permute.xlu1 %7414  ;;  %v7468_v63 = vsel %vm1920_vm3, %v14232_v13, %v7255_v54  ;;  %v7496_v13 = vsel %vm7492_vm0, %v7487_v30, %v7353_v10  ;;  %v9910_v10 = vld [vmem:[%s11589_s23 + $0x8] sm:$0xff] }
 0xc06   : > { %7392 = vrot.lane.b32.xlu1 %v14409_v58, %s11320_s20  ;;  %v7323_v39 = vpop.permute.xlu0 %7322  ;;  %v7477_v58 = vsel %vm7474_vm11, %v7468_v63, %v14474_v28  ;;  %v7505_v53 = vsel %vm7501_vm15, %v7496_v13, %v7385_v31  ;;  %v7480_v28 = vsel %vm7474_vm11, %v7471_v52, %v7293_v62  ;;  %v9911_v62 = vld [vmem:[%s11589_s23 + $0x10] sm:$0xff] }
 0xc07   : > { %v7486_v43 = vsel %vm7483_vm5, %v7477_v58, %v7319_v33  ;;  %v7514_v37 = vsel %vm7510_vm1, %v7505_v53, %v7417_v19  ;;  %v9915_v19 = vld [vmem:[%s11589_s23 + $0x30] sm:$0xff]  ;;  %v9912_v33 = vld [vmem:[%s11589_s23 + $0x18] sm:$0xff] }
 0xc08   : > { %v7495_v40 = vsel %vm7492_vm0, %v7486_v43, %v7351_v18  ;;  %7741 = vmatpush.bf16.msrb.mxu2 %v9915_v19  ;;  %v9914_v18 = vld [vmem:[%s11589_s23 + $0x28] sm:$0xff] }
 0xc0a   : > { %7456 = vrot.lane.b32.xlu2 %v14443_v35, %s11317_s6  ;;  %v7470_v35 = vsel %vm1920_vm3, %v14236_v47, %v7259_v3  ;;  %v7504_v47 = vsel %vm7501_vm15, %v7495_v40, %v7383_v56  ;;  %v9913_v3 = vld [vmem:[%s11589_s23 + $0x20] sm:$0xff]  ;;  %s15692_s6 = scalar_lea.vmem %s15691_s0, %s11620_s2 }
 0xc0b   : > { %v7513_v9 = vsel %vm7510_vm1, %v7504_v47, %v7415_v14 }
 0xc0c   : > { %v7389_v7 = vpop.permute.xlu2 %7388  ;;  %v14550_v21 = vsel %vm7519_vm2, %v7513_v9, %v7447_v60  ;;  %7742 = vmatpush.bf16.msrb.mxu2 %v9914_v18 }
 0xc0d   : > { %v7449_v27 = vpop.permute.xlu1 %7448  ;;  %v7530_v22 = vmul.f32 %v14550_v21, %v14550_v21 }
 0xc0e   : > { %v7357_v2 = vpop.permute.xlu0 %7356  ;;  %v14556_v34 = vsel %vm7519_vm2, %v7514_v37, %v7449_v27 }
 0xc0f   : > { %v7531_v44 = vmul.f32 %v14556_v34, %v14556_v34 }
 0xc10   : > { %7743 = vmatpush.bf16.msrb.mxu2 %v9913_v3 }
 0xc14   : > { %v7451_v8 = vpop.permute.xlu2 %7450  ;;  %7744 = vmatpush.bf16.msrb.mxu2 %v9912_v33 }
 0xc15   : > { %v7291_v15 = vpop.permute.xlu1 %7290 }
 0xc16   : > { %v7479_v59 = vsel %vm7474_vm11, %v7470_v35, %v7291_v15  ;;  %v7419_v25 = vpop.permute.xlu0 %7418 }
 0xc17   : > { %v7488_v26 = vsel %vm7483_vm5, %v7479_v59, %v7323_v39 }
 0xc18   : > { %v7497_v5 = vsel %vm7492_vm0, %v7488_v26, %v7355_v24  ;;  %7745 = vmatpush.bf16.msrb.mxu2 %v9911_v62  ;;  %v9909_v24 = vld [vmem:[%s11589_s23] sm:$0xff] }
 0xc1c   : > { %v14532_v57 = vpop.permute.xlu2 %7264  ;;  %7746 = vmatpush.bf16.msrb.mxu2 %v9910_v10 }
 0xc1d   : > { %v7325_v45 = vpop.permute.xlu1 %7324 }
 0xc1e   : > { %v7489_v54 = vsel %vm7483_vm5, %v7480_v28, %v7325_v45  ;;  %v7453_v48 = vpop.permute.xlu0 %7452 }
 0xc1f   : > { %v7498_v42 = vsel %vm7492_vm0, %v7489_v54, %v7357_v2  ;;  %v14600_v54 = vld [vmem:[%s15673_s17] ss:$0 sm:$0xff] }
 0xc20   : > { %v7507_v38 = vsel %vm7501_vm15, %v7498_v42, %v7389_v7  ;;  %7747 = vmatpush.bf16.msrb.mxu2 %v9909_v24  ;;  %v15672_v7 = vld [vmem:[#allocation29_spill] sm:$0xff] }
 0xc24   : > { %v14553_v55 = vpop.permute.xlu2 %7294 }
 0xc25   : > { %v7387_v4 = vpop.permute.xlu1 %7386 }
 0xc26   : > { %v7506_v1 = vsel %vm7501_vm15, %v7497_v5, %v7387_v4 }
 0xc27   : > { %v7515_v23 = vsel %vm7510_vm1, %v7506_v1, %v7419_v25 }
 0xc28   : > { %v14566_v51 = vsel %vm7519_vm2, %v7515_v23, %v7451_v8 }
 0xc29   : > { %v7532_v16 = vmul.f32 %v14566_v51, %v14566_v51 }
 0xc2c   : > { %v7297_v32 = vpop.permute.xlu2 %7296 }
 0xc2d   : > { %v7421_v17 = vpop.permute.xlu1 %7420 }
 0xc2e   : > { %v7516_v56 = vsel %vm7510_vm1, %v7507_v38, %v7421_v17 }
 0xc2f   : > { %7540 = vadd.xlane.f32.xlu0 %v7530_v22  ;;  %v14572_v20 = vsel %vm7519_vm2, %v7516_v56, %v7453_v48 }
 0xc30   : > { %7542 = vadd.xlane.f32.xlu1 %v7531_v44  ;;  %v7533_v29 = vmul.f32 %v14572_v20, %v14572_v20 }
 0xc33   : > { %7544 = vadd.xlane.f32.xlu2 %v7532_v16 }
 0xc34   : > { %v7327_v11 = vpop.permute.xlu2 %7326 }
 0xc35   : > { %v7263_v60 = vpop.permute.xlu1 %7262 }
 0xc36   : > { %v7472_v59 = vsel %vm1920_vm3, %v14261_v49, %v7263_v60  ;;  %v7473_v49 = vsel %vm1920_vm3, %v14271_v50, %v14532_v57 }
 0xc37   : > { %7546 = vadd.xlane.f32.xlu0 %v7533_v29  ;;  %v7481_v47 = vsel %vm7474_vm11, %v7472_v59, %v14553_v55  ;;  %v7482_v37 = vsel %vm7474_vm11, %v7473_v49, %v7297_v32 }
 0xc38   : > { %v7490_v25 = vsel %vm7483_vm5, %v7481_v47, %v7327_v11 }
 0xc3c   : > { %v7329_v46 = vpop.permute.xlu2 %7328 }
 0xc3d   : > { %v7491_v23 = vsel %vm7483_vm5, %v7482_v37, %v7329_v46 }
 0xc44   : > { %v7359_v31 = vpop.permute.xlu2 %7358 }
 0xc45   : > { %v7499_v5 = vsel %vm7492_vm0, %v7490_v25, %v7359_v31 }
 0xc4c   : > { %v7391_v14 = vpop.permute.xlu2 %7390 }
 0xc4d   : > { %v7508_v55 = vsel %vm7501_vm15, %v7499_v5, %v7391_v14 }
 0xc54   : > { %v7423_v2 = vpop.permute.xlu2 %7422 }
 0xc55   : > { %v7517_v50 = vsel %vm7510_vm1, %v7508_v55, %v7423_v2 }
 0xc5c   : > { %v7537_v41 = vpop.xlane.xlu0 %7536  ;;  %v7425_v26 = vpop.permute.xlu2 %7424 }
 0xc5d   : > { %v7552_v27 = vmul.f32 %v7537_v41, %v15672_v7 }
 0xc5f   : > { %v7560_v39 = vadd.f32 1.1920929e-07, %v7552_v27 }
 0xc60   : > { %v7539_v15 = vpop.xlane.xlu1 %7538 }
 0xc61   : > { %10813 = vrsqrt.f32 %v7560_v39  ;;  %v7553_v8 = vmul.f32 %v7539_v15, %v15672_v7  ;;  %vm7574_vm6 = vweird.f32 %v7560_v39 }
 0xc63   : > { %v7561_v61 = vadd.f32 1.1920929e-07, %v7553_v8 }
 0xc64   : > { %v7457_v32 = vpop.permute.xlu2 %7456 }
 0xc65   : > { %10815 = vrsqrt.f32 %v7561_v61  ;;  %vm7584_vm9 = vweird.f32 %v7561_v61 }
 0xc67   : > { %v10814_v45 = vpop.eup %10813 }
 0xc68   : > { %v7569_v63 = vmul.f32 %v10814_v45, %v7560_v39  ;;  %vm7575_vm4 = vweird.f32 %v10814_v45 }
 0xc69   : > { %vm7576_vm7 = vmor %vm7574_vm6, %vm7575_vm4 }
 0xc6a   : > { %v7570_v58 = vmul.f32 %v10814_v45, %v7569_v63 }
 0xc6b   : > { %v10816_v12 = vpop.eup %10815 }
 0xc6c   : > { %v7571_v35 = vmul.f32 0.5, %v7570_v58  ;;  %v7579_v43 = vmul.f32 %v10816_v12, %v7561_v61  ;;  %vm7585_vm8 = vweird.f32 %v10816_v12 }
 0xc6d   : > { %vm7586_vm10 = vmor %vm7584_vm9, %vm7585_vm8 }
 0xc6e   : > { %v7572_v40 = vsub.f32 1.5, %v7571_v35  ;;  %v7580_v30 = vmul.f32 %v10816_v12, %v7579_v43 }
 0xc6f   : > { %v7361_v13 = vpop.permute.xlu0 %7360 }
 0xc70   : > { %v7573_v52 = vmul.f32 %v10814_v45, %v7572_v40  ;;  %v7581_v4 = vmul.f32 0.5, %v7580_v30  ;;  %v7500_v22 = vsel %vm7492_vm0, %v7491_v23, %v7361_v13 }
 0xc72   : > { %v7577_v53 = vsel %vm7576_vm7, %v10814_v45, %v7573_v52  ;;  %v7582_v9 = vsub.f32 1.5, %v7581_v4 }
 0xc73   : > { %v7648_v1 = vmul.f32 %v7577_v53, %v14496_v6 }
 0xc74   : > { %v7583_v28 = vmul.f32 %v10816_v12, %v7582_v9 }
 0xc75   : > { %v7660_v6 = vmul.f32 %v14600_v54, %v7648_v1 }
 0xc76   : > { %v7587_v42 = vsel %vm7586_vm10, %v10816_v12, %v7583_v28 }
 0xc77   : > { %v7649_v57 = vmul.f32 %v7587_v42, %v14502_v36  ;;  %v7455_v17 = vpop.permute.xlu0 %7454 }
 0xc78   : > { %v14610_v44 = vsel %vm7519_vm2, %v7517_v50, %v7455_v17  ;;  %v7393_v38 = vpop.permute.xlu1 %7392 }
 0xc79   : > { %v7661_v56 = vmul.f32 %v14600_v54, %v7649_v57  ;;  %v7534_v48 = vmul.f32 %v14610_v44, %v14610_v44  ;;  %v7509_v16 = vsel %vm7501_vm15, %v7500_v22, %v7393_v38 }
 0xc7a   : > { %v7518_v29 = vsel %vm7510_vm1, %v7509_v16, %v7425_v26 }
 0xc7b   : > { %7548 = vadd.xlane.f32.xlu1 %v7534_v48  ;;  %v7668_v36 = vpack.c.bf16 %v7661_v56, %v7660_v6  ;;  %v14619_v11 = vsel %vm7519_vm2, %v7518_v29, %v7457_v32 }
 0xc7c   : > { %v7535_v0 = vmul.f32 %v14619_v11, %v14619_v11 }
 0xc7d   : > { %7748 = vmatmul.bf16.vlgmr.msrb.gmra.mxu2 %v7668_v36 }
 0xc7e   : > { %7550 = vadd.xlane.f32.xlu2 %v7535_v0 }
 0xca2   : > { %v7541_v19 = vpop.xlane.xlu0 %7540 }
 0xca3   : > { %v7554_v18 = vmul.f32 %v7541_v19, %v15672_v7  ;;  %v7543_v46 = vpop.xlane.xlu1 %7542 }
 0xca4   : > { %v7555_v3 = vmul.f32 %v7543_v46, %v15672_v7 }
 0xca5   : > { %v7562_v33 = vadd.f32 1.1920929e-07, %v7554_v18  ;;  %v14639_v18 = vld [vmem:[%s15674_s19] ss:$0 sm:$0xff]  ;;  %s15701_s19 = sld [smem:[#allocation88_spill]] (!%p9843_p3) }
 0xca6   : > { %v7563_v31 = vadd.f32 1.1920929e-07, %v7555_v3  ;;  %v7545_v62 = vpop.xlane.xlu2 %7544 }
 0xca7   : > { %10817 = vrsqrt.f32 %v7562_v33  ;;  %v7556_v10 = vmul.f32 %v7545_v62, %v15672_v7  ;;  %vm7594_vm13 = vweird.f32 %v7562_v33 }
 0xca8   : > { %10819 = vrsqrt.f32 %v7563_v31  ;;  %vm7604_vm11 = vweird.f32 %v7563_v31 }
 0xca9   : > { %v7564_v60 = vadd.f32 1.1920929e-07, %v7556_v10 }
 0xcaa   : > { %v7547_v24 = vpop.xlane.xlu0 %7546 }
 0xcab   : > { %10821 = vrsqrt.f32 %v7564_v60  ;;  %v7557_v14 = vmul.f32 %v7547_v24, %v15672_v7  ;;  %vm7614_vm4 = vweird.f32 %v7564_v60 }
 0xcad   : > { %v10818_v41 = vpop.eup %10817  ;;  %v7565_v27 = vadd.f32 1.1920929e-07, %v7557_v14 }
 0xcae   : > { %v10820_v39 = vpop.eup %10819  ;;  %v7589_v15 = vmul.f32 %v10818_v41, %v7562_v33  ;;  %vm7595_vm3 = vweird.f32 %v10818_v41  ;;  %v14646_v33 = vld [vmem:[%s894_s30] ss:$0 sm:$0xff] }
 0xcaf   : > { %v7599_v8 = vmul.f32 %v10820_v39, %v7563_v31  ;;  %10823 = vrsqrt.f32 %v7565_v27  ;;  %vm7605_vm12 = vweird.f32 %v10820_v39  ;;  %vm7596_vm14 = vmor %vm7594_vm13, %vm7595_vm3  ;;  %vm7624_vm1 = vweird.f32 %v7565_v27 }
 0xcb0   : > { %v7590_v61 = vmul.f32 %v10818_v41, %v7589_v15  ;;  %vm7606_vm5 = vmor %vm7604_vm11, %vm7605_vm12  ;;  %v10909_v15 = vld [vmem:[%s15488_s13] sm:$0xff] }
 0xcb1   : > { %v10822_v2 = vpop.eup %10821  ;;  %v7600_v45 = vmul.f32 %v10820_v39, %v7599_v8 }
 0xcb2   : > { %v7591_v63 = vmul.f32 0.5, %v7590_v61  ;;  %v7609_v58 = vmul.f32 %v10822_v2, %v7564_v60  ;;  %vm7615_vm0 = vweird.f32 %v10822_v2 }
 0xcb3   : > { %v7601_v12 = vmul.f32 0.5, %v7600_v45  ;;  %vm7616_vm6 = vmor %vm7614_vm4, %vm7615_vm0 }
 0xcb4   : > { %v7592_v35 = vsub.f32 1.5, %v7591_v63  ;;  %v7610_v40 = vmul.f32 %v10822_v2, %v7609_v58 }
 0xcb5   : > { %v10824_v43 = vpop.eup %10823  ;;  %v7602_v59 = vsub.f32 1.5, %v7601_v12 }
 0xcb6   : > { %v7593_v30 = vmul.f32 %v10818_v41, %v7592_v35  ;;  %v7619_v13 = vmul.f32 %v10824_v43, %v7565_v27  ;;  %v7611_v53 = vmul.f32 0.5, %v7610_v40  ;;  %vm7625_vm15 = vweird.f32 %v10824_v43 }
 0xcb7   : > { %v7603_v52 = vmul.f32 %v10820_v39, %v7602_v59  ;;  %vm7626_vm2 = vmor %vm7624_vm1, %vm7625_vm15 }
 0xcb8   : > { %v7597_v26 = vsel %vm7596_vm14, %v10818_v41, %v7593_v30  ;;  %v7620_v4 = vmul.f32 %v10824_v43, %v7619_v13  ;;  %v7612_v37 = vsub.f32 1.5, %v7611_v53 }
 0xcb9   : > { %v7607_v47 = vsel %vm7606_vm5, %v10820_v39, %v7603_v52  ;;  %v7650_v9 = vmul.f32 %v7597_v26, %v14550_v21 }
 0xcba   : > { %v7621_v25 = vmul.f32 0.5, %v7620_v4  ;;  %v7651_v28 = vmul.f32 %v7607_v47, %v14556_v34  ;;  %v7613_v23 = vmul.f32 %v10822_v2, %v7612_v37 }
 0xcbb   : > { %v7662_v49 = vmul.f32 %v14600_v54, %v7650_v9 }
 0xcbc   : > { %v7622_v5 = vsub.f32 1.5, %v7621_v25  ;;  %v7663_v1 = vmul.f32 %v14600_v54, %v7651_v28  ;;  %v7617_v21 = vsel %vm7616_vm6, %v10822_v2, %v7613_v23 }
 0xcbd   : > { %v7652_v57 = vmul.f32 %v7617_v21, %v14566_v51 }
 0xcbe   : > { %v7669_v55 = vpack.c.bf16 %v7663_v1, %v7662_v49  ;;  %v7623_v42 = vmul.f32 %v10824_v43, %v7622_v5  ;;  %v10912_v5 = vld [vmem:[%s15488_s13 + $0x20] sm:$0xff] }
 0xcbf   : > { %v7664_v22 = vmul.f32 %v14600_v54, %v7652_v57  ;;  %v9749_v57 = vld [vmem:[%s11598_s8 + $0xe0] sm:$0xf] }
 0xcc0   : > { %7753 = vmatmul.bf16.gmra.mxu2 %v7669_v55  ;;  %v7627_v50 = vsel %vm7626_vm2, %v10824_v43, %v7623_v42 }
 0xcc1   : > { %v7653_v34 = vmul.f32 %v7627_v50, %v14572_v20  ;;  %v10913_v50 = vld [vmem:[%s15488_s13 + $0x18] sm:$0xff] }
 0xcc3   : > { %v7665_v17 = vmul.f32 %v14600_v54, %v7653_v34 }
 0xcc5   : > { %v7670_v38 = vpack.c.bf16 %v7665_v17, %v7664_v22  ;;  %v9947_v17 = vld [vmem:[%s11598_s8 + $0xec] sm:$0xf0]  ;;  %v9945_v22 = vld [vmem:[%s11598_s8 + $0xe4] sm:$0xf] }
 0xcd0   : > { %7758 = vmatmul.bf16.gmra.mxu2 %v7670_v38  ;;  %v10914_v38 = vld [vmem:[%s15488_s13 + $0x28] sm:$0xff] }
 0xcee   : > { %v7549_v6 = vpop.xlane.xlu1 %7548 }
 0xcef   : > { %v7558_v56 = vmul.f32 %v7549_v6, %v15672_v7 }
 0xcf1   : > { %v7566_v48 = vadd.f32 1.1920929e-07, %v7558_v56  ;;  %v7551_v16 = vpop.xlane.xlu2 %7550  ;;  %v9750_v56 = vor.u32 %v9947_v17, %v9749_v57 }
 0xcf2   : > { %v7559_v32 = vmul.f32 %v7551_v16, %v15672_v7  ;;  %v9946_v16 = vld [vmem:[%s11598_s8 + $0xec] sm:$0xf] }
 0xcf3   : > { %10825 = vrsqrt.f32 %v7566_v48  ;;  %vm7634_vm8 = vweird.f32 %v7566_v48  ;;  %8123 = vmatpush.bf16.msrb.mxu3 %v9750_v56  ;;  %v9921_v56 = vld [vmem:[%s11598_s8 + $0x24] sm:$0xf] }
 0xcf4   : > { %v7567_v29 = vadd.f32 1.1920929e-07, %v7559_v32  ;;  %v9759_v32 = vld [vmem:[%s11598_s8 + $0xf8] sm:$0xf0] }
 0xcf6   : > { %10827 = vrsqrt.f32 %v7567_v29  ;;  %vm7644_vm3 = vweird.f32 %v7567_v29 }
 0xcf9   : > { %v10826_v20 = vpop.eup %10825 }
 0xcfa   : > { %v7629_v51 = vmul.f32 %v10826_v20, %v7566_v48  ;;  %vm7635_vm7 = vweird.f32 %v10826_v20  ;;  %v9751_v48 = vld [vmem:[%s11598_s8 + $0xf0] sm:$0xf0] }
 0xcfb   : > { %vm7636_vm9 = vmor %vm7634_vm8, %vm7635_vm7 }
 0xcfc   : > { %v10828_v36 = vpop.eup %10827  ;;  %v7630_v0 = vmul.f32 %v10826_v20, %v7629_v51 }
 0xcfd   : > { %v7639_v19 = vmul.f32 %v10828_v36, %v7567_v29  ;;  %vm7645_vm10 = vweird.f32 %v10828_v36  ;;  %v9754_v29 = vor.u32 %v9945_v22, %v9751_v48  ;;  %v9653_v22 = vld [vmem:[%s11598_s8 + $0x20] sm:$0xf] }
 0xcfe   : > { %v7631_v46 = vmul.f32 0.5, %v7630_v0  ;;  %vm7646_vm12 = vmor %vm7644_vm3, %vm7645_vm10  ;;  %v9733_v0 = vld [vmem:[%s11598_s8 + $0xc0] sm:$0xf] }
 0xcff   : > { %v7640_v3 = vmul.f32 %v10828_v36, %v7639_v19  ;;  %8152 = vmatpush.bf16.msrb.mxu0 %v9754_v29  ;;  %v9943_v19 = vld [vmem:[%s11598_s8 + $0xcc] sm:$0xf0]  ;;  %9973 = vmatpush.bf16.msra.mxu1 %v9754_v29  ;;  %v9663_v29 = vld [vmem:[%s11598_s8 + $0x38] sm:$0xf0] }
 0xd00   : > { %v7632_v31 = vsub.f32 1.5, %v7631_v46  ;;  %v7749_v62 = vpop.f32.mrf.mxu2  ;;  %v9941_v46 = vld [vmem:[%s11598_s8 + $0xc4] sm:$0xf] }
 0xd01   : > { %v7641_v10 = vmul.f32 0.5, %v7640_v3  ;;  %v7750_v60 = vadd.f32 %v14639_v18, %v7749_v62  ;;  %v9734_v3 = vor.u32 %v9943_v19, %v9733_v0  ;;  %v9942_v62 = vld [vmem:[%s11598_s8 + $0xcc] sm:$0xf]  ;;  %v9919_v0 = vld [vmem:[%s11598_s8 + $0xc] sm:$0xf0] }
 0xd02   : > { %v7633_v24 = vmul.f32 %v10826_v20, %v7632_v31  ;;  %v9735_v31 = vld [vmem:[%s11598_s8 + $0xd0] sm:$0xf0]  ;;  %v9917_v19 = vld [vmem:[%s11598_s8 + $0x4] sm:$0xf] }
 0xd03   : > { %v7642_v14 = vsub.f32 1.5, %v7641_v10  ;;  %v7773_v41 = vmul.f32 %v14646_v33, %v7750_v60  ;;  %v9743_v10 = vld [vmem:[%s11598_s8 + $0xd8] sm:$0xf0]  ;;  %v9738_v60 = vor.u32 %v9941_v46, %v9735_v31  ;;  %8124 = vmatpush.bf16.msrb.mxu3 %v9734_v3  ;;  %v9639_v31 = vld [vmem:[%s11598_s8 + $0x10] sm:$0xf0] }
 0xd04   : > { %v7637_v27 = vsel %vm7636_vm9, %v10826_v20, %v7633_v24  ;;  %v9762_v20 = vor.u32 %v9946_v16, %v9759_v32  ;;  %v9746_v24 = vor.u32 %v9942_v62, %v9743_v10  ;;  %v9655_v16 = vld [vmem:[%s11598_s8 + $0x30] sm:$0xf0]  ;;  %v9922_v32 = vld [vmem:[%s11598_s8 + $0x2c] sm:$0xf]  ;;  %v9647_v10 = vld [vmem:[%s11598_s8 + $0x18] sm:$0xf0] }
 0xd05   : > { %v7643_v39 = vmul.f32 %v10828_v36, %v7642_v14  ;;  %v14653_v8 = vadd.f32 %v10909_v15, %v7773_v41  ;;  %v7654_v61 = vmul.f32 %v7637_v27, %v14610_v44  ;;  %v10910_v44 = vld [vmem:[%s15488_s13 + $0x8] sm:$0xff]  ;;  %8153 = vmatpush.bf16.msrb.mxu0 %v9738_v60  ;;  %v9939_v41 = vld [vmem:[%s11598_s8 + $0xac] sm:$0xf0]  ;;  %v9719_v15 = vld [vmem:[%s11598_s8 + $0xb0] sm:$0xf0]  ;;  %9974 = vmatpush.bf16.msra.mxu1 %v9738_v60 }
 0xd06   : > { %8210 = vmatpush.bf16.msra.mxu2 %v9762_v20  ;;  %v9717_v14 = vld [vmem:[%s11598_s8 + $0xa0] sm:$0xf]  ;;  %v9937_v27 = vld [vmem:[%s11598_s8 + $0xa4] sm:$0xf]  ;;  %v9658_v20 = vor.u32 %v9921_v56, %v9655_v16  ;;  %v9918_v62 = vld [vmem:[%s11598_s8 + $0xc] sm:$0xf] }
 0xd07   : > { %v7647_v2 = vsel %vm7646_vm12, %v10828_v36, %v7643_v39  ;;  %v7789_v45 = vmul.f32 %v14653_v8, %v14653_v8  ;;  %v7666_v35 = vmul.f32 %v14600_v54, %v7654_v61  ;;  %v9718_v39 = vor.u32 %v9939_v41, %v9717_v14  ;;  %v9938_v61 = vld [vmem:[%s11598_s8 + $0xac] sm:$0xf] }
 0xd08   : > { %v7751_v63 = vpop.f32.mrf.mxu2  ;;  %v7655_v58 = vmul.f32 %v7647_v2, %v14619_v11  ;;  %v9727_v2 = vld [vmem:[%s11598_s8 + $0xb8] sm:$0xf0]  ;;  %v9650_v14 = vor.u32 %v9918_v62, %v9647_v10 }
 0xd09   : > { %v7752_v12 = vadd.f32 %v14639_v18, %v7751_v63  ;;  %7797 = vadd.xlane.f32.xlu0 %v7789_v45  ;;  %v9722_v45 = vor.u32 %v9937_v27, %v9719_v15  ;;  %v9730_v63 = vor.u32 %v9938_v61, %v9727_v2  ;;  %8125 = vmatpush.bf16.msrb.mxu3 %v9718_v39 }
 0xd0a   : > { %v7667_v43 = vmul.f32 %v14600_v54, %v7655_v58  ;;  %v10911_v54 = vld [vmem:[%s15488_s13 + $0x10] sm:$0xff]  ;;  %8211 = vmatpush.bf16.msra.mxu2 %v9746_v24  ;;  %v9701_v58 = vld [vmem:[%s11598_s8 + $0x80] sm:$0xf]  ;;  %v9642_v24 = vor.u32 %v9917_v19, %v9639_v31 }
 0xd0b   : > { %v7774_v59 = vmul.f32 %v14646_v33, %v7752_v12  ;;  %8154 = vmatpush.bf16.msrb.mxu0 %v9722_v45  ;;  %v9935_v12 = vld [vmem:[%s11598_s8 + $0x8c] sm:$0xf0]  ;;  %9975 = vmatpush.bf16.msra.mxu1 %v9722_v45 }
 0xd0c   : > { %v7671_v40 = vpack.c.bf16 %v7667_v43, %v7666_v35  ;;  %v9933_v35 = vld [vmem:[%s11598_s8 + $0x84] sm:$0xf]  ;;  %v9702_v43 = vor.u32 %v9935_v12, %v9701_v58 }
 0xd0d   : > { %v14666_v30 = vadd.f32 %v10910_v44, %v7774_v59  ;;  %v9703_v59 = vld [vmem:[%s11598_s8 + $0x90] sm:$0xf0]  ;;  %v9711_v44 = vld [vmem:[%s11598_s8 + $0x98] sm:$0xf0] }
 0xd0e   : > { %7763 = vmatmul.bf16.gmra.mxu2 %v7671_v40  ;;  %v9934_v40 = vld [vmem:[%s11598_s8 + $0x8c] sm:$0xf]  ;;  %8126 = vmatpush.bf16.msrb.mxu3 %v9702_v43 }
 0xd0f   : > { %v7790_v11 = vmul.f32 %v14666_v30, %v14666_v30  ;;  %8212 = vmatpush.bf16.msra.mxu2 %v9730_v63 }
 0xd11   : > { %7799 = vadd.xlane.f32.xlu1 %v7790_v11  ;;  %v9706_v11 = vor.u32 %v9933_v35, %v9703_v59 }
 0xd13   : > { %8155 = vmatpush.bf16.msrb.mxu0 %v9706_v11  ;;  %9976 = vmatpush.bf16.msra.mxu1 %v9706_v11 }
 0xd43   : > { %v7754_v13 = vpop.f32.mrf.mxu2 }
 0xd44   : > { %v7755_v52 = vadd.f32 %v14639_v18, %v7754_v13  ;;  %v9714_v13 = vor.u32 %v9934_v40, %v9711_v44 }
 0xd46   : > { %v7775_v26 = vmul.f32 %v14646_v33, %v7755_v52  ;;  %8213 = vmatpush.bf16.msra.mxu2 %v9714_v13  ;;  %v9685_v52 = vld [vmem:[%s11598_s8 + $0x60] sm:$0xf] }
 0xd48   : > { %v14675_v4 = vadd.f32 %v10911_v54, %v7775_v26  ;;  %v9931_v26 = vld [vmem:[%s11598_s8 + $0x6c] sm:$0xf0]  ;;  %v9929_v54 = vld [vmem:[%s11598_s8 + $0x64] sm:$0xf] }
 0xd4a   : > { %v7791_v47 = vmul.f32 %v14675_v4, %v14675_v4 }
 0xd4b   : > { %v7756_v53 = vpop.f32.mrf.mxu2 }
 0xd4c   : > { %7801 = vadd.xlane.f32.xlu1 %v7791_v47  ;;  %v7757_v28 = vadd.f32 %v14639_v18, %v7756_v53  ;;  %v9686_v47 = vor.u32 %v9931_v26, %v9685_v52  ;;  %v9687_v53 = vld [vmem:[%s11598_s8 + $0x70] sm:$0xf0]  ;;  %v10915_v26 = vld [vmem:[%s15488_s13 + $0x30] sm:$0xff] }
 0xd4e   : > { %v7776_v37 = vmul.f32 %v14646_v33, %v7757_v28  ;;  %v9690_v28 = vor.u32 %v9929_v54, %v9687_v53  ;;  %8127 = vmatpush.bf16.msrb.mxu3 %v9686_v47 }
 0xd50   : > { %v14694_v21 = vadd.f32 %v10913_v50, %v7776_v37  ;;  %8156 = vmatpush.bf16.msrb.mxu0 %v9690_v28  ;;  %v9927_v37 = vld [vmem:[%s11598_s8 + $0x4c] sm:$0xf0]  ;;  %v9926_v50 = vld [vmem:[%s11598_s8 + $0x4c] sm:$0xf]  ;;  %9977 = vmatpush.bf16.msra.mxu1 %v9690_v28 }
 0xd52   : > { %v7792_v51 = vmul.f32 %v14694_v21, %v14694_v21 }
 0xd53   : > { %v7759_v9 = vpop.f32.mrf.mxu2 }
 0xd54   : > { %v7760_v25 = vadd.f32 %v14639_v18, %v7759_v9  ;;  %v9930_v9 = vld [vmem:[%s11598_s8 + $0x6c] sm:$0xf] }
 0xd56   : > { %v7777_v49 = vmul.f32 %v14646_v33, %v7760_v25  ;;  %v9695_v25 = vld [vmem:[%s11598_s8 + $0x78] sm:$0xf0] }
 0xd58   : > { %v14685_v1 = vadd.f32 %v10912_v5, %v7777_v49  ;;  %v9698_v49 = vor.u32 %v9930_v9, %v9695_v25  ;;  %v9669_v5 = vld [vmem:[%s11598_s8 + $0x40] sm:$0xf] }
 0xd5a   : > { %v7793_v55 = vmul.f32 %v14685_v1, %v14685_v1  ;;  %8214 = vmatpush.bf16.msra.mxu2 %v9698_v49 }
 0xd5b   : > { %v7761_v42 = vpop.f32.mrf.mxu2 }
 0xd5c   : > { %v7762_v23 = vadd.f32 %v14639_v18, %v7761_v42  ;;  %7805 = vadd.xlane.f32.xlu2 %v7793_v55  ;;  %v9925_v55 = vld [vmem:[%s11598_s8 + $0x44] sm:$0xf]  ;;  %v9670_v42 = vor.u32 %v9927_v37, %v9669_v5 }
 0xd5e   : > { %v7778_v34 = vmul.f32 %v14646_v33, %v7762_v23  ;;  %v9671_v23 = vld [vmem:[%s11598_s8 + $0x50] sm:$0xf0]  ;;  %8128 = vmatpush.bf16.msrb.mxu3 %v9670_v42 }
 0xd5f   : > { %v9674_v57 = vor.u32 %v9925_v55, %v9671_v23  ;;  %v10916_v23 = vld [vmem:[%s15488_s13 + $0x38] sm:$0xff] }
 0xd60   : > { %v14703_v6 = vadd.f32 %v10914_v38, %v7778_v34  ;;  %v9679_v34 = vld [vmem:[%s11598_s8 + $0x58] sm:$0xf0]  ;;  %v9923_v38 = vld [vmem:[%s11598_s8 + $0x2c] sm:$0xf0] }
 0xd61   : > { %v9682_v17 = vor.u32 %v9926_v50, %v9679_v34  ;;  %8157 = vmatpush.bf16.msrb.mxu0 %v9674_v57  ;;  %v9654_v48 = vor.u32 %v9923_v38, %v9653_v22  ;;  %9978 = vmatpush.bf16.msra.mxu1 %v9674_v57 }
 0xd62   : > { %v7794_v36 = vmul.f32 %v14703_v6, %v14703_v6 }
 0xd63   : > { %8215 = vmatpush.bf16.msra.mxu2 %v9682_v17  ;;  %8129 = vmatpush.bf16.msrb.mxu3 %v9654_v48 }
 0xd64   : > { %7803 = vadd.xlane.f32.xlu2 %v7792_v51  ;;  %7807 = vadd.xlane.f32.xlu0 %v7794_v36  ;;  %v9666_v51 = vor.u32 %v9922_v32, %v9663_v29  ;;  %v9637_v36 = vld [vmem:[%s11598_s8] sm:$0xf] }
 0xd65   : > { %8158 = vmatpush.bf16.msrb.mxu0 %v9658_v20  ;;  %v9638_v3 = vor.u32 %v9919_v0, %v9637_v36  ;;  %9979 = vmatpush.bf16.msra.mxu1 %v9658_v20 }
 0xd67   : > { %8216 = vmatpush.bf16.msra.mxu2 %v9666_v51  ;;  %8130 = vmatpush.bf16.msrb.mxu3 %v9638_v3 }
 0xd69   : > { %8159 = vmatpush.bf16.msrb.mxu0 %v9642_v24  ;;  %9980 = vmatpush.bf16.msra.mxu1 %v9642_v24 }
 0xd6b   : > { %8217 = vmatpush.bf16.msra.mxu2 %v9650_v14 }
 0xd7c   : > { %v7798_v46 = vpop.xlane.xlu0 %7797 }
 0xd7d   : > { %v7813_v60 = vmul.f32 %v7798_v46, %v15672_v7 }
 0xd7f   : > { %v7821_v41 = vadd.f32 1.1920929e-07, %v7813_v60 }
 0xd81   : > { %10829 = vrsqrt.f32 %v7821_v41  ;;  %vm7835_vm14 = vweird.f32 %v7821_v41 }
 0xd84   : > { %v7800_v27 = vpop.xlane.xlu1 %7799 }
 0xd85   : > { %v7814_v39 = vmul.f32 %v7800_v27, %v15672_v7 }
 0xd87   : > { %v10830_v15 = vpop.eup %10829  ;;  %v7822_v61 = vadd.f32 1.1920929e-07, %v7814_v39 }
 0xd88   : > { %v7830_v2 = vmul.f32 %v10830_v15, %v7821_v41  ;;  %vm7836_vm13 = vweird.f32 %v10830_v15 }
 0xd89   : > { %10831 = vrsqrt.f32 %v7822_v61  ;;  %vm7837_vm5 = vmor %vm7835_vm14, %vm7836_vm13  ;;  %vm7845_vm15 = vweird.f32 %v7822_v61 }
 0xd8a   : > { %v7831_v45 = vmul.f32 %v10830_v15, %v7830_v2 }
 0xd8c   : > { %v7832_v63 = vmul.f32 0.5, %v7831_v45 }
 0xd8e   : > { %v7833_v12 = vsub.f32 1.5, %v7832_v63 }
 0xd8f   : > { %v10832_v58 = vpop.eup %10831 }
 0xd90   : > { %v7840_v35 = vmul.f32 %v10832_v58, %v7822_v61  ;;  %v7834_v44 = vmul.f32 %v10830_v15, %v7833_v12  ;;  %vm7846_vm11 = vweird.f32 %v10832_v58 }
 0xd91   : > { %v7764_v43 = vpop.f32.mrf.mxu2  ;;  %vm7847_vm0 = vmor %vm7845_vm15, %vm7846_vm11 }
 0xd92   : > { %v7841_v59 = vmul.f32 %v10832_v58, %v7840_v35  ;;  %v7765_v40 = vadd.f32 %v14639_v18, %v7764_v43  ;;  %v7838_v47 = vsel %vm7837_vm5, %v10830_v15, %v7834_v44 }
 0xd93   : > { %v7909_v5 = vmul.f32 %v7838_v47, %v14653_v8 }
 0xd94   : > { %v7842_v11 = vmul.f32 0.5, %v7841_v59  ;;  %v7779_v13 = vmul.f32 %v14646_v33, %v7765_v40 }
 0xd96   : > { %v7843_v52 = vsub.f32 1.5, %v7842_v11  ;;  %v14761_v54 = vadd.f32 %v10915_v26, %v7779_v13 }
 0xd98   : > { %v7844_v53 = vmul.f32 %v10832_v58, %v7843_v52  ;;  %v7795_v9 = vmul.f32 %v14761_v54, %v14761_v54 }
 0xd99   : > { %v7766_v25 = vpop.f32.mrf.mxu2 }
 0xd9a   : > { %v7848_v28 = vsel %vm7847_vm0, %v10832_v58, %v7844_v53  ;;  %v7767_v49 = vadd.f32 %v14639_v18, %v7766_v25  ;;  %7809 = vadd.xlane.f32.xlu0 %v7795_v9  ;;  %v9757_v25 = vld [vmem:[%s11598_s8 + $0xe8] sm:$0xf] }
 0xd9b   : > { %v7910_v37 = vmul.f32 %v7848_v28, %v14666_v30  ;;  %v9948_v28 = vld [vmem:[%s11598_s8 + $0xf4] sm:$0xf0] }
 0xd9c   : > { %v7780_v55 = vmul.f32 %v14646_v33, %v7767_v49  ;;  %v9758_v49 = vor.u32 %v9948_v28, %v9757_v25  ;;  %v9957_v28 = vld [vmem:[%s11607_s11 + $0x40] sm:$0xff] }
 0xd9d   : > { %v14769_v42 = vpack.c.bf16 %v7910_v37, %v7909_v5  ;;  %v9741_v5 = vld [vmem:[%s11598_s8 + $0xc8] sm:$0xf]  ;;  %v9944_v37 = vld [vmem:[%s11598_s8 + $0xd4] sm:$0xf0] }
 0xd9e   : > { %v14774_v50 = vadd.f32 %v10916_v23, %v7780_v55  ;;  %8181 = vmatpush.bf16.msrb.mxu1 %v9758_v49  ;;  %v9742_v55 = vor.u32 %v9944_v37, %v9741_v5  ;;  %v9725_v23 = vld [vmem:[%s11598_s8 + $0xa8] sm:$0xf] }
 0xd9f   : > { %8131 = vmatmul.bf16.vlgmr.msrb.gmra.mxu3 %v14769_v42  ;;  %8160 = vmatmul.bf16.vlgmr.msrb.gmra.mxu0 %v14769_v42 }
 0xda0   : > { %8218 = vmatmul.bf16.vlgmr.msra.gmra.mxu2 %v14769_v42  ;;  %v7796_v18 = vmul.f32 %v14774_v50, %v14774_v50 }
 0xda2   : > { %7811 = vadd.xlane.f32.xlu1 %v7796_v18  ;;  %8182 = vmatpush.bf16.msrb.mxu1 %v9742_v55  ;;  %v9940_v18 = vld [vmem:[%s11598_s8 + $0xb4] sm:$0xf0] }
 0xdbf   : > { %v7802_v34 = vpop.xlane.xlu1 %7801 }
 0xdc0   : > { %v7815_v33 = vmul.f32 %v7802_v34, %v15672_v7  ;;  %v9726_v34 = vor.u32 %v9940_v18, %v9725_v23 }
 0xdc2   : > { %v7823_v57 = vadd.f32 1.1920929e-07, %v7815_v33  ;;  %v9964_v33 = vld [vmem:[%s11607_s11 + $0x78] sm:$0xff]  ;;  %8183 = vmatpush.bf16.msrb.mxu1 %v9726_v34 }
 0xdc3   : > { %8744 = vmatpush.bf16.msra.mxu0 %v9964_v33 }
 0xdc4   : > { %10833 = vrsqrt.f32 %v7823_v57  ;;  %vm7855_vm4 = vweird.f32 %v7823_v57 }
 0xdca   : > { %v10834_v56 = vpop.eup %10833 }
 0xdcb   : > { %v7850_v48 = vmul.f32 %v10834_v56, %v7823_v57  ;;  %vm7856_vm1 = vweird.f32 %v10834_v56  ;;  %v9709_v57 = vld [vmem:[%s11598_s8 + $0x88] sm:$0xf] }
 0xdcc   : > { %vm7857_vm7 = vmor %vm7855_vm4, %vm7856_vm1 }
 0xdcd   : > { %v7851_v19 = vmul.f32 %v10834_v56, %v7850_v48  ;;  %v9963_v48 = vld [vmem:[%s11607_s11 + $0x70] sm:$0xff] }
 0xdce   : > { %8745 = vmatpush.bf16.msra.mxu0 %v9963_v48 }
 0xdcf   : > { %v7806_v17 = vpop.xlane.xlu2 %7805  ;;  %v7852_v31 = vmul.f32 0.5, %v7851_v19 }
 0xdd0   : > { %v7817_v22 = vmul.f32 %v7806_v17, %v15672_v7  ;;  %v9936_v17 = vld [vmem:[%s11598_s8 + $0x94] sm:$0xf0] }
 0xdd1   : > { %v7853_v24 = vsub.f32 1.5, %v7852_v31  ;;  %v14817_v31 = vld [vmem:[%s11600_s15] sm:$0xf] }
 0xdd2   : > { %v7825_v38 = vadd.f32 1.1920929e-07, %v7817_v22 }
 0xdd3   : > { %v7854_v61 = vmul.f32 %v10834_v56, %v7853_v24  ;;  %v9661_v24 = vld [vmem:[%s11598_s8 + $0x28] sm:$0xf] }
 0xdd4   : > { %10835 = vrsqrt.f32 %v7825_v38  ;;  %vm7875_vm8 = vweird.f32 %v7825_v38 }
 0xdd5   : > { %v7858_v35 = vsel %vm7857_vm7, %v10834_v56, %v7854_v61 }
 0xdd6   : > { %v7911_v13 = vmul.f32 %v7858_v35, %v14675_v4  ;;  %v9959_v35 = vld [vmem:[%s11607_s11 + $0x50] sm:$0xff] }
 0xdd7   : > { %v7804_v16 = vpop.xlane.xlu2 %7803  ;;  %v7808_v32 = vpop.xlane.xlu0 %7807 }
 0xdd8   : > { %v7816_v29 = vmul.f32 %v7804_v16, %v15672_v7  ;;  %v7818_v20 = vmul.f32 %v7808_v32, %v15672_v7  ;;  %v9693_v32 = vld [vmem:[%s11598_s8 + $0x68] sm:$0xf] }
 0xdda   : > { %v10836_v51 = vpop.eup %10835  ;;  %v7824_v36 = vadd.f32 1.1920929e-07, %v7816_v29  ;;  %v7826_v0 = vadd.f32 1.1920929e-07, %v7818_v20  ;;  %v9932_v29 = vld [vmem:[%s11598_s8 + $0x74] sm:$0xf0] }
 0xddb   : > { %v7870_v46 = vmul.f32 %v10836_v51, %v7825_v38  ;;  %vm7876_vm2 = vweird.f32 %v10836_v51  ;;  %v9710_v38 = vor.u32 %v9936_v17, %v9709_v57  ;;  %v9694_v20 = vor.u32 %v9932_v29, %v9693_v32 }
 0xddc   : > { %10837 = vrsqrt.f32 %v7824_v36  ;;  %vm7877_vm10 = vmor %vm7875_vm8, %vm7876_vm2  ;;  %vm7865_vm3 = vweird.f32 %v7824_v36  ;;  %vm7885_vm13 = vweird.f32 %v7826_v0 }
 0xddd   : > { %v7871_v3 = vmul.f32 %v10836_v51, %v7870_v46  ;;  %10839 = vrsqrt.f32 %v7826_v0  ;;  %8184 = vmatpush.bf16.msrb.mxu1 %v9710_v38 }
 0xddf   : > { %v7872_v62 = vmul.f32 0.5, %v7871_v3 }
 0xde1   : > { %v7873_v41 = vsub.f32 1.5, %v7872_v62  ;;  %8185 = vmatpush.bf16.msrb.mxu1 %v9694_v20  ;;  %v9961_v62 = vld [vmem:[%s11607_s11 + $0x60] sm:$0xff] }
 0xde2   : > { %v10838_v10 = vpop.eup %10837 }
 0xde3   : > { %v10840_v60 = vpop.eup %10839  ;;  %v7860_v14 = vmul.f32 %v10838_v10, %v7824_v36  ;;  %v7874_v45 = vmul.f32 %v10836_v51, %v7873_v41  ;;  %vm7866_vm6 = vweird.f32 %v10838_v10  ;;  %v9677_v36 = vld [vmem:[%s11598_s8 + $0x48] sm:$0xf] }
 0xde4   : > { %v7880_v27 = vmul.f32 %v10840_v60, %v7826_v0  ;;  %vm7886_vm9 = vweird.f32 %v10840_v60  ;;  %vm7867_vm12 = vmor %vm7865_vm3, %vm7866_vm6  ;;  %v9928_v0 = vld [vmem:[%s11598_s8 + $0x54] sm:$0xf0] }
 0xde5   : > { %v7861_v39 = vmul.f32 %v10838_v10, %v7860_v14  ;;  %v7878_v59 = vsel %vm7877_vm10, %v10836_v51, %v7874_v45  ;;  %vm7887_vm14 = vmor %vm7885_vm13, %vm7886_vm9  ;;  %v9962_v51 = vld [vmem:[%s11607_s11 + $0x68] sm:$0xff]  ;;  %v9678_v46 = vor.u32 %v9928_v0, %v9677_v36  ;;  %v9924_v14 = vld [vmem:[%s11598_s8 + $0x34] sm:$0xf0] }
 0xde6   : > { %v7881_v15 = vmul.f32 %v10840_v60, %v7880_v27  ;;  %v7913_v26 = vmul.f32 %v7878_v59, %v14685_v1  ;;  %8746 = vmatpush.bf16.msra.mxu0 %v9962_v51  ;;  %v14823_v27 = vperm.slane %v14817_v31, 1  ;;  %v9920_v45 = vld [vmem:[%s11598_s8 + $0x14] sm:$0xf0] }
 0xde7   : > { %v7862_v2 = vmul.f32 0.5, %v7861_v39  ;;  %8186 = vmatpush.bf16.msrb.mxu1 %v9678_v46  ;;  %v9662_v39 = vor.u32 %v9924_v14, %v9661_v24 }
 0xde8   : > { %v7882_v63 = vmul.f32 0.5, %v7881_v15  ;;  %v9960_v15 = vld [vmem:[%s11607_s11 + $0x58] sm:$0xff] }
 0xde9   : > { %v7863_v58 = vsub.f32 1.5, %v7862_v2  ;;  %v9645_v2 = vld [vmem:[%s11598_s8 + $0x8] sm:$0xf]  ;;  %s15690_s8 = scalar_lea.vmem [#allocation14], %s11570_s14 }
 0xdea   : > { %v7883_v12 = vsub.f32 1.5, %v7882_v63  ;;  %8747 = vmatpush.bf16.msra.mxu0 %v9961_v62 }
 0xdeb   : > { %v7864_v43 = vmul.f32 %v10838_v10, %v7863_v58  ;;  %8187 = vmatpush.bf16.msrb.mxu1 %v9662_v39 }
 0xdec   : > { %v7884_v40 = vmul.f32 %v10840_v60, %v7883_v12  ;;  %v9646_v12 = vor.u32 %v9920_v45, %v9645_v2 }
 0xded   : > { %v7868_v44 = vsel %vm7867_vm12, %v10838_v10, %v7864_v43 }
 0xdee   : > { %v7888_v11 = vsel %vm7887_vm14, %v10840_v60, %v7884_v40  ;;  %v7912_v52 = vmul.f32 %v7868_v44, %v14694_v21  ;;  %8748 = vmatpush.bf16.msra.mxu0 %v9960_v15 }
 0xdef   : > { %v7914_v47 = vmul.f32 %v7888_v11, %v14703_v6  ;;  %8188 = vmatpush.bf16.msrb.mxu1 %v9646_v12  ;;  %v9958_v11 = vld [vmem:[%s11607_s11 + $0x48] sm:$0xff] }
 0xdf0   : > { %v14789_v53 = vpack.c.bf16 %v7912_v52, %v7911_v13 }
 0xdf1   : > { %v14791_v9 = vpack.c.bf16 %v7914_v47, %v7913_v26 }
 0xdf2   : > { %8136 = vmatmul.bf16.gmra.mxu3 %v14789_v53  ;;  %8165 = vmatmul.bf16.gmra.mxu0 %v14789_v53 }
 0xdf3   : > { %8170 = vmatmul.bf16.vlgmr.msra.gmra.mxu1 %v14791_v9  ;;  %8223 = vmatmul.bf16.gmra.mxu2 %v14789_v53 }
 0xdf4   : > { %8749 = vmatpush.bf16.msra.mxu0 %v9959_v35 }
 0xdf8   : > { %8750 = vmatpush.bf16.msra.mxu0 %v9958_v11 }
 0xdfc   : > { %8751 = vmatpush.bf16.msra.mxu0 %v9957_v28 }
 0xe02   : > { %8141 = vmatmul.bf16.gmra.mxu3 %v14791_v9 }
 0xe03   : > { %8228 = vmatmul.bf16.gmra.mxu2 %v14791_v9 }
 0xe0d   : > { %v7810_v22 = vpop.xlane.xlu0 %7809 }
 0xe0e   : > { %v7819_v56 = vmul.f32 %v7810_v22, %v15672_v7 }
 0xe10   : > { %v7827_v16 = vadd.f32 1.1920929e-07, %v7819_v56 }
 0xe12   : > { %10841 = vrsqrt.f32 %v7827_v16  ;;  %vm7895_vm5 = vweird.f32 %v7827_v16 }
 0xe15   : > { %v7812_v19 = vpop.xlane.xlu1 %7811 }
 0xe16   : > { %v7820_v3 = vmul.f32 %v7812_v19, %v15672_v7 }
 0xe18   : > { %v10842_v10 = vpop.eup %10841  ;;  %v7828_v60 = vadd.f32 1.1920929e-07, %v7820_v3 }
 0xe19   : > { %v7890_v41 = vmul.f32 %v10842_v10, %v7827_v16  ;;  %vm7896_vm11 = vweird.f32 %v10842_v10 }
 0xe1a   : > { %10843 = vrsqrt.f32 %v7828_v60  ;;  %vm7897_vm0 = vmor %vm7895_vm5, %vm7896_vm11  ;;  %vm7905_vm1 = vweird.f32 %v7828_v60 }
 0xe1b   : > { %v7891_v7 = vmul.f32 %v10842_v10, %v7890_v41  ;;  %v14839_v41 = vperm.slane %v14817_v31, 3 }
 0xe1c   : > { %v8161_v61 = vpop.f32.mrf.mxu0 }
 0xe1d   : > { %v7892_v63 = vmul.f32 0.5, %v7891_v7  ;;  %v14829_v58 = vadd.f32 %v8161_v61, %v14823_v27 }
 0xe1f   : > { %v9764_v43 = vmul.f32 -1.442695, %v14829_v58  ;;  %v7893_v40 = vsub.f32 1.5, %v7892_v63 }
 0xe20   : > { %v10844_v59 = vpop.eup %10843 }
 0xe21   : > { %v7900_v44 = vmul.f32 %v10844_v59, %v7828_v60  ;;  %10845 = vpow2.f32 %v9764_v43  ;;  %v7894_v26 = vmul.f32 %v10842_v10, %v7893_v40  ;;  %vm7906_vm15 = vweird.f32 %v10844_v59 }
 0xe22   : > { %vm7907_vm2 = vmor %vm7905_vm1, %vm7906_vm15 }
 0xe23   : > { %v7901_v13 = vmul.f32 %v10844_v59, %v7900_v44  ;;  %v7898_v23 = vsel %vm7897_vm0, %v10842_v10, %v7894_v26  ;;  %v8219_v29 = vpop.f32.mrf.mxu2 }
 0xe24   : > { %v8163_v52 = vpop.f32.mrf.mxu0  ;;  %v7915_v33 = vmul.f32 %v7898_v23, %v14761_v54  ;;  %v8220_v63 = vadd.f32 %v8219_v29, %v14839_v41 }
 0xe25   : > { %v7902_v47 = vmul.f32 0.5, %v7901_v13  ;;  %v8164_v25 = vadd.f32 %v8163_v52, %v14823_v27 }
 0xe27   : > { %v10846_v49 = vpop.eup %10845  ;;  %v7903_v5 = vsub.f32 1.5, %v7902_v47  ;;  %v9766_v37 = vmul.f32 -1.442695, %v8164_v25 }
 0xe28   : > { %v8288_v55 = vadd.f32 1.0, %v10846_v49 }
 0xe29   : > { %v7904_v18 = vmul.f32 %v10844_v59, %v7903_v5  ;;  %10847 = vpow2.f32 %v9766_v37  ;;  %v8132_v37 = vpop.f32.mrf.mxu3 }
 0xe2a   : > { %10849 = vrcp.f32 %v8288_v55  ;;  %v8329_v36 = vand.u32 2147483648, %v8288_v55  ;;  %vm8323_vm6 = vweird.f32 %v8288_v55  ;;  %v8327_v0 = vand.u32 2147483647, %v8288_v55 }
 0xe2b   : > { %v7908_v34 = vsel %vm7907_vm2, %v10844_v59, %v7904_v18  ;;  %v8221_v7 = vpop.f32.mrf.mxu2 }
 0xe2c   : > { %v7916_v57 = vmul.f32 %v7908_v34, %v14774_v50  ;;  %v8330_v62 = vor.u32 1.1754944e-38, %v8329_v36  ;;  %vm8328_vm8 = vcmp.eq.f32.partialorder %v8327_v0, 8.507059e+37  ;;  %v8222_v35 = vadd.f32 %v8221_v7, %v14839_v41 }
 0xe2e   : > { %v7920_v17 = vpack.c.bf16 %v7916_v57, %v7915_v33 }
 0xe2f   : > { %v10848_v22 = vpop.eup %10847 }
 0xe30   : > { %v10850_v38 = vpop.eup %10849  ;;  %8146 = vmatmul.bf16.gmra.mxu3 %v7920_v17  ;;  %8175 = vmatmul.bf16.gmra.mxu1 %v7920_v17  ;;  %v8290_v48 = vadd.f32 1.0, %v10848_v22 }
 0xe31   : > { %v8319_v56 = vmul.f32 %v10850_v38, %v8288_v55  ;;  %8233 = vmatmul.bf16.gmra.mxu2 %v7920_v17  ;;  %vm8324_vm4 = vweird.f32 %v10850_v38 }
 0xe32   : > { %10851 = vrcp.f32 %v8290_v48  ;;  %vm8325_vm7 = vmor %vm8323_vm6, %vm8324_vm4  ;;  %v8359_v10 = vand.u32 2147483648, %v8290_v48  ;;  %v8357_v24 = vand.u32 2147483647, %v8290_v48  ;;  %vm8353_vm10 = vweird.f32 %v8290_v48 }
 0xe33   : > { %v8320_v16 = vsub.f32 1.0, %v8319_v56  ;;  %v8134_v56 = vpop.f32.mrf.mxu3 }
 0xe34   : > { %v8360_v15 = vor.u32 1.1754944e-38, %v8359_v10  ;;  %vm8358_vm12 = vcmp.eq.f32.partialorder %v8357_v24, 8.507059e+37 }
 0xe35   : > { %v8321_v32 = vmul.f32 %v10850_v38, %v8320_v16 }
 0xe37   : > { %v8322_v20 = vadd.f32 %v10850_v38, %v8321_v32  ;;  %v14870_v32 = vperm.slane %v14817_v31, 0 }
 0xe38   : > { %v10852_v51 = vpop.eup %10851 }
 0xe39   : > { %v8349_v19 = vmul.f32 %v10852_v51, %v8290_v48  ;;  %v8326_v46 = vsel %vm8325_vm7, %v10850_v38, %v8322_v20  ;;  %vm8354_vm9 = vweird.f32 %v10852_v51 }
 0xe3a   : > { %v8331_v14 = vsel %vm8328_vm8, %v8330_v62, %v8326_v46  ;;  %vm8355_vm3 = vmor %vm8353_vm10, %vm8354_vm9  ;;  %v14875_v46 = vadd.f32 %v8132_v37, %v14870_v32 }
 0xe3b   : > { %v8350_v3 = vsub.f32 1.0, %v8349_v19  ;;  %v8544_v61 = vmul.f32 %v8331_v14, %v14829_v58 }
 0xe3d   : > { %v8351_v60 = vmul.f32 %v10852_v51, %v8350_v3  ;;  %v8560_v43 = vmul.f32 %v8544_v61, %v8220_v63 }
 0xe3f   : > { %v8352_v39 = vadd.f32 %v10852_v51, %v8351_v60 }
 0xe40   : > { %8189 = vmatmul.bf16.vlgmr.msrb.gmra.mxu1 %v14769_v42 }
 0xe41   : > { %v8356_v2 = vsel %vm8355_vm3, %v10852_v51, %v8352_v39 }
 0xe42   : > { %v8361_v45 = vsel %vm8358_vm12, %v8360_v15, %v8356_v2  ;;  %v14888_v15 = vadd.f32 %v8134_v56, %v14870_v32 }
 0xe43   : > { %v8546_v12 = vmul.f32 %v8361_v45, %v8164_v25 }
 0xe45   : > { %v8562_v59 = vmul.f32 %v8546_v12, %v8222_v35  ;;  %v9956_v12 = vld [vmem:[%s11607_s11 + $0x38] sm:$0xff]  ;;  %v9763_v35 = vmul.f32 -1.442695, %v14875_v46 }
 0xe46   : > { %8715 = vmatpush.bf16.msra.mxu3 %v9956_v12  ;;  %v9952_v12 = vld [vmem:[%s11607_s11 + $0x18] sm:$0xff] }
 0xe47   : > { %v8576_v40 = vpack.c.bf16 %v8562_v59, %v8560_v43 }
 0xe49   : > { %8752 = vmatmul.bf16.vlgmr.msra.gmra.mxu0 %v8576_v40 }
 0xe50   : > { %8194 = vmatmul.bf16.gmra.mxu1 %v14789_v53 }
 0xe60   : > { %8199 = vmatmul.bf16.gmra.mxu1 %v14791_v9 }
 0xe6f   : > { %v8166_v42 = vpop.f32.mrf.mxu0 }
 0xe70   : > { %v14848_v44 = vadd.f32 %v8166_v42, %v14823_v27  ;;  %v8171_v58 = vpop.f32.mrf.mxu1  ;;  %8204 = vmatmul.bf16.gmra.mxu1 %v7920_v17 }
 0xe71   : > { %v14851_v11 = vadd.f32 %v8171_v58, %v14823_v27  ;;  %v9955_v58 = vld [vmem:[%s11607_s11 + $0x30] sm:$0xff] }
 0xe72   : > { %v9768_v13 = vmul.f32 -1.442695, %v14848_v44  ;;  %8716 = vmatpush.bf16.msra.mxu3 %v9955_v58 }
 0xe73   : > { %v9772_v52 = vmul.f32 -1.442695, %v14851_v11 }
 0xe74   : > { %10853 = vpow2.f32 %v9768_v13  ;;  %v9765_v13 = vmul.f32 -1.442695, %v14888_v15 }
 0xe75   : > { %10855 = vpow2.f32 %v9772_v52  ;;  %v8137_v14 = vpop.f32.mrf.mxu3 }
 0xe76   : > { %v8224_v57 = vpop.f32.mrf.mxu2 }
 0xe77   : > { %v8168_v26 = vpop.f32.mrf.mxu0 }
 0xe78   : > { %v14856_v53 = vadd.f32 %v8168_v26, %v14823_v27  ;;  %v8173_v9 = vpop.f32.mrf.mxu1 }
 0xe79   : > { %v14859_v47 = vadd.f32 %v8173_v9, %v14823_v27 }
 0xe7a   : > { %v10854_v25 = vpop.eup %10853  ;;  %v9770_v28 = vmul.f32 -1.442695, %v14856_v53 }
 0xe7b   : > { %v8292_v49 = vadd.f32 1.0, %v10854_v25  ;;  %v9774_v5 = vmul.f32 -1.442695, %v14859_v47  ;;  %v10856_v55 = vpop.eup %10855 }
 0xe7c   : > { %10857 = vpow2.f32 %v9770_v28  ;;  %v14863_v23 = vadd.f32 1.0, %v10856_v55 }
 0xe7d   : > { %10859 = vrcp.f32 %v8292_v49  ;;  %v8389_v36 = vand.u32 2147483648, %v8292_v49  ;;  %vm8383_vm14 = vweird.f32 %v8292_v49  ;;  %v8387_v0 = vand.u32 2147483647, %v8292_v49 }
 0xe7e   : > { %10861 = vpow2.f32 %v9774_v5  ;;  %v8226_v62 = vpop.f32.mrf.mxu2  ;;  %v8225_v5 = vadd.f32 %v8224_v57, %v14839_v41  ;;  %vm8443_vm9 = vweird.f32 %v14863_v23 }
 0xe7f   : > { %10863 = vrcp.f32 %v14863_v23  ;;  %v8390_v7 = vor.u32 1.1754944e-38, %v8389_v36  ;;  %vm8388_vm5 = vcmp.eq.f32.partialorder %v8387_v0, 8.507059e+37  ;;  %v8227_v55 = vadd.f32 %v8226_v62, %v14839_v41 }
 0xe80   : > { %v8447_v36 = vand.u32 2147483647, %v14863_v23 }
 0xe82   : > { %v10858_v18 = vpop.eup %10857  ;;  %vm8448_vm12 = vcmp.eq.f32.partialorder %v8447_v36, 8.507059e+37 }
 0xe83   : > { %v10860_v34 = vpop.eup %10859  ;;  %v8294_v17 = vadd.f32 1.0, %v10858_v18  ;;  %v9954_v18 = vld [vmem:[%s11607_s11 + $0x28] sm:$0xff] }
 0xe84   : > { %v8379_v33 = vmul.f32 %v10860_v34, %v8292_v49  ;;  %v10862_v22 = vpop.eup %10861  ;;  %vm8384_vm13 = vweird.f32 %v10860_v34  ;;  %8717 = vmatpush.bf16.msra.mxu3 %v9954_v18  ;;  %v9949_v18 = vld [vmem:[%s11607_s11] sm:$0xff] }
 0xe85   : > { %10865 = vrcp.f32 %v8294_v17  ;;  %v14866_v48 = vadd.f32 1.0, %v10862_v22  ;;  %v14872_v29 = vpop.eup %10863  ;;  %vm14877_vm11 = vmor %vm8383_vm14, %vm8384_vm13  ;;  %v8419_v61 = vand.u32 2147483648, %v8294_v17  ;;  %v8417_v63 = vand.u32 2147483647, %v8294_v17 }
 0xe86   : > { %v8380_v38 = vsub.f32 1.0, %v8379_v33  ;;  %v8439_v24 = vmul.f32 %v14872_v29, %v14863_v23  ;;  %vm8413_vm0 = vweird.f32 %v8294_v17  ;;  %vm8444_vm6 = vweird.f32 %v14872_v29 }
 0xe87   : > { %10867 = vrcp.f32 %v14866_v48  ;;  %v8420_v52 = vor.u32 1.1754944e-38, %v8419_v61  ;;  %vm8418_vm2 = vcmp.eq.f32.partialorder %v8417_v63, 8.507059e+37  ;;  %vm8473_vm7 = vweird.f32 %v14866_v48  ;;  %vm8445_vm10 = vmor %vm8443_vm9, %vm8444_vm6 }
 0xe88   : > { %v8381_v16 = vmul.f32 %v10860_v34, %v8380_v38  ;;  %v8440_v40 = vsub.f32 1.0, %v8439_v24  ;;  %10869 = vpow2.f32 %v9763_v35  ;;  %v8479_v38 = vand.u32 2147483648, %v14866_v48 }
 0xe89   : > { %10871 = vpow2.f32 %v9765_v13 }
 0xe8a   : > { %v8382_v20 = vadd.f32 %v10860_v34, %v8381_v16  ;;  %v8441_v49 = vmul.f32 %v14872_v29, %v8440_v40  ;;  %v8480_v3 = vor.u32 1.1754944e-38, %v8479_v38 }
 0xe8b   : > { %v10866_v51 = vpop.eup %10865 }
 0xe8c   : > { %v8409_v19 = vmul.f32 %v10866_v51, %v8294_v17  ;;  %v8386_v60 = vsel %vm14877_vm11, %v10860_v34, %v8382_v20  ;;  %vm8414_vm15 = vweird.f32 %v10866_v51  ;;  %v8229_v34 = vpop.f32.mrf.mxu2  ;;  %v8139_v17 = vpop.f32.mrf.mxu3  ;;  %v8442_v57 = vadd.f32 %v14872_v29, %v8441_v49 }
 0xe8d   : > { %v14881_v10 = vpop.eup %10867  ;;  %v8391_v43 = vsel %vm8388_vm5, %v8390_v7, %v8386_v60  ;;  %vm8415_vm1 = vmor %vm8413_vm0, %vm8414_vm15  ;;  %v8449_v20 = vand.u32 2147483648, %v14863_v23  ;;  %v14927_v60 = vadd.f32 %v8139_v17, %v14870_v32  ;;  %v9953_v23 = vld [vmem:[%s11607_s11 + $0x20] sm:$0xff] }
 0xe8e   : > { %v8410_v39 = vsub.f32 1.0, %v8409_v19  ;;  %v8469_v2 = vmul.f32 %v14881_v10, %v14866_v48  ;;  %v8548_v26 = vmul.f32 %v8391_v43, %v14848_v44  ;;  %vm8474_vm4 = vweird.f32 %v14881_v10  ;;  %v10870_v16 = vpop.eup %10869  ;;  %8718 = vmatpush.bf16.msra.mxu3 %v9953_v23 }
 0xe8f   : > { %vm14911_vm8 = vmor %vm8473_vm7, %vm8474_vm4  ;;  %v14923_v19 = vadd.f32 %v8137_v14, %v14870_v32  ;;  %v8446_v62 = vsel %vm8445_vm10, %v14872_v29, %v8442_v57  ;;  %v14930_v24 = vadd.f32 1.0, %v10870_v16 }
 0xe90   : > { %v8411_v45 = vmul.f32 %v10866_v51, %v8410_v39  ;;  %v8470_v59 = vsub.f32 1.0, %v8469_v2  ;;  %v8564_v33 = vmul.f32 %v8548_v26, %v8225_v5  ;;  %v9950_v26 = vld [vmem:[%s11607_s11 + $0x8] sm:$0xff] }
 0xe91   : > { %v9767_v14 = vmul.f32 -1.442695, %v14923_v19  ;;  %10873 = vrcp.f32 %v14930_v24  ;;  %vm8308_vm11 = vweird.f32 %v14930_v24 }
 0xe92   : > { %v8412_v42 = vadd.f32 %v10866_v51, %v8411_v45  ;;  %v8471_v25 = vmul.f32 %v14881_v10, %v8470_v59  ;;  %v9769_v45 = vmul.f32 -1.442695, %v14927_v60  ;;  %8719 = vmatpush.bf16.msra.mxu3 %v9952_v12  ;;  %v8230_v59 = vadd.f32 %v8229_v34, %v14839_v41 }
 0xe94   : > { %v8416_v9 = vsel %vm8415_vm1, %v10866_v51, %v8412_v42  ;;  %v8472_v44 = vadd.f32 %v14881_v10, %v8471_v25  ;;  %v8231_v2 = vpop.f32.mrf.mxu2  ;;  %v8142_v63 = vpop.f32.mrf.mxu3 }
 0xe95   : > { %v8421_v28 = vsel %vm8418_vm2, %v8420_v52, %v8416_v9  ;;  %v8232_v43 = vadd.f32 %v8231_v2, %v14839_v41  ;;  %v8312_v2 = vand.u32 2147483647, %v14930_v24 }
 0xe96   : > { %v8550_v37 = vmul.f32 %v8421_v28, %v14856_v53  ;;  %v8477_v53 = vand.u32 2147483647, %v14866_v48  ;;  %v8476_v0 = vsel %vm14911_vm8, %v14881_v10, %v8472_v44  ;;  %v10872_v48 = vpop.eup %10871  ;;  %v8450_v10 = vor.u32 1.1754944e-38, %v8449_v20 }
 0xe97   : > { %v14932_v7 = vadd.f32 1.0, %v10872_v48  ;;  %v14944_v58 = vpop.eup %10873  ;;  %vm8313_vm1 = vcmp.eq.f32.partialorder %v8312_v2, 8.507059e+37 }
 0xe98   : > { %v8566_v22 = vmul.f32 %v8550_v37, %v8227_v55  ;;  %vm8478_vm3 = vcmp.eq.f32.partialorder %v8477_v53, 8.507059e+37  ;;  %v8451_v61 = vsel %vm8448_vm12, %v8450_v10, %v8446_v62  ;;  %v8304_v49 = vmul.f32 %v14944_v58, %v14930_v24 }
 0xe99   : > { %v8481_v39 = vsel %vm8478_vm3, %v8480_v3, %v8476_v0  ;;  %10875 = vrcp.f32 %v14932_v7  ;;  %v8552_v35 = vmul.f32 %v8451_v61, %v14851_v11  ;;  %vm8309_vm13 = vweird.f32 %v14944_v58 }
 0xe9a   : > { %v8578_v56 = vpack.c.bf16 %v8566_v22, %v8564_v33  ;;  %v8554_v29 = vmul.f32 %v8481_v39, %v14859_v47  ;;  %10877 = vpow2.f32 %v9767_v14  ;;  %v9951_v47 = vld [vmem:[%s11607_s11 + $0x10] sm:$0xff]  ;;  %v14962_v33 = vadd.f32 %v8142_v63, %v14870_v32  ;;  %vm14992_vm5 = vmor %vm8308_vm11, %vm8309_vm13 }
 0xe9b   : > { %10879 = vpow2.f32 %v9769_v45  ;;  %v8568_v42 = vmul.f32 %v8552_v35, %v8230_v59  ;;  %8720 = vmatpush.bf16.msra.mxu3 %v9951_v47  ;;  %v8305_v22 = vsub.f32 1.0, %v8304_v49  ;;  %v8344_v61 = vand.u32 2147483648, %v14932_v7 }
 0xe9c   : > { %8757 = vmatmul.bf16.gmra.mxu0 %v8578_v56  ;;  %v8570_v40 = vmul.f32 %v8554_v29, %v8232_v43  ;;  %v8144_v25 = vpop.f32.mrf.mxu3  ;;  %v9771_v57 = vmul.f32 -1.442695, %v14962_v33  ;;  %vm8338_vm15 = vweird.f32 %v14932_v7  ;;  %v8342_v29 = vand.u32 2147483647, %v14932_v7 }
 0xe9d   : > { %v14966_v17 = vadd.f32 %v8144_v25, %v14870_v32  ;;  %v8306_v20 = vmul.f32 %v14944_v58, %v8305_v22  ;;  %v8345_v47 = vor.u32 1.1754944e-38, %v8344_v61 }
 0xe9e   : > { %v8580_v52 = vpack.c.bf16 %v8570_v40, %v8568_v42  ;;  %vm8343_vm2 = vcmp.eq.f32.partialorder %v8342_v29, 8.507059e+37 }
 0xe9f   : > { %v14946_v13 = vpop.eup %10875  ;;  %8721 = vmatpush.bf16.msra.mxu3 %v9950_v26  ;;  %v9773_v53 = vmul.f32 -1.442695, %v14966_v17  ;;  %v8307_v10 = vadd.f32 %v14944_v58, %v8306_v20 }
 0xea0   : > { %v10878_v9 = vpop.eup %10877  ;;  %v8334_v5 = vmul.f32 %v14946_v13, %v14932_v7  ;;  %vm8339_vm14 = vweird.f32 %v14946_v13 }
 0xea1   : > { %v10880_v11 = vpop.eup %10879  ;;  %v14956_v55 = vadd.f32 1.0, %v10878_v9  ;;  %vm15001_vm0 = vmor %vm8338_vm15, %vm8339_vm14  ;;  %v15014_v9 = vperm.slane %v14817_v31, 2 }
 0xea2   : > { %v14959_v34 = vadd.f32 1.0, %v10880_v11  ;;  %v8335_v38 = vsub.f32 1.0, %v8334_v5 }
 0xea3   : > { %8722 = vmatpush.bf16.msra.mxu3 %v9949_v18  ;;  %vm8368_vm4 = vweird.f32 %v14956_v55 }
 0xea4   : > { %v8336_v51 = vmul.f32 %v14946_v13, %v8335_v38  ;;  %vm8398_vm3 = vweird.f32 %v14959_v34 }
 0xea6   : > { %v8337_v39 = vadd.f32 %v14946_v13, %v8336_v51 }
 0xea8   : > { %v8341_v7 = vsel %vm15001_vm0, %v14946_v13, %v8337_v39 }
 0xeac   : > { %8762 = vmatmul.bf16.gmra.mxu0 %v8580_v52 }
 0xead   : > { %v8176_v28 = vpop.f32.mrf.mxu1 }
 0xeae   : > { %v14954_v37 = vadd.f32 %v8176_v28, %v14823_v27  ;;  %v8346_v28 = vsel %vm8343_vm2, %v8345_v47, %v8341_v7  ;;  %v8404_v7 = vand.u32 2147483648, %v14959_v34 }
 0xeb0   : > { %v9776_v44 = vmul.f32 -1.442695, %v14954_v37 }
 0xeb2   : > { %10881 = vpow2.f32 %v9776_v44 }
 0xeb3   : > { %10883 = vrcp.f32 %v14956_v55  ;;  %v8147_v56 = vpop.f32.mrf.mxu3 }
 0xeb4   : > { %10885 = vrcp.f32 %v14959_v34  ;;  %v15019_v49 = vadd.f32 %v8147_v56, %v14870_v32  ;;  %v8545_v56 = vmul.f32 %v8346_v28, %v14888_v15  ;;  %v8234_v15 = vpop.f32.mrf.mxu2 }
 0xeb5   : > { %v8178_v16 = vpop.f32.mrf.mxu1  ;;  %10887 = vpow2.f32 %v9771_v57 }
 0xeb6   : > { %v14975_v36 = vadd.f32 %v8178_v16, %v14823_v27  ;;  %10889 = vpow2.f32 %v9773_v53  ;;  %v8314_v27 = vand.u32 2147483648, %v14930_v24  ;;  %v8311_v24 = vsel %vm14992_vm5, %v14944_v58, %v8307_v10 }
 0xeb7   : > { %v9775_v20 = vmul.f32 -1.442695, %v15019_v49  ;;  %v8374_v10 = vand.u32 2147483648, %v14956_v55 }
 0xeb8   : > { %v10882_v0 = vpop.eup %10881  ;;  %v9778_v48 = vmul.f32 -1.442695, %v14975_v36  ;;  %v8315_v40 = vor.u32 1.1754944e-38, %v8314_v27 }
 0xeb9   : > { %v14978_v3 = vpop.eup %10883  ;;  %v14981_v62 = vadd.f32 1.0, %v10882_v0 }
 0xeba   : > { %v14983_v23 = vpop.eup %10885  ;;  %10891 = vpow2.f32 %v9778_v48  ;;  %v8364_v45 = vmul.f32 %v14978_v3, %v14956_v55  ;;  %v8316_v25 = vsel %vm8313_vm1, %v8315_v40, %v8311_v24  ;;  %vm8369_vm6 = vweird.f32 %v14978_v3 }
 0xebb   : > { %10893 = vrcp.f32 %v14981_v62  ;;  %v8394_v12 = vmul.f32 %v14983_v23, %v14959_v34  ;;  %v10888_v43 = vpop.eup %10887  ;;  %v8149_v42 = vpop.f32.mrf.mxu3  ;;  %v8543_v53 = vmul.f32 %v8316_v25, %v14875_v46  ;;  %vm8399_vm7 = vweird.f32 %v14983_v23  ;;  %vm15055_vm9 = vmor %vm8368_vm4, %vm8369_vm6 }
 0xebc   : > { %v10890_v59 = vpop.eup %10889  ;;  %v8365_v26 = vsub.f32 1.0, %v8364_v45  ;;  %v15021_v13 = vadd.f32 1.0, %v10888_v43  ;;  %v15028_v44 = vadd.f32 %v8149_v42, %v14870_v32  ;;  %v8509_v29 = vand.u32 2147483648, %v14981_v62  ;;  %vm15077_vm13 = vmor %vm8398_vm3, %vm8399_vm7 }
 0xebd   : > { %v8190_v35 = vpop.f32.mrf.mxu1  ;;  %v8395_v58 = vsub.f32 1.0, %v8394_v12  ;;  %v15030_v31 = vadd.f32 1.0, %v10890_v59  ;;  %vm8503_vm10 = vweird.f32 %v14981_v62  ;;  %v8507_v12 = vand.u32 2147483647, %v14981_v62 }
 0xebe   : > { %v8366_v22 = vmul.f32 %v14978_v3, %v8365_v26  ;;  %v8191_v57 = vadd.f32 %v8190_v35, %v15014_v9  ;;  %v9777_v0 = vmul.f32 -1.442695, %v15028_v44  ;;  %v8372_v24 = vand.u32 2147483647, %v14956_v55 }
 0xebf   : > { %v8396_v16 = vmul.f32 %v14983_v23, %v8395_v58  ;;  %v8402_v55 = vand.u32 2147483647, %v14959_v34  ;;  %v8510_v58 = vor.u32 1.1754944e-38, %v8509_v29  ;;  %vm8508_vm14 = vcmp.eq.f32.partialorder %v8507_v12, 8.507059e+37 }
 0xec0   : > { %v10892_v52 = vpop.eup %10891  ;;  %v8367_v46 = vadd.f32 %v14978_v3, %v8366_v22  ;;  %v8559_v39 = vmul.f32 %v8543_v53, %v8191_v57  ;;  %v8405_v57 = vor.u32 1.1754944e-38, %v8404_v7  ;;  %vm8373_vm5 = vcmp.eq.f32.partialorder %v8372_v24, 8.507059e+37 }
 0xec1   : > { %v15016_v11 = vpop.eup %10893  ;;  %v15025_v18 = vadd.f32 1.0, %v10892_v52  ;;  %v8397_v2 = vadd.f32 %v14983_v23, %v8396_v16  ;;  %vm8403_vm15 = vcmp.eq.f32.partialorder %v8402_v55, 8.507059e+37  ;;  %vm8428_vm7 = vweird.f32 %v15021_v13 }
 0xec2   : > { %v8499_v5 = vmul.f32 %v15016_v11, %v14981_v62  ;;  %vm8504_vm8 = vweird.f32 %v15016_v11  ;;  %v8375_v62 = vor.u32 1.1754944e-38, %v8374_v10  ;;  %v8371_v25 = vsel %vm15055_vm9, %v14978_v3, %v8367_v46 }
 0xec3   : > { %10895 = vrcp.f32 %v15025_v18  ;;  %vm15069_vm12 = vmor %vm8503_vm10, %vm8504_vm8  ;;  %v8401_v28 = vsel %vm15077_vm13, %v14983_v23, %v8397_v2  ;;  %vm8533_vm0 = vweird.f32 %v15025_v18  ;;  %vm8458_vm9 = vweird.f32 %v15030_v31 }
 0xec4   : > { %v8500_v38 = vsub.f32 1.0, %v8499_v5  ;;  %10897 = vrcp.f32 %v15021_v13  ;;  %v8539_v5 = vand.u32 2147483648, %v15025_v18  ;;  %v8376_v16 = vsel %vm8373_vm5, %v8375_v62, %v8371_v25 }
 0xec5   : > { %v8192_v51 = vpop.f32.mrf.mxu1  ;;  %10899 = vrcp.f32 %v15030_v31  ;;  %v8547_v12 = vmul.f32 %v8376_v16, %v14923_v19  ;;  %v8432_v25 = vand.u32 2147483647, %v15021_v13 }
 0xec6   : > { %v8501_v32 = vmul.f32 %v15016_v11, %v8500_v38  ;;  %v8193_v48 = vadd.f32 %v8192_v51, %v15014_v9  ;;  %10901 = vpow2.f32 %v9775_v20  ;;  %v8537_v38 = vand.u32 2147483647, %v15025_v18 }
 0xec7   : > { %10903 = vpow2.f32 %v9777_v0  ;;  %v8406_v20 = vsel %vm8403_vm15, %v8405_v57, %v8401_v28  ;;  %v8236_v0 = vpop.f32.mrf.mxu2  ;;  %v8462_v28 = vand.u32 2147483647, %v15030_v31  ;;  %vm8433_vm3 = vcmp.eq.f32.partialorder %v8432_v25, 8.507059e+37 }
 0xec8   : > { %v8561_v27 = vmul.f32 %v8545_v56, %v8193_v48  ;;  %v8502_v61 = vadd.f32 %v15016_v11, %v8501_v32  ;;  %v8540_v32 = vor.u32 1.1754944e-38, %v8539_v5  ;;  %vm8538_vm2 = vcmp.eq.f32.partialorder %v8537_v38, 8.507059e+37 }
 0xec9   : > { %v10896_v14 = vpop.eup %10895 }
 0xeca   : > { %v8575_v45 = vpack.c.bf16 %v8561_v27, %v8559_v39  ;;  %v8529_v35 = vmul.f32 %v10896_v14, %v15025_v18  ;;  %v15062_v43 = vpop.eup %10897  ;;  %v8506_v42 = vsel %vm15069_vm12, %v15016_v11, %v8502_v61  ;;  %vm8534_vm11 = vweird.f32 %v10896_v14 }
 0xecb   : > { %v15073_v40 = vpop.eup %10899  ;;  %v8424_v53 = vmul.f32 %v15062_v43, %v15021_v13  ;;  %v8511_v56 = vsel %vm8508_vm14, %v8510_v58, %v8506_v42  ;;  %vm8535_vm1 = vmor %vm8533_vm0, %vm8534_vm11  ;;  %v8235_v18 = vadd.f32 %v8234_v15, %v14839_v41  ;;  %vm8429_vm4 = vweird.f32 %v15062_v43 }
 0xecc   : > { %8723 = vmatmul.bf16.vlgmr.msra.gmra.mxu3 %v8575_v45  ;;  %v8530_v52 = vsub.f32 1.0, %v8529_v35  ;;  %v10902_v22 = vpop.eup %10901  ;;  %v8454_v3 = vmul.f32 %v15073_v40, %v15030_v31  ;;  %v8556_v48 = vmul.f32 %v8511_v56, %v14954_v37  ;;  %v8237_v45 = vadd.f32 %v8236_v0, %v14839_v41  ;;  %vm8430_vm8 = vmor %vm8428_vm7, %vm8429_vm4 }
 0xecd   : > { %v8195_v26 = vpop.f32.mrf.mxu1  ;;  %v10904_v11 = vpop.eup %10903  ;;  %v15098_v51 = vadd.f32 1.0, %v10902_v22  ;;  %v8425_v39 = vsub.f32 1.0, %v8424_v53  ;;  %v8549_v37 = vmul.f32 %v8406_v20, %v14927_v60  ;;  %vm8459_vm6 = vweird.f32 %v15073_v40 }
 0xece   : > { %v8531_v34 = vmul.f32 %v10896_v14, %v8530_v52  ;;  %v15101_v46 = vadd.f32 1.0, %v10904_v11  ;;  %v8455_v27 = vsub.f32 1.0, %v8454_v3  ;;  %v8196_v2 = vadd.f32 %v8195_v26, %v15014_v9  ;;  %vm8460_vm10 = vmor %vm8458_vm9, %vm8459_vm6 }
 0xecf   : > { %10905 = vrcp.f32 %v15098_v51  ;;  %v8572_v35 = vmul.f32 %v8556_v48, %v8235_v18  ;;  %v8426_v7 = vmul.f32 %v15062_v43, %v8425_v39  ;;  %v8434_v42 = vand.u32 2147483648, %v15021_v13 }
 0xed0   : > { %v8532_v23 = vadd.f32 %v10896_v14, %v8531_v34  ;;  %10907 = vrcp.f32 %v15101_v46  ;;  %v8456_v15 = vmul.f32 %v15073_v40, %v8455_v27  ;;  %v8464_v52 = vand.u32 2147483648, %v15030_v31 }
 0xed1   : > { %v8427_v60 = vadd.f32 %v15062_v43, %v8426_v7  ;;  %v8435_v38 = vor.u32 1.1754944e-38, %v8434_v42  ;;  %vm8463_vm12 = vcmp.eq.f32.partialorder %v8462_v28, 8.507059e+37  ;;  %vm8488_vm11 = vweird.f32 %v15098_v51 }
 0xed2   : > { %v8536_v10 = vsel %vm8535_vm1, %v10896_v14, %v8532_v23  ;;  %v8457_v47 = vadd.f32 %v15073_v40, %v8456_v15  ;;  %v8465_v11 = vor.u32 1.1754944e-38, %v8464_v52  ;;  %v8494_v27 = vand.u32 2147483648, %v15098_v51 }
 0xed3   : > { %v8541_v61 = vsel %vm8538_vm2, %v8540_v32, %v8536_v10  ;;  %v8431_v58 = vsel %vm8430_vm8, %v15062_v43, %v8427_v60  ;;  %vm8518_vm15 = vweird.f32 %v15101_v46  ;;  %v10280_v60 = vld [vmem:[%s15692_s6] ss:$0 sm:$0xff] }
 0xed4   : > { %v8558_v29 = vmul.f32 %v8541_v61, %v14975_v36  ;;  %v8563_v36 = vmul.f32 %v8547_v12, %v8196_v2  ;;  %v8461_v5 = vsel %vm8460_vm10, %v15073_v40, %v8457_v47  ;;  %v8436_v57 = vsel %vm8433_vm3, %v8435_v38, %v8431_v58 }
 0xed5   : > { %v8197_v63 = vpop.f32.mrf.mxu1  ;;  %v10906_v19 = vpop.eup %10905  ;;  %v8466_v53 = vsel %vm8463_vm12, %v8465_v11, %v8461_v5  ;;  %v8551_v23 = vmul.f32 %v8436_v57, %v14962_v33  ;;  %v8524_v33 = vand.u32 2147483648, %v15101_v46  ;;  %v8522_v2 = vand.u32 2147483647, %v15101_v46 }
 0xed6   : > { %v8198_v14 = vadd.f32 %v8197_v63, %v15014_v9  ;;  %v8574_v24 = vmul.f32 %v8558_v29, %v8237_v45  ;;  %v10908_v55 = vpop.eup %10907  ;;  %v8484_v22 = vmul.f32 %v10906_v19, %v15098_v51  ;;  %v8553_v43 = vmul.f32 %v8466_v53, %v14966_v17 }
 0xed7   : > { %v8514_v34 = vmul.f32 %v10908_v55, %v15101_v46  ;;  %vm8489_vm13 = vweird.f32 %v10906_v19  ;;  %vm8519_vm14 = vweird.f32 %v10908_v55  ;;  %v8492_v17 = vand.u32 2147483647, %v15098_v51 }
 0xed8   : > { %v8565_v59 = vmul.f32 %v8549_v37, %v8198_v14  ;;  %v8582_v41 = vpack.c.bf16 %v8574_v24, %v8572_v35  ;;  %v8485_v13 = vsub.f32 1.0, %v8484_v22  ;;  %vm8490_vm5 = vmor %vm8488_vm11, %vm8489_vm13  ;;  %v8495_v45 = vor.u32 1.1754944e-38, %v8494_v27 }
 0xed9   : > { %v8515_v3 = vsub.f32 1.0, %v8514_v34  ;;  %vm8520_vm0 = vmor %vm8518_vm15, %vm8519_vm14  ;;  %v8525_v63 = vor.u32 1.1754944e-38, %v8524_v33  ;;  %vm8493_vm1 = vcmp.eq.f32.partialorder %v8492_v17, 8.507059e+37  ;;  %vm8523_vm2 = vcmp.eq.f32.partialorder %v8522_v2, 8.507059e+37 }
 0xeda   : > { %v8577_v62 = vpack.c.bf16 %v8565_v59, %v8563_v36  ;;  %8767 = vmatmul.bf16.gmra.mxu0 %v8582_v41  ;;  %v8486_v16 = vmul.f32 %v10906_v19, %v8485_v13  ;;  %v8753_v59 = vpop.f32.mrf.mxu0  ;;  %v10279_v41 = vld [vmem:[%s15690_s8] ss:$0 sm:$0xff]  ;;  %s15693_s8 = sld [smem:[#allocation89_spill]] (!%p9843_p3) }
 0xedb   : > { %v8516_v20 = vmul.f32 %v10908_v55, %v8515_v3 }
 0xedc   : > { %8728 = vmatmul.bf16.gmra.mxu3 %v8577_v62  ;;  %v8487_v10 = vadd.f32 %v10906_v19, %v8486_v16 }
 0xedd   : > { %v8200_v26 = vpop.f32.mrf.mxu1  ;;  %v8517_v39 = vadd.f32 %v10908_v55, %v8516_v20 }
 0xede   : > { %v8201_v56 = vadd.f32 %v8200_v26, %v15014_v9  ;;  %v8491_v18 = vsel %vm8490_vm5, %v10906_v19, %v8487_v10 }
 0xedf   : > { %v8521_v29 = vsel %vm8520_vm0, %v10908_v55, %v8517_v39  ;;  %v8496_v12 = vsel %vm8493_vm1, %v8495_v45, %v8491_v18 }
 0xee0   : > { %v8567_v32 = vmul.f32 %v8551_v23, %v8201_v56  ;;  %v8526_v37 = vsel %vm8523_vm2, %v8525_v63, %v8521_v29  ;;  %v8555_v51 = vmul.f32 %v8496_v12, %v15019_v49 }
 0xee1   : > { %v8557_v24 = vmul.f32 %v8526_v37, %v15028_v44 }
 0xee2   : > { %v8755_v47 = vpop.f32.mrf.mxu0 }
 0xee5   : > { %v8202_v31 = vpop.f32.mrf.mxu1 }
 0xee6   : > { %v8203_v40 = vadd.f32 %v8202_v31, %v15014_v9 }
 0xee8   : > { %v8569_v0 = vmul.f32 %v8553_v43, %v8203_v40 }
 0xeea   : > { %v8579_v48 = vpack.c.bf16 %v8569_v0, %v8567_v32 }
 0xeec   : > { %8733 = vmatmul.bf16.gmra.mxu3 %v8579_v48 }
 0xeed   : > { %v8205_v61 = vpop.f32.mrf.mxu1 }
 0xeee   : > { %v8206_v14 = vadd.f32 %v8205_v61, %v15014_v9 }
 0xef0   : > { %v8571_v7 = vmul.f32 %v8555_v51, %v8206_v14 }
 0xef5   : > { %v8207_v35 = vpop.f32.mrf.mxu1 }
 0xef6   : > { %v8208_v46 = vadd.f32 %v8207_v35, %v15014_v9 }
 0xef8   : > { %v8573_v15 = vmul.f32 %v8557_v24, %v8208_v46 }
 0xefa   : > { %v8581_v36 = vpack.c.bf16 %v8573_v15, %v8571_v7 }
 0xefc   : > { %8738 = vmatmul.bf16.gmra.mxu3 %v8581_v36 }
 0xf19   : > { %v8758_v52 = vpop.f32.mrf.mxu0 }
 0xf21   : > { %v8760_v22 = vpop.f32.mrf.mxu0 }
 0xf29   : > { %v8763_v13 = vpop.f32.mrf.mxu0 }
 0xf31   : > { %v8765_v40 = vpop.f32.mrf.mxu0 }
 0xf4f   : > { %v8724_v62 = vpop.f32.mrf.mxu3 }
 0xf50   : > { %v8725_v19 = vadd.f32 %v10279_v41, %v8724_v62 }
 0xf52   : > { %v8754_v49 = vadd.f32 %v8753_v59, %v8725_v19 }
 0xf54   : > { %v8777_v55 = vmul.f32 %v10280_v60, %v8754_v49 }
 0xf56   : > { %v15150_v44 = vadd.f32 %v8777_v55, %v14653_v8 }
 0xf57   : > { %v8726_v9 = vpop.f32.mrf.mxu3  ;;  %v8768_v48 = vpop.f32.mrf.mxu0 }
 0xf58   : > { %8793 = vst [vmem:[%s15488_s13] sm:$0xff] %v15150_v44  ;;  %v8727_v42 = vadd.f32 %v10279_v41, %v8726_v9 }
 0xf5a   : > { %v8756_v26 = vadd.f32 %v8755_v47, %v8727_v42 }
 0xf5c   : > { %v8778_v25 = vmul.f32 %v10280_v60, %v8756_v26 }
 0xf5e   : > { %v15157_v28 = vadd.f32 %v8778_v25, %v14666_v30 }
 0xf5f   : > { %v8729_v58 = vpop.f32.mrf.mxu3  ;;  %v8770_v17 = vpop.f32.mrf.mxu0 }
 0xf60   : > { %8794 = vst [vmem:[%s15488_s13 + $0x8] sm:$0xff] %v15157_v28  ;;  %v8730_v8 = vadd.f32 %v10279_v41, %v8729_v58 }
 0xf62   : > { %v8759_v5 = vadd.f32 %v8758_v52, %v8730_v8 }
 0xf64   : > { %v8779_v34 = vmul.f32 %v10280_v60, %v8759_v5 }
 0xf66   : > { %v15164_v38 = vadd.f32 %v8779_v34, %v14675_v4 }
 0xf67   : > { %v8731_v11 = vpop.f32.mrf.mxu3 }
 0xf68   : > { %8795 = vst [vmem:[%s15488_s13 + $0x10] sm:$0xff] %v15164_v38  ;;  %v8732_v30 = vadd.f32 %v10279_v41, %v8731_v11 }
 0xf6a   : > { %v8761_v57 = vadd.f32 %v8760_v22, %v8732_v30 }
 0xf6c   : > { %v8780_v53 = vmul.f32 %v10280_v60, %v8761_v57 }
 0xf6e   : > { %v15171_v3 = vadd.f32 %v8780_v53, %v14694_v21 }
 0xf6f   : > { %v8734_v56 = vpop.f32.mrf.mxu3 }
 0xf70   : > { %8796 = vst [vmem:[%s15488_s13 + $0x18] sm:$0xff] %v15171_v3  ;;  %v8735_v4 = vadd.f32 %v10279_v41, %v8734_v56 }
 0xf72   : > { %v8764_v31 = vadd.f32 %v8763_v13, %v8735_v4 }
 0xf74   : > { %v8781_v23 = vmul.f32 %v10280_v60, %v8764_v31 }
 0xf76   : > { %v15178_v43 = vadd.f32 %v8781_v23, %v14685_v1 }
 0xf77   : > { %v8736_v16 = vpop.f32.mrf.mxu3 }
 0xf78   : > { %8797 = vst [vmem:[%s15488_s13 + $0x20] sm:$0xff] %v15178_v43  ;;  %v8737_v21 = vadd.f32 %v10279_v41, %v8736_v16 }
 0xf7a   : > { %v8766_v20 = vadd.f32 %v8765_v40, %v8737_v21 }
 0xf7c   : > { %v8782_v32 = vmul.f32 %v10280_v60, %v8766_v20 }
 0xf7e   : > { %v15185_v0 = vadd.f32 %v8782_v32, %v14703_v6 }
 0xf7f   : > { %v8739_v10 = vpop.f32.mrf.mxu3 }
 0xf80   : > { %8798 = vst [vmem:[%s15488_s13 + $0x28] sm:$0xff] %v15185_v0  ;;  %v8740_v1 = vadd.f32 %v10279_v41, %v8739_v10 }
 0xf82   : > { %v8769_v39 = vadd.f32 %v8768_v48, %v8740_v1 }
 0xf84   : > { %v8783_v27 = vmul.f32 %v10280_v60, %v8769_v39 }
 0xf86   : > { %v15192_v33 = vadd.f32 %v8783_v27, %v14761_v54 }
 0xf87   : > { %v8741_v61 = vpop.f32.mrf.mxu3 }
 0xf88   : > { %8799 = vst [vmem:[%s15488_s13 + $0x30] sm:$0xff] %v15192_v33  ;;  %v8742_v6 = vadd.f32 %v10279_v41, %v8741_v61 }
 0xf8a   : > { %v8771_v2 = vadd.f32 %v8770_v17, %v8742_v6 }
 0xf8c   : > { %v8784_v18 = vmul.f32 %v10280_v60, %v8771_v2  ;;  %8804 = sbr.rel (%p9843_p3) target bundleno = 4285 (0x10bd), region = 124 }
 0xf8e   : > { %v15199_v29 = vadd.f32 %v8784_v18, %v14774_v50 }
 0xf90   : > { %8800 = vst [vmem:[%s15488_s13 + $0x38] sm:$0xff] %v15199_v29 }
 0xf91   : > { %v8811_v54 = vmul.f32 %v15192_v33, %v15192_v33  ;;  %v8809_v45 = vmul.f32 %v15178_v43, %v15178_v43  ;;  %v8805_v63 = vmul.f32 %v15150_v44, %v15150_v44  ;;  %v8812_v50 = vmul.f32 %v15199_v29, %v15199_v29  ;;  %v9972_v51 = vld [vmem:[%s15693_s8 + $0x38] sm:$0xff]  ;;  %v9971_v24 = vld [vmem:[%s15693_s8 + $0x30] sm:$0xff]  ;;  %v9970_v46 = vld [vmem:[%s15693_s8 + $0x28] sm:$0xff] }
 0xf92   : > { %v8810_v12 = vmul.f32 %v15185_v0, %v15185_v0  ;;  %v8806_v37 = vmul.f32 %v15157_v28, %v15157_v28  ;;  %v8808_v14 = vmul.f32 %v15171_v3, %v15171_v3  ;;  %v8807_v35 = vmul.f32 %v15164_v38, %v15164_v38  ;;  %9017 = vmatpush.bf16.msra.mxu0 %v9972_v51  ;;  %v9969_v7 = vld [vmem:[%s15693_s8 + $0x20] sm:$0xff]  ;;  %v9968_v15 = vld [vmem:[%s15693_s8 + $0x18] sm:$0xff]  ;;  %v9967_v36 = vld [vmem:[%s15693_s8 + $0x10] sm:$0xff] }
 0xf93   : > { %8825 = vadd.xlane.f32.xlu1 %v8811_v54  ;;  %8821 = vadd.xlane.f32.xlu0 %v8809_v45  ;;  %v9966_v59 = vld [vmem:[%s15693_s8 + $0x8] sm:$0xff]  ;;  %v15694_v19 = vld [vmem:[#allocation29_spill] sm:$0xff]  ;;  %v9965_v9 = vld [vmem:[%s15693_s8] sm:$0xff] }
 0xf94   : > { %8813 = vadd.xlane.f32.xlu2 %v8805_v63  ;;  %9982 = vmatpush.bf16.msra.mxu2 %v9972_v51 }
 0xf95   : > { %9983 = vmatpush.bf16.msra.mxu3 %v9972_v51  ;;  %9981 = vmatpush.bf16.msra.mxu1 %v9972_v51 }
 0xf96   : > { %9018 = vmatpush.bf16.msra.mxu0 %v9971_v24 }
 0xf98   : > { %9985 = vmatpush.bf16.msra.mxu2 %v9971_v24 }
 0xf99   : > { %9986 = vmatpush.bf16.msra.mxu3 %v9971_v24  ;;  %9984 = vmatpush.bf16.msra.mxu1 %v9971_v24 }
 0xf9a   : > { %9019 = vmatpush.bf16.msra.mxu0 %v9970_v46 }
 0xf9b   : > { %8827 = vadd.xlane.f32.xlu1 %v8812_v50  ;;  %8823 = vadd.xlane.f32.xlu0 %v8810_v12 }
 0xf9c   : > { %8815 = vadd.xlane.f32.xlu2 %v8806_v37  ;;  %9988 = vmatpush.bf16.msra.mxu2 %v9970_v46 }
 0xf9d   : > { %9989 = vmatpush.bf16.msra.mxu3 %v9970_v46  ;;  %9987 = vmatpush.bf16.msra.mxu1 %v9970_v46 }
 0xf9e   : > { %9020 = vmatpush.bf16.msra.mxu0 %v9969_v7 }
 0xfa0   : > { %9991 = vmatpush.bf16.msra.mxu2 %v9969_v7 }
 0xfa1   : > { %9992 = vmatpush.bf16.msra.mxu3 %v9969_v7  ;;  %9990 = vmatpush.bf16.msra.mxu1 %v9969_v7 }
 0xfa2   : > { %9021 = vmatpush.bf16.msra.mxu0 %v9968_v15 }
 0xfa3   : > { %8819 = vadd.xlane.f32.xlu1 %v8808_v14  ;;  %8817 = vadd.xlane.f32.xlu0 %v8807_v35 }
 0xfa4   : > { %9994 = vmatpush.bf16.msra.mxu2 %v9968_v15 }
 0xfa5   : > { %9995 = vmatpush.bf16.msra.mxu3 %v9968_v15  ;;  %9993 = vmatpush.bf16.msra.mxu1 %v9968_v15 }
 0xfa6   : > { %9022 = vmatpush.bf16.msra.mxu0 %v9967_v36 }
 0xfa8   : > { %9997 = vmatpush.bf16.msra.mxu2 %v9967_v36 }
 0xfa9   : > { %9998 = vmatpush.bf16.msra.mxu3 %v9967_v36  ;;  %9996 = vmatpush.bf16.msra.mxu1 %v9967_v36 }
 0xfaa   : > { %9023 = vmatpush.bf16.msra.mxu0 %v9966_v59 }
 0xfac   : > { %10000 = vmatpush.bf16.msra.mxu2 %v9966_v59 }
 0xfad   : > { %10001 = vmatpush.bf16.msra.mxu3 %v9966_v59  ;;  %9999 = vmatpush.bf16.msra.mxu1 %v9966_v59 }
 0xfae   : > { %9024 = vmatpush.bf16.msra.mxu0 %v9965_v9 }
 0xfb0   : > { %10003 = vmatpush.bf16.msra.mxu2 %v9965_v9 }
 0xfb1   : > { %10004 = vmatpush.bf16.msra.mxu3 %v9965_v9  ;;  %10002 = vmatpush.bf16.msra.mxu1 %v9965_v9 }
0x1006   : > { %v8826_v41 = vpop.xlane.xlu1 %8825  ;;  %v8822_v62 = vpop.xlane.xlu0 %8821 }
0x1007   : > { %v8835_v60 = vmul.f32 %v8826_v41, %v15694_v19  ;;  %v8833_v47 = vmul.f32 %v8822_v62, %v15694_v19  ;;  %v8814_v49 = vpop.xlane.xlu2 %8813 }
0x1008   : > { %v8829_v55 = vmul.f32 %v8814_v49, %v15694_v19 }
0x1009   : > { %v8843_v42 = vadd.f32 1.1920929e-07, %v8835_v60  ;;  %v15249_v52 = vadd.f32 1.1920929e-07, %v8833_v47 }
0x100a   : > { %v15251_v26 = vadd.f32 1.1920929e-07, %v8829_v55 }
0x100b   : > { %10919 = vrsqrt.f32 %v8843_v42  ;;  %vm8911_vm6 = vweird.f32 %v8843_v42  ;;  %vm8891_vm3 = vweird.f32 %v15249_v52 }
0x100c   : > { %10921 = vrsqrt.f32 %v15249_v52  ;;  %vm8851_vm7 = vweird.f32 %v15251_v26 }
0x100d   : > { %10923 = vrsqrt.f32 %v15251_v26 }
0x100e   : > { %v8828_v25 = vpop.xlane.xlu1 %8827  ;;  %v8824_v58 = vpop.xlane.xlu0 %8823 }
0x100f   : > { %v8836_v8 = vmul.f32 %v8828_v25, %v15694_v19  ;;  %v8834_v5 = vmul.f32 %v8824_v58, %v15694_v19  ;;  %v8816_v22 = vpop.xlane.xlu2 %8815 }
0x1010   : > { %v8830_v34 = vmul.f32 %v8816_v22, %v15694_v19 }
0x1011   : > { %v15258_v11 = vpop.eup %10919  ;;  %v15260_v30 = vadd.f32 1.1920929e-07, %v8836_v8  ;;  %v15262_v57 = vadd.f32 1.1920929e-07, %v8834_v5 }
0x1012   : > { %v15264_v53 = vpop.eup %10921  ;;  %v8906_v13 = vmul.f32 %v15258_v11, %v8843_v42  ;;  %v15267_v56 = vadd.f32 1.1920929e-07, %v8830_v34  ;;  %vm8912_vm4 = vweird.f32 %v15258_v11  ;;  %v10917_v42 = vld [vmem:[%s15701_s19] ss:$0 sm:$0xff] }
0x1013   : > { %v15269_v4 = vpop.eup %10923  ;;  %v8886_v31 = vmul.f32 %v15264_v53, %v15249_v52  ;;  %10925 = vrsqrt.f32 %v15260_v30  ;;  %vm15300_vm9 = vmor %vm8911_vm6, %vm8912_vm4  ;;  %vm8892_vm10 = vweird.f32 %v15264_v53  ;;  %vm8921_vm13 = vweird.f32 %v15260_v30 }
0x1014   : > { %v8907_v23 = vmul.f32 %v15258_v11, %v8906_v13  ;;  %v8846_v40 = vmul.f32 %v15269_v4, %v15251_v26  ;;  %10927 = vrsqrt.f32 %v15262_v57  ;;  %vm8852_vm8 = vweird.f32 %v15269_v4  ;;  %vm15318_vm14 = vmor %vm8891_vm3, %vm8892_vm10 }
0x1015   : > { %v8887_v16 = vmul.f32 %v15264_v53, %v8886_v31  ;;  %10929 = vrsqrt.f32 %v15267_v56  ;;  %vm15313_vm12 = vmor %vm8851_vm7, %vm8852_vm8  ;;  %vm8861_vm15 = vweird.f32 %v15267_v56  ;;  %vm8901_vm2 = vweird.f32 %v15262_v57 }
0x1016   : > { %v8908_v21 = vmul.f32 0.5, %v8907_v23  ;;  %v8847_v20 = vmul.f32 %v15269_v4, %v8846_v40  ;;  %v8820_v32 = vpop.xlane.xlu1 %8819  ;;  %v8818_v48 = vpop.xlane.xlu0 %8817 }
0x1017   : > { %v8888_v10 = vmul.f32 0.5, %v8887_v16  ;;  %v8832_v1 = vmul.f32 %v8820_v32, %v15694_v19  ;;  %v8831_v39 = vmul.f32 %v8818_v48, %v15694_v19 }
0x1018   : > { %v8909_v27 = vsub.f32 1.5, %v8908_v21  ;;  %v8848_v61 = vmul.f32 0.5, %v8847_v20 }
0x1019   : > { %v15283_v6 = vpop.eup %10925  ;;  %v8889_v17 = vsub.f32 1.5, %v8888_v10  ;;  %v15285_v2 = vadd.f32 1.1920929e-07, %v8832_v1  ;;  %v15287_v18 = vadd.f32 1.1920929e-07, %v8831_v39 }
0x101a   : > { %v10928_v54 = vpop.eup %10927  ;;  %v8849_v45 = vsub.f32 1.5, %v8848_v61  ;;  %v8916_v63 = vmul.f32 %v15283_v6, %v15260_v30  ;;  %v8910_v50 = vmul.f32 %v15258_v11, %v8909_v27  ;;  %vm8922_vm11 = vweird.f32 %v15283_v6 }
0x101b   : > { %v10930_v12 = vpop.eup %10929  ;;  %v8896_v37 = vmul.f32 %v10928_v54, %v15262_v57  ;;  %10931 = vrsqrt.f32 %v15285_v2  ;;  %v8890_v7 = vmul.f32 %v15264_v53, %v8889_v17  ;;  %vm8902_vm5 = vweird.f32 %v10928_v54  ;;  %vm15337_vm1 = vmor %vm8921_vm13, %vm8922_vm11 }
0x101c   : > { %v8917_v14 = vmul.f32 %v15283_v6, %v8916_v63  ;;  %v8856_v35 = vmul.f32 %v10930_v12, %v15267_v56  ;;  %10933 = vrsqrt.f32 %v15287_v18  ;;  %v8850_v46 = vmul.f32 %v15269_v4, %v8849_v45  ;;  %vm8903_vm4 = vmor %vm8901_vm2, %vm8902_vm5 }
0x101d   : > { %v8897_v24 = vmul.f32 %v10928_v54, %v8896_v37  ;;  %v8914_v59 = vsel %vm15300_vm9, %v15258_v11, %v8910_v50  ;;  %v8894_v52 = vsel %vm15318_vm14, %v15264_v53, %v8890_v7  ;;  %vm8862_vm0 = vweird.f32 %v10930_v12  ;;  %v10918_v37 = vld [vmem:[#allocation16] ss:$0 sm:$0xff] }
0x101e   : > { %v8918_v15 = vmul.f32 0.5, %v8917_v14  ;;  %v8857_v36 = vmul.f32 %v10930_v12, %v8856_v35  ;;  %v8854_v49 = vsel %vm15313_vm12, %v15269_v4, %v8850_v46  ;;  %v8931_v26 = vmul.f32 %v8914_v59, %v15192_v33  ;;  %vm8863_vm6 = vmor %vm8861_vm15, %vm8862_vm0 }
0x101f   : > { %v8898_v62 = vmul.f32 0.5, %v8897_v24  ;;  %v8925_v34 = vmul.f32 %v8854_v49, %v15150_v44  ;;  %v8929_v13 = vmul.f32 %v8894_v52, %v15178_v43  ;;  %vm8881_vm9 = vweird.f32 %v15285_v2 }
0x1020   : > { %v8919_v60 = vsub.f32 1.5, %v8918_v15  ;;  %v8858_v47 = vmul.f32 0.5, %v8857_v36  ;;  %v8943_v31 = vmul.f32 %v10917_v42, %v8931_v26  ;;  %vm8871_vm3 = vweird.f32 %v15287_v18 }
0x1021   : > { %v10932_v55 = vpop.eup %10931  ;;  %v8899_v9 = vsub.f32 1.5, %v8898_v62  ;;  %v8937_v32 = vmul.f32 %v10917_v42, %v8925_v34  ;;  %v8941_v48 = vmul.f32 %v10917_v42, %v8929_v13 }
0x1022   : > { %v10934_v25 = vpop.eup %10933  ;;  %v8859_v58 = vsub.f32 1.5, %v8858_v47  ;;  %v8876_v8 = vmul.f32 %v10932_v55, %v15285_v2  ;;  %v8920_v56 = vmul.f32 %v15283_v6, %v8919_v60  ;;  %vm8882_vm7 = vweird.f32 %v10932_v55 }
0x1023   : > { %v8866_v22 = vmul.f32 %v10934_v25, %v15287_v18  ;;  %v8900_v33 = vmul.f32 %v10928_v54, %v8899_v9  ;;  %vm8872_vm8 = vweird.f32 %v10934_v25  ;;  %vm8883_vm10 = vmor %vm8881_vm9, %vm8882_vm7 }
0x1024   : > { %v8860_v11 = vmul.f32 %v10930_v12, %v8859_v58  ;;  %v8877_v53 = vmul.f32 %v10932_v55, %v8876_v8  ;;  %v8924_v44 = vsel %vm15337_vm1, %v15283_v6, %v8920_v56  ;;  %vm8873_vm12 = vmor %vm8871_vm3, %vm8872_vm8 }
0x1025   : > { %v8867_v30 = vmul.f32 %v10934_v25, %v8866_v22  ;;  %v8904_v4 = vsel %vm8903_vm4, %v10928_v54, %v8900_v33  ;;  %v8932_v43 = vmul.f32 %v8924_v44, %v15199_v29 }
0x1026   : > { %v8878_v23 = vmul.f32 0.5, %v8877_v53  ;;  %v8864_v40 = vsel %vm8863_vm6, %v10930_v12, %v8860_v11  ;;  %v8930_v57 = vmul.f32 %v8904_v4, %v15185_v0 }
0x1027   : > { %v8868_v16 = vmul.f32 0.5, %v8867_v30  ;;  %v8926_v21 = vmul.f32 %v8864_v40, %v15157_v28  ;;  %v8944_v27 = vmul.f32 %v10917_v42, %v8932_v43 }
0x1028   : > { %v8879_v20 = vsub.f32 1.5, %v8878_v23  ;;  %v8942_v10 = vmul.f32 %v10917_v42, %v8930_v57 }
0x1029   : > { %v8869_v1 = vsub.f32 1.5, %v8868_v16  ;;  %v8938_v39 = vmul.f32 %v10917_v42, %v8926_v21  ;;  %v8948_v17 = vpack.c.bf16 %v8944_v27, %v8943_v31 }
0x102a   : > { %v8880_v61 = vmul.f32 %v10932_v55, %v8879_v20  ;;  %v8947_v0 = vpack.c.bf16 %v8942_v10, %v8941_v48 }
0x102b   : > { %v8870_v6 = vmul.f32 %v10934_v25, %v8869_v1  ;;  %v8945_v28 = vpack.c.bf16 %v8938_v39, %v8937_v32  ;;  %9040 = vmatmul.bf16.vlgmr.msra.gmra.mxu3 %v8948_v17 }
0x102c   : > { %9035 = vmatmul.bf16.vlgmr.msra.gmra.mxu2 %v8947_v0  ;;  %v8884_v29 = vsel %vm8883_vm10, %v10932_v55, %v8880_v61 }
0x102d   : > { %9025 = vmatmul.bf16.vlgmr.msra.gmra.mxu0 %v8945_v28  ;;  %v8874_v54 = vsel %vm8873_vm12, %v10934_v25, %v8870_v6  ;;  %v8928_v45 = vmul.f32 %v8884_v29, %v15171_v3 }
0x102e   : > { %v8927_v63 = vmul.f32 %v8874_v54, %v15164_v38 }
0x102f   : > { %v8940_v50 = vmul.f32 %v10917_v42, %v8928_v45 }
0x1030   : > { %v8939_v2 = vmul.f32 %v10917_v42, %v8927_v63 }
0x1032   : > { %v8946_v12 = vpack.c.bf16 %v8940_v50, %v8939_v2 }
0x1034   : > { %9030 = vmatmul.bf16.vlgmr.msra.gmra.mxu1 %v8946_v12 }
0x10aa   : > { %v9026_v14 = vpop.f32.mrf.mxu0 }
0x10ab   : > { %v9027_v35 = vadd.f32 %v10918_v37, %v9026_v14 }
0x10ad   : > { %9046 = vst [vmem:[#allocation17] sm:$0xff] %v9027_v35 }
0x10ae   : > { %v9041_v24 = vpop.f32.mrf.mxu3 }
0x10af   : > { %v9036_v18 = vpop.f32.mrf.mxu2  ;;  %v9042_v46 = vadd.f32 %v10918_v37, %v9041_v24 }
0x10b0   : > { %v9037_v51 = vadd.f32 %v10918_v37, %v9036_v18 }
0x10b1   : > { %v9031_v7 = vpop.f32.mrf.mxu1  ;;  %9052 = vst [vmem:[#allocation17 + $0x30] sm:$0xff] %v9042_v46 }
0x10b2   : > { %9050 = vst [vmem:[#allocation17 + $0x20] sm:$0xff] %v9037_v51  ;;  %v9028_v15 = vpop.f32.mrf.mxu0  ;;  %v9032_v36 = vadd.f32 %v10918_v37, %v9031_v7 }
0x10b3   : > { %v9029_v3 = vadd.f32 %v10918_v37, %v9028_v15 }
0x10b4   : > { %9048 = vst [vmem:[#allocation17 + $0x10] sm:$0xff] %v9032_v36 }
0x10b5   : > { %9047 = vst [vmem:[#allocation17 + $0x8] sm:$0xff] %v9029_v3 }
0x10b6   : > { %v9043_v41 = vpop.f32.mrf.mxu3 }
0x10b7   : > { %v9038_v38 = vpop.f32.mrf.mxu2  ;;  %v9044_v62 = vadd.f32 %v10918_v37, %v9043_v41 }
0x10b8   : > { %v9039_v59 = vadd.f32 %v10918_v37, %v9038_v38 }
0x10b9   : > { %v9033_v19 = vpop.f32.mrf.mxu1  ;;  %9053 = vst [vmem:[#allocation17 + $0x38] sm:$0xff] %v9044_v62 }
0x10ba   : > { %9051 = vst [vmem:[#allocation17 + $0x28] sm:$0xff] %v9039_v59  ;;  %v9034_v60 = vadd.f32 %v10918_v37, %v9033_v19 }
0x10bc   : > { %9049 = vst [vmem:[#allocation17 + $0x18] sm:$0xff] %v9034_v60 }
0x10bd PF: > { %p10067_p4 = scmp.eq.s32.totalorder %s11442_s27, 1  ;;  %s15704_s28 = sld [smem:[#allocation92_spill]] }
0x10be   : > { %s11325_s13 = smov [#allocation17]   ;;  %s11326_s11 = smov 128  }
0x10bf   : > { %s9071_s15 = sshll.u32 %s11325_s13, 4  ;;  %s11327_s0 = smov 8   ;;  %s9072_s15 = int_to_ptr.vmem [resolvable:$true] %s9071_s15 }
0x10c3   : > { %s9073_s24 = sshll.u32 %s15704_s28, 4  ;;  %s9074_s24 = int_to_ptr.hbm [resolvable:$true] %s9073_s24 }
0x10c4   : > { %10032 = dma.vmem_to_hbm [thread:$0]  (%p10067_p4), %s9072_s15, 1024, %s9074_s24, [#allocation4], %s11326_s11, %s11326_s11, %s11327_s0  }
0x10c5   : > { %11282 = dma.done.wait (%p10067_p4), [#allocation4], 1024  }
0x10c6   : > { %11284 = vsyncadd (%p10067_p4), [#allocation4], 4294966272 }
0x10c7 PF: > { %s15705_s6 = sld [smem:[#allocation26_spill]]  ;;  %s15709_s21 = smov %s11291_s22 }
0x10c8   : > { %s15706_s30 = sld [smem:[#allocation25_spill]]  ;;  %s15711_s24 = smov %s11303_s25 }
0x10c9   : > { %s15707_s23 = sld [smem:[#allocation28_spill]] }
0x10ca   : > { %s15708_s27 = sld [smem:[#allocation27_spill]] }
0x10cd   : > { %s43_s26 = sadd.s32 1, %s15705_s6  }
0x10ce   : > { %p40_p5 = scmp.ge.s32.totalorder %s43_s26, 4   ;;  %s15710_s22 = smov %s15706_s30 }
0x10d0   : > { %s15712_s25 = smov %s15708_s27  ;;  %42 = sbr.rel (!%p40_p5) target bundleno = 27 (0x1b), region = 239 }
0x10d5   :  { %9098 = vsyncpa [#allocation3], 1 }
0x10d6   :  { %9100 = vsyncpa [#allocation3 + $0x1], 1 }
0x10d7   :  { %9101 = vsyncpa [#allocation6], 1 }
0x10d8   :  { %9103 = vsyncpa [#allocation6 + $0x1], 1 }
0x10d9   :  { %9104 = vsyncpa [#allocation9], 1 }
0x10da   :  { %9106 = vsyncpa [#allocation9 + $0x1], 1 }
0x10db   :  { %9107 = vsyncpa [#allocation12], 1 }
0x10dc   :  { %9109 = vsyncpa [#allocation12 + $0x1], 1 }
0x10dd   :  { %9110 = vsyncpa [#allocation15], 1 }
0x10de   :  { %9112 = vsyncpa [#allocation15 + $0x1], 1 }
0x10df   :  { %9113 = vsyncpa [#allocation4], 1 }
0x10e0   :  { %9115 = vsyncpa [#allocation4 + $0x1], 1 }

</bundles_post_ra>
